<compile_context>
chip_gen: v7x
topology: tpu7x:2x2x1
jax: 0.10.0
libtpu: 0.0.40
codegen_flags: <defaults>
</compile_context>

<pallas_src>
import functools

import jax
import jax.numpy as jnp
from jax.experimental import pallas as pl
from jax.experimental.pallas import tpu as pltpu

_BN_EPS = 1e-5
_VMEM_LIMIT = 48 * 1024 * 1024   # conservative for v7x (64 MiB VMEM per TC)


def _ru(x, m):
    return (x + m - 1) // m * m


def _pick_tile(dim, candidates):
    for c in candidates:
        if dim % c == 0:
            return c
    return dim


# ----------------------------------------------------------------------------
# Pallas kernels
# ----------------------------------------------------------------------------
def _conv_mm_kernel(*refs, relu, has_res):
    """Tiled matmul + bias (+ residual) (+ ReLU); bf16 operands, f32 accum."""
    if has_res:
        a_ref, b_ref, bias_ref, r_ref, o_ref, acc_ref = refs
    else:
        a_ref, b_ref, bias_ref, o_ref, acc_ref = refs
        r_ref = None
    k = pl.program_id(2)

    @pl.when(k == 0)
    def _():
        acc_ref[...] = jnp.zeros_like(acc_ref)

    acc_ref[...] += jnp.dot(a_ref[...], b_ref[...],
                            preferred_element_type=jnp.float32)

    @pl.when(k == pl.num_programs(2) - 1)
    def _():
        out = acc_ref[...] + bias_ref[...]          # f32 epilogue (v5e-safe)
        if has_res:
            out = out + r_ref[...].astype(jnp.float32)
        if relu:
            out = jnp.maximum(out, 0.0)
        o_ref[...] = out.astype(o_ref.dtype)


def conv_matmul(a, w, bias, *, relu, residual=None):
    """act(a @ w + bias [+ residual]).

    a: (M, K) bf16, w: (K, Np) bf16 (K, Np multiples of 128),
    bias: (1, Np) f32, residual: (M, Np) bf16 or None.  Returns (M, Np) bf16.
    """
    M, K = a.shape
    Np = w.shape[1]
    assert K == w.shape[0]
    Mp = _ru(max(M, 8), 8)
    if Mp != M:
        a = jnp.pad(a, ((0, Mp - M), (0, 0)))
        if residual is not None:
            residual = jnp.pad(residual, ((0, Mp - M), (0, 0)))
    a = a.astype(jnp.bfloat16)
    if residual is not None:
        residual = residual.astype(jnp.bfloat16)

    tm = _pick_tile(Mp, (512, 256, 128, 64, 32, 16, 8))
    tn = _pick_tile(Np, (256, 128))
    tk = _pick_tile(K, (640, 512, 384, 256, 128))
    grid = (Mp // tm, Np // tn, K // tk)

    in_specs = [
        pl.BlockSpec((tm, tk), lambda i, j, k: (i, k)),
        pl.BlockSpec((tk, tn), lambda i, j, k: (k, j)),
        pl.BlockSpec((1, tn), lambda i, j, k: (0, j)),
    ]
    args = [a, w, bias]
    if residual is not None:
        in_specs.append(pl.BlockSpec((tm, tn), lambda i, j, k: (i, j)))
        args.append(residual)

    out = pl.pallas_call(
        functools.partial(_conv_mm_kernel, relu=relu,
                          has_res=residual is not None),
        out_shape=jax.ShapeDtypeStruct((Mp, Np), jnp.bfloat16),
        grid_spec=pltpu.PrefetchScalarGridSpec(
            num_scalar_prefetch=0,
            grid=grid,
            in_specs=in_specs,
            out_specs=pl.BlockSpec((tm, tn), lambda i, j, k: (i, j)),
            scratch_shapes=[pltpu.VMEM((tm, tn), jnp.float32)],
        ),
        compiler_params=pltpu.CompilerParams(
            dimension_semantics=("parallel", "parallel", "arbitrary"),
            vmem_limit_bytes=_VMEM_LIMIT,
        ),
    )(*args)
    return out[:M] if Mp != M else out


def _pool_max_kernel(p_ref, o_ref):
    o_ref[...] = jnp.max(p_ref[...], axis=0)     # reduce over the 9 windows


def _gap_kernel(x_ref, o_ref, *, inv_hw):
    o_ref[...] = jnp.sum(x_ref[...].astype(jnp.float32), axis=1) * inv_hw


def _head_kernel(x_ref, w1_ref, b1_ref, w2_ref, b2_ref, w3_ref, b3_ref, o_ref):
    """Fused Linear(512,256)+ReLU -> Linear(256,128)+ReLU -> Linear(128,nc)."""
    h = jnp.dot(x_ref[...], w1_ref[...],
                preferred_element_type=jnp.float32) + b1_ref[...]
    h = jnp.maximum(h, 0.0)
    # TODO(synk): dropout(p=0.5) omitted — inference semantics.
    h = jnp.dot(h.astype(jnp.bfloat16), w2_ref[...],
                preferred_element_type=jnp.float32) + b2_ref[...]
    h = jnp.maximum(h, 0.0)
    o_ref[...] = jnp.dot(h.astype(jnp.bfloat16), w3_ref[...],
                         preferred_element_type=jnp.float32) + b3_ref[...]


# ----------------------------------------------------------------------------
# Layer wrappers (im2col / window extraction in glue, matmul/reduce in Pallas)
# ----------------------------------------------------------------------------
def conv2d_bn_act(x, cp, *, relu, residual=None):
    """Conv2d + folded BN (+ fused residual) (+ ReLU) on channel-padded NHWC."""
    n, h, w, cin_eff = x.shape
    kh, kw, s, pad = cp["kh"], cp["kw"], cp["stride"], cp["pad"]
    if kh == 1 and kw == 1:
        # pointwise conv on the (zero-)channel-padded activation; no im2col
        xs = x[:, ::s, ::s, :] if s > 1 else x
        oh, ow = xs.shape[1], xs.shape[2]
        a = xs.reshape(n * oh * ow, cin_eff)
    else:
        cin_use = cp.get("cin_raw", cin_eff)     # pack raw channels only
        xin = x[..., :cin_use] if cin_use != cin_eff else x
        xp = jnp.pad(xin, ((0, 0), (pad, pad), (pad, pad), (0, 0)))
        hp, wp = h + 2 * pad, w + 2 * pad
        oh = (hp - kh) // s + 1
        ow = (wp - kw) // s + 1
        cols = [xp[:, di:di + s * oh:s, dj:dj + s * ow:s, :]
                for di in range(kh) for dj in range(kw)]
        a = jnp.stack(cols, axis=3).reshape(n * oh * ow, kh * kw * cin_use)
        kw_rows = cp["w"].shape[0]
        if a.shape[1] != kw_rows:                # tail-pad K to multiple of 128
            a = jnp.pad(a, ((0, 0), (0, kw_rows - a.shape[1])))
    out = conv_matmul(a, cp["w"], cp["b"], relu=relu, residual=residual)
    return out.reshape(n, oh, ow, cp["w"].shape[1])


def max_pool_3x3_s2(x):
    n, h, w, c = x.shape
    neg = float(jnp.finfo(jnp.bfloat16).min)
    xp = jnp.pad(x, ((0, 0), (1, 1), (1, 1), (0, 0)), constant_values=neg)
    oh = (h + 2 - 3) // 2 + 1
    ow = (w + 2 - 3) // 2 + 1
    m = n * oh * ow
    cols = [xp[:, di:di + 2 * oh:2, dj:dj + 2 * ow:2, :].reshape(m, c)
            for di in range(3) for dj in range(3)]
    p = jnp.stack(cols, axis=0)                  # (9, M, C)  — no transpose
    mp = _ru(max(m, 8), 8)
    if mp != m:
        p = jnp.pad(p, ((0, 0), (0, mp - m), (0, 0)), constant_values=neg)
    tm = _pick_tile(mp, (512, 256, 128, 64, 32, 16, 8))
    out = pl.pallas_call(
        _pool_max_kernel,
        out_shape=jax.ShapeDtypeStruct((mp, c), jnp.bfloat16),
        grid_spec=pltpu.PrefetchScalarGridSpec(
            num_scalar_prefetch=0,
            grid=(mp // tm,),
            in_specs=[pl.BlockSpec((9, tm, c), lambda i: (0, i, 0))],
            out_specs=pl.BlockSpec((tm, c), lambda i: (i, 0)),
        ),
        compiler_params=pltpu.CompilerParams(
            dimension_semantics=("parallel",),
            vmem_limit_bytes=_VMEM_LIMIT),
    )(p)
    out = out[:m] if mp != m else out
    return out.reshape(n, oh, ow, c)


def global_avg_pool(x):
    """Adaptive avg-pool to (1,1): (N,H,W,C) bf16 -> (N,C) f32."""
    n, h, w, c = x.shape
    x3 = x.reshape(n, h * w, c)
    return pl.pallas_call(
        functools.partial(_gap_kernel, inv_hw=1.0 / float(h * w)),
        out_shape=jax.ShapeDtypeStruct((n, c), jnp.float32),
    )(x3)


def fc_head(feat, hp):
    n = feat.shape[0]
    mp = _ru(max(n, 8), 8)
    x = jnp.pad(feat.astype(jnp.bfloat16), ((0, mp - n), (0, 0)))
    out = pl.pallas_call(
        _head_kernel,
        out_shape=jax.ShapeDtypeStruct((mp, hp["w3"].shape[1]), jnp.float32),
    )(x, hp["w1"], hp["b1"], hp["w2"], hp["b2"], hp["w3"], hp["b3"])
    return out[:n, :hp["num_classes"]]


def basic_block(x, blk):
    out1 = conv2d_bn_act(x, blk["conv1"], relu=True)
    if "ds" in blk:
        identity = conv2d_bn_act(x, blk["ds"], relu=False)
    else:
        identity = x
    n, oh, ow, _ = out1.shape
    res = identity.reshape(n * oh * ow, identity.shape[-1])
    # residual add + ReLU fused into the second conv's matmul epilogue
    return conv2d_bn_act(out1, blk["conv2"], relu=True, residual=res)


# ----------------------------------------------------------------------------
# Deterministic parameter construction (synthetic weights, ResNet18 shapes)
# ----------------------------------------------------------------------------
def _bn_init(key, c):
    k1, k2, k3, k4 = jax.random.split(key, 4)
    gamma = 1.0 + 0.1 * jax.random.normal(k1, (c,), jnp.float32)
    beta = 0.1 * jax.random.normal(k2, (c,), jnp.float32)
    mean = 0.1 * jax.random.normal(k3, (c,), jnp.float32)
    var = jax.random.uniform(k4, (c,), jnp.float32, 0.5, 1.5)
    return (gamma, beta, mean, var)


def _conv_init(key, cout, cin, k):
    fan_in = cin * k * k
    return jax.random.normal(key, (cout, cin, k, k), jnp.float32) * (2.0 / fan_in) ** 0.5


def _linear_init(key, out_f, in_f):
    k1, k2 = jax.random.split(key)
    w = jax.random.normal(k1, (out_f, in_f), jnp.float32) * (1.0 / in_f) ** 0.5
    b = 0.01 * jax.random.normal(k2, (out_f,), jnp.float32)
    return w, b


def make_params(key, num_classes=5):
    keys = iter(jax.random.split(key, 256))
    params = {
        "conv1_w": _conv_init(next(keys), 64, 3, 7),
        "bn1": _bn_init(next(keys), 64),
    }
    stage_channels = [64, 128, 256, 512]
    stage_strides = [1, 2, 2, 2]
    cin = 64
    layers = []
    for cout, s in zip(stage_channels, stage_strides):
        blocks = []
        for b in range(2):               # ResNet18: 2 BasicBlocks per stage
            stride = s if b == 0 else 1
            in_c = cin if b == 0 else cout
            blk = {
                "conv1_w": _conv_init(next(keys), cout, in_c, 3),
                "bn1": _bn_init(next(keys), cout),
                "conv2_w": _conv_init(next(keys), cout, cout, 3),
                "bn2": _bn_init(next(keys), cout),
                "stride": stride,
            }
            if stride != 1 or in_c != cout:
                blk["ds_w"] = _conv_init(next(keys), cout, in_c, 1)
                blk["ds_bn"] = _bn_init(next(keys), cout)
            blocks.append(blk)
        layers.append(blocks)
        cin = cout
    params["layers"] = layers
    params["fc1"] = _linear_init(next(keys), 256, 512)
    params["fc2"] = _linear_init(next(keys), 128, 256)
    params["fc3"] = _linear_init(next(keys), num_classes, 128)
    return params


# ----------------------------------------------------------------------------
# One-time parameter preparation: fold BN, transpose to (K, Cout), pad, bf16.
# ----------------------------------------------------------------------------
def _prep_conv(w_oihw, bn, *, pad_cin):
    gamma, beta, mean, var = bn
    scale = gamma / jnp.sqrt(var + _BN_EPS)
    w_eff = w_oihw * scale[:, None, None, None]
    b_eff = beta - mean * scale
    cout, cin, kh, kw = w_oihw.shape
    cpo = _ru(cout, 128)
    w_khwc = jnp.transpose(w_eff, (2, 3, 1, 0))            # (kh, kw, cin, cout)
    if pad_cin:
        cpi = _ru(cin, 128)
        w_khwc = jnp.pad(w_khwc, ((0, 0), (0, 0), (0, cpi - cin), (0, 0)))
        k_rows = kh * kw * cpi
    else:
        k_rows = kh * kw * cin
    w2 = w_khwc.reshape(k_rows, cout)
    kp = _ru(k_rows, 128)
    if kp != k_rows:
        w2 = jnp.pad(w2, ((0, kp - k_rows), (0, 0)))
    w2 = jnp.pad(w2, ((0, 0), (0, cpo - cout))).astype(jnp.bfloat16)
    b2 = jnp.pad(b_eff, (0, cpo - cout)).reshape(1, cpo).astype(jnp.float32)
    return {"w": w2, "b": b2, "kh": kh, "kw": kw, "cin_raw": cin}


def prepare_params(params):
    # k>1 convs: pack raw input channels in im2col (smaller K for 64-ch layers)
    stem = _prep_conv(params["conv1_w"], params["bn1"], pad_cin=False)
    stem.update(stride=2, pad=3)
    layers = []
    for blocks in params["layers"]:
        pblocks = []
        for blk in blocks:
            c1 = _prep_conv(blk["conv1_w"], blk["bn1"], pad_cin=False)
            c1.update(stride=blk["stride"], pad=1)
            c2 = _prep_conv(blk["conv2_w"], blk["bn2"], pad_cin=False)
            c2.update(stride=1, pad=1)
            pb = {"conv1": c1, "conv2": c2}
            if "ds_w" in blk:
                # 1x1 downsample: operates on the zero-padded activation
                d = _prep_conv(blk["ds_w"], blk["ds_bn"], pad_cin=True)
                d.update(stride=blk["stride"], pad=0)
                pb["ds"] = d
            pblocks.append(pb)
        layers.append(pblocks)
    w1, b1 = params["fc1"]
    w2, b2 = params["fc2"]
    w3, b3 = params["fc3"]
    nc = w3.shape[0]
    ncp = _ru(nc, 128)
    head = {
        "w1": jnp.transpose(w1).astype(jnp.bfloat16),
        "b1": b1.reshape(1, -1).astype(jnp.float32),
        "w2": jnp.transpose(w2).astype(jnp.bfloat16),
        "b2": b2.reshape(1, -1).astype(jnp.float32),
        "w3": jnp.pad(jnp.transpose(w3), ((0, 0), (0, ncp - nc))).astype(jnp.bfloat16),
        "b3": jnp.pad(b3, (0, ncp - nc)).reshape(1, ncp).astype(jnp.float32),
        "num_classes": nc,
    }
    return {"stem": stem, "layers": layers, "head": head}


# ----------------------------------------------------------------------------
# Full forward pass
# ----------------------------------------------------------------------------
def my_model_resnet_forward(prep, x_nchw):
    x = jnp.transpose(x_nchw, (0, 2, 3, 1)).astype(jnp.bfloat16)  # NCHW -> NHWC
    # backbone stem: 7x7/s2 conv + BN + ReLU, 3x3/s2 max pool
    x = conv2d_bn_act(x, prep["stem"], relu=True)
    x = max_pool_3x3_s2(x)
    # residual stages
    for blocks in prep["layers"]:
        for blk in blocks:
            x = basic_block(x, blk)
    # adaptive avg pool (1,1) + flatten ; backbone.fc is Identity
    feat = global_avg_pool(x)                                     # (N, 512) f32
    # fused MLP head (dropout = identity at inference)
    return fc_head(feat, prep["head"])                            # (N, classes)


if __name__ == "__main__":
    key = jax.random.PRNGKey(0)
    k_param, k_x = jax.random.split(key)
    params = make_params(k_param, num_classes=5)
    prep = prepare_params(params)        # one-time: BN fold + pad + bf16 cast
    # small input: batch=2, 3 channels, 32x32 spatial (reduces to 1x1 at layer4)
    x = jax.random.normal(k_x, (2, 3, 32, 32), jnp.float32)
    fwd = jax.jit(lambda xin: my_model_resnet_forward(prep, xin))
    out = jax.block_until_ready(fwd(x))
    assert out.shape == (2, 5), out.shape
    assert bool(jnp.all(jnp.isfinite(out)))
    print("KERNEL_OK")
</pallas_src>

<mosaic_0001>
module attributes {stable_mosaic.version = 11 : i64} {
  func.func @_conv_mm_kernel(%arg0: i32, %arg1: i32, %arg2: i32, %arg3: memref<512x256xbf16, #tpu.memory_space<vmem>>, %arg4: memref<256x128xbf16, #tpu.memory_space<vmem>>, %arg5: memref<1x128xf32, #tpu.memory_space<vmem>>, %arg6: memref<512x128xbf16, #tpu.memory_space<vmem>>, %arg7: memref<512x128xf32, #tpu.memory_space<vmem>>) attributes {dimension_semantics = [#tpu.dimension_semantics<parallel>, #tpu.dimension_semantics<parallel>, #tpu.dimension_semantics<arbitrary>], iteration_bounds = array<i64: 1, 1, 1>, scalar_prefetch = 0 : i64, scratch_operands = 1 : i64, tpu.core_type = #tpu.core_type<tc>, window_params = [{transform_indices = @transform_0, window_bounds = array<i64: 512, 256>}, {transform_indices = @transform_1, window_bounds = array<i64: 256, 128>}, {transform_indices = @transform_2, window_bounds = array<i64: 1, 128>}, {transform_indices = @transform_3, window_bounds = array<i64: 512, 128>}]} {
    %c0_i32 = arith.constant 0 : i32
    %0 = arith.cmpi eq, %arg2, %c0_i32 : i32
    %1 = arith.extui %0 : i1 to i32
    %c0_i32_0 = arith.constant 0 : i32
    %2 = arith.cmpi ne, %1, %c0_i32_0 : i32
    scf.if %2 {
      %cst_10 = arith.constant 0.000000e+00 : f32
      %12 = vector.broadcast %cst_10 : f32 to vector<512x128xf32>
      %c0_11 = arith.constant 0 : index
      %c0_12 = arith.constant 0 : index
      %13 = vector.load %arg7[%c0_11, %c0_12] : memref<512x128xf32, #tpu.memory_space<vmem>>, vector<512x128xf32>
      tpu.vector_store %arg7[%c0_11, %c0_12], %12 {strides = array<i32>} : memref<512x128xf32, #tpu.memory_space<vmem>>, vector<512x128xf32>,
    } else {
    }
    %c0 = arith.constant 0 : index
    %c0_1 = arith.constant 0 : index
    %3 = vector.load %arg7[%c0, %c0_1] : memref<512x128xf32, #tpu.memory_space<vmem>>, vector<512x128xf32>
    %c0_2 = arith.constant 0 : index
    %c0_3 = arith.constant 0 : index
    %4 = vector.load %arg3[%c0_2, %c0_3] : memref<512x256xbf16, #tpu.memory_space<vmem>>, vector<512x256xbf16>
    %c0_4 = arith.constant 0 : index
    %c0_5 = arith.constant 0 : index
    %5 = vector.load %arg4[%c0_4, %c0_5] : memref<256x128xbf16, #tpu.memory_space<vmem>>, vector<256x128xbf16>
    %cst = arith.constant dense<0.000000e+00> : vector<512x128xf32>
    %6 = tpu.matmul %4, %5, %cst {dimension_numbers = #tpu.dot_dimension_numbers<[1], [0], [0], [1], [0, 0, 1, 1], [], []>} : vector<512x256xbf16>, vector<256x128xbf16>, vector<512x128xf32> -> vector<512x128xf32>
    %7 = arith.addf %3, %6 : vector<512x128xf32>
    %c0_6 = arith.constant 0 : index
    %c0_7 = arith.constant 0 : index
    %8 = vector.load %arg7[%c0_6, %c0_7] : memref<512x128xf32, #tpu.memory_space<vmem>>, vector<512x128xf32>
    tpu.vector_store %arg7[%c0_6, %c0_7], %7 {strides = array<i32>} : memref<512x128xf32, #tpu.memory_space<vmem>>, vector<512x128xf32>,
    %c0_i32_8 = arith.constant 0 : i32
    %9 = arith.cmpi eq, %arg2, %c0_i32_8 : i32
    %10 = arith.extui %9 : i1 to i32
    %c0_i32_9 = arith.constant 0 : i32
    %11 = arith.cmpi ne, %10, %c0_i32_9 : i32
    scf.if %11 {
      %c0_10 = arith.constant 0 : index
      %c0_11 = arith.constant 0 : index
      %12 = vector.load %arg7[%c0_10, %c0_11] : memref<512x128xf32, #tpu.memory_space<vmem>>, vector<512x128xf32>
      %c0_12 = arith.constant 0 : index
      %c0_13 = arith.constant 0 : index
      %13 = vector.load %arg5[%c0_12, %c0_13] : memref<1x128xf32, #tpu.memory_space<vmem>>, vector<1x128xf32>
      %14 = vector.broadcast %13 : vector<1x128xf32> to vector<512x128xf32>
      %15 = arith.addf %12, %14 : vector<512x128xf32>
      %cst_14 = arith.constant 0.000000e+00 : f32
      %16 = vector.broadcast %cst_14 : f32 to vector<512x128xf32>
      %17 = arith.maximumf %15, %16 : vector<512x128xf32>
      %18 = arith.truncf %17 : vector<512x128xf32> to vector<512x128xbf16>
      %c0_15 = arith.constant 0 : index
      %c0_16 = arith.constant 0 : index
      %19 = vector.load %arg6[%c0_15, %c0_16] : memref<512x128xbf16, #tpu.memory_space<vmem>>, vector<512x128xbf16>
      tpu.vector_store %arg6[%c0_15, %c0_16], %18 {strides = array<i32>} : memref<512x128xbf16, #tpu.memory_space<vmem>>, vector<512x128xbf16>,
    } else {
    }
    return
  }
  func.func @transform_0(%arg0: i32, %arg1: i32, %arg2: i32) -> (i32, i32) {
    %c0_i32 = arith.constant 0 : i32
    return %arg0, %arg2 : i32, i32
  }
  func.func @transform_1(%arg0: i32, %arg1: i32, %arg2: i32) -> (i32, i32) {
    %c0_i32 = arith.constant 0 : i32
    return %arg2, %arg1 : i32, i32
  }
  func.func @transform_2(%arg0: i32, %arg1: i32, %arg2: i32) -> (i32, i32) {
    %c0_i32 = arith.constant 0 : i32
    %c0_i32_0 = arith.constant 0 : i32
    return %c0_i32, %arg1 : i32, i32
  }
  func.func @transform_3(%arg0: i32, %arg1: i32, %arg2: i32) -> (i32, i32) {
    %c0_i32 = arith.constant 0 : i32
    return %arg0, %arg1 : i32, i32
  }
}

module attributes {stable_mosaic.version = 11 : i64} {
  func.func @_pool_max_kernel(%arg0: i32, %arg1: memref<9x128x128xbf16, #tpu.memory_space<vmem>>, %arg2: memref<128x128xbf16, #tpu.memory_space<vmem>>) attributes {dimension_semantics = [#tpu.dimension_semantics<parallel>], iteration_bounds = array<i64: 1>, scalar_prefetch = 0 : i64, scratch_operands = 0 : i64, tpu.core_type = #tpu.core_type<tc>, window_params = [{transform_indices = @transform_0, window_bounds = array<i64: 9, 128, 128>}, {transform_indices = @transform_1, window_bounds = array<i64: 128, 128>}]} {
    %c0 = arith.constant 0 : index
    %c0_0 = arith.constant 0 : index
    %c0_1 = arith.constant 0 : index
    %0 = vector.load %arg1[%c0, %c0_0, %c0_1] : memref<9x128x128xbf16, #tpu.memory_space<vmem>>, vector<9x128x128xbf16>
    %cst = arith.constant dense<0xFF80> : vector<128x128xbf16>
    %1 = vector.multi_reduction <maximumf>, %0, %cst [0] : vector<9x128x128xbf16> to vector<128x128xbf16>
    %c0_2 = arith.constant 0 : index
    %c0_3 = arith.constant 0 : index
    %2 = vector.load %arg2[%c0_2, %c0_3] : memref<128x128xbf16, #tpu.memory_space<vmem>>, vector<128x128xbf16>
    tpu.vector_store %arg2[%c0_2, %c0_3], %1 {strides = array<i32>} : memref<128x128xbf16, #tpu.memory_space<vmem>>, vector<128x128xbf16>,
    return
  }
  func.func @transform_0(%arg0: i32) -> (i32, i32, i32) {
    %c0_i32 = arith.constant 0 : i32
    %c0_i32_0 = arith.constant 0 : i32
    %c0_i32_1 = arith.constant 0 : i32
    return %c0_i32, %arg0, %c0_i32_0 : i32, i32, i32
  }
  func.func @transform_1(%arg0: i32) -> (i32, i32) {
    %c0_i32 = arith.constant 0 : i32
    %c0_i32_0 = arith.constant 0 : i32
    return %arg0, %c0_i32 : i32, i32
  }
}

module attributes {stable_mosaic.version = 11 : i64} {
  func.func @_conv_mm_kernel(%arg0: i32, %arg1: i32, %arg2: i32, %arg3: memref<128x640xbf16, #tpu.memory_space<vmem>>, %arg4: memref<640x128xbf16, #tpu.memory_space<vmem>>, %arg5: memref<1x128xf32, #tpu.memory_space<vmem>>, %arg6: memref<128x128xbf16, #tpu.memory_space<vmem>>, %arg7: memref<128x128xf32, #tpu.memory_space<vmem>>) attributes {dimension_semantics = [#tpu.dimension_semantics<parallel>, #tpu.dimension_semantics<parallel>, #tpu.dimension_semantics<arbitrary>], iteration_bounds = array<i64: 1, 1, 1>, scalar_prefetch = 0 : i64, scratch_operands = 1 : i64, tpu.core_type = #tpu.core_type<tc>, window_params = [{transform_indices = @transform_0, window_bounds = array<i64: 128, 640>}, {transform_indices = @transform_1, window_bounds = array<i64: 640, 128>}, {transform_indices = @transform_2, window_bounds = array<i64: 1, 128>}, {transform_indices = @transform_3, window_bounds = array<i64: 128, 128>}]} {
    %c0_i32 = arith.constant 0 : i32
    %0 = arith.cmpi eq, %arg2, %c0_i32 : i32
    %1 = arith.extui %0 : i1 to i32
    %c0_i32_0 = arith.constant 0 : i32
    %2 = arith.cmpi ne, %1, %c0_i32_0 : i32
    scf.if %2 {
      %cst_10 = arith.constant 0.000000e+00 : f32
      %12 = vector.broadcast %cst_10 : f32 to vector<128x128xf32>
      %c0_11 = arith.constant 0 : index
      %c0_12 = arith.constant 0 : index
      %13 = vector.load %arg7[%c0_11, %c0_12] : memref<128x128xf32, #tpu.memory_space<vmem>>, vector<128x128xf32>
      tpu.vector_store %arg7[%c0_11, %c0_12], %12 {strides = array<i32>} : memref<128x128xf32, #tpu.memory_space<vmem>>, vector<128x128xf32>,
    } else {
    }
    %c0 = arith.constant 0 : index
    %c0_1 = arith.constant 0 : index
    %3 = vector.load %arg7[%c0, %c0_1] : memref<128x128xf32, #tpu.memory_space<vmem>>, vector<128x128xf32>
    %c0_2 = arith.constant 0 : index
    %c0_3 = arith.constant 0 : index
    %4 = vector.load %arg3[%c0_2, %c0_3] : memref<128x640xbf16, #tpu.memory_space<vmem>>, vector<128x640xbf16>
    %c0_4 = arith.constant 0 : index
    %c0_5 = arith.constant 0 : index
    %5 = vector.load %arg4[%c0_4, %c0_5] : memref<640x128xbf16, #tpu.memory_space<vmem>>, vector<640x128xbf16>
    %cst = arith.constant dense<0.000000e+00> : vector<128x128xf32>
    %6 = tpu.matmul %4, %5, %cst {dimension_numbers = #tpu.dot_dimension_numbers<[1], [0], [0], [1], [0, 0, 1, 1], [], []>} : vector<128x640xbf16>, vector<640x128xbf16>, vector<128x128xf32> -> vector<128x128xf32>
    %7 = arith.addf %3, %6 : vector<128x128xf32>
    %c0_6 = arith.constant 0 : index
    %c0_7 = arith.constant 0 : index
    %8 = vector.load %arg7[%c0_6, %c0_7] : memref<128x128xf32, #tpu.memory_space<vmem>>, vector<128x128xf32>
    tpu.vector_store %arg7[%c0_6, %c0_7], %7 {strides = array<i32>} : memref<128x128xf32, #tpu.memory_space<vmem>>, vector<128x128xf32>,
    %c0_i32_8 = arith.constant 0 : i32
    %9 = arith.cmpi eq, %arg2, %c0_i32_8 : i32
    %10 = arith.extui %9 : i1 to i32
    %c0_i32_9 = arith.constant 0 : i32
    %11 = arith.cmpi ne, %10, %c0_i32_9 : i32
    scf.if %11 {
      %c0_10 = arith.constant 0 : index
      %c0_11 = arith.constant 0 : index
      %12 = vector.load %arg7[%c0_10, %c0_11] : memref<128x128xf32, #tpu.memory_space<vmem>>, vector<128x128xf32>
      %c0_12 = arith.constant 0 : index
      %c0_13 = arith.constant 0 : index
      %13 = vector.load %arg5[%c0_12, %c0_13] : memref<1x128xf32, #tpu.memory_space<vmem>>, vector<1x128xf32>
      %14 = vector.broadcast %13 : vector<1x128xf32> to vector<128x128xf32>
      %15 = arith.addf %12, %14 : vector<128x128xf32>
      %cst_14 = arith.constant 0.000000e+00 : f32
      %16 = vector.broadcast %cst_14 : f32 to vector<128x128xf32>
      %17 = arith.maximumf %15, %16 : vector<128x128xf32>
      %18 = arith.truncf %17 : vector<128x128xf32> to vector<128x128xbf16>
      %c0_15 = arith.constant 0 : index
      %c0_16 = arith.constant 0 : index
      %19 = vector.load %arg6[%c0_15, %c0_16] : memref<128x128xbf16, #tpu.memory_space<vmem>>, vector<128x128xbf16>
      tpu.vector_store %arg6[%c0_15, %c0_16], %18 {strides = array<i32>} : memref<128x128xbf16, #tpu.memory_space<vmem>>, vector<128x128xbf16>,
    } else {
    }
    return
  }
  func.func @transform_0(%arg0: i32, %arg1: i32, %arg2: i32) -> (i32, i32) {
    %c0_i32 = arith.constant 0 : i32
    return %arg0, %arg2 : i32, i32
  }
  func.func @transform_1(%arg0: i32, %arg1: i32, %arg2: i32) -> (i32, i32) {
    %c0_i32 = arith.constant 0 : i32
    return %arg2, %arg1 : i32, i32
  }
  func.func @transform_2(%arg0: i32, %arg1: i32, %arg2: i32) -> (i32, i32) {
    %c0_i32 = arith.constant 0 : i32
    %c0_i32_0 = arith.constant 0 : i32
    return %c0_i32, %arg1 : i32, i32
  }
  func.func @transform_3(%arg0: i32, %arg1: i32, %arg2: i32) -> (i32, i32) {
    %c0_i32 = arith.constant 0 : i32
    return %arg0, %arg1 : i32, i32
  }
}

module attributes {stable_mosaic.version = 11 : i64} {
  func.func @_conv_mm_kernel(%arg0: i32, %arg1: i32, %arg2: i32, %arg3: memref<128x640xbf16, #tpu.memory_space<vmem>>, %arg4: memref<640x128xbf16, #tpu.memory_space<vmem>>, %arg5: memref<1x128xf32, #tpu.memory_space<vmem>>, %arg6: memref<128x128xbf16, #tpu.memory_space<vmem>>, %arg7: memref<128x128xbf16, #tpu.memory_space<vmem>>, %arg8: memref<128x128xf32, #tpu.memory_space<vmem>>) attributes {dimension_semantics = [#tpu.dimension_semantics<parallel>, #tpu.dimension_semantics<parallel>, #tpu.dimension_semantics<arbitrary>], iteration_bounds = array<i64: 1, 1, 1>, scalar_prefetch = 0 : i64, scratch_operands = 1 : i64, tpu.core_type = #tpu.core_type<tc>, window_params = [{transform_indices = @transform_0, window_bounds = array<i64: 128, 640>}, {transform_indices = @transform_1, window_bounds = array<i64: 640, 128>}, {transform_indices = @transform_2, window_bounds = array<i64: 1, 128>}, {transform_indices = @transform_3, window_bounds = array<i64: 128, 128>}, {transform_indices = @transform_4, window_bounds = array<i64: 128, 128>}]} {
    %c0_i32 = arith.constant 0 : i32
    %0 = arith.cmpi eq, %arg2, %c0_i32 : i32
    %1 = arith.extui %0 : i1 to i32
    %c0_i32_0 = arith.constant 0 : i32
    %2 = arith.cmpi ne, %1, %c0_i32_0 : i32
    scf.if %2 {
      %cst_10 = arith.constant 0.000000e+00 : f32
      %12 = vector.broadcast %cst_10 : f32 to vector<128x128xf32>
      %c0_11 = arith.constant 0 : index
      %c0_12 = arith.constant 0 : index
      %13 = vector.load %arg8[%c0_11, %c0_12] : memref<128x128xf32, #tpu.memory_space<vmem>>, vector<128x128xf32>
      tpu.vector_store %arg8[%c0_11, %c0_12], %12 {strides = array<i32>} : memref<128x128xf32, #tpu.memory_space<vmem>>, vector<128x128xf32>,
    } else {
    }
    %c0 = arith.constant 0 : index
    %c0_1 = arith.constant 0 : index
    %3 = vector.load %arg8[%c0, %c0_1] : memref<128x128xf32, #tpu.memory_space<vmem>>, vector<128x128xf32>
    %c0_2 = arith.constant 0 : index
    %c0_3 = arith.constant 0 : index
    %4 = vector.load %arg3[%c0_2, %c0_3] : memref<128x640xbf16, #tpu.memory_space<vmem>>, vector<128x640xbf16>
    %c0_4 = arith.constant 0 : index
    %c0_5 = arith.constant 0 : index
    %5 = vector.load %arg4[%c0_4, %c0_5] : memref<640x128xbf16, #tpu.memory_space<vmem>>, vector<640x128xbf16>
    %cst = arith.constant dense<0.000000e+00> : vector<128x128xf32>
    %6 = tpu.matmul %4, %5, %cst {dimension_numbers = #tpu.dot_dimension_numbers<[1], [0], [0], [1], [0, 0, 1, 1], [], []>} : vector<128x640xbf16>, vector<640x128xbf16>, vector<128x128xf32> -> vector<128x128xf32>
    %7 = arith.addf %3, %6 : vector<128x128xf32>
    %c0_6 = arith.constant 0 : index
    %c0_7 = arith.constant 0 : index
    %8 = vector.load %arg8[%c0_6, %c0_7] : memref<128x128xf32, #tpu.memory_space<vmem>>, vector<128x128xf32>
    tpu.vector_store %arg8[%c0_6, %c0_7], %7 {strides = array<i32>} : memref<128x128xf32, #tpu.memory_space<vmem>>, vector<128x128xf32>,
    %c0_i32_8 = arith.constant 0 : i32
    %9 = arith.cmpi eq, %arg2, %c0_i32_8 : i32
    %10 = arith.extui %9 : i1 to i32
    %c0_i32_9 = arith.constant 0 : i32
    %11 = arith.cmpi ne, %10, %c0_i32_9 : i32
    scf.if %11 {
      %c0_10 = arith.constant 0 : index
      %c0_11 = arith.constant 0 : index
      %12 = vector.load %arg8[%c0_10, %c0_11] : memref<128x128xf32, #tpu.memory_space<vmem>>, vector<128x128xf32>
      %c0_12 = arith.constant 0 : index
      %c0_13 = arith.constant 0 : index
      %13 = vector.load %arg5[%c0_12, %c0_13] : memref<1x128xf32, #tpu.memory_space<vmem>>, vector<1x128xf32>
      %14 = vector.broadcast %13 : vector<1x128xf32> to vector<128x128xf32>
      %15 = arith.addf %12, %14 : vector<128x128xf32>
      %c0_14 = arith.constant 0 : index
      %c0_15 = arith.constant 0 : index
      %16 = vector.load %arg6[%c0_14, %c0_15] : memref<128x128xbf16, #tpu.memory_space<vmem>>, vector<128x128xbf16>
      %17 = arith.extf %16 : vector<128x128xbf16> to vector<128x128xf32>
      %18 = arith.addf %15, %17 : vector<128x128xf32>
      %cst_16 = arith.constant 0.000000e+00 : f32
      %19 = vector.broadcast %cst_16 : f32 to vector<128x128xf32>
      %20 = arith.maximumf %18, %19 : vector<128x128xf32>
      %21 = arith.truncf %20 : vector<128x128xf32> to vector<128x128xbf16>
      %c0_17 = arith.constant 0 : index
      %c0_18 = arith.constant 0 : index
      %22 = vector.load %arg7[%c0_17, %c0_18] : memref<128x128xbf16, #tpu.memory_space<vmem>>, vector<128x128xbf16>
      tpu.vector_store %arg7[%c0_17, %c0_18], %21 {strides = array<i32>} : memref<128x128xbf16, #tpu.memory_space<vmem>>, vector<128x128xbf16>,
    } else {
    }
    return
  }
  func.func @transform_0(%arg0: i32, %arg1: i32, %arg2: i32) -> (i32, i32) {
    %c0_i32 = arith.constant 0 : i32
    return %arg0, %arg2 : i32, i32
  }
  func.func @transform_1(%arg0: i32, %arg1: i32, %arg2: i32) -> (i32, i32) {
    %c0_i32 = arith.constant 0 : i32
    return %arg2, %arg1 : i32, i32
  }
  func.func @transform_2(%arg0: i32, %arg1: i32, %arg2: i32) -> (i32, i32) {
    %c0_i32 = arith.constant 0 : i32
    %c0_i32_0 = arith.constant 0 : i32
    return %c0_i32, %arg1 : i32, i32
  }
  func.func @transform_3(%arg0: i32, %arg1: i32, %arg2: i32) -> (i32, i32) {
    %c0_i32 = arith.constant 0 : i32
    return %arg0, %arg1 : i32, i32
  }
  func.func @transform_4(%arg0: i32, %arg1: i32, %arg2: i32) -> (i32, i32) {
    %c0_i32 = arith.constant 0 : i32
    return %arg0, %arg1 : i32, i32
  }
}

module attributes {stable_mosaic.version = 11 : i64} {
  func.func @_conv_mm_kernel(%arg0: i32, %arg1: i32, %arg2: i32, %arg3: memref<32x640xbf16, #tpu.memory_space<vmem>>, %arg4: memref<640x128xbf16, #tpu.memory_space<vmem>>, %arg5: memref<1x128xf32, #tpu.memory_space<vmem>>, %arg6: memref<32x128xbf16, #tpu.memory_space<vmem>>, %arg7: memref<32x128xf32, #tpu.memory_space<vmem>>) attributes {dimension_semantics = [#tpu.dimension_semantics<parallel>, #tpu.dimension_semantics<parallel>, #tpu.dimension_semantics<arbitrary>], iteration_bounds = array<i64: 1, 1, 1>, scalar_prefetch = 0 : i64, scratch_operands = 1 : i64, tpu.core_type = #tpu.core_type<tc>, window_params = [{transform_indices = @transform_0, window_bounds = array<i64: 32, 640>}, {transform_indices = @transform_1, window_bounds = array<i64: 640, 128>}, {transform_indices = @transform_2, window_bounds = array<i64: 1, 128>}, {transform_indices = @transform_3, window_bounds = array<i64: 32, 128>}]} {
    %c0_i32 = arith.constant 0 : i32
    %0 = arith.cmpi eq, %arg2, %c0_i32 : i32
    %1 = arith.extui %0 : i1 to i32
    %c0_i32_0 = arith.constant 0 : i32
    %2 = arith.cmpi ne, %1, %c0_i32_0 : i32
    scf.if %2 {
      %cst_10 = arith.constant 0.000000e+00 : f32
      %12 = vector.broadcast %cst_10 : f32 to vector<32x128xf32>
      %c0_11 = arith.constant 0 : index
      %c0_12 = arith.constant 0 : index
      %13 = vector.load %arg7[%c0_11, %c0_12] : memref<32x128xf32, #tpu.memory_space<vmem>>, vector<32x128xf32>
      tpu.vector_store %arg7[%c0_11, %c0_12], %12 {strides = array<i32>} : memref<32x128xf32, #tpu.memory_space<vmem>>, vector<32x128xf32>,
    } else {
    }
    %c0 = arith.constant 0 : index
    %c0_1 = arith.constant 0 : index
    %3 = vector.load %arg7[%c0, %c0_1] : memref<32x128xf32, #tpu.memory_space<vmem>>, vector<32x128xf32>
    %c0_2 = arith.constant 0 : index
    %c0_3 = arith.constant 0 : index
    %4 = vector.load %arg3[%c0_2, %c0_3] : memref<32x640xbf16, #tpu.memory_space<vmem>>, vector<32x640xbf16>
    %c0_4 = arith.constant 0 : index
    %c0_5 = arith.constant 0 : index
    %5 = vector.load %arg4[%c0_4, %c0_5] : memref<640x128xbf16, #tpu.memory_space<vmem>>, vector<640x128xbf16>
    %cst = arith.constant dense<0.000000e+00> : vector<32x128xf32>
    %6 = tpu.matmul %4, %5, %cst {dimension_numbers = #tpu.dot_dimension_numbers<[1], [0], [0], [1], [0, 0, 1, 1], [], []>} : vector<32x640xbf16>, vector<640x128xbf16>, vector<32x128xf32> -> vector<32x128xf32>
    %7 = arith.addf %3, %6 : vector<32x128xf32>
    %c0_6 = arith.constant 0 : index
    %c0_7 = arith.constant 0 : index
    %8 = vector.load %arg7[%c0_6, %c0_7] : memref<32x128xf32, #tpu.memory_space<vmem>>, vector<32x128xf32>
    tpu.vector_store %arg7[%c0_6, %c0_7], %7 {strides = array<i32>} : memref<32x128xf32, #tpu.memory_space<vmem>>, vector<32x128xf32>,
    %c0_i32_8 = arith.constant 0 : i32
    %9 = arith.cmpi eq, %arg2, %c0_i32_8 : i32
    %10 = arith.extui %9 : i1 to i32
    %c0_i32_9 = arith.constant 0 : i32
    %11 = arith.cmpi ne, %10, %c0_i32_9 : i32
    scf.if %11 {
      %c0_10 = arith.constant 0 : index
      %c0_11 = arith.constant 0 : index
      %12 = vector.load %arg7[%c0_10, %c0_11] : memref<32x128xf32, #tpu.memory_space<vmem>>, vector<32x128xf32>
      %c0_12 = arith.constant 0 : index
      %c0_13 = arith.constant 0 : index
      %13 = vector.load %arg5[%c0_12, %c0_13] : memref<1x128xf32, #tpu.memory_space<vmem>>, vector<1x128xf32>
      %14 = vector.broadcast %13 : vector<1x128xf32> to vector<32x128xf32>
      %15 = arith.addf %12, %14 : vector<32x128xf32>
      %cst_14 = arith.constant 0.000000e+00 : f32
      %16 = vector.broadcast %cst_14 : f32 to vector<32x128xf32>
      %17 = arith.maximumf %15, %16 : vector<32x128xf32>
      %18 = arith.truncf %17 : vector<32x128xf32> to vector<32x128xbf16>
      %c0_15 = arith.constant 0 : index
      %c0_16 = arith.constant 0 : index
      %19 = vector.load %arg6[%c0_15, %c0_16] : memref<32x128xbf16, #tpu.memory_space<vmem>>, vector<32x128xbf16>
      tpu.vector_store %arg6[%c0_15, %c0_16], %18 {strides = array<i32>} : memref<32x128xbf16, #tpu.memory_space<vmem>>, vector<32x128xbf16>,
    } else {
    }
    return
  }
  func.func @transform_0(%arg0: i32, %arg1: i32, %arg2: i32) -> (i32, i32) {
    %c0_i32 = arith.constant 0 : i32
    return %arg0, %arg2 : i32, i32
  }
  func.func @transform_1(%arg0: i32, %arg1: i32, %arg2: i32) -> (i32, i32) {
    %c0_i32 = arith.constant 0 : i32
    return %arg2, %arg1 : i32, i32
  }
  func.func @transform_2(%arg0: i32, %arg1: i32, %arg2: i32) -> (i32, i32) {
    %c0_i32 = arith.constant 0 : i32
    %c0_i32_0 = arith.constant 0 : i32
    return %c0_i32, %arg1 : i32, i32
  }
  func.func @transform_3(%arg0: i32, %arg1: i32, %arg2: i32) -> (i32, i32) {
    %c0_i32 = arith.constant 0 : i32
    return %arg0, %arg1 : i32, i32
  }
}

module attributes {stable_mosaic.version = 11 : i64} {
  func.func @_conv_mm_kernel(%arg0: i32, %arg1: i32, %arg2: i32, %arg3: memref<32x384xbf16, #tpu.memory_space<vmem>>, %arg4: memref<384x128xbf16, #tpu.memory_space<vmem>>, %arg5: memref<1x128xf32, #tpu.memory_space<vmem>>, %arg6: memref<32x128xbf16, #tpu.memory_space<vmem>>, %arg7: memref<32x128xbf16, #tpu.memory_space<vmem>>, %arg8: memref<32x128xf32, #tpu.memory_space<vmem>>) attributes {dimension_semantics = [#tpu.dimension_semantics<parallel>, #tpu.dimension_semantics<parallel>, #tpu.dimension_semantics<arbitrary>], iteration_bounds = array<i64: 1, 1, 3>, scalar_prefetch = 0 : i64, scratch_operands = 1 : i64, tpu.core_type = #tpu.core_type<tc>, window_params = [{transform_indices = @transform_0, window_bounds = array<i64: 32, 384>}, {transform_indices = @transform_1, window_bounds = array<i64: 384, 128>}, {transform_indices = @transform_2, window_bounds = array<i64: 1, 128>}, {transform_indices = @transform_3, window_bounds = array<i64: 32, 128>}, {transform_indices = @transform_4, window_bounds = array<i64: 32, 128>}]} {
    %c0_i32 = arith.constant 0 : i32
    %0 = arith.cmpi eq, %arg2, %c0_i32 : i32
    %1 = arith.extui %0 : i1 to i32
    %c0_i32_0 = arith.constant 0 : i32
    %2 = arith.cmpi ne, %1, %c0_i32_0 : i32
    scf.if %2 {
      %cst_9 = arith.constant 0.000000e+00 : f32
      %12 = vector.broadcast %cst_9 : f32 to vector<32x128xf32>
      %c0_10 = arith.constant 0 : index
      %c0_11 = arith.constant 0 : index
      %13 = vector.load %arg8[%c0_10, %c0_11] : memref<32x128xf32, #tpu.memory_space<vmem>>, vector<32x128xf32>
      tpu.vector_store %arg8[%c0_10, %c0_11], %12 {strides = array<i32>} : memref<32x128xf32, #tpu.memory_space<vmem>>, vector<32x128xf32>,
    } else {
    }
    %c0 = arith.constant 0 : index
    %c0_1 = arith.constant 0 : index
    %3 = vector.load %arg8[%c0, %c0_1] : memref<32x128xf32, #tpu.memory_space<vmem>>, vector<32x128xf32>
    %c0_2 = arith.constant 0 : index
    %c0_3 = arith.constant 0 : index
    %4 = vector.load %arg3[%c0_2, %c0_3] : memref<32x384xbf16, #tpu.memory_space<vmem>>, vector<32x384xbf16>
    %c0_4 = arith.constant 0 : index
    %c0_5 = arith.constant 0 : index
    %5 = vector.load %arg4[%c0_4, %c0_5] : memref<384x128xbf16, #tpu.memory_space<vmem>>, vector<384x128xbf16>
    %cst = arith.constant dense<0.000000e+00> : vector<32x128xf32>
    %6 = tpu.matmul %4, %5, %cst {dimension_numbers = #tpu.dot_dimension_numbers<[1], [0], [0], [1], [0, 0, 1, 1], [], []>} : vector<32x384xbf16>, vector<384x128xbf16>, vector<32x128xf32> -> vector<32x128xf32>
    %7 = arith.addf %3, %6 : vector<32x128xf32>
    %c0_6 = arith.constant 0 : index
    %c0_7 = arith.constant 0 : index
    %8 = vector.load %arg8[%c0_6, %c0_7] : memref<32x128xf32, #tpu.memory_space<vmem>>, vector<32x128xf32>
    tpu.vector_store %arg8[%c0_6, %c0_7], %7 {strides = array<i32>} : memref<32x128xf32, #tpu.memory_space<vmem>>, vector<32x128xf32>,
    %c2_i32 = arith.constant 2 : i32
    %9 = arith.cmpi eq, %arg2, %c2_i32 : i32
    %10 = arith.extui %9 : i1 to i32
    %c0_i32_8 = arith.constant 0 : i32
    %11 = arith.cmpi ne, %10, %c0_i32_8 : i32
    scf.if %11 {
      %c0_9 = arith.constant 0 : index
      %c0_10 = arith.constant 0 : index
      %12 = vector.load %arg8[%c0_9, %c0_10] : memref<32x128xf32, #tpu.memory_space<vmem>>, vector<32x128xf32>
      %c0_11 = arith.constant 0 : index
      %c0_12 = arith.constant 0 : index
      %13 = vector.load %arg5[%c0_11, %c0_12] : memref<1x128xf32, #tpu.memory_space<vmem>>, vector<1x128xf32>
      %14 = vector.broadcast %13 : vector<1x128xf32> to vector<32x128xf32>
      %15 = arith.addf %12, %14 : vector<32x128xf32>
      %c0_13 = arith.constant 0 : index
      %c0_14 = arith.constant 0 : index
      %16 = vector.load %arg6[%c0_13, %c0_14] : memref<32x128xbf16, #tpu.memory_space<vmem>>, vector<32x128xbf16>
      %17 = arith.extf %16 : vector<32x128xbf16> to vector<32x128xf32>
      %18 = arith.addf %15, %17 : vector<32x128xf32>
      %cst_15 = arith.constant 0.000000e+00 : f32
      %19 = vector.broadcast %cst_15 : f32 to vector<32x128xf32>
      %20 = arith.maximumf %18, %19 : vector<32x128xf32>
      %21 = arith.truncf %20 : vector<32x128xf32> to vector<32x128xbf16>
      %c0_16 = arith.constant 0 : index
      %c0_17 = arith.constant 0 : index
      %22 = vector.load %arg7[%c0_16, %c0_17] : memref<32x128xbf16, #tpu.memory_space<vmem>>, vector<32x128xbf16>
      tpu.vector_store %arg7[%c0_16, %c0_17], %21 {strides = array<i32>} : memref<32x128xbf16, #tpu.memory_space<vmem>>, vector<32x128xbf16>,
    } else {
    }
    return
  }
  func.func @transform_0(%arg0: i32, %arg1: i32, %arg2: i32) -> (i32, i32) {
    %c0_i32 = arith.constant 0 : i32
    return %arg0, %arg2 : i32, i32
  }
  func.func @transform_1(%arg0: i32, %arg1: i32, %arg2: i32) -> (i32, i32) {
    %c0_i32 = arith.constant 0 : i32
    return %arg2, %arg1 : i32, i32
  }
  func.func @transform_2(%arg0: i32, %arg1: i32, %arg2: i32) -> (i32, i32) {
    %c0_i32 = arith.constant 0 : i32
    %c0_i32_0 = arith.constant 0 : i32
    return %c0_i32, %arg1 : i32, i32
  }
  func.func @transform_3(%arg0: i32, %arg1: i32, %arg2: i32) -> (i32, i32) {
    %c0_i32 = arith.constant 0 : i32
    return %arg0, %arg1 : i32, i32
  }
  func.func @transform_4(%arg0: i32, %arg1: i32, %arg2: i32) -> (i32, i32) {
    %c0_i32 = arith.constant 0 : i32
    return %arg0, %arg1 : i32, i32
  }
}

module attributes {stable_mosaic.version = 11 : i64} {
  func.func @_conv_mm_kernel(%arg0: i32, %arg1: i32, %arg2: i32, %arg3: memref<32x128xbf16, #tpu.memory_space<vmem>>, %arg4: memref<128x128xbf16, #tpu.memory_space<vmem>>, %arg5: memref<1x128xf32, #tpu.memory_space<vmem>>, %arg6: memref<32x128xbf16, #tpu.memory_space<vmem>>, %arg7: memref<32x128xf32, #tpu.memory_space<vmem>>) attributes {dimension_semantics = [#tpu.dimension_semantics<parallel>, #tpu.dimension_semantics<parallel>, #tpu.dimension_semantics<arbitrary>], iteration_bounds = array<i64: 1, 1, 1>, scalar_prefetch = 0 : i64, scratch_operands = 1 : i64, tpu.core_type = #tpu.core_type<tc>, window_params = [{transform_indices = @transform_0, window_bounds = array<i64: 32, 128>}, {transform_indices = @transform_1, window_bounds = array<i64: 128, 128>}, {transform_indices = @transform_2, window_bounds = array<i64: 1, 128>}, {transform_indices = @transform_3, window_bounds = array<i64: 32, 128>}]} {
    %c0_i32 = arith.constant 0 : i32
    %0 = arith.cmpi eq, %arg2, %c0_i32 : i32
    %1 = arith.extui %0 : i1 to i32
    %c0_i32_0 = arith.constant 0 : i32
    %2 = arith.cmpi ne, %1, %c0_i32_0 : i32
    scf.if %2 {
      %cst_10 = arith.constant 0.000000e+00 : f32
      %12 = vector.broadcast %cst_10 : f32 to vector<32x128xf32>
      %c0_11 = arith.constant 0 : index
      %c0_12 = arith.constant 0 : index
      %13 = vector.load %arg7[%c0_11, %c0_12] : memref<32x128xf32, #tpu.memory_space<vmem>>, vector<32x128xf32>
      tpu.vector_store %arg7[%c0_11, %c0_12], %12 {strides = array<i32>} : memref<32x128xf32, #tpu.memory_space<vmem>>, vector<32x128xf32>,
    } else {
    }
    %c0 = arith.constant 0 : index
    %c0_1 = arith.constant 0 : index
    %3 = vector.load %arg7[%c0, %c0_1] : memref<32x128xf32, #tpu.memory_space<vmem>>, vector<32x128xf32>
    %c0_2 = arith.constant 0 : index
    %c0_3 = arith.constant 0 : index
    %4 = vector.load %arg3[%c0_2, %c0_3] : memref<32x128xbf16, #tpu.memory_space<vmem>>, vector<32x128xbf16>
    %c0_4 = arith.constant 0 : index
    %c0_5 = arith.constant 0 : index
    %5 = vector.load %arg4[%c0_4, %c0_5] : memref<128x128xbf16, #tpu.memory_space<vmem>>, vector<128x128xbf16>
    %cst = arith.constant dense<0.000000e+00> : vector<32x128xf32>
    %6 = tpu.matmul %4, %5, %cst {dimension_numbers = #tpu.dot_dimension_numbers<[1], [0], [0], [1], [0, 0, 1, 1], [], []>} : vector<32x128xbf16>, vector<128x128xbf16>, vector<32x128xf32> -> vector<32x128xf32>
    %7 = arith.addf %3, %6 : vector<32x128xf32>
    %c0_6 = arith.constant 0 : index
    %c0_7 = arith.constant 0 : index
    %8 = vector.load %arg7[%c0_6, %c0_7] : memref<32x128xf32, #tpu.memory_space<vmem>>, vector<32x128xf32>
    tpu.vector_store %arg7[%c0_6, %c0_7], %7 {strides = array<i32>} : memref<32x128xf32, #tpu.memory_space<vmem>>, vector<32x128xf32>,
    %c0_i32_8 = arith.constant 0 : i32
    %9 = arith.cmpi eq, %arg2, %c0_i32_8 : i32
    %10 = arith.extui %9 : i1 to i32
    %c0_i32_9 = arith.constant 0 : i32
    %11 = arith.cmpi ne, %10, %c0_i32_9 : i32
    scf.if %11 {
      %c0_10 = arith.constant 0 : index
      %c0_11 = arith.constant 0 : index
      %12 = vector.load %arg7[%c0_10, %c0_11] : memref<32x128xf32, #tpu.memory_space<vmem>>, vector<32x128xf32>
      %c0_12 = arith.constant 0 : index
      %c0_13 = arith.constant 0 : index
      %13 = vector.load %arg5[%c0_12, %c0_13] : memref<1x128xf32, #tpu.memory_space<vmem>>, vector<1x128xf32>
      %14 = vector.broadcast %13 : vector<1x128xf32> to vector<32x128xf32>
      %15 = arith.addf %12, %14 : vector<32x128xf32>
      %16 = arith.truncf %15 : vector<32x128xf32> to vector<32x128xbf16>
      %c0_14 = arith.constant 0 : index
      %c0_15 = arith.constant 0 : index
      %17 = vector.load %arg6[%c0_14, %c0_15] : memref<32x128xbf16, #tpu.memory_space<vmem>>, vector<32x128xbf16>
      tpu.vector_store %arg6[%c0_14, %c0_15], %16 {strides = array<i32>} : memref<32x128xbf16, #tpu.memory_space<vmem>>, vector<32x128xbf16>,
    } else {
    }
    return
  }
  func.func @transform_0(%arg0: i32, %arg1: i32, %arg2: i32) -> (i32, i32) {
    %c0_i32 = arith.constant 0 : i32
    return %arg0, %arg2 : i32, i32
  }
  func.func @transform_1(%arg0: i32, %arg1: i32, %arg2: i32) -> (i32, i32) {
    %c0_i32 = arith.constant 0 : i32
    return %arg2, %arg1 : i32, i32
  }
  func.func @transform_2(%arg0: i32, %arg1: i32, %arg2: i32) -> (i32, i32) {
    %c0_i32 = arith.constant 0 : i32
    %c0_i32_0 = arith.constant 0 : i32
    return %c0_i32, %arg1 : i32, i32
  }
  func.func @transform_3(%arg0: i32, %arg1: i32, %arg2: i32) -> (i32, i32) {
    %c0_i32 = arith.constant 0 : i32
    return %arg0, %arg1 : i32, i32
  }
}

module attributes {stable_mosaic.version = 11 : i64} {
  func.func @_conv_mm_kernel(%arg0: i32, %arg1: i32, %arg2: i32, %arg3: memref<32x384xbf16, #tpu.memory_space<vmem>>, %arg4: memref<384x128xbf16, #tpu.memory_space<vmem>>, %arg5: memref<1x128xf32, #tpu.memory_space<vmem>>, %arg6: memref<32x128xbf16, #tpu.memory_space<vmem>>, %arg7: memref<32x128xf32, #tpu.memory_space<vmem>>) attributes {dimension_semantics = [#tpu.dimension_semantics<parallel>, #tpu.dimension_semantics<parallel>, #tpu.dimension_semantics<arbitrary>], iteration_bounds = array<i64: 1, 1, 3>, scalar_prefetch = 0 : i64, scratch_operands = 1 : i64, tpu.core_type = #tpu.core_type<tc>, window_params = [{transform_indices = @transform_0, window_bounds = array<i64: 32, 384>}, {transform_indices = @transform_1, window_bounds = array<i64: 384, 128>}, {transform_indices = @transform_2, window_bounds = array<i64: 1, 128>}, {transform_indices = @transform_3, window_bounds = array<i64: 32, 128>}]} {
    %c0_i32 = arith.constant 0 : i32
    %0 = arith.cmpi eq, %arg2, %c0_i32 : i32
    %1 = arith.extui %0 : i1 to i32
    %c0_i32_0 = arith.constant 0 : i32
    %2 = arith.cmpi ne, %1, %c0_i32_0 : i32
    scf.if %2 {
      %cst_9 = arith.constant 0.000000e+00 : f32
      %12 = vector.broadcast %cst_9 : f32 to vector<32x128xf32>
      %c0_10 = arith.constant 0 : index
      %c0_11 = arith.constant 0 : index
      %13 = vector.load %arg7[%c0_10, %c0_11] : memref<32x128xf32, #tpu.memory_space<vmem>>, vector<32x128xf32>
      tpu.vector_store %arg7[%c0_10, %c0_11], %12 {strides = array<i32>} : memref<32x128xf32, #tpu.memory_space<vmem>>, vector<32x128xf32>,
    } else {
    }
    %c0 = arith.constant 0 : index
    %c0_1 = arith.constant 0 : index
    %3 = vector.load %arg7[%c0, %c0_1] : memref<32x128xf32, #tpu.memory_space<vmem>>, vector<32x128xf32>
    %c0_2 = arith.constant 0 : index
    %c0_3 = arith.constant 0 : index
    %4 = vector.load %arg3[%c0_2, %c0_3] : memref<32x384xbf16, #tpu.memory_space<vmem>>, vector<32x384xbf16>
    %c0_4 = arith.constant 0 : index
    %c0_5 = arith.constant 0 : index
    %5 = vector.load %arg4[%c0_4, %c0_5] : memref<384x128xbf16, #tpu.memory_space<vmem>>, vector<384x128xbf16>
    %cst = arith.constant dense<0.000000e+00> : vector<32x128xf32>
    %6 = tpu.matmul %4, %5, %cst {dimension_numbers = #tpu.dot_dimension_numbers<[1], [0], [0], [1], [0, 0, 1, 1], [], []>} : vector<32x384xbf16>, vector<384x128xbf16>, vector<32x128xf32> -> vector<32x128xf32>
    %7 = arith.addf %3, %6 : vector<32x128xf32>
    %c0_6 = arith.constant 0 : index
    %c0_7 = arith.constant 0 : index
    %8 = vector.load %arg7[%c0_6, %c0_7] : memref<32x128xf32, #tpu.memory_space<vmem>>, vector<32x128xf32>
    tpu.vector_store %arg7[%c0_6, %c0_7], %7 {strides = array<i32>} : memref<32x128xf32, #tpu.memory_space<vmem>>, vector<32x128xf32>,
    %c2_i32 = arith.constant 2 : i32
    %9 = arith.cmpi eq, %arg2, %c2_i32 : i32
    %10 = arith.extui %9 : i1 to i32
    %c0_i32_8 = arith.constant 0 : i32
    %11 = arith.cmpi ne, %10, %c0_i32_8 : i32
    scf.if %11 {
      %c0_9 = arith.constant 0 : index
      %c0_10 = arith.constant 0 : index
      %12 = vector.load %arg7[%c0_9, %c0_10] : memref<32x128xf32, #tpu.memory_space<vmem>>, vector<32x128xf32>
      %c0_11 = arith.constant 0 : index
      %c0_12 = arith.constant 0 : index
      %13 = vector.load %arg5[%c0_11, %c0_12] : memref<1x128xf32, #tpu.memory_space<vmem>>, vector<1x128xf32>
      %14 = vector.broadcast %13 : vector<1x128xf32> to vector<32x128xf32>
      %15 = arith.addf %12, %14 : vector<32x128xf32>
      %cst_13 = arith.constant 0.000000e+00 : f32
      %16 = vector.broadcast %cst_13 : f32 to vector<32x128xf32>
      %17 = arith.maximumf %15, %16 : vector<32x128xf32>
      %18 = arith.truncf %17 : vector<32x128xf32> to vector<32x128xbf16>
      %c0_14 = arith.constant 0 : index
      %c0_15 = arith.constant 0 : index
      %19 = vector.load %arg6[%c0_14, %c0_15] : memref<32x128xbf16, #tpu.memory_space<vmem>>, vector<32x128xbf16>
      tpu.vector_store %arg6[%c0_14, %c0_15], %18 {strides = array<i32>} : memref<32x128xbf16, #tpu.memory_space<vmem>>, vector<32x128xbf16>,
    } else {
    }
    return
  }
  func.func @transform_0(%arg0: i32, %arg1: i32, %arg2: i32) -> (i32, i32) {
    %c0_i32 = arith.constant 0 : i32
    return %arg0, %arg2 : i32, i32
  }
  func.func @transform_1(%arg0: i32, %arg1: i32, %arg2: i32) -> (i32, i32) {
    %c0_i32 = arith.constant 0 : i32
    return %arg2, %arg1 : i32, i32
  }
  func.func @transform_2(%arg0: i32, %arg1: i32, %arg2: i32) -> (i32, i32) {
    %c0_i32 = arith.constant 0 : i32
    %c0_i32_0 = arith.constant 0 : i32
    return %c0_i32, %arg1 : i32, i32
  }
  func.func @transform_3(%arg0: i32, %arg1: i32, %arg2: i32) -> (i32, i32) {
    %c0_i32 = arith.constant 0 : i32
    return %arg0, %arg1 : i32, i32
  }
}

module attributes {stable_mosaic.version = 11 : i64} {
  func.func @_conv_mm_kernel(%arg0: i32, %arg1: i32, %arg2: i32, %arg3: memref<8x384xbf16, #tpu.memory_space<vmem>>, %arg4: memref<384x256xbf16, #tpu.memory_space<vmem>>, %arg5: memref<1x256xf32, #tpu.memory_space<vmem>>, %arg6: memref<8x256xbf16, #tpu.memory_space<vmem>>, %arg7: memref<8x256xf32, #tpu.memory_space<vmem>>) attributes {dimension_semantics = [#tpu.dimension_semantics<parallel>, #tpu.dimension_semantics<parallel>, #tpu.dimension_semantics<arbitrary>], iteration_bounds = array<i64: 1, 1, 3>, scalar_prefetch = 0 : i64, scratch_operands = 1 : i64, tpu.core_type = #tpu.core_type<tc>, window_params = [{transform_indices = @transform_0, window_bounds = array<i64: 8, 384>}, {transform_indices = @transform_1, window_bounds = array<i64: 384, 256>}, {transform_indices = @transform_2, window_bounds = array<i64: 1, 256>}, {transform_indices = @transform_3, window_bounds = array<i64: 8, 256>}]} {
    %c0_i32 = arith.constant 0 : i32
    %0 = arith.cmpi eq, %arg2, %c0_i32 : i32
    %1 = arith.extui %0 : i1 to i32
    %c0_i32_0 = arith.constant 0 : i32
    %2 = arith.cmpi ne, %1, %c0_i32_0 : i32
    scf.if %2 {
      %cst_9 = arith.constant 0.000000e+00 : f32
      %12 = vector.broadcast %cst_9 : f32 to vector<8x256xf32>
      %c0_10 = arith.constant 0 : index
      %c0_11 = arith.constant 0 : index
      %13 = vector.load %arg7[%c0_10, %c0_11] : memref<8x256xf32, #tpu.memory_space<vmem>>, vector<8x256xf32>
      tpu.vector_store %arg7[%c0_10, %c0_11], %12 {strides = array<i32>} : memref<8x256xf32, #tpu.memory_space<vmem>>, vector<8x256xf32>,
    } else {
    }
    %c0 = arith.constant 0 : index
    %c0_1 = arith.constant 0 : index
    %3 = vector.load %arg7[%c0, %c0_1] : memref<8x256xf32, #tpu.memory_space<vmem>>, vector<8x256xf32>
    %c0_2 = arith.constant 0 : index
    %c0_3 = arith.constant 0 : index
    %4 = vector.load %arg3[%c0_2, %c0_3] : memref<8x384xbf16, #tpu.memory_space<vmem>>, vector<8x384xbf16>
    %c0_4 = arith.constant 0 : index
    %c0_5 = arith.constant 0 : index
    %5 = vector.load %arg4[%c0_4, %c0_5] : memref<384x256xbf16, #tpu.memory_space<vmem>>, vector<384x256xbf16>
    %cst = arith.constant dense<0.000000e+00> : vector<8x256xf32>
    %6 = tpu.matmul %4, %5, %cst {dimension_numbers = #tpu.dot_dimension_numbers<[1], [0], [0], [1], [0, 0, 1, 1], [], []>} : vector<8x384xbf16>, vector<384x256xbf16>, vector<8x256xf32> -> vector<8x256xf32>
    %7 = arith.addf %3, %6 : vector<8x256xf32>
    %c0_6 = arith.constant 0 : index
    %c0_7 = arith.constant 0 : index
    %8 = vector.load %arg7[%c0_6, %c0_7] : memref<8x256xf32, #tpu.memory_space<vmem>>, vector<8x256xf32>
    tpu.vector_store %arg7[%c0_6, %c0_7], %7 {strides = array<i32>} : memref<8x256xf32, #tpu.memory_space<vmem>>, vector<8x256xf32>,
    %c2_i32 = arith.constant 2 : i32
    %9 = arith.cmpi eq, %arg2, %c2_i32 : i32
    %10 = arith.extui %9 : i1 to i32
    %c0_i32_8 = arith.constant 0 : i32
    %11 = arith.cmpi ne, %10, %c0_i32_8 : i32
    scf.if %11 {
      %c0_9 = arith.constant 0 : index
      %c0_10 = arith.constant 0 : index
      %12 = vector.load %arg7[%c0_9, %c0_10] : memref<8x256xf32, #tpu.memory_space<vmem>>, vector<8x256xf32>
      %c0_11 = arith.constant 0 : index
      %c0_12 = arith.constant 0 : index
      %13 = vector.load %arg5[%c0_11, %c0_12] : memref<1x256xf32, #tpu.memory_space<vmem>>, vector<1x256xf32>
      %14 = vector.broadcast %13 : vector<1x256xf32> to vector<8x256xf32>
      %15 = arith.addf %12, %14 : vector<8x256xf32>
      %cst_13 = arith.constant 0.000000e+00 : f32
      %16 = vector.broadcast %cst_13 : f32 to vector<8x256xf32>
      %17 = arith.maximumf %15, %16 : vector<8x256xf32>
      %18 = arith.truncf %17 : vector<8x256xf32> to vector<8x256xbf16>
      %c0_14 = arith.constant 0 : index
      %c0_15 = arith.constant 0 : index
      %19 = vector.load %arg6[%c0_14, %c0_15] : memref<8x256xbf16, #tpu.memory_space<vmem>>, vector<8x256xbf16>
      tpu.vector_store %arg6[%c0_14, %c0_15], %18 {strides = array<i32>} : memref<8x256xbf16, #tpu.memory_space<vmem>>, vector<8x256xbf16>,
    } else {
    }
    return
  }
  func.func @transform_0(%arg0: i32, %arg1: i32, %arg2: i32) -> (i32, i32) {
    %c0_i32 = arith.constant 0 : i32
    return %arg0, %arg2 : i32, i32
  }
  func.func @transform_1(%arg0: i32, %arg1: i32, %arg2: i32) -> (i32, i32) {
    %c0_i32 = arith.constant 0 : i32
    return %arg2, %arg1 : i32, i32
  }
  func.func @transform_2(%arg0: i32, %arg1: i32, %arg2: i32) -> (i32, i32) {
    %c0_i32 = arith.constant 0 : i32
    %c0_i32_0 = arith.constant 0 : i32
    return %c0_i32, %arg1 : i32, i32
  }
  func.func @transform_3(%arg0: i32, %arg1: i32, %arg2: i32) -> (i32, i32) {
    %c0_i32 = arith.constant 0 : i32
    return %arg0, %arg1 : i32, i32
  }
}

module attributes {stable_mosaic.version = 11 : i64} {
  func.func @_conv_mm_kernel(%arg0: i32, %arg1: i32, %arg2: i32, %arg3: memref<8x128xbf16, #tpu.memory_space<vmem>>, %arg4: memref<128x256xbf16, #tpu.memory_space<vmem>>, %arg5: memref<1x256xf32, #tpu.memory_space<vmem>>, %arg6: memref<8x256xbf16, #tpu.memory_space<vmem>>, %arg7: memref<8x256xf32, #tpu.memory_space<vmem>>) attributes {dimension_semantics = [#tpu.dimension_semantics<parallel>, #tpu.dimension_semantics<parallel>, #tpu.dimension_semantics<arbitrary>], iteration_bounds = array<i64: 1, 1, 1>, scalar_prefetch = 0 : i64, scratch_operands = 1 : i64, tpu.core_type = #tpu.core_type<tc>, window_params = [{transform_indices = @transform_0, window_bounds = array<i64: 8, 128>}, {transform_indices = @transform_1, window_bounds = array<i64: 128, 256>}, {transform_indices = @transform_2, window_bounds = array<i64: 1, 256>}, {transform_indices = @transform_3, window_bounds = array<i64: 8, 256>}]} {
    %c0_i32 = arith.constant 0 : i32
    %0 = arith.cmpi eq, %arg2, %c0_i32 : i32
    %1 = arith.extui %0 : i1 to i32
    %c0_i32_0 = arith.constant 0 : i32
    %2 = arith.cmpi ne, %1, %c0_i32_0 : i32
    scf.if %2 {
      %cst_10 = arith.constant 0.000000e+00 : f32
      %12 = vector.broadcast %cst_10 : f32 to vector<8x256xf32>
      %c0_11 = arith.constant 0 : index
      %c0_12 = arith.constant 0 : index
      %13 = vector.load %arg7[%c0_11, %c0_12] : memref<8x256xf32, #tpu.memory_space<vmem>>, vector<8x256xf32>
      tpu.vector_store %arg7[%c0_11, %c0_12], %12 {strides = array<i32>} : memref<8x256xf32, #tpu.memory_space<vmem>>, vector<8x256xf32>,
    } else {
    }
    %c0 = arith.constant 0 : index
    %c0_1 = arith.constant 0 : index
    %3 = vector.load %arg7[%c0, %c0_1] : memref<8x256xf32, #tpu.memory_space<vmem>>, vector<8x256xf32>
    %c0_2 = arith.constant 0 : index
    %c0_3 = arith.constant 0 : index
    %4 = vector.load %arg3[%c0_2, %c0_3] : memref<8x128xbf16, #tpu.memory_space<vmem>>, vector<8x128xbf16>
    %c0_4 = arith.constant 0 : index
    %c0_5 = arith.constant 0 : index
    %5 = vector.load %arg4[%c0_4, %c0_5] : memref<128x256xbf16, #tpu.memory_space<vmem>>, vector<128x256xbf16>
    %cst = arith.constant dense<0.000000e+00> : vector<8x256xf32>
    %6 = tpu.matmul %4, %5, %cst {dimension_numbers = #tpu.dot_dimension_numbers<[1], [0], [0], [1], [0, 0, 1, 1], [], []>} : vector<8x128xbf16>, vector<128x256xbf16>, vector<8x256xf32> -> vector<8x256xf32>
    %7 = arith.addf %3, %6 : vector<8x256xf32>
    %c0_6 = arith.constant 0 : index
    %c0_7 = arith.constant 0 : index
    %8 = vector.load %arg7[%c0_6, %c0_7] : memref<8x256xf32, #tpu.memory_space<vmem>>, vector<8x256xf32>
    tpu.vector_store %arg7[%c0_6, %c0_7], %7 {strides = array<i32>} : memref<8x256xf32, #tpu.memory_space<vmem>>, vector<8x256xf32>,
    %c0_i32_8 = arith.constant 0 : i32
    %9 = arith.cmpi eq, %arg2, %c0_i32_8 : i32
    %10 = arith.extui %9 : i1 to i32
    %c0_i32_9 = arith.constant 0 : i32
    %11 = arith.cmpi ne, %10, %c0_i32_9 : i32
    scf.if %11 {
      %c0_10 = arith.constant 0 : index
      %c0_11 = arith.constant 0 : index
      %12 = vector.load %arg7[%c0_10, %c0_11] : memref<8x256xf32, #tpu.memory_space<vmem>>, vector<8x256xf32>
      %c0_12 = arith.constant 0 : index
      %c0_13 = arith.constant 0 : index
      %13 = vector.load %arg5[%c0_12, %c0_13] : memref<1x256xf32, #tpu.memory_space<vmem>>, vector<1x256xf32>
      %14 = vector.broadcast %13 : vector<1x256xf32> to vector<8x256xf32>
      %15 = arith.addf %12, %14 : vector<8x256xf32>
      %16 = arith.truncf %15 : vector<8x256xf32> to vector<8x256xbf16>
      %c0_14 = arith.constant 0 : index
      %c0_15 = arith.constant 0 : index
      %17 = vector.load %arg6[%c0_14, %c0_15] : memref<8x256xbf16, #tpu.memory_space<vmem>>, vector<8x256xbf16>
      tpu.vector_store %arg6[%c0_14, %c0_15], %16 {strides = array<i32>} : memref<8x256xbf16, #tpu.memory_space<vmem>>, vector<8x256xbf16>,
    } else {
    }
    return
  }
  func.func @transform_0(%arg0: i32, %arg1: i32, %arg2: i32) -> (i32, i32) {
    %c0_i32 = arith.constant 0 : i32
    return %arg0, %arg2 : i32, i32
  }
  func.func @transform_1(%arg0: i32, %arg1: i32, %arg2: i32) -> (i32, i32) {
    %c0_i32 = arith.constant 0 : i32
    return %arg2, %arg1 : i32, i32
  }
  func.func @transform_2(%arg0: i32, %arg1: i32, %arg2: i32) -> (i32, i32) {
    %c0_i32 = arith.constant 0 : i32
    %c0_i32_0 = arith.constant 0 : i32
    return %c0_i32, %arg1 : i32, i32
  }
  func.func @transform_3(%arg0: i32, %arg1: i32, %arg2: i32) -> (i32, i32) {
    %c0_i32 = arith.constant 0 : i32
    return %arg0, %arg1 : i32, i32
  }
}

module attributes {stable_mosaic.version = 11 : i64} {
  func.func @_conv_mm_kernel(%arg0: i32, %arg1: i32, %arg2: i32, %arg3: memref<8x384xbf16, #tpu.memory_space<vmem>>, %arg4: memref<384x256xbf16, #tpu.memory_space<vmem>>, %arg5: memref<1x256xf32, #tpu.memory_space<vmem>>, %arg6: memref<8x256xbf16, #tpu.memory_space<vmem>>, %arg7: memref<8x256xbf16, #tpu.memory_space<vmem>>, %arg8: memref<8x256xf32, #tpu.memory_space<vmem>>) attributes {dimension_semantics = [#tpu.dimension_semantics<parallel>, #tpu.dimension_semantics<parallel>, #tpu.dimension_semantics<arbitrary>], iteration_bounds = array<i64: 1, 1, 6>, scalar_prefetch = 0 : i64, scratch_operands = 1 : i64, tpu.core_type = #tpu.core_type<tc>, window_params = [{transform_indices = @transform_0, window_bounds = array<i64: 8, 384>}, {transform_indices = @transform_1, window_bounds = array<i64: 384, 256>}, {transform_indices = @transform_2, window_bounds = array<i64: 1, 256>}, {transform_indices = @transform_3, window_bounds = array<i64: 8, 256>}, {transform_indices = @transform_4, window_bounds = array<i64: 8, 256>}]} {
    %c0_i32 = arith.constant 0 : i32
    %0 = arith.cmpi eq, %arg2, %c0_i32 : i32
    %1 = arith.extui %0 : i1 to i32
    %c0_i32_0 = arith.constant 0 : i32
    %2 = arith.cmpi ne, %1, %c0_i32_0 : i32
    scf.if %2 {
      %cst_9 = arith.constant 0.000000e+00 : f32
      %12 = vector.broadcast %cst_9 : f32 to vector<8x256xf32>
      %c0_10 = arith.constant 0 : index
      %c0_11 = arith.constant 0 : index
      %13 = vector.load %arg8[%c0_10, %c0_11] : memref<8x256xf32, #tpu.memory_space<vmem>>, vector<8x256xf32>
      tpu.vector_store %arg8[%c0_10, %c0_11], %12 {strides = array<i32>} : memref<8x256xf32, #tpu.memory_space<vmem>>, vector<8x256xf32>,
    } else {
    }
    %c0 = arith.constant 0 : index
    %c0_1 = arith.constant 0 : index
    %3 = vector.load %arg8[%c0, %c0_1] : memref<8x256xf32, #tpu.memory_space<vmem>>, vector<8x256xf32>
    %c0_2 = arith.constant 0 : index
    %c0_3 = arith.constant 0 : index
    %4 = vector.load %arg3[%c0_2, %c0_3] : memref<8x384xbf16, #tpu.memory_space<vmem>>, vector<8x384xbf16>
    %c0_4 = arith.constant 0 : index
    %c0_5 = arith.constant 0 : index
    %5 = vector.load %arg4[%c0_4, %c0_5] : memref<384x256xbf16, #tpu.memory_space<vmem>>, vector<384x256xbf16>
    %cst = arith.constant dense<0.000000e+00> : vector<8x256xf32>
    %6 = tpu.matmul %4, %5, %cst {dimension_numbers = #tpu.dot_dimension_numbers<[1], [0], [0], [1], [0, 0, 1, 1], [], []>} : vector<8x384xbf16>, vector<384x256xbf16>, vector<8x256xf32> -> vector<8x256xf32>
    %7 = arith.addf %3, %6 : vector<8x256xf32>
    %c0_6 = arith.constant 0 : index
    %c0_7 = arith.constant 0 : index
    %8 = vector.load %arg8[%c0_6, %c0_7] : memref<8x256xf32, #tpu.memory_space<vmem>>, vector<8x256xf32>
    tpu.vector_store %arg8[%c0_6, %c0_7], %7 {strides = array<i32>} : memref<8x256xf32, #tpu.memory_space<vmem>>, vector<8x256xf32>,
    %c5_i32 = arith.constant 5 : i32
    %9 = arith.cmpi eq, %arg2, %c5_i32 : i32
    %10 = arith.extui %9 : i1 to i32
    %c0_i32_8 = arith.constant 0 : i32
    %11 = arith.cmpi ne, %10, %c0_i32_8 : i32
    scf.if %11 {
      %c0_9 = arith.constant 0 : index
      %c0_10 = arith.constant 0 : index
      %12 = vector.load %arg8[%c0_9, %c0_10] : memref<8x256xf32, #tpu.memory_space<vmem>>, vector<8x256xf32>
      %c0_11 = arith.constant 0 : index
      %c0_12 = arith.constant 0 : index
      %13 = vector.load %arg5[%c0_11, %c0_12] : memref<1x256xf32, #tpu.memory_space<vmem>>, vector<1x256xf32>
      %14 = vector.broadcast %13 : vector<1x256xf32> to vector<8x256xf32>
      %15 = arith.addf %12, %14 : vector<8x256xf32>
      %c0_13 = arith.constant 0 : index
      %c0_14 = arith.constant 0 : index
      %16 = vector.load %arg6[%c0_13, %c0_14] : memref<8x256xbf16, #tpu.memory_space<vmem>>, vector<8x256xbf16>
      %17 = arith.extf %16 : vector<8x256xbf16> to vector<8x256xf32>
      %18 = arith.addf %15, %17 : vector<8x256xf32>
      %cst_15 = arith.constant 0.000000e+00 : f32
      %19 = vector.broadcast %cst_15 : f32 to vector<8x256xf32>
      %20 = arith.maximumf %18, %19 : vector<8x256xf32>
      %21 = arith.truncf %20 : vector<8x256xf32> to vector<8x256xbf16>
      %c0_16 = arith.constant 0 : index
      %c0_17 = arith.constant 0 : index
      %22 = vector.load %arg7[%c0_16, %c0_17] : memref<8x256xbf16, #tpu.memory_space<vmem>>, vector<8x256xbf16>
      tpu.vector_store %arg7[%c0_16, %c0_17], %21 {strides = array<i32>} : memref<8x256xbf16, #tpu.memory_space<vmem>>, vector<8x256xbf16>,
    } else {
    }
    return
  }
  func.func @transform_0(%arg0: i32, %arg1: i32, %arg2: i32) -> (i32, i32) {
    %c0_i32 = arith.constant 0 : i32
    return %arg0, %arg2 : i32, i32
  }
  func.func @transform_1(%arg0: i32, %arg1: i32, %arg2: i32) -> (i32, i32) {
    %c0_i32 = arith.constant 0 : i32
    return %arg2, %arg1 : i32, i32
  }
  func.func @transform_2(%arg0: i32, %arg1: i32, %arg2: i32) -> (i32, i32) {
    %c0_i32 = arith.constant 0 : i32
    %c0_i32_0 = arith.constant 0 : i32
    return %c0_i32, %arg1 : i32, i32
  }
  func.func @transform_3(%arg0: i32, %arg1: i32, %arg2: i32) -> (i32, i32) {
    %c0_i32 = arith.constant 0 : i32
    return %arg0, %arg1 : i32, i32
  }
  func.func @transform_4(%arg0: i32, %arg1: i32, %arg2: i32) -> (i32, i32) {
    %c0_i32 = arith.constant 0 : i32
    return %arg0, %arg1 : i32, i32
  }
}

module attributes {stable_mosaic.version = 11 : i64} {
  func.func @_conv_mm_kernel(%arg0: i32, %arg1: i32, %arg2: i32, %arg3: memref<8x384xbf16, #tpu.memory_space<vmem>>, %arg4: memref<384x256xbf16, #tpu.memory_space<vmem>>, %arg5: memref<1x256xf32, #tpu.memory_space<vmem>>, %arg6: memref<8x256xbf16, #tpu.memory_space<vmem>>, %arg7: memref<8x256xf32, #tpu.memory_space<vmem>>) attributes {dimension_semantics = [#tpu.dimension_semantics<parallel>, #tpu.dimension_semantics<parallel>, #tpu.dimension_semantics<arbitrary>], iteration_bounds = array<i64: 1, 1, 6>, scalar_prefetch = 0 : i64, scratch_operands = 1 : i64, tpu.core_type = #tpu.core_type<tc>, window_params = [{transform_indices = @transform_0, window_bounds = array<i64: 8, 384>}, {transform_indices = @transform_1, window_bounds = array<i64: 384, 256>}, {transform_indices = @transform_2, window_bounds = array<i64: 1, 256>}, {transform_indices = @transform_3, window_bounds = array<i64: 8, 256>}]} {
    %c0_i32 = arith.constant 0 : i32
    %0 = arith.cmpi eq, %arg2, %c0_i32 : i32
    %1 = arith.extui %0 : i1 to i32
    %c0_i32_0 = arith.constant 0 : i32
    %2 = arith.cmpi ne, %1, %c0_i32_0 : i32
    scf.if %2 {
      %cst_9 = arith.constant 0.000000e+00 : f32
      %12 = vector.broadcast %cst_9 : f32 to vector<8x256xf32>
      %c0_10 = arith.constant 0 : index
      %c0_11 = arith.constant 0 : index
      %13 = vector.load %arg7[%c0_10, %c0_11] : memref<8x256xf32, #tpu.memory_space<vmem>>, vector<8x256xf32>
      tpu.vector_store %arg7[%c0_10, %c0_11], %12 {strides = array<i32>} : memref<8x256xf32, #tpu.memory_space<vmem>>, vector<8x256xf32>,
    } else {
    }
    %c0 = arith.constant 0 : index
    %c0_1 = arith.constant 0 : index
    %3 = vector.load %arg7[%c0, %c0_1] : memref<8x256xf32, #tpu.memory_space<vmem>>, vector<8x256xf32>
    %c0_2 = arith.constant 0 : index
    %c0_3 = arith.constant 0 : index
    %4 = vector.load %arg3[%c0_2, %c0_3] : memref<8x384xbf16, #tpu.memory_space<vmem>>, vector<8x384xbf16>
    %c0_4 = arith.constant 0 : index
    %c0_5 = arith.constant 0 : index
    %5 = vector.load %arg4[%c0_4, %c0_5] : memref<384x256xbf16, #tpu.memory_space<vmem>>, vector<384x256xbf16>
    %cst = arith.constant dense<0.000000e+00> : vector<8x256xf32>
    %6 = tpu.matmul %4, %5, %cst {dimension_numbers = #tpu.dot_dimension_numbers<[1], [0], [0], [1], [0, 0, 1, 1], [], []>} : vector<8x384xbf16>, vector<384x256xbf16>, vector<8x256xf32> -> vector<8x256xf32>
    %7 = arith.addf %3, %6 : vector<8x256xf32>
    %c0_6 = arith.constant 0 : index
    %c0_7 = arith.constant 0 : index
    %8 = vector.load %arg7[%c0_6, %c0_7] : memref<8x256xf32, #tpu.memory_space<vmem>>, vector<8x256xf32>
    tpu.vector_store %arg7[%c0_6, %c0_7], %7 {strides = array<i32>} : memref<8x256xf32, #tpu.memory_space<vmem>>, vector<8x256xf32>,
    %c5_i32 = arith.constant 5 : i32
    %9 = arith.cmpi eq, %arg2, %c5_i32 : i32
    %10 = arith.extui %9 : i1 to i32
    %c0_i32_8 = arith.constant 0 : i32
    %11 = arith.cmpi ne, %10, %c0_i32_8 : i32
    scf.if %11 {
      %c0_9 = arith.constant 0 : index
      %c0_10 = arith.constant 0 : index
      %12 = vector.load %arg7[%c0_9, %c0_10] : memref<8x256xf32, #tpu.memory_space<vmem>>, vector<8x256xf32>
      %c0_11 = arith.constant 0 : index
      %c0_12 = arith.constant 0 : index
      %13 = vector.load %arg5[%c0_11, %c0_12] : memref<1x256xf32, #tpu.memory_space<vmem>>, vector<1x256xf32>
      %14 = vector.broadcast %13 : vector<1x256xf32> to vector<8x256xf32>
      %15 = arith.addf %12, %14 : vector<8x256xf32>
      %cst_13 = arith.constant 0.000000e+00 : f32
      %16 = vector.broadcast %cst_13 : f32 to vector<8x256xf32>
      %17 = arith.maximumf %15, %16 : vector<8x256xf32>
      %18 = arith.truncf %17 : vector<8x256xf32> to vector<8x256xbf16>
      %c0_14 = arith.constant 0 : index
      %c0_15 = arith.constant 0 : index
      %19 = vector.load %arg6[%c0_14, %c0_15] : memref<8x256xbf16, #tpu.memory_space<vmem>>, vector<8x256xbf16>
      tpu.vector_store %arg6[%c0_14, %c0_15], %18 {strides = array<i32>} : memref<8x256xbf16, #tpu.memory_space<vmem>>, vector<8x256xbf16>,
    } else {
    }
    return
  }
  func.func @transform_0(%arg0: i32, %arg1: i32, %arg2: i32) -> (i32, i32) {
    %c0_i32 = arith.constant 0 : i32
    return %arg0, %arg2 : i32, i32
  }
  func.func @transform_1(%arg0: i32, %arg1: i32, %arg2: i32) -> (i32, i32) {
    %c0_i32 = arith.constant 0 : i32
    return %arg2, %arg1 : i32, i32
  }
  func.func @transform_2(%arg0: i32, %arg1: i32, %arg2: i32) -> (i32, i32) {
    %c0_i32 = arith.constant 0 : i32
    %c0_i32_0 = arith.constant 0 : i32
    return %c0_i32, %arg1 : i32, i32
  }
  func.func @transform_3(%arg0: i32, %arg1: i32, %arg2: i32) -> (i32, i32) {
    %c0_i32 = arith.constant 0 : i32
    return %arg0, %arg1 : i32, i32
  }
}

module attributes {stable_mosaic.version = 11 : i64} {
  func.func @_conv_mm_kernel(%arg0: i32, %arg1: i32, %arg2: i32, %arg3: memref<8x384xbf16, #tpu.memory_space<vmem>>, %arg4: memref<384x256xbf16, #tpu.memory_space<vmem>>, %arg5: memref<1x256xf32, #tpu.memory_space<vmem>>, %arg6: memref<8x256xbf16, #tpu.memory_space<vmem>>, %arg7: memref<8x256xf32, #tpu.memory_space<vmem>>) attributes {dimension_semantics = [#tpu.dimension_semantics<parallel>, #tpu.dimension_semantics<parallel>, #tpu.dimension_semantics<arbitrary>], iteration_bounds = array<i64: 1, 2, 6>, scalar_prefetch = 0 : i64, scratch_operands = 1 : i64, tpu.core_type = #tpu.core_type<tc>, window_params = [{transform_indices = @transform_0, window_bounds = array<i64: 8, 384>}, {transform_indices = @transform_1, window_bounds = array<i64: 384, 256>}, {transform_indices = @transform_2, window_bounds = array<i64: 1, 256>}, {transform_indices = @transform_3, window_bounds = array<i64: 8, 256>}]} {
    %c0_i32 = arith.constant 0 : i32
    %0 = arith.cmpi eq, %arg2, %c0_i32 : i32
    %1 = arith.extui %0 : i1 to i32
    %c0_i32_0 = arith.constant 0 : i32
    %2 = arith.cmpi ne, %1, %c0_i32_0 : i32
    scf.if %2 {
      %cst_9 = arith.constant 0.000000e+00 : f32
      %12 = vector.broadcast %cst_9 : f32 to vector<8x256xf32>
      %c0_10 = arith.constant 0 : index
      %c0_11 = arith.constant 0 : index
      %13 = vector.load %arg7[%c0_10, %c0_11] : memref<8x256xf32, #tpu.memory_space<vmem>>, vector<8x256xf32>
      tpu.vector_store %arg7[%c0_10, %c0_11], %12 {strides = array<i32>} : memref<8x256xf32, #tpu.memory_space<vmem>>, vector<8x256xf32>,
    } else {
    }
    %c0 = arith.constant 0 : index
    %c0_1 = arith.constant 0 : index
    %3 = vector.load %arg7[%c0, %c0_1] : memref<8x256xf32, #tpu.memory_space<vmem>>, vector<8x256xf32>
    %c0_2 = arith.constant 0 : index
    %c0_3 = arith.constant 0 : index
    %4 = vector.load %arg3[%c0_2, %c0_3] : memref<8x384xbf16, #tpu.memory_space<vmem>>, vector<8x384xbf16>
    %c0_4 = arith.constant 0 : index
    %c0_5 = arith.constant 0 : index
    %5 = vector.load %arg4[%c0_4, %c0_5] : memref<384x256xbf16, #tpu.memory_space<vmem>>, vector<384x256xbf16>
    %cst = arith.constant dense<0.000000e+00> : vector<8x256xf32>
    %6 = tpu.matmul %4, %5, %cst {dimension_numbers = #tpu.dot_dimension_numbers<[1], [0], [0], [1], [0, 0, 1, 1], [], []>} : vector<8x384xbf16>, vector<384x256xbf16>, vector<8x256xf32> -> vector<8x256xf32>
    %7 = arith.addf %3, %6 : vector<8x256xf32>
    %c0_6 = arith.constant 0 : index
    %c0_7 = arith.constant 0 : index
    %8 = vector.load %arg7[%c0_6, %c0_7] : memref<8x256xf32, #tpu.memory_space<vmem>>, vector<8x256xf32>
    tpu.vector_store %arg7[%c0_6, %c0_7], %7 {strides = array<i32>} : memref<8x256xf32, #tpu.memory_space<vmem>>, vector<8x256xf32>,
    %c5_i32 = arith.constant 5 : i32
    %9 = arith.cmpi eq, %arg2, %c5_i32 : i32
    %10 = arith.extui %9 : i1 to i32
    %c0_i32_8 = arith.constant 0 : i32
    %11 = arith.cmpi ne, %10, %c0_i32_8 : i32
    scf.if %11 {
      %c0_9 = arith.constant 0 : index
      %c0_10 = arith.constant 0 : index
      %12 = vector.load %arg7[%c0_9, %c0_10] : memref<8x256xf32, #tpu.memory_space<vmem>>, vector<8x256xf32>
      %c0_11 = arith.constant 0 : index
      %c0_12 = arith.constant 0 : index
      %13 = vector.load %arg5[%c0_11, %c0_12] : memref<1x256xf32, #tpu.memory_space<vmem>>, vector<1x256xf32>
      %14 = vector.broadcast %13 : vector<1x256xf32> to vector<8x256xf32>
      %15 = arith.addf %12, %14 : vector<8x256xf32>
      %cst_13 = arith.constant 0.000000e+00 : f32
      %16 = vector.broadcast %cst_13 : f32 to vector<8x256xf32>
      %17 = arith.maximumf %15, %16 : vector<8x256xf32>
      %18 = arith.truncf %17 : vector<8x256xf32> to vector<8x256xbf16>
      %c0_14 = arith.constant 0 : index
      %c0_15 = arith.constant 0 : index
      %19 = vector.load %arg6[%c0_14, %c0_15] : memref<8x256xbf16, #tpu.memory_space<vmem>>, vector<8x256xbf16>
      tpu.vector_store %arg6[%c0_14, %c0_15], %18 {strides = array<i32>} : memref<8x256xbf16, #tpu.memory_space<vmem>>, vector<8x256xbf16>,
    } else {
    }
    return
  }
  func.func @transform_0(%arg0: i32, %arg1: i32, %arg2: i32) -> (i32, i32) {
    %c0_i32 = arith.constant 0 : i32
    return %arg0, %arg2 : i32, i32
  }
  func.func @transform_1(%arg0: i32, %arg1: i32, %arg2: i32) -> (i32, i32) {
    %c0_i32 = arith.constant 0 : i32
    return %arg2, %arg1 : i32, i32
  }
  func.func @transform_2(%arg0: i32, %arg1: i32, %arg2: i32) -> (i32, i32) {
    %c0_i32 = arith.constant 0 : i32
    %c0_i32_0 = arith.constant 0 : i32
    return %c0_i32, %arg1 : i32, i32
  }
  func.func @transform_3(%arg0: i32, %arg1: i32, %arg2: i32) -> (i32, i32) {
    %c0_i32 = arith.constant 0 : i32
    return %arg0, %arg1 : i32, i32
  }
}

module attributes {stable_mosaic.version = 11 : i64} {
  func.func @_conv_mm_kernel(%arg0: i32, %arg1: i32, %arg2: i32, %arg3: memref<8x256xbf16, #tpu.memory_space<vmem>>, %arg4: memref<256x256xbf16, #tpu.memory_space<vmem>>, %arg5: memref<1x256xf32, #tpu.memory_space<vmem>>, %arg6: memref<8x256xbf16, #tpu.memory_space<vmem>>, %arg7: memref<8x256xf32, #tpu.memory_space<vmem>>) attributes {dimension_semantics = [#tpu.dimension_semantics<parallel>, #tpu.dimension_semantics<parallel>, #tpu.dimension_semantics<arbitrary>], iteration_bounds = array<i64: 1, 2, 1>, scalar_prefetch = 0 : i64, scratch_operands = 1 : i64, tpu.core_type = #tpu.core_type<tc>, window_params = [{transform_indices = @transform_0, window_bounds = array<i64: 8, 256>}, {transform_indices = @transform_1, window_bounds = array<i64: 256, 256>}, {transform_indices = @transform_2, window_bounds = array<i64: 1, 256>}, {transform_indices = @transform_3, window_bounds = array<i64: 8, 256>}]} {
    %c0_i32 = arith.constant 0 : i32
    %0 = arith.cmpi eq, %arg2, %c0_i32 : i32
    %1 = arith.extui %0 : i1 to i32
    %c0_i32_0 = arith.constant 0 : i32
    %2 = arith.cmpi ne, %1, %c0_i32_0 : i32
    scf.if %2 {
      %cst_10 = arith.constant 0.000000e+00 : f32
      %12 = vector.broadcast %cst_10 : f32 to vector<8x256xf32>
      %c0_11 = arith.constant 0 : index
      %c0_12 = arith.constant 0 : index
      %13 = vector.load %arg7[%c0_11, %c0_12] : memref<8x256xf32, #tpu.memory_space<vmem>>, vector<8x256xf32>
      tpu.vector_store %arg7[%c0_11, %c0_12], %12 {strides = array<i32>} : memref<8x256xf32, #tpu.memory_space<vmem>>, vector<8x256xf32>,
    } else {
    }
    %c0 = arith.constant 0 : index
    %c0_1 = arith.constant 0 : index
    %3 = vector.load %arg7[%c0, %c0_1] : memref<8x256xf32, #tpu.memory_space<vmem>>, vector<8x256xf32>
    %c0_2 = arith.constant 0 : index
    %c0_3 = arith.constant 0 : index
    %4 = vector.load %arg3[%c0_2, %c0_3] : memref<8x256xbf16, #tpu.memory_space<vmem>>, vector<8x256xbf16>
    %c0_4 = arith.constant 0 : index
    %c0_5 = arith.constant 0 : index
    %5 = vector.load %arg4[%c0_4, %c0_5] : memref<256x256xbf16, #tpu.memory_space<vmem>>, vector<256x256xbf16>
    %cst = arith.constant dense<0.000000e+00> : vector<8x256xf32>
    %6 = tpu.matmul %4, %5, %cst {dimension_numbers = #tpu.dot_dimension_numbers<[1], [0], [0], [1], [0, 0, 1, 1], [], []>} : vector<8x256xbf16>, vector<256x256xbf16>, vector<8x256xf32> -> vector<8x256xf32>
    %7 = arith.addf %3, %6 : vector<8x256xf32>
    %c0_6 = arith.constant 0 : index
    %c0_7 = arith.constant 0 : index
    %8 = vector.load %arg7[%c0_6, %c0_7] : memref<8x256xf32, #tpu.memory_space<vmem>>, vector<8x256xf32>
    tpu.vector_store %arg7[%c0_6, %c0_7], %7 {strides = array<i32>} : memref<8x256xf32, #tpu.memory_space<vmem>>, vector<8x256xf32>,
    %c0_i32_8 = arith.constant 0 : i32
    %9 = arith.cmpi eq, %arg2, %c0_i32_8 : i32
    %10 = arith.extui %9 : i1 to i32
    %c0_i32_9 = arith.constant 0 : i32
    %11 = arith.cmpi ne, %10, %c0_i32_9 : i32
    scf.if %11 {
      %c0_10 = arith.constant 0 : index
      %c0_11 = arith.constant 0 : index
      %12 = vector.load %arg7[%c0_10, %c0_11] : memref<8x256xf32, #tpu.memory_space<vmem>>, vector<8x256xf32>
      %c0_12 = arith.constant 0 : index
      %c0_13 = arith.constant 0 : index
      %13 = vector.load %arg5[%c0_12, %c0_13] : memref<1x256xf32, #tpu.memory_space<vmem>>, vector<1x256xf32>
      %14 = vector.broadcast %13 : vector<1x256xf32> to vector<8x256xf32>
      %15 = arith.addf %12, %14 : vector<8x256xf32>
      %16 = arith.truncf %15 : vector<8x256xf32> to vector<8x256xbf16>
      %c0_14 = arith.constant 0 : index
      %c0_15 = arith.constant 0 : index
      %17 = vector.load %arg6[%c0_14, %c0_15] : memref<8x256xbf16, #tpu.memory_space<vmem>>, vector<8x256xbf16>
      tpu.vector_store %arg6[%c0_14, %c0_15], %16 {strides = array<i32>} : memref<8x256xbf16, #tpu.memory_space<vmem>>, vector<8x256xbf16>,
    } else {
    }
    return
  }
  func.func @transform_0(%arg0: i32, %arg1: i32, %arg2: i32) -> (i32, i32) {
    %c0_i32 = arith.constant 0 : i32
    return %arg0, %arg2 : i32, i32
  }
  func.func @transform_1(%arg0: i32, %arg1: i32, %arg2: i32) -> (i32, i32) {
    %c0_i32 = arith.constant 0 : i32
    return %arg2, %arg1 : i32, i32
  }
  func.func @transform_2(%arg0: i32, %arg1: i32, %arg2: i32) -> (i32, i32) {
    %c0_i32 = arith.constant 0 : i32
    %c0_i32_0 = arith.constant 0 : i32
    return %c0_i32, %arg1 : i32, i32
  }
  func.func @transform_3(%arg0: i32, %arg1: i32, %arg2: i32) -> (i32, i32) {
    %c0_i32 = arith.constant 0 : i32
    return %arg0, %arg1 : i32, i32
  }
}

module attributes {stable_mosaic.version = 11 : i64} {
  func.func @_conv_mm_kernel(%arg0: i32, %arg1: i32, %arg2: i32, %arg3: memref<8x512xbf16, #tpu.memory_space<vmem>>, %arg4: memref<512x256xbf16, #tpu.memory_space<vmem>>, %arg5: memref<1x256xf32, #tpu.memory_space<vmem>>, %arg6: memref<8x256xbf16, #tpu.memory_space<vmem>>, %arg7: memref<8x256xbf16, #tpu.memory_space<vmem>>, %arg8: memref<8x256xf32, #tpu.memory_space<vmem>>) attributes {dimension_semantics = [#tpu.dimension_semantics<parallel>, #tpu.dimension_semantics<parallel>, #tpu.dimension_semantics<arbitrary>], iteration_bounds = array<i64: 1, 2, 9>, scalar_prefetch = 0 : i64, scratch_operands = 1 : i64, tpu.core_type = #tpu.core_type<tc>, window_params = [{transform_indices = @transform_0, window_bounds = array<i64: 8, 512>}, {transform_indices = @transform_1, window_bounds = array<i64: 512, 256>}, {transform_indices = @transform_2, window_bounds = array<i64: 1, 256>}, {transform_indices = @transform_3, window_bounds = array<i64: 8, 256>}, {transform_indices = @transform_4, window_bounds = array<i64: 8, 256>}]} {
    %c0_i32 = arith.constant 0 : i32
    %0 = arith.cmpi eq, %arg2, %c0_i32 : i32
    %1 = arith.extui %0 : i1 to i32
    %c0_i32_0 = arith.constant 0 : i32
    %2 = arith.cmpi ne, %1, %c0_i32_0 : i32
    scf.if %2 {
      %cst_9 = arith.constant 0.000000e+00 : f32
      %12 = vector.broadcast %cst_9 : f32 to vector<8x256xf32>
      %c0_10 = arith.constant 0 : index
      %c0_11 = arith.constant 0 : index
      %13 = vector.load %arg8[%c0_10, %c0_11] : memref<8x256xf32, #tpu.memory_space<vmem>>, vector<8x256xf32>
      tpu.vector_store %arg8[%c0_10, %c0_11], %12 {strides = array<i32>} : memref<8x256xf32, #tpu.memory_space<vmem>>, vector<8x256xf32>,
    } else {
    }
    %c0 = arith.constant 0 : index
    %c0_1 = arith.constant 0 : index
    %3 = vector.load %arg8[%c0, %c0_1] : memref<8x256xf32, #tpu.memory_space<vmem>>, vector<8x256xf32>
    %c0_2 = arith.constant 0 : index
    %c0_3 = arith.constant 0 : index
    %4 = vector.load %arg3[%c0_2, %c0_3] : memref<8x512xbf16, #tpu.memory_space<vmem>>, vector<8x512xbf16>
    %c0_4 = arith.constant 0 : index
    %c0_5 = arith.constant 0 : index
    %5 = vector.load %arg4[%c0_4, %c0_5] : memref<512x256xbf16, #tpu.memory_space<vmem>>, vector<512x256xbf16>
    %cst = arith.constant dense<0.000000e+00> : vector<8x256xf32>
    %6 = tpu.matmul %4, %5, %cst {dimension_numbers = #tpu.dot_dimension_numbers<[1], [0], [0], [1], [0, 0, 1, 1], [], []>} : vector<8x512xbf16>, vector<512x256xbf16>, vector<8x256xf32> -> vector<8x256xf32>
    %7 = arith.addf %3, %6 : vector<8x256xf32>
    %c0_6 = arith.constant 0 : index
    %c0_7 = arith.constant 0 : index
    %8 = vector.load %arg8[%c0_6, %c0_7] : memref<8x256xf32, #tpu.memory_space<vmem>>, vector<8x256xf32>
    tpu.vector_store %arg8[%c0_6, %c0_7], %7 {strides = array<i32>} : memref<8x256xf32, #tpu.memory_space<vmem>>, vector<8x256xf32>,
    %c8_i32 = arith.constant 8 : i32
    %9 = arith.cmpi eq, %arg2, %c8_i32 : i32
    %10 = arith.extui %9 : i1 to i32
    %c0_i32_8 = arith.constant 0 : i32
    %11 = arith.cmpi ne, %10, %c0_i32_8 : i32
    scf.if %11 {
      %c0_9 = arith.constant 0 : index
      %c0_10 = arith.constant 0 : index
      %12 = vector.load %arg8[%c0_9, %c0_10] : memref<8x256xf32, #tpu.memory_space<vmem>>, vector<8x256xf32>
      %c0_11 = arith.constant 0 : index
      %c0_12 = arith.constant 0 : index
      %13 = vector.load %arg5[%c0_11, %c0_12] : memref<1x256xf32, #tpu.memory_space<vmem>>, vector<1x256xf32>
      %14 = vector.broadcast %13 : vector<1x256xf32> to vector<8x256xf32>
      %15 = arith.addf %12, %14 : vector<8x256xf32>
      %c0_13 = arith.constant 0 : index
      %c0_14 = arith.constant 0 : index
      %16 = vector.load %arg6[%c0_13, %c0_14] : memref<8x256xbf16, #tpu.memory_space<vmem>>, vector<8x256xbf16>
      %17 = arith.extf %16 : vector<8x256xbf16> to vector<8x256xf32>
      %18 = arith.addf %15, %17 : vector<8x256xf32>
      %cst_15 = arith.constant 0.000000e+00 : f32
      %19 = vector.broadcast %cst_15 : f32 to vector<8x256xf32>
      %20 = arith.maximumf %18, %19 : vector<8x256xf32>
      %21 = arith.truncf %20 : vector<8x256xf32> to vector<8x256xbf16>
      %c0_16 = arith.constant 0 : index
      %c0_17 = arith.constant 0 : index
      %22 = vector.load %arg7[%c0_16, %c0_17] : memref<8x256xbf16, #tpu.memory_space<vmem>>, vector<8x256xbf16>
      tpu.vector_store %arg7[%c0_16, %c0_17], %21 {strides = array<i32>} : memref<8x256xbf16, #tpu.memory_space<vmem>>, vector<8x256xbf16>,
    } else {
    }
    return
  }
  func.func @transform_0(%arg0: i32, %arg1: i32, %arg2: i32) -> (i32, i32) {
    %c0_i32 = arith.constant 0 : i32
    return %arg0, %arg2 : i32, i32
  }
  func.func @transform_1(%arg0: i32, %arg1: i32, %arg2: i32) -> (i32, i32) {
    %c0_i32 = arith.constant 0 : i32
    return %arg2, %arg1 : i32, i32
  }
  func.func @transform_2(%arg0: i32, %arg1: i32, %arg2: i32) -> (i32, i32) {
    %c0_i32 = arith.constant 0 : i32
    %c0_i32_0 = arith.constant 0 : i32
    return %c0_i32, %arg1 : i32, i32
  }
  func.func @transform_3(%arg0: i32, %arg1: i32, %arg2: i32) -> (i32, i32) {
    %c0_i32 = arith.constant 0 : i32
    return %arg0, %arg1 : i32, i32
  }
  func.func @transform_4(%arg0: i32, %arg1: i32, %arg2: i32) -> (i32, i32) {
    %c0_i32 = arith.constant 0 : i32
    return %arg0, %arg1 : i32, i32
  }
}

module attributes {stable_mosaic.version = 11 : i64} {
  func.func @_conv_mm_kernel(%arg0: i32, %arg1: i32, %arg2: i32, %arg3: memref<8x512xbf16, #tpu.memory_space<vmem>>, %arg4: memref<512x256xbf16, #tpu.memory_space<vmem>>, %arg5: memref<1x256xf32, #tpu.memory_space<vmem>>, %arg6: memref<8x256xbf16, #tpu.memory_space<vmem>>, %arg7: memref<8x256xf32, #tpu.memory_space<vmem>>) attributes {dimension_semantics = [#tpu.dimension_semantics<parallel>, #tpu.dimension_semantics<parallel>, #tpu.dimension_semantics<arbitrary>], iteration_bounds = array<i64: 1, 2, 9>, scalar_prefetch = 0 : i64, scratch_operands = 1 : i64, tpu.core_type = #tpu.core_type<tc>, window_params = [{transform_indices = @transform_0, window_bounds = array<i64: 8, 512>}, {transform_indices = @transform_1, window_bounds = array<i64: 512, 256>}, {transform_indices = @transform_2, window_bounds = array<i64: 1, 256>}, {transform_indices = @transform_3, window_bounds = array<i64: 8, 256>}]} {
    %c0_i32 = arith.constant 0 : i32
    %0 = arith.cmpi eq, %arg2, %c0_i32 : i32
    %1 = arith.extui %0 : i1 to i32
    %c0_i32_0 = arith.constant 0 : i32
    %2 = arith.cmpi ne, %1, %c0_i32_0 : i32
    scf.if %2 {
      %cst_9 = arith.constant 0.000000e+00 : f32
      %12 = vector.broadcast %cst_9 : f32 to vector<8x256xf32>
      %c0_10 = arith.constant 0 : index
      %c0_11 = arith.constant 0 : index
      %13 = vector.load %arg7[%c0_10, %c0_11] : memref<8x256xf32, #tpu.memory_space<vmem>>, vector<8x256xf32>
      tpu.vector_store %arg7[%c0_10, %c0_11], %12 {strides = array<i32>} : memref<8x256xf32, #tpu.memory_space<vmem>>, vector<8x256xf32>,
    } else {
    }
    %c0 = arith.constant 0 : index
    %c0_1 = arith.constant 0 : index
    %3 = vector.load %arg7[%c0, %c0_1] : memref<8x256xf32, #tpu.memory_space<vmem>>, vector<8x256xf32>
    %c0_2 = arith.constant 0 : index
    %c0_3 = arith.constant 0 : index
    %4 = vector.load %arg3[%c0_2, %c0_3] : memref<8x512xbf16, #tpu.memory_space<vmem>>, vector<8x512xbf16>
    %c0_4 = arith.constant 0 : index
    %c0_5 = arith.constant 0 : index
    %5 = vector.load %arg4[%c0_4, %c0_5] : memref<512x256xbf16, #tpu.memory_space<vmem>>, vector<512x256xbf16>
    %cst = arith.constant dense<0.000000e+00> : vector<8x256xf32>
    %6 = tpu.matmul %4, %5, %cst {dimension_numbers = #tpu.dot_dimension_numbers<[1], [0], [0], [1], [0, 0, 1, 1], [], []>} : vector<8x512xbf16>, vector<512x256xbf16>, vector<8x256xf32> -> vector<8x256xf32>
    %7 = arith.addf %3, %6 : vector<8x256xf32>
    %c0_6 = arith.constant 0 : index
    %c0_7 = arith.constant 0 : index
    %8 = vector.load %arg7[%c0_6, %c0_7] : memref<8x256xf32, #tpu.memory_space<vmem>>, vector<8x256xf32>
    tpu.vector_store %arg7[%c0_6, %c0_7], %7 {strides = array<i32>} : memref<8x256xf32, #tpu.memory_space<vmem>>, vector<8x256xf32>,
    %c8_i32 = arith.constant 8 : i32
    %9 = arith.cmpi eq, %arg2, %c8_i32 : i32
    %10 = arith.extui %9 : i1 to i32
    %c0_i32_8 = arith.constant 0 : i32
    %11 = arith.cmpi ne, %10, %c0_i32_8 : i32
    scf.if %11 {
      %c0_9 = arith.constant 0 : index
      %c0_10 = arith.constant 0 : index
      %12 = vector.load %arg7[%c0_9, %c0_10] : memref<8x256xf32, #tpu.memory_space<vmem>>, vector<8x256xf32>
      %c0_11 = arith.constant 0 : index
      %c0_12 = arith.constant 0 : index
      %13 = vector.load %arg5[%c0_11, %c0_12] : memref<1x256xf32, #tpu.memory_space<vmem>>, vector<1x256xf32>
      %14 = vector.broadcast %13 : vector<1x256xf32> to vector<8x256xf32>
      %15 = arith.addf %12, %14 : vector<8x256xf32>
      %cst_13 = arith.constant 0.000000e+00 : f32
      %16 = vector.broadcast %cst_13 : f32 to vector<8x256xf32>
      %17 = arith.maximumf %15, %16 : vector<8x256xf32>
      %18 = arith.truncf %17 : vector<8x256xf32> to vector<8x256xbf16>
      %c0_14 = arith.constant 0 : index
      %c0_15 = arith.constant 0 : index
      %19 = vector.load %arg6[%c0_14, %c0_15] : memref<8x256xbf16, #tpu.memory_space<vmem>>, vector<8x256xbf16>
      tpu.vector_store %arg6[%c0_14, %c0_15], %18 {strides = array<i32>} : memref<8x256xbf16, #tpu.memory_space<vmem>>, vector<8x256xbf16>,
    } else {
    }
    return
  }
  func.func @transform_0(%arg0: i32, %arg1: i32, %arg2: i32) -> (i32, i32) {
    %c0_i32 = arith.constant 0 : i32
    return %arg0, %arg2 : i32, i32
  }
  func.func @transform_1(%arg0: i32, %arg1: i32, %arg2: i32) -> (i32, i32) {
    %c0_i32 = arith.constant 0 : i32
    return %arg2, %arg1 : i32, i32
  }
  func.func @transform_2(%arg0: i32, %arg1: i32, %arg2: i32) -> (i32, i32) {
    %c0_i32 = arith.constant 0 : i32
    %c0_i32_0 = arith.constant 0 : i32
    return %c0_i32, %arg1 : i32, i32
  }
  func.func @transform_3(%arg0: i32, %arg1: i32, %arg2: i32) -> (i32, i32) {
    %c0_i32 = arith.constant 0 : i32
    return %arg0, %arg1 : i32, i32
  }
}

module attributes {stable_mosaic.version = 11 : i64} {
  func.func @_gap_kernel(%arg0: memref<2x1x512xbf16, #tpu.memory_space<vmem>>, %arg1: memref<2x512xf32, #tpu.memory_space<vmem>>) attributes {dimension_semantics = [], scalar_prefetch = 0 : i64, scratch_operands = 0 : i64, tpu.core_type = #tpu.core_type<tc>} {
    %c0 = arith.constant 0 : index
    %c0_0 = arith.constant 0 : index
    %c0_1 = arith.constant 0 : index
    %0 = vector.load %arg0[%c0, %c0_0, %c0_1] : memref<2x1x512xbf16, #tpu.memory_space<vmem>>, vector<2x1x512xbf16>
    %1 = arith.extf %0 : vector<2x1x512xbf16> to vector<2x1x512xf32>
    %cst = arith.constant dense<0.000000e+00> : vector<2x512xf32>
    %2 = vector.multi_reduction <add>, %1, %cst [1] : vector<2x1x512xf32> to vector<2x512xf32>
    %cst_2 = arith.constant 1.000000e+00 : f32
    %3 = vector.broadcast %cst_2 : f32 to vector<2x512xf32>
    %4 = arith.mulf %2, %3 : vector<2x512xf32>
    %c0_3 = arith.constant 0 : index
    %c0_4 = arith.constant 0 : index
    %5 = vector.load %arg1[%c0_3, %c0_4] : memref<2x512xf32, #tpu.memory_space<vmem>>, vector<2x512xf32>
    tpu.vector_store %arg1[%c0_3, %c0_4], %4 {strides = array<i32>} : memref<2x512xf32, #tpu.memory_space<vmem>>, vector<2x512xf32>,
    return
  }
}

module attributes {stable_mosaic.version = 11 : i64} {
  func.func @_head_kernel(%arg0: memref<8x512xbf16, #tpu.memory_space<vmem>>, %arg1: memref<512x256xbf16, #tpu.memory_space<vmem>>, %arg2: memref<1x256xf32, #tpu.memory_space<vmem>>, %arg3: memref<256x128xbf16, #tpu.memory_space<vmem>>, %arg4: memref<1x128xf32, #tpu.memory_space<vmem>>, %arg5: memref<128x128xbf16, #tpu.memory_space<vmem>>, %arg6: memref<1x128xf32, #tpu.memory_space<vmem>>, %arg7: memref<8x128xf32, #tpu.memory_space<vmem>>) attributes {dimension_semantics = [], scalar_prefetch = 0 : i64, scratch_operands = 0 : i64, tpu.core_type = #tpu.core_type<tc>} {
    %c0 = arith.constant 0 : index
    %c0_0 = arith.constant 0 : index
    %0 = vector.load %arg0[%c0, %c0_0] : memref<8x512xbf16, #tpu.memory_space<vmem>>, vector<8x512xbf16>
    %c0_1 = arith.constant 0 : index
    %c0_2 = arith.constant 0 : index
    %1 = vector.load %arg1[%c0_1, %c0_2] : memref<512x256xbf16, #tpu.memory_space<vmem>>, vector<512x256xbf16>
    %cst = arith.constant dense<0.000000e+00> : vector<8x256xf32>
    %2 = tpu.matmul %0, %1, %cst {dimension_numbers = #tpu.dot_dimension_numbers<[1], [0], [0], [1], [0, 0, 1, 1], [], []>} : vector<8x512xbf16>, vector<512x256xbf16>, vector<8x256xf32> -> vector<8x256xf32>
    %c0_3 = arith.constant 0 : index
    %c0_4 = arith.constant 0 : index
    %3 = vector.load %arg2[%c0_3, %c0_4] : memref<1x256xf32, #tpu.memory_space<vmem>>, vector<1x256xf32>
    %4 = vector.broadcast %3 : vector<1x256xf32> to vector<8x256xf32>
    %5 = arith.addf %2, %4 : vector<8x256xf32>
    %cst_5 = arith.constant 0.000000e+00 : f32
    %6 = vector.broadcast %cst_5 : f32 to vector<8x256xf32>
    %7 = arith.maximumf %5, %6 : vector<8x256xf32>
    %8 = arith.truncf %7 : vector<8x256xf32> to vector<8x256xbf16>
    %c0_6 = arith.constant 0 : index
    %c0_7 = arith.constant 0 : index
    %9 = vector.load %arg3[%c0_6, %c0_7] : memref<256x128xbf16, #tpu.memory_space<vmem>>, vector<256x128xbf16>
    %cst_8 = arith.constant dense<0.000000e+00> : vector<8x128xf32>
    %10 = tpu.matmul %8, %9, %cst_8 {dimension_numbers = #tpu.dot_dimension_numbers<[1], [0], [0], [1], [0, 0, 1, 1], [], []>} : vector<8x256xbf16>, vector<256x128xbf16>, vector<8x128xf32> -> vector<8x128xf32>
    %c0_9 = arith.constant 0 : index
    %c0_10 = arith.constant 0 : index
    %11 = vector.load %arg4[%c0_9, %c0_10] : memref<1x128xf32, #tpu.memory_space<vmem>>, vector<1x128xf32>
    %12 = vector.broadcast %11 : vector<1x128xf32> to vector<8x128xf32>
    %13 = arith.addf %10, %12 : vector<8x128xf32>
    %cst_11 = arith.constant 0.000000e+00 : f32
    %14 = vector.broadcast %cst_11 : f32 to vector<8x128xf32>
    %15 = arith.maximumf %13, %14 : vector<8x128xf32>
    %16 = arith.truncf %15 : vector<8x128xf32> to vector<8x128xbf16>
    %c0_12 = arith.constant 0 : index
    %c0_13 = arith.constant 0 : index
    %17 = vector.load %arg5[%c0_12, %c0_13] : memref<128x128xbf16, #tpu.memory_space<vmem>>, vector<128x128xbf16>
    %cst_14 = arith.constant dense<0.000000e+00> : vector<8x128xf32>
    %18 = tpu.matmul %16, %17, %cst_14 {dimension_numbers = #tpu.dot_dimension_numbers<[1], [0], [0], [1], [0, 0, 1, 1], [], []>} : vector<8x128xbf16>, vector<128x128xbf16>, vector<8x128xf32> -> vector<8x128xf32>
    %c0_15 = arith.constant 0 : index
    %c0_16 = arith.constant 0 : index
    %19 = vector.load %arg6[%c0_15, %c0_16] : memref<1x128xf32, #tpu.memory_space<vmem>>, vector<1x128xf32>
    %20 = vector.broadcast %19 : vector<1x128xf32> to vector<8x128xf32>
    %21 = arith.addf %18, %20 : vector<8x128xf32>
    %c0_17 = arith.constant 0 : index
    %c0_18 = arith.constant 0 : index
    %22 = vector.load %arg7[%c0_17, %c0_18] : memref<8x128xf32, #tpu.memory_space<vmem>>, vector<8x128xf32>
    tpu.vector_store %arg7[%c0_17, %c0_18], %21 {strides = array<i32>} : memref<8x128xf32, #tpu.memory_space<vmem>>, vector<8x128xf32>,
    return
  }
}

</mosaic_0001>

<bundles_post_ra>
// kernel: _lambda_.23
= control target key start
LH: loop header
LB: loop body
LE: loop exit
PB: predicated region body
PF: predicated region fallthrough
CT: control target
= control target key end

     0   :  { %v2147_v0 = vmov 0   ;;  %s2605_s1 = inlined_call_operand.vmem [shape: bf16[256,128], index: 1, kind: input, shape index: {}]   ;;  %s2606_s0 = inlined_call_operand.vmem [shape: bf16[512,256], index: 0, kind: input, shape index: {}]   ;;  %s2607_s2 = inlined_call_operand.vmem [shape: f32[1,128], index: 2, kind: input, shape index: {}]   ;;  %s2608_s3 = inlined_call_operand.vmem [shape: bf16[512,128], index: 3, kind: output, shape index: {}]  }
   0x1   :  { %659 = vmatprep.subr.bf16.mxu0 %v2147_v0  ;;  %2002 = vmatprep.subr.bf16.mxu1 %v2147_v0  ;;  %v2035_v1 = vld [vmem:[%s2605_s1] sm:$0xff]   ;;  %v2036_v2 = vld [vmem:[%s2605_s1 + $0x8] sm:$0xff]   ;;  %v2037_v3 = vld [vmem:[%s2605_s1 + $0x10] sm:$0xff]  }
   0x2   :  { %660 = vmatpush1.bf16.msra.mxu0 %v2035_v1  ;;  %2018 = vmatpush1.bf16.msra.mxu1 %v2035_v1  ;;  %v2038_v4 = vld [vmem:[%s2605_s1 + $0x18] sm:$0xff]   ;;  %v2039_v5 = vld [vmem:[%s2605_s1 + $0x20] sm:$0xff]   ;;  %v2040_v7 = vld [vmem:[%s2605_s1 + $0x28] sm:$0xff]  }
   0x3   :  { %661 = vmatprep.subr.bf16.mxu0 %v2147_v0  ;;  %2003 = vmatprep.subr.bf16.mxu1 %v2147_v0  ;;  %v2053_v6 = vld [vmem:[%s2606_s0 + $0x4] ss:$8 sps:$4 sm:$0xff]   ;;  %v2041_v9 = vld [vmem:[%s2605_s1 + $0x30] sm:$0xff]   ;;  %v2042_v10 = vld [vmem:[%s2605_s1 + $0x38] sm:$0xff]  }
   0x4   :  { %v2056_v8 = vld [vmem:[%s2606_s0 + $0x104] ss:$8 sps:$4 sm:$0xff]   ;;  %691 = vmatprep.mubr.bf16.mxu0 %v2053_v6  ;;  %v2045_v13 = vld [vmem:[%s2605_s1 + $0x50] sm:$0xff]   ;;  %v2046_v14 = vld [vmem:[%s2605_s1 + $0x58] sm:$0xff]  }
   0x5   :  { %819 = vmatprep.mubr.bf16.mxu1 %v2056_v8  ;;  %v2043_v11 = vld [vmem:[%s2605_s1 + $0x40] sm:$0xff]   ;;  %v2044_v12 = vld [vmem:[%s2605_s1 + $0x48] sm:$0xff]   ;;  %v2049_v17 = vld [vmem:[%s2605_s1 + $0x70] sm:$0xff]  }
   0x6   :  { %662 = vmatpush1.bf16.msra.mxu0 %v2036_v2  ;;  %2019 = vmatpush1.bf16.msra.mxu1 %v2036_v2  ;;  %v2047_v15 = vld [vmem:[%s2605_s1 + $0x60] sm:$0xff]   ;;  %v2048_v16 = vld [vmem:[%s2605_s1 + $0x68] sm:$0xff]   ;;  %v2050_v18 = vld [vmem:[%s2605_s1 + $0x78] sm:$0xff]  }
   0x7   :  { %663 = vmatprep.subr.bf16.mxu0 %v2147_v0  ;;  %2004 = vmatprep.subr.bf16.mxu1 %v2147_v0  ;;  %v2051_v19 = vld [vmem:[%s2606_s0] ss:$8 sps:$4 sm:$0xff]   ;;  %v2057_v21 = vld [vmem:[%s2606_s0 + $0x14] ss:$8 sps:$4 sm:$0xff]   ;;  %v2061_v23 = vld [vmem:[%s2606_s0 + $0x10] ss:$8 sps:$4 sm:$0xff]  }
   0x8   :  { %v2054_v20 = vld [vmem:[%s2606_s0 + $0x100] ss:$8 sps:$4 sm:$0xff]   ;;  %v2059_v22 = vld [vmem:[%s2606_s0 + $0x114] ss:$8 sps:$4 sm:$0xff]   ;;  %v2062_v24 = vld [vmem:[%s2606_s0 + $0x110] ss:$8 sps:$4 sm:$0xff]  }
   0x9   :  { %v2063_v25 = vld [vmem:[%s2606_s0 + $0x24] ss:$8 sps:$4 sm:$0xff]   ;;  %v2067_v27 = vld [vmem:[%s2606_s0 + $0x20] ss:$8 sps:$4 sm:$0xff]   ;;  %v2069_v29 = vld [vmem:[%s2606_s0 + $0x34] ss:$8 sps:$4 sm:$0xff]  }
   0xa   :  { %664 = vmatpush1.bf16.msra.mxu0 %v2037_v3  ;;  %2020 = vmatpush1.bf16.msra.mxu1 %v2037_v3  ;;  %v2065_v26 = vld [vmem:[%s2606_s0 + $0x124] ss:$8 sps:$4 sm:$0xff]   ;;  %v2068_v28 = vld [vmem:[%s2606_s0 + $0x120] ss:$8 sps:$4 sm:$0xff]   ;;  %v2071_v30 = vld [vmem:[%s2606_s0 + $0x134] ss:$8 sps:$4 sm:$0xff]  }
   0xb   :  { %665 = vmatprep.subr.bf16.mxu0 %v2147_v0  ;;  %2005 = vmatprep.subr.bf16.mxu1 %v2147_v0  ;;  %v2073_v31 = vld [vmem:[%s2606_s0 + $0x30] ss:$8 sps:$4 sm:$0xff]   ;;  %v2075_v33 = vld [vmem:[%s2606_s0 + $0x44] ss:$8 sps:$4 sm:$0xff]   ;;  %v2079_v35 = vld [vmem:[%s2606_s0 + $0x40] ss:$8 sps:$4 sm:$0xff]  }
   0xc   :  { %v2074_v32 = vld [vmem:[%s2606_s0 + $0x130] ss:$8 sps:$4 sm:$0xff]   ;;  %v2077_v34 = vld [vmem:[%s2606_s0 + $0x144] ss:$8 sps:$4 sm:$0xff]   ;;  %v2080_v36 = vld [vmem:[%s2606_s0 + $0x140] ss:$8 sps:$4 sm:$0xff]  }
   0xd   :  { %v2081_v37 = vld [vmem:[%s2606_s0 + $0x54] ss:$8 sps:$4 sm:$0xff]   ;;  %v2085_v39 = vld [vmem:[%s2606_s0 + $0x50] ss:$8 sps:$4 sm:$0xff]   ;;  %v2087_v41 = vld [vmem:[%s2606_s0 + $0x64] ss:$8 sps:$4 sm:$0xff]  }
   0xe   :  { %666 = vmatpush1.bf16.msra.mxu0 %v2038_v4  ;;  %2021 = vmatpush1.bf16.msra.mxu1 %v2038_v4  ;;  %v2083_v38 = vld [vmem:[%s2606_s0 + $0x154] ss:$8 sps:$4 sm:$0xff]   ;;  %v2086_v40 = vld [vmem:[%s2606_s0 + $0x150] ss:$8 sps:$4 sm:$0xff]   ;;  %v2089_v42 = vld [vmem:[%s2606_s0 + $0x164] ss:$8 sps:$4 sm:$0xff]  }
   0xf   :  { %667 = vmatprep.subr.bf16.mxu0 %v2147_v0  ;;  %2006 = vmatprep.subr.bf16.mxu1 %v2147_v0  ;;  %v2091_v43 = vld [vmem:[%s2606_s0 + $0x60] ss:$8 sps:$4 sm:$0xff]   ;;  %v2093_v45 = vld [vmem:[%s2606_s0 + $0x74] ss:$8 sps:$4 sm:$0xff]   ;;  %v2097_v47 = vld [vmem:[%s2606_s0 + $0x70] ss:$8 sps:$4 sm:$0xff]  }
  0x10   :  { %v2092_v44 = vld [vmem:[%s2606_s0 + $0x160] ss:$8 sps:$4 sm:$0xff]   ;;  %v2095_v46 = vld [vmem:[%s2606_s0 + $0x174] ss:$8 sps:$4 sm:$0xff]   ;;  %v2098_v48 = vld [vmem:[%s2606_s0 + $0x170] ss:$8 sps:$4 sm:$0xff]  }
  0x11   :  { %v2099_v49 = vld [vmem:[%s2606_s0 + $0x84] ss:$8 sps:$4 sm:$0xff]   ;;  %v2103_v51 = vld [vmem:[%s2606_s0 + $0x80] ss:$8 sps:$4 sm:$0xff]   ;;  %v2105_v53 = vld [vmem:[%s2606_s0 + $0x94] ss:$8 sps:$4 sm:$0xff]  }
  0x12   :  { %668 = vmatpush1.bf16.msra.mxu0 %v2039_v5  ;;  %2022 = vmatpush1.bf16.msra.mxu1 %v2039_v5  ;;  %v2101_v50 = vld [vmem:[%s2606_s0 + $0x184] ss:$8 sps:$4 sm:$0xff]   ;;  %v2104_v52 = vld [vmem:[%s2606_s0 + $0x180] ss:$8 sps:$4 sm:$0xff]   ;;  %v2107_v54 = vld [vmem:[%s2606_s0 + $0x194] ss:$8 sps:$4 sm:$0xff]  }
  0x13   :  { %669 = vmatprep.subr.bf16.mxu0 %v2147_v0  ;;  %2007 = vmatprep.subr.bf16.mxu1 %v2147_v0  ;;  %v2109_v55 = vld [vmem:[%s2606_s0 + $0x90] ss:$8 sps:$4 sm:$0xff]   ;;  %v2111_v57 = vld [vmem:[%s2606_s0 + $0xa4] ss:$8 sps:$4 sm:$0xff]   ;;  %v2115_v59 = vld [vmem:[%s2606_s0 + $0xa0] ss:$8 sps:$4 sm:$0xff]  }
  0x14   :  { %v2110_v56 = vld [vmem:[%s2606_s0 + $0x190] ss:$8 sps:$4 sm:$0xff]   ;;  %v2113_v58 = vld [vmem:[%s2606_s0 + $0x1a4] ss:$8 sps:$4 sm:$0xff]   ;;  %v2116_v60 = vld [vmem:[%s2606_s0 + $0x1a0] ss:$8 sps:$4 sm:$0xff]  }
  0x15   :  { %v2117_v61 = vld [vmem:[%s2606_s0 + $0xb4] ss:$8 sps:$4 sm:$0xff]   ;;  %v2121_v63 = vld [vmem:[%s2606_s0 + $0xb0] ss:$8 sps:$4 sm:$0xff]   ;;  %v2123_v1 = vld [vmem:[%s2606_s0 + $0xc4] ss:$8 sps:$4 sm:$0xff]  }
  0x16   :  { %670 = vmatpush1.bf16.msra.mxu0 %v2040_v7  ;;  %2023 = vmatpush1.bf16.msra.mxu1 %v2040_v7  ;;  %v2119_v62 = vld [vmem:[%s2606_s0 + $0x1b4] ss:$8 sps:$4 sm:$0xff]   ;;  %v2125_v2 = vld [vmem:[%s2606_s0 + $0x1c4] ss:$8 sps:$4 sm:$0xff]   ;;  %v2127_v3 = vld [vmem:[%s2606_s0 + $0xc0] ss:$8 sps:$4 sm:$0xff]  }
  0x17   :  { %671 = vmatprep.subr.bf16.mxu0 %v2147_v0  ;;  %2008 = vmatprep.subr.bf16.mxu1 %v2147_v0  ;;  %v2128_v4 = vld [vmem:[%s2606_s0 + $0x1c0] ss:$8 sps:$4 sm:$0xff]   ;;  %v2129_v5 = vld [vmem:[%s2606_s0 + $0xd4] ss:$8 sps:$4 sm:$0xff]   ;;  %v2133_v7 = vld [vmem:[%s2606_s0 + $0xd0] ss:$8 sps:$4 sm:$0xff]  }
  0x18   :  { %v2131_v6 = vld [vmem:[%s2606_s0 + $0x1d4] ss:$8 sps:$4 sm:$0xff]   ;;  %v2134_v8 = vld [vmem:[%s2606_s0 + $0x1d0] ss:$8 sps:$4 sm:$0xff]  }
  0x1a   :  { %672 = vmatpush1.bf16.msra.mxu0 %v2041_v9  ;;  %2024 = vmatpush1.bf16.msra.mxu1 %v2041_v9  ;;  %v2135_v9 = vld [vmem:[%s2606_s0 + $0xe4] ss:$8 sps:$4 sm:$0xff]  }
  0x1b   :  { %673 = vmatprep.subr.bf16.mxu0 %v2147_v0  ;;  %2009 = vmatprep.subr.bf16.mxu1 %v2147_v0 }
  0x1e   :  { %674 = vmatpush1.bf16.msra.mxu0 %v2042_v10  ;;  %2025 = vmatpush1.bf16.msra.mxu1 %v2042_v10  ;;  %v2137_v10 = vld [vmem:[%s2606_s0 + $0x1e4] ss:$8 sps:$4 sm:$0xff]  }
  0x1f   :  { %675 = vmatprep.subr.bf16.mxu0 %v2147_v0  ;;  %2010 = vmatprep.subr.bf16.mxu1 %v2147_v0 }
  0x22   :  { %676 = vmatpush1.bf16.msra.mxu0 %v2043_v11  ;;  %2026 = vmatpush1.bf16.msra.mxu1 %v2043_v11  ;;  %v2139_v11 = vld [vmem:[%s2606_s0 + $0xe0] ss:$8 sps:$4 sm:$0xff]  }
  0x23   :  { %677 = vmatprep.subr.bf16.mxu0 %v2147_v0  ;;  %2011 = vmatprep.subr.bf16.mxu1 %v2147_v0 }
  0x26   :  { %678 = vmatpush1.bf16.msra.mxu0 %v2044_v12  ;;  %2027 = vmatpush1.bf16.msra.mxu1 %v2044_v12  ;;  %v2140_v12 = vld [vmem:[%s2606_s0 + $0x1e0] ss:$8 sps:$4 sm:$0xff]  }
  0x27   :  { %679 = vmatprep.subr.bf16.mxu0 %v2147_v0  ;;  %2012 = vmatprep.subr.bf16.mxu1 %v2147_v0 }
  0x2a   :  { %680 = vmatpush1.bf16.msra.mxu0 %v2045_v13  ;;  %2028 = vmatpush1.bf16.msra.mxu1 %v2045_v13  ;;  %v2141_v13 = vld [vmem:[%s2606_s0 + $0xf4] ss:$8 sps:$4 sm:$0xff]  }
  0x2b   :  { %681 = vmatprep.subr.bf16.mxu0 %v2147_v0  ;;  %2013 = vmatprep.subr.bf16.mxu1 %v2147_v0 }
  0x2e   :  { %682 = vmatpush1.bf16.msra.mxu0 %v2046_v14  ;;  %2029 = vmatpush1.bf16.msra.mxu1 %v2046_v14  ;;  %v2143_v14 = vld [vmem:[%s2606_s0 + $0x1f4] ss:$8 sps:$4 sm:$0xff]  }
  0x2f   :  { %683 = vmatprep.subr.bf16.mxu0 %v2147_v0  ;;  %2014 = vmatprep.subr.bf16.mxu1 %v2147_v0 }
  0x32   :  { %684 = vmatpush1.bf16.msra.mxu0 %v2047_v15  ;;  %2030 = vmatpush1.bf16.msra.mxu1 %v2047_v15  ;;  %v2145_v15 = vld [vmem:[%s2606_s0 + $0xf0] ss:$8 sps:$4 sm:$0xff]  }
  0x33   :  { %685 = vmatprep.subr.bf16.mxu0 %v2147_v0  ;;  %2015 = vmatprep.subr.bf16.mxu1 %v2147_v0 }
  0x36   :  { %686 = vmatpush1.bf16.msra.mxu0 %v2048_v16  ;;  %2031 = vmatpush1.bf16.msra.mxu1 %v2048_v16  ;;  %v2146_v16 = vld [vmem:[%s2606_s0 + $0x1f0] ss:$8 sps:$4 sm:$0xff]  }
  0x37   :  { %687 = vmatprep.subr.bf16.mxu0 %v2147_v0  ;;  %2016 = vmatprep.subr.bf16.mxu1 %v2147_v0 }
  0x3a   :  { %688 = vmatpush1.bf16.msra.mxu0 %v2049_v17  ;;  %2032 = vmatpush1.bf16.msra.mxu1 %v2049_v17  ;;  %v2443_v17 = vld [vmem:[%s2607_s2] ss:$0 sm:$0xff] }
  0x3b   :  { %689 = vmatprep.subr.bf16.mxu0 %v2147_v0  ;;  %2017 = vmatprep.subr.bf16.mxu1 %v2147_v0  ;;  %v2122_v0 = vld [vmem:[%s2606_s0 + $0x1b0] ss:$8 sps:$4 sm:$0xff]  }
  0x3e   :  { %690 = vmatpush1.bf16.msra.mxu0 %v2050_v18  ;;  %2033 = vmatpush1.bf16.msra.mxu1 %v2050_v18 }
  0x41   :  { %692 = vmatmul.mubr.bf16.vlgmr.msra.gmra.mrb[0].mxu0 %v2051_v19  ;;  %820 = vmatmul.mubr.bf16.vlgmr.msra.gmra.mrb[0].mxu1 %v2054_v20 }
  0x42   :  { %699 = vmatprep.mubr.bf16.mxu0 %v2057_v21  ;;  %827 = vmatprep.mubr.bf16.mxu1 %v2059_v22 }
  0x49   :  { %700 = vmatmul.mubr.bf16.gmra.mrb[4].mxu0 %v2061_v23  ;;  %828 = vmatmul.mubr.bf16.gmra.mrb[4].mxu1 %v2062_v24 }
  0x4a   :  { %707 = vmatprep.mubr.bf16.mxu0 %v2063_v25  ;;  %835 = vmatprep.mubr.bf16.mxu1 %v2065_v26 }
  0x51   :  { %708 = vmatmul.mubr.bf16.gmra.mrb[8].mxu0 %v2067_v27  ;;  %836 = vmatmul.mubr.bf16.gmra.mrb[8].mxu1 %v2068_v28 }
  0x52   :  { %715 = vmatprep.mubr.bf16.mxu0 %v2069_v29  ;;  %843 = vmatprep.mubr.bf16.mxu1 %v2071_v30 }
  0x59   :  { %716 = vmatmul.mubr.bf16.gmra.mrb[12].mxu0 %v2073_v31  ;;  %844 = vmatmul.mubr.bf16.gmra.mrb[12].mxu1 %v2074_v32 }
  0x5a   :  { %723 = vmatprep.mubr.bf16.mxu0 %v2075_v33  ;;  %851 = vmatprep.mubr.bf16.mxu1 %v2077_v34 }
  0x61   :  { %724 = vmatmul.mubr.bf16.gmra.mrb[16].mxu0 %v2079_v35  ;;  %852 = vmatmul.mubr.bf16.gmra.mrb[16].mxu1 %v2080_v36 }
  0x62   :  { %731 = vmatprep.mubr.bf16.mxu0 %v2081_v37  ;;  %859 = vmatprep.mubr.bf16.mxu1 %v2083_v38 }
  0x69   :  { %732 = vmatmul.mubr.bf16.gmra.mrb[20].mxu0 %v2085_v39  ;;  %860 = vmatmul.mubr.bf16.gmra.mrb[20].mxu1 %v2086_v40 }
  0x6a   :  { %739 = vmatprep.mubr.bf16.mxu0 %v2087_v41  ;;  %867 = vmatprep.mubr.bf16.mxu1 %v2089_v42 }
  0x71   :  { %740 = vmatmul.mubr.bf16.gmra.mrb[24].mxu0 %v2091_v43  ;;  %868 = vmatmul.mubr.bf16.gmra.mrb[24].mxu1 %v2092_v44 }
  0x72   :  { %747 = vmatprep.mubr.bf16.mxu0 %v2093_v45  ;;  %875 = vmatprep.mubr.bf16.mxu1 %v2095_v46 }
  0x79   :  { %748 = vmatmul.mubr.bf16.gmra.mrb[28].mxu0 %v2097_v47  ;;  %876 = vmatmul.mubr.bf16.gmra.mrb[28].mxu1 %v2098_v48 }
  0x7a   :  { %755 = vmatprep.mubr.bf16.mxu0 %v2099_v49  ;;  %883 = vmatprep.mubr.bf16.mxu1 %v2101_v50 }
  0x81   :  { %756 = vmatmul.mubr.bf16.gmra.mrb[32].mxu0 %v2103_v51  ;;  %884 = vmatmul.mubr.bf16.gmra.mrb[32].mxu1 %v2104_v52 }
  0x82   :  { %763 = vmatprep.mubr.bf16.mxu0 %v2105_v53  ;;  %891 = vmatprep.mubr.bf16.mxu1 %v2107_v54 }
  0x89   :  { %764 = vmatmul.mubr.bf16.gmra.mrb[36].mxu0 %v2109_v55  ;;  %892 = vmatmul.mubr.bf16.gmra.mrb[36].mxu1 %v2110_v56 }
  0x8a   :  { %771 = vmatprep.mubr.bf16.mxu0 %v2111_v57  ;;  %899 = vmatprep.mubr.bf16.mxu1 %v2113_v58 }
  0x91   :  { %772 = vmatmul.mubr.bf16.gmra.mrb[40].mxu0 %v2115_v59  ;;  %900 = vmatmul.mubr.bf16.gmra.mrb[40].mxu1 %v2116_v60 }
  0x92   :  { %779 = vmatprep.mubr.bf16.mxu0 %v2117_v61  ;;  %907 = vmatprep.mubr.bf16.mxu1 %v2119_v62 }
  0x99   :  { %780 = vmatmul.mubr.bf16.gmra.mrb[44].mxu0 %v2121_v63  ;;  %908 = vmatmul.mubr.bf16.gmra.mrb[44].mxu1 %v2122_v0 }
  0x9a   :  { %787 = vmatprep.mubr.bf16.mxu0 %v2123_v1  ;;  %915 = vmatprep.mubr.bf16.mxu1 %v2125_v2 }
  0xa1   :  { %788 = vmatmul.mubr.bf16.gmra.mrb[48].mxu0 %v2127_v3  ;;  %916 = vmatmul.mubr.bf16.gmra.mrb[48].mxu1 %v2128_v4 }
  0xa2   :  { %795 = vmatprep.mubr.bf16.mxu0 %v2129_v5  ;;  %923 = vmatprep.mubr.bf16.mxu1 %v2131_v6 }
  0xa9   :  { %796 = vmatmul.mubr.bf16.gmra.mrb[52].mxu0 %v2133_v7  ;;  %924 = vmatmul.mubr.bf16.gmra.mrb[52].mxu1 %v2134_v8 }
  0xaa   :  { %803 = vmatprep.mubr.bf16.mxu0 %v2135_v9  ;;  %931 = vmatprep.mubr.bf16.mxu1 %v2137_v10 }
  0xb1   :  { %804 = vmatmul.mubr.bf16.gmra.mrb[56].mxu0 %v2139_v11  ;;  %932 = vmatmul.mubr.bf16.gmra.mrb[56].mxu1 %v2140_v12 }
  0xb2   :  { %811 = vmatprep.mubr.bf16.mxu0 %v2141_v13  ;;  %939 = vmatprep.mubr.bf16.mxu1 %v2143_v14 }
  0xb9   :  { %812 = vmatmul.mubr.bf16.gmra.mrb[60].mxu0 %v2145_v15  ;;  %940 = vmatmul.mubr.bf16.gmra.mrb[60].mxu1 %v2146_v16 }
 0x114   :  { %v693_v18 = vpop.f32.mrb[0].mxu0  ;;  %v821_v19 = vpop.f32.mrb[0].mxu1 }
 0x115   :  { %v1150_v20 = vadd.f32 %v2443_v17, %v693_v18  ;;  %v1182_v21 = vadd.f32 %v2443_v17, %v821_v19  ;;  %v695_v22 = vpop.f32.mrb[1].mxu0  ;;  %v823_v23 = vpop.f32.mrb[1].mxu1 }
 0x116   :  { %v696_v24 = vpop.f32.mrb[2].mxu0  ;;  %v824_v25 = vpop.f32.mrb[2].mxu1 }
 0x117   :  { %v1151_v26 = vadd.f32 %v2443_v17, %v696_v24  ;;  %v1183_v27 = vadd.f32 %v2443_v17, %v824_v25  ;;  %v698_v28 = vpop.f32.mrb[3].mxu0  ;;  %v826_v29 = vpop.f32.mrb[3].mxu1  ;;  %v1214_v30 = vmax.f32 %v1150_v20, 0.0  ;;  %v1246_v31 = vmax.f32 %v1182_v21, 0.0 }
 0x119   :  { %v1215_v32 = vmax.f32 %v1151_v26, 0.0  ;;  %v1247_v33 = vmax.f32 %v1183_v27, 0.0 }
 0x11b   :  { %v1814_v34 = vpack.c.bf16 %v1215_v32, %v1214_v30  ;;  %v1894_v35 = vpack.c.bf16 %v1247_v33, %v1246_v31 }
 0x11c   :  { %v701_v36 = vpop.f32.mrb[4].mxu0  ;;  %v829_v37 = vpop.f32.mrb[4].mxu1 }
 0x11d   :  { %1815 = vst [vmem:[%s2608_s3] sm:$0xff] %v1814_v34   ;;  %1986 = vst [vmem:[%s2608_s3 + $0x80] sm:$0xff] %v1894_v35   ;;  %v1152_v38 = vadd.f32 %v2443_v17, %v701_v36  ;;  %v1184_v39 = vadd.f32 %v2443_v17, %v829_v37  ;;  %v703_v40 = vpop.f32.mrb[5].mxu0  ;;  %v831_v41 = vpop.f32.mrb[5].mxu1 }
 0x11e   :  { %v704_v42 = vpop.f32.mrb[6].mxu0  ;;  %v832_v43 = vpop.f32.mrb[6].mxu1 }
 0x11f   :  { %v1153_v44 = vadd.f32 %v2443_v17, %v704_v42  ;;  %v1185_v45 = vadd.f32 %v2443_v17, %v832_v43  ;;  %v706_v46 = vpop.f32.mrb[7].mxu0  ;;  %v834_v47 = vpop.f32.mrb[7].mxu1  ;;  %v1216_v48 = vmax.f32 %v1152_v38, 0.0  ;;  %v1248_v49 = vmax.f32 %v1184_v39, 0.0 }
 0x121   :  { %v1217_v50 = vmax.f32 %v1153_v44, 0.0  ;;  %v1249_v51 = vmax.f32 %v1185_v45, 0.0 }
 0x123   :  { %v1819_v52 = vpack.c.bf16 %v1217_v50, %v1216_v48  ;;  %v1899_v53 = vpack.c.bf16 %v1249_v51, %v1248_v49 }
 0x124   :  { %v709_v54 = vpop.f32.mrb[8].mxu0  ;;  %v837_v55 = vpop.f32.mrb[8].mxu1 }
 0x125   :  { %1971 = vst [vmem:[%s2608_s3 + $0x8] sm:$0xff] %v1819_v52   ;;  %1987 = vst [vmem:[%s2608_s3 + $0x88] sm:$0xff] %v1899_v53   ;;  %v1154_v56 = vadd.f32 %v2443_v17, %v709_v54  ;;  %v1186_v57 = vadd.f32 %v2443_v17, %v837_v55  ;;  %v711_v58 = vpop.f32.mrb[9].mxu0  ;;  %v839_v59 = vpop.f32.mrb[9].mxu1 }
 0x126   :  { %v712_v60 = vpop.f32.mrb[10].mxu0  ;;  %v840_v61 = vpop.f32.mrb[10].mxu1 }
 0x127   :  { %v1155_v62 = vadd.f32 %v2443_v17, %v712_v60  ;;  %v1187_v63 = vadd.f32 %v2443_v17, %v840_v61  ;;  %v714_v0 = vpop.f32.mrb[11].mxu0  ;;  %v842_v1 = vpop.f32.mrb[11].mxu1  ;;  %v1218_v2 = vmax.f32 %v1154_v56, 0.0  ;;  %v1250_v3 = vmax.f32 %v1186_v57, 0.0 }
 0x129   :  { %v1219_v4 = vmax.f32 %v1155_v62, 0.0  ;;  %v1251_v5 = vmax.f32 %v1187_v63, 0.0 }
 0x12b   :  { %v1824_v6 = vpack.c.bf16 %v1219_v4, %v1218_v2  ;;  %v1904_v7 = vpack.c.bf16 %v1251_v5, %v1250_v3 }
 0x12c   :  { %v717_v8 = vpop.f32.mrb[12].mxu0  ;;  %v845_v9 = vpop.f32.mrb[12].mxu1 }
 0x12d   :  { %1972 = vst [vmem:[%s2608_s3 + $0x10] sm:$0xff] %v1824_v6   ;;  %1988 = vst [vmem:[%s2608_s3 + $0x90] sm:$0xff] %v1904_v7   ;;  %v1156_v10 = vadd.f32 %v2443_v17, %v717_v8  ;;  %v1188_v11 = vadd.f32 %v2443_v17, %v845_v9  ;;  %v719_v12 = vpop.f32.mrb[13].mxu0  ;;  %v847_v13 = vpop.f32.mrb[13].mxu1 }
 0x12e   :  { %v720_v14 = vpop.f32.mrb[14].mxu0  ;;  %v848_v15 = vpop.f32.mrb[14].mxu1 }
 0x12f   :  { %v1157_v16 = vadd.f32 %v2443_v17, %v720_v14  ;;  %v1189_v18 = vadd.f32 %v2443_v17, %v848_v15  ;;  %v722_v19 = vpop.f32.mrb[15].mxu0  ;;  %v850_v20 = vpop.f32.mrb[15].mxu1  ;;  %v1220_v21 = vmax.f32 %v1156_v10, 0.0  ;;  %v1252_v22 = vmax.f32 %v1188_v11, 0.0 }
 0x131   :  { %v1221_v23 = vmax.f32 %v1157_v16, 0.0  ;;  %v1253_v24 = vmax.f32 %v1189_v18, 0.0 }
 0x133   :  { %v1829_v25 = vpack.c.bf16 %v1221_v23, %v1220_v21  ;;  %v1909_v26 = vpack.c.bf16 %v1253_v24, %v1252_v22 }
 0x134   :  { %v725_v27 = vpop.f32.mrb[16].mxu0  ;;  %v853_v28 = vpop.f32.mrb[16].mxu1 }
 0x135   :  { %1973 = vst [vmem:[%s2608_s3 + $0x18] sm:$0xff] %v1829_v25   ;;  %1989 = vst [vmem:[%s2608_s3 + $0x98] sm:$0xff] %v1909_v26   ;;  %v1158_v29 = vadd.f32 %v2443_v17, %v725_v27  ;;  %v1190_v30 = vadd.f32 %v2443_v17, %v853_v28  ;;  %v727_v31 = vpop.f32.mrb[17].mxu0  ;;  %v855_v32 = vpop.f32.mrb[17].mxu1 }
 0x136   :  { %v728_v33 = vpop.f32.mrb[18].mxu0  ;;  %v856_v34 = vpop.f32.mrb[18].mxu1 }
 0x137   :  { %v1159_v35 = vadd.f32 %v2443_v17, %v728_v33  ;;  %v1191_v36 = vadd.f32 %v2443_v17, %v856_v34  ;;  %v730_v37 = vpop.f32.mrb[19].mxu0  ;;  %v858_v38 = vpop.f32.mrb[19].mxu1  ;;  %v1222_v39 = vmax.f32 %v1158_v29, 0.0  ;;  %v1254_v40 = vmax.f32 %v1190_v30, 0.0 }
 0x139   :  { %v1223_v41 = vmax.f32 %v1159_v35, 0.0  ;;  %v1255_v42 = vmax.f32 %v1191_v36, 0.0 }
 0x13b   :  { %v1834_v43 = vpack.c.bf16 %v1223_v41, %v1222_v39  ;;  %v1914_v44 = vpack.c.bf16 %v1255_v42, %v1254_v40 }
 0x13c   :  { %v733_v45 = vpop.f32.mrb[20].mxu0  ;;  %v861_v46 = vpop.f32.mrb[20].mxu1 }
 0x13d   :  { %1974 = vst [vmem:[%s2608_s3 + $0x20] sm:$0xff] %v1834_v43   ;;  %1990 = vst [vmem:[%s2608_s3 + $0xa0] sm:$0xff] %v1914_v44   ;;  %v1160_v47 = vadd.f32 %v2443_v17, %v733_v45  ;;  %v1192_v48 = vadd.f32 %v2443_v17, %v861_v46  ;;  %v735_v49 = vpop.f32.mrb[21].mxu0  ;;  %v863_v50 = vpop.f32.mrb[21].mxu1 }
 0x13e   :  { %v736_v51 = vpop.f32.mrb[22].mxu0  ;;  %v864_v52 = vpop.f32.mrb[22].mxu1 }
 0x13f   :  { %v1161_v53 = vadd.f32 %v2443_v17, %v736_v51  ;;  %v1193_v54 = vadd.f32 %v2443_v17, %v864_v52  ;;  %v738_v55 = vpop.f32.mrb[23].mxu0  ;;  %v866_v56 = vpop.f32.mrb[23].mxu1  ;;  %v1224_v57 = vmax.f32 %v1160_v47, 0.0  ;;  %v1256_v58 = vmax.f32 %v1192_v48, 0.0 }
 0x141   :  { %v1225_v59 = vmax.f32 %v1161_v53, 0.0  ;;  %v1257_v60 = vmax.f32 %v1193_v54, 0.0 }
 0x143   :  { %v1839_v61 = vpack.c.bf16 %v1225_v59, %v1224_v57  ;;  %v1919_v62 = vpack.c.bf16 %v1257_v60, %v1256_v58 }
 0x144   :  { %v741_v63 = vpop.f32.mrb[24].mxu0  ;;  %v869_v0 = vpop.f32.mrb[24].mxu1 }
 0x145   :  { %1975 = vst [vmem:[%s2608_s3 + $0x28] sm:$0xff] %v1839_v61   ;;  %1991 = vst [vmem:[%s2608_s3 + $0xa8] sm:$0xff] %v1919_v62   ;;  %v1162_v1 = vadd.f32 %v2443_v17, %v741_v63  ;;  %v1194_v2 = vadd.f32 %v2443_v17, %v869_v0  ;;  %v743_v3 = vpop.f32.mrb[25].mxu0  ;;  %v871_v4 = vpop.f32.mrb[25].mxu1 }
 0x146   :  { %v744_v5 = vpop.f32.mrb[26].mxu0  ;;  %v872_v6 = vpop.f32.mrb[26].mxu1 }
 0x147   :  { %v1163_v7 = vadd.f32 %v2443_v17, %v744_v5  ;;  %v1195_v8 = vadd.f32 %v2443_v17, %v872_v6  ;;  %v746_v9 = vpop.f32.mrb[27].mxu0  ;;  %v874_v10 = vpop.f32.mrb[27].mxu1  ;;  %v1226_v11 = vmax.f32 %v1162_v1, 0.0  ;;  %v1258_v12 = vmax.f32 %v1194_v2, 0.0 }
 0x149   :  { %v1227_v13 = vmax.f32 %v1163_v7, 0.0  ;;  %v1259_v14 = vmax.f32 %v1195_v8, 0.0 }
 0x14b   :  { %v1844_v15 = vpack.c.bf16 %v1227_v13, %v1226_v11  ;;  %v1924_v16 = vpack.c.bf16 %v1259_v14, %v1258_v12 }
 0x14c   :  { %v749_v18 = vpop.f32.mrb[28].mxu0  ;;  %v877_v19 = vpop.f32.mrb[28].mxu1 }
 0x14d   :  { %1976 = vst [vmem:[%s2608_s3 + $0x30] sm:$0xff] %v1844_v15   ;;  %1992 = vst [vmem:[%s2608_s3 + $0xb0] sm:$0xff] %v1924_v16   ;;  %v1164_v20 = vadd.f32 %v2443_v17, %v749_v18  ;;  %v1196_v21 = vadd.f32 %v2443_v17, %v877_v19  ;;  %v751_v22 = vpop.f32.mrb[29].mxu0  ;;  %v879_v23 = vpop.f32.mrb[29].mxu1 }
 0x14e   :  { %v752_v24 = vpop.f32.mrb[30].mxu0  ;;  %v880_v25 = vpop.f32.mrb[30].mxu1 }
 0x14f   :  { %v1165_v26 = vadd.f32 %v2443_v17, %v752_v24  ;;  %v1197_v27 = vadd.f32 %v2443_v17, %v880_v25  ;;  %v754_v28 = vpop.f32.mrb[31].mxu0  ;;  %v882_v29 = vpop.f32.mrb[31].mxu1  ;;  %v1228_v30 = vmax.f32 %v1164_v20, 0.0  ;;  %v1260_v31 = vmax.f32 %v1196_v21, 0.0 }
 0x151   :  { %v1229_v32 = vmax.f32 %v1165_v26, 0.0  ;;  %v1261_v33 = vmax.f32 %v1197_v27, 0.0 }
 0x153   :  { %v1849_v34 = vpack.c.bf16 %v1229_v32, %v1228_v30  ;;  %v1929_v35 = vpack.c.bf16 %v1261_v33, %v1260_v31 }
 0x154   :  { %v757_v36 = vpop.f32.mrb[32].mxu0  ;;  %v885_v37 = vpop.f32.mrb[32].mxu1 }
 0x155   :  { %1977 = vst [vmem:[%s2608_s3 + $0x38] sm:$0xff] %v1849_v34   ;;  %1993 = vst [vmem:[%s2608_s3 + $0xb8] sm:$0xff] %v1929_v35   ;;  %v1166_v38 = vadd.f32 %v2443_v17, %v757_v36  ;;  %v1198_v39 = vadd.f32 %v2443_v17, %v885_v37  ;;  %v759_v40 = vpop.f32.mrb[33].mxu0  ;;  %v887_v41 = vpop.f32.mrb[33].mxu1 }
 0x156   :  { %v760_v42 = vpop.f32.mrb[34].mxu0  ;;  %v888_v43 = vpop.f32.mrb[34].mxu1 }
 0x157   :  { %v1167_v44 = vadd.f32 %v2443_v17, %v760_v42  ;;  %v1199_v45 = vadd.f32 %v2443_v17, %v888_v43  ;;  %v762_v46 = vpop.f32.mrb[35].mxu0  ;;  %v890_v47 = vpop.f32.mrb[35].mxu1  ;;  %v1230_v48 = vmax.f32 %v1166_v38, 0.0  ;;  %v1262_v49 = vmax.f32 %v1198_v39, 0.0 }
 0x159   :  { %v1231_v50 = vmax.f32 %v1167_v44, 0.0  ;;  %v1263_v51 = vmax.f32 %v1199_v45, 0.0 }
 0x15b   :  { %v1854_v52 = vpack.c.bf16 %v1231_v50, %v1230_v48  ;;  %v1934_v53 = vpack.c.bf16 %v1263_v51, %v1262_v49 }
 0x15c   :  { %v765_v54 = vpop.f32.mrb[36].mxu0  ;;  %v893_v55 = vpop.f32.mrb[36].mxu1 }
 0x15d   :  { %1978 = vst [vmem:[%s2608_s3 + $0x40] sm:$0xff] %v1854_v52   ;;  %1994 = vst [vmem:[%s2608_s3 + $0xc0] sm:$0xff] %v1934_v53   ;;  %v1168_v56 = vadd.f32 %v2443_v17, %v765_v54  ;;  %v1200_v57 = vadd.f32 %v2443_v17, %v893_v55  ;;  %v767_v58 = vpop.f32.mrb[37].mxu0  ;;  %v895_v59 = vpop.f32.mrb[37].mxu1 }
 0x15e   :  { %v768_v60 = vpop.f32.mrb[38].mxu0  ;;  %v896_v61 = vpop.f32.mrb[38].mxu1 }
 0x15f   :  { %v1169_v62 = vadd.f32 %v2443_v17, %v768_v60  ;;  %v1201_v63 = vadd.f32 %v2443_v17, %v896_v61  ;;  %v770_v0 = vpop.f32.mrb[39].mxu0  ;;  %v898_v1 = vpop.f32.mrb[39].mxu1  ;;  %v1232_v2 = vmax.f32 %v1168_v56, 0.0  ;;  %v1264_v3 = vmax.f32 %v1200_v57, 0.0 }
 0x161   :  { %v1233_v4 = vmax.f32 %v1169_v62, 0.0  ;;  %v1265_v5 = vmax.f32 %v1201_v63, 0.0 }
 0x163   :  { %v1859_v6 = vpack.c.bf16 %v1233_v4, %v1232_v2  ;;  %v1939_v7 = vpack.c.bf16 %v1265_v5, %v1264_v3 }
 0x164   :  { %v773_v8 = vpop.f32.mrb[40].mxu0  ;;  %v901_v9 = vpop.f32.mrb[40].mxu1 }
 0x165   :  { %1979 = vst [vmem:[%s2608_s3 + $0x48] sm:$0xff] %v1859_v6   ;;  %1995 = vst [vmem:[%s2608_s3 + $0xc8] sm:$0xff] %v1939_v7   ;;  %v1170_v10 = vadd.f32 %v2443_v17, %v773_v8  ;;  %v1202_v11 = vadd.f32 %v2443_v17, %v901_v9  ;;  %v775_v12 = vpop.f32.mrb[41].mxu0  ;;  %v903_v13 = vpop.f32.mrb[41].mxu1 }
 0x166   :  { %v776_v14 = vpop.f32.mrb[42].mxu0  ;;  %v904_v15 = vpop.f32.mrb[42].mxu1 }
 0x167   :  { %v1171_v16 = vadd.f32 %v2443_v17, %v776_v14  ;;  %v1203_v18 = vadd.f32 %v2443_v17, %v904_v15  ;;  %v778_v19 = vpop.f32.mrb[43].mxu0  ;;  %v906_v20 = vpop.f32.mrb[43].mxu1  ;;  %v1234_v21 = vmax.f32 %v1170_v10, 0.0  ;;  %v1266_v22 = vmax.f32 %v1202_v11, 0.0 }
 0x169   :  { %v1235_v23 = vmax.f32 %v1171_v16, 0.0  ;;  %v1267_v24 = vmax.f32 %v1203_v18, 0.0 }
 0x16b   :  { %v1864_v25 = vpack.c.bf16 %v1235_v23, %v1234_v21  ;;  %v1944_v26 = vpack.c.bf16 %v1267_v24, %v1266_v22 }
 0x16c   :  { %v781_v27 = vpop.f32.mrb[44].mxu0  ;;  %v909_v28 = vpop.f32.mrb[44].mxu1 }
 0x16d   :  { %1980 = vst [vmem:[%s2608_s3 + $0x50] sm:$0xff] %v1864_v25   ;;  %1996 = vst [vmem:[%s2608_s3 + $0xd0] sm:$0xff] %v1944_v26   ;;  %v1172_v29 = vadd.f32 %v2443_v17, %v781_v27  ;;  %v1204_v30 = vadd.f32 %v2443_v17, %v909_v28  ;;  %v783_v31 = vpop.f32.mrb[45].mxu0  ;;  %v911_v32 = vpop.f32.mrb[45].mxu1 }
 0x16e   :  { %v784_v33 = vpop.f32.mrb[46].mxu0  ;;  %v912_v34 = vpop.f32.mrb[46].mxu1 }
 0x16f   :  { %v1173_v35 = vadd.f32 %v2443_v17, %v784_v33  ;;  %v1205_v36 = vadd.f32 %v2443_v17, %v912_v34  ;;  %v786_v37 = vpop.f32.mrb[47].mxu0  ;;  %v914_v38 = vpop.f32.mrb[47].mxu1  ;;  %v1236_v39 = vmax.f32 %v1172_v29, 0.0  ;;  %v1268_v40 = vmax.f32 %v1204_v30, 0.0 }
 0x171   :  { %v1237_v41 = vmax.f32 %v1173_v35, 0.0  ;;  %v1269_v42 = vmax.f32 %v1205_v36, 0.0 }
 0x173   :  { %v1869_v43 = vpack.c.bf16 %v1237_v41, %v1236_v39  ;;  %v1949_v44 = vpack.c.bf16 %v1269_v42, %v1268_v40 }
 0x174   :  { %v789_v45 = vpop.f32.mrb[48].mxu0  ;;  %v917_v46 = vpop.f32.mrb[48].mxu1 }
 0x175   :  { %1981 = vst [vmem:[%s2608_s3 + $0x58] sm:$0xff] %v1869_v43   ;;  %1997 = vst [vmem:[%s2608_s3 + $0xd8] sm:$0xff] %v1949_v44   ;;  %v1174_v47 = vadd.f32 %v2443_v17, %v789_v45  ;;  %v1206_v48 = vadd.f32 %v2443_v17, %v917_v46  ;;  %v791_v49 = vpop.f32.mrb[49].mxu0  ;;  %v919_v50 = vpop.f32.mrb[49].mxu1 }
 0x176   :  { %v792_v51 = vpop.f32.mrb[50].mxu0  ;;  %v920_v52 = vpop.f32.mrb[50].mxu1 }
 0x177   :  { %v1175_v53 = vadd.f32 %v2443_v17, %v792_v51  ;;  %v1207_v54 = vadd.f32 %v2443_v17, %v920_v52  ;;  %v794_v55 = vpop.f32.mrb[51].mxu0  ;;  %v922_v56 = vpop.f32.mrb[51].mxu1  ;;  %v1238_v57 = vmax.f32 %v1174_v47, 0.0  ;;  %v1270_v58 = vmax.f32 %v1206_v48, 0.0 }
 0x179   :  { %v1239_v59 = vmax.f32 %v1175_v53, 0.0  ;;  %v1271_v60 = vmax.f32 %v1207_v54, 0.0 }
 0x17b   :  { %v1874_v61 = vpack.c.bf16 %v1239_v59, %v1238_v57  ;;  %v1954_v62 = vpack.c.bf16 %v1271_v60, %v1270_v58 }
 0x17c   :  { %v797_v63 = vpop.f32.mrb[52].mxu0  ;;  %v925_v0 = vpop.f32.mrb[52].mxu1 }
 0x17d   :  { %1982 = vst [vmem:[%s2608_s3 + $0x60] sm:$0xff] %v1874_v61   ;;  %1998 = vst [vmem:[%s2608_s3 + $0xe0] sm:$0xff] %v1954_v62   ;;  %v1176_v1 = vadd.f32 %v2443_v17, %v797_v63  ;;  %v1208_v2 = vadd.f32 %v2443_v17, %v925_v0  ;;  %v799_v3 = vpop.f32.mrb[53].mxu0  ;;  %v927_v4 = vpop.f32.mrb[53].mxu1 }
 0x17e   :  { %v800_v5 = vpop.f32.mrb[54].mxu0  ;;  %v928_v6 = vpop.f32.mrb[54].mxu1 }
 0x17f   :  { %v1177_v7 = vadd.f32 %v2443_v17, %v800_v5  ;;  %v1209_v8 = vadd.f32 %v2443_v17, %v928_v6  ;;  %v802_v9 = vpop.f32.mrb[55].mxu0  ;;  %v930_v10 = vpop.f32.mrb[55].mxu1  ;;  %v1240_v11 = vmax.f32 %v1176_v1, 0.0  ;;  %v1272_v12 = vmax.f32 %v1208_v2, 0.0 }
 0x181   :  { %v1241_v13 = vmax.f32 %v1177_v7, 0.0  ;;  %v1273_v14 = vmax.f32 %v1209_v8, 0.0 }
 0x183   :  { %v1879_v15 = vpack.c.bf16 %v1241_v13, %v1240_v11  ;;  %v1959_v16 = vpack.c.bf16 %v1273_v14, %v1272_v12 }
 0x184   :  { %v805_v18 = vpop.f32.mrb[56].mxu0  ;;  %v933_v19 = vpop.f32.mrb[56].mxu1 }
 0x185   :  { %1983 = vst [vmem:[%s2608_s3 + $0x68] sm:$0xff] %v1879_v15   ;;  %1999 = vst [vmem:[%s2608_s3 + $0xe8] sm:$0xff] %v1959_v16   ;;  %v1178_v20 = vadd.f32 %v2443_v17, %v805_v18  ;;  %v1210_v21 = vadd.f32 %v2443_v17, %v933_v19  ;;  %v807_v22 = vpop.f32.mrb[57].mxu0  ;;  %v935_v23 = vpop.f32.mrb[57].mxu1 }
 0x186   :  { %v808_v24 = vpop.f32.mrb[58].mxu0  ;;  %v936_v25 = vpop.f32.mrb[58].mxu1 }
 0x187   :  { %v1179_v26 = vadd.f32 %v2443_v17, %v808_v24  ;;  %v1211_v27 = vadd.f32 %v2443_v17, %v936_v25  ;;  %v810_v28 = vpop.f32.mrb[59].mxu0  ;;  %v938_v29 = vpop.f32.mrb[59].mxu1  ;;  %v1242_v30 = vmax.f32 %v1178_v20, 0.0  ;;  %v1274_v31 = vmax.f32 %v1210_v21, 0.0 }
 0x189   :  { %v1243_v32 = vmax.f32 %v1179_v26, 0.0  ;;  %v1275_v33 = vmax.f32 %v1211_v27, 0.0 }
 0x18b   :  { %v1884_v34 = vpack.c.bf16 %v1243_v32, %v1242_v30  ;;  %v1964_v35 = vpack.c.bf16 %v1275_v33, %v1274_v31 }
 0x18c   :  { %v813_v36 = vpop.f32.mrb[60].mxu0  ;;  %v941_v37 = vpop.f32.mrb[60].mxu1 }
 0x18d   :  { %1984 = vst [vmem:[%s2608_s3 + $0x70] sm:$0xff] %v1884_v34   ;;  %2000 = vst [vmem:[%s2608_s3 + $0xf0] sm:$0xff] %v1964_v35   ;;  %v1180_v38 = vadd.f32 %v2443_v17, %v813_v36  ;;  %v1212_v39 = vadd.f32 %v2443_v17, %v941_v37  ;;  %v815_v40 = vpop.f32.mrb[61].mxu0  ;;  %v943_v41 = vpop.f32.mrb[61].mxu1 }
 0x18e   :  { %v816_v42 = vpop.f32.mrb[62].mxu0  ;;  %v944_v43 = vpop.f32.mrb[62].mxu1 }
 0x18f   :  { %v1181_v44 = vadd.f32 %v2443_v17, %v816_v42  ;;  %v1213_v45 = vadd.f32 %v2443_v17, %v944_v43  ;;  %v818_v46 = vpop.f32.mrb[63].mxu0  ;;  %v946_v47 = vpop.f32.mrb[63].mxu1  ;;  %v1244_v48 = vmax.f32 %v1180_v38, 0.0  ;;  %v1276_v49 = vmax.f32 %v1212_v39, 0.0 }
 0x191   :  { %v1245_v50 = vmax.f32 %v1181_v44, 0.0  ;;  %v1277_v51 = vmax.f32 %v1213_v45, 0.0 }
 0x193   :  { %v1889_v52 = vpack.c.bf16 %v1245_v50, %v1244_v48  ;;  %v1969_v53 = vpack.c.bf16 %v1277_v51, %v1276_v49 }
 0x195   :  { %1985 = vst [vmem:[%s2608_s3 + $0x78] sm:$0xff] %v1889_v52   ;;  %2001 = vst [vmem:[%s2608_s3 + $0xf8] sm:$0xff] %v1969_v53  }

// kernel: _lambda_.24
= control target key start
LH: loop header
LB: loop body
LE: loop exit
PB: predicated region body
PF: predicated region fallthrough
CT: control target
= control target key end

     0   :  { %vm153_vm0 = vcmask 1043456   ;;  %s1400_s0 = inlined_call_operand.vmem [shape: bf16[9,128,128], index: 0, kind: input, shape index: {}]   ;;  %s1401_s1 = inlined_call_operand.vmem [shape: bf16[128,128], index: 1, kind: output, shape index: {}]  }
   0x1   :  { %v9_v0 = vld [vmem:[%s1400_s0] sm:$0xf]  ;;  %v10_v3 = vld [vmem:[%s1400_s0 + $0x4] sm:$0xf]  ;;  %v11_v39 = vld [vmem:[%s1400_s0 + $0x8] sm:$0xf] }
   0x2   :  { %v25_v1 = vld [vmem:[%s1400_s0 + $0x40] sm:$0xf]  ;;  %v26_v4 = vld [vmem:[%s1400_s0 + $0x44] sm:$0xf]  ;;  %v156_v7 = vsel %vm153_vm0, %v9_v0, 4286644096 }
   0x3   :  { %v41_v2 = vld [vmem:[%s1400_s0 + $0x80] sm:$0xf]  ;;  %v42_v5 = vld [vmem:[%s1400_s0 + $0x84] sm:$0xf]  ;;  %v159_v8 = vsel %vm153_vm0, %v25_v1, 4286644096 }
   0x4   :  { %v57_v6 = vld [vmem:[%s1400_s0 + $0xc0] sm:$0xf]  ;;  %v163_v9 = vsel %vm153_vm0, %v41_v2, 4286644096  ;;  %v161_v11 = vmax.bf16 %v159_v8, %v156_v7  ;;  %v58_v12 = vld [vmem:[%s1400_s0 + $0xc4] sm:$0xf] }
   0x5   :  { %v73_v10 = vld [vmem:[%s1400_s0 + $0x100] sm:$0xf]  ;;  %v167_v14 = vsel %vm153_vm0, %v57_v6, 4286644096  ;;  %v191_v16 = vsel %vm153_vm0, %v10_v3, 4286644096 }
   0x6   :  { %v89_v13 = vld [vmem:[%s1400_s0 + $0x140] sm:$0xf]  ;;  %v165_v15 = vmax.bf16 %v163_v9, %v161_v11  ;;  %v194_v17 = vsel %vm153_vm0, %v26_v4, 4286644096  ;;  %v198_v18 = vsel %vm153_vm0, %v42_v5, 4286644096 }
   0x7   :  { %v74_v19 = vld [vmem:[%s1400_s0 + $0x104] sm:$0xf]  ;;  %v171_v20 = vsel %vm153_vm0, %v73_v10, 4286644096  ;;  %v196_v21 = vmax.bf16 %v194_v17, %v191_v16  ;;  %v105_v23 = vld [vmem:[%s1400_s0 + $0x180] sm:$0xf] }
   0x8   :  { %v90_v22 = vld [vmem:[%s1400_s0 + $0x144] sm:$0xf]  ;;  %v169_v24 = vmax.bf16 %v167_v14, %v165_v15  ;;  %v202_v25 = vsel %vm153_vm0, %v58_v12, 4286644096  ;;  %v175_v27 = vsel %vm153_vm0, %v89_v13, 4286644096 }
   0x9   :  { %v106_v26 = vld [vmem:[%s1400_s0 + $0x184] sm:$0xf]  ;;  %v200_v28 = vmax.bf16 %v198_v18, %v196_v21  ;;  %v121_v29 = vld [vmem:[%s1400_s0 + $0x1c0] sm:$0xf]  ;;  %v206_v32 = vsel %vm153_vm0, %v74_v19, 4286644096 }
   0xa   :  { %v137_v30 = vld [vmem:[%s1400_s0 + $0x200] sm:$0xf]  ;;  %v173_v31 = vmax.bf16 %v171_v20, %v169_v24  ;;  %v122_v33 = vld [vmem:[%s1400_s0 + $0x1c4] sm:$0xf]  ;;  %v179_v34 = vsel %vm153_vm0, %v105_v23, 4286644096 }
   0xb   :  { %v204_v35 = vmax.bf16 %v202_v25, %v200_v28  ;;  %v210_v36 = vsel %vm153_vm0, %v90_v22, 4286644096  ;;  %v138_v37 = vld [vmem:[%s1400_s0 + $0x204] sm:$0xf]  ;;  %v27_v40 = vld [vmem:[%s1400_s0 + $0x48] sm:$0xf] }
   0xc   :  { %v177_v38 = vmax.bf16 %v175_v27, %v173_v31  ;;  %v43_v41 = vld [vmem:[%s1400_s0 + $0x88] sm:$0xf]  ;;  %v183_v42 = vsel %vm153_vm0, %v121_v29, 4286644096  ;;  %v187_v43 = vsel %vm153_vm0, %v137_v30, 4286644096 }
   0xd   :  { %v208_v44 = vmax.bf16 %v206_v32, %v204_v35  ;;  %v214_v45 = vsel %vm153_vm0, %v106_v26, 4286644096  ;;  %v12_v47 = vld [vmem:[%s1400_s0 + $0xc] sm:$0xf]  ;;  %v59_v48 = vld [vmem:[%s1400_s0 + $0xc8] sm:$0xf] }
   0xe   :  { %v181_v46 = vmax.bf16 %v179_v34, %v177_v38  ;;  %v75_v49 = vld [vmem:[%s1400_s0 + $0x108] sm:$0xf]  ;;  %v226_v51 = vsel %vm153_vm0, %v11_v39, 4286644096  ;;  %v229_v52 = vsel %vm153_vm0, %v27_v40, 4286644096 }
   0xf   :  { %v212_v50 = vmax.bf16 %v210_v36, %v208_v44  ;;  %v233_v53 = vsel %vm153_vm0, %v43_v41, 4286644096  ;;  %v218_v55 = vsel %vm153_vm0, %v122_v33, 4286644096  ;;  %v28_v56 = vld [vmem:[%s1400_s0 + $0x4c] sm:$0xf]  ;;  %v231_v58 = vmax.bf16 %v229_v52, %v226_v51 }
  0x10   :  { %v185_v54 = vmax.bf16 %v183_v42, %v181_v46  ;;  %v44_v57 = vld [vmem:[%s1400_s0 + $0x8c] sm:$0xf]  ;;  %v222_v60 = vsel %vm153_vm0, %v138_v37, 4286644096  ;;  %v237_v62 = vsel %vm153_vm0, %v59_v48, 4286644096 }
  0x11   :  { %v216_v59 = vmax.bf16 %v214_v45, %v212_v50  ;;  %v60_v61 = vld [vmem:[%s1400_s0 + $0xcc] sm:$0xf]  ;;  %v91_v63 = vld [vmem:[%s1400_s0 + $0x148] sm:$0xf]  ;;  %v235_v0 = vmax.bf16 %v233_v53, %v231_v58  ;;  %v241_v1 = vsel %vm153_vm0, %v75_v49, 4286644096 }
  0x12   :  { %v261_v2 = vsel %vm153_vm0, %v12_v47, 4286644096  ;;  %v189_v3 = vmax.bf16 %v187_v43, %v185_v54  ;;  %v264_v5 = vsel %vm153_vm0, %v28_v56, 4286644096  ;;  %v268_v6 = vsel %vm153_vm0, %v44_v57, 4286644096 }
  0x13   :  { %v220_v4 = vmax.bf16 %v218_v55, %v216_v59  ;;  %v76_v7 = vld [vmem:[%s1400_s0 + $0x10c] sm:$0xf]  ;;  %v107_v8 = vld [vmem:[%s1400_s0 + $0x188] sm:$0xf]  ;;  %v239_v9 = vmax.bf16 %v237_v62, %v235_v0  ;;  %v266_v10 = vmax.bf16 %v264_v5, %v261_v2  ;;  %v245_v12 = vsel %vm153_vm0, %v91_v63, 4286644096 }
  0x14   :  { %v272_v13 = vsel %vm153_vm0, %v60_v61, 4286644096  ;;  %v92_v14 = vld [vmem:[%s1400_s0 + $0x14c] sm:$0xf]  ;;  %v123_v16 = vld [vmem:[%s1400_s0 + $0x1c8] sm:$0xf] }
  0x15   :  { %v224_v11 = vmax.bf16 %v222_v60, %v220_v4  ;;  %v108_v15 = vld [vmem:[%s1400_s0 + $0x18c] sm:$0xf]  ;;  %v243_v17 = vmax.bf16 %v241_v1, %v239_v9  ;;  %v270_v18 = vmax.bf16 %v268_v6, %v266_v10  ;;  %v139_v20 = vld [vmem:[%s1400_s0 + $0x208] sm:$0xf]  ;;  %v249_v21 = vsel %vm153_vm0, %v107_v8, 4286644096 }
  0x16   :  { %v276_v22 = vsel %vm153_vm0, %v76_v7, 4286644096  ;;  %v124_v23 = vld [vmem:[%s1400_s0 + $0x1cc] sm:$0xf]  ;;  %v13_v26 = vld [vmem:[%s1400_s0 + $0x10] sm:$0xf] }
  0x17   :  { %v775_v19 = vcombine.low %v189_v3, %v224_v11  ;;  %v247_v24 = vmax.bf16 %v245_v12, %v243_v17  ;;  %v274_v25 = vmax.bf16 %v272_v13, %v270_v18  ;;  %v29_v27 = vld [vmem:[%s1400_s0 + $0x50] sm:$0xf]  ;;  %v140_v29 = vld [vmem:[%s1400_s0 + $0x20c] sm:$0xf]  ;;  %v253_v30 = vsel %vm153_vm0, %v123_v16, 4286644096 }
  0x18   :  { %v45_v28 = vld [vmem:[%s1400_s0 + $0x90] sm:$0xf]  ;;  %v280_v31 = vsel %vm153_vm0, %v92_v14, 4286644096  ;;  %v257_v33 = vsel %vm153_vm0, %v139_v20, 4286644096 }
  0x19   :  { %739 = vst [vmem:[%s1401_s1] sm:$0xff] %v775_v19   ;;  %v251_v32 = vmax.bf16 %v249_v21, %v247_v24  ;;  %v278_v34 = vmax.bf16 %v276_v22, %v274_v25  ;;  %v284_v35 = vsel %vm153_vm0, %v108_v15, 4286644096  ;;  %v61_v36 = vld [vmem:[%s1400_s0 + $0xd0] sm:$0xf]  ;;  %v296_v37 = vsel %vm153_vm0, %v13_v26, 4286644096 }
  0x1a   :  { %v299_v38 = vsel %vm153_vm0, %v29_v27, 4286644096  ;;  %v303_v39 = vsel %vm153_vm0, %v45_v28, 4286644096  ;;  %v14_v42 = vld [vmem:[%s1400_s0 + $0x14] sm:$0xf] }
  0x1b   :  { %v255_v40 = vmax.bf16 %v253_v30, %v251_v32  ;;  %v282_v41 = vmax.bf16 %v280_v31, %v278_v34  ;;  %v30_v43 = vld [vmem:[%s1400_s0 + $0x54] sm:$0xf]  ;;  %v77_v44 = vld [vmem:[%s1400_s0 + $0x110] sm:$0xf]  ;;  %v301_v45 = vmax.bf16 %v299_v38, %v296_v37  ;;  %v288_v46 = vsel %vm153_vm0, %v124_v23, 4286644096 }
  0x1c   :  { %v46_v47 = vld [vmem:[%s1400_s0 + $0x94] sm:$0xf]  ;;  %v307_v48 = vsel %vm153_vm0, %v61_v36, 4286644096  ;;  %v292_v50 = vsel %vm153_vm0, %v140_v29, 4286644096 }
  0x1d   :  { %v286_v49 = vmax.bf16 %v284_v35, %v282_v41  ;;  %v62_v51 = vld [vmem:[%s1400_s0 + $0xd4] sm:$0xf]  ;;  %v93_v52 = vld [vmem:[%s1400_s0 + $0x150] sm:$0xf]  ;;  %v305_v53 = vmax.bf16 %v303_v39, %v301_v45  ;;  %v259_v54 = vmax.bf16 %v257_v33, %v255_v40  ;;  %v311_v55 = vsel %vm153_vm0, %v77_v44, 4286644096 }
  0x1e   :  { %v331_v56 = vsel %vm153_vm0, %v14_v42, 4286644096  ;;  %v334_v57 = vsel %vm153_vm0, %v30_v43, 4286644096  ;;  %v78_v59 = vld [vmem:[%s1400_s0 + $0x114] sm:$0xf] }
  0x1f   :  { %v290_v58 = vmax.bf16 %v288_v46, %v286_v49  ;;  %v109_v60 = vld [vmem:[%s1400_s0 + $0x190] sm:$0xf]  ;;  %v309_v61 = vmax.bf16 %v307_v48, %v305_v53  ;;  %v336_v62 = vmax.bf16 %v334_v57, %v331_v56  ;;  %v338_v63 = vsel %vm153_vm0, %v46_v47, 4286644096  ;;  %v94_v3 = vld [vmem:[%s1400_s0 + $0x154] sm:$0xf] }
  0x20   :  { %v315_v0 = vsel %vm153_vm0, %v93_v52, 4286644096  ;;  %v342_v1 = vsel %vm153_vm0, %v62_v51, 4286644096  ;;  %v110_v4 = vld [vmem:[%s1400_s0 + $0x194] sm:$0xf] }
  0x21   :  { %v294_v2 = vmax.bf16 %v292_v50, %v290_v58  ;;  %v125_v5 = vld [vmem:[%s1400_s0 + $0x1d0] sm:$0xf]  ;;  %v313_v6 = vmax.bf16 %v311_v55, %v309_v61  ;;  %v340_v7 = vmax.bf16 %v338_v63, %v336_v62  ;;  %v319_v9 = vsel %vm153_vm0, %v109_v60, 4286644096  ;;  %v126_v12 = vld [vmem:[%s1400_s0 + $0x1d4] sm:$0xf] }
  0x22   :  { %v141_v8 = vld [vmem:[%s1400_s0 + $0x210] sm:$0xf]  ;;  %v346_v10 = vsel %vm153_vm0, %v78_v59, 4286644096  ;;  %v15_v15 = vld [vmem:[%s1400_s0 + $0x18] sm:$0xf] }
  0x23   :  { %v776_v11 = vcombine.low %v259_v54, %v294_v2  ;;  %v317_v13 = vmax.bf16 %v315_v0, %v313_v6  ;;  %v344_v14 = vmax.bf16 %v342_v1, %v340_v7  ;;  %v31_v16 = vld [vmem:[%s1400_s0 + $0x58] sm:$0xf]  ;;  %v142_v18 = vld [vmem:[%s1400_s0 + $0x214] sm:$0xf]  ;;  %v323_v19 = vsel %vm153_vm0, %v125_v5, 4286644096 }
  0x24   :  { %v47_v17 = vld [vmem:[%s1400_s0 + $0x98] sm:$0xf]  ;;  %v350_v20 = vsel %vm153_vm0, %v94_v3, 4286644096  ;;  %v354_v23 = vsel %vm153_vm0, %v110_v4, 4286644096 }
  0x25   :  { %777 = vst [vmem:[%s1401_s1 + $0x8] sm:$0xff] %v776_v11   ;;  %v321_v21 = vmax.bf16 %v319_v9, %v317_v13  ;;  %v348_v22 = vmax.bf16 %v346_v10, %v344_v14  ;;  %v16_v24 = vld [vmem:[%s1400_s0 + $0x1c] sm:$0xf]  ;;  %v63_v25 = vld [vmem:[%s1400_s0 + $0xd8] sm:$0xf] }
  0x26   :  { %v366_v26 = vsel %vm153_vm0, %v15_v15, 4286644096  ;;  %v369_v27 = vsel %vm153_vm0, %v31_v16, 4286644096  ;;  %v373_v28 = vsel %vm153_vm0, %v47_v17, 4286644096 }
  0x27   :  { %v325_v29 = vmax.bf16 %v323_v19, %v321_v21  ;;  %v327_v30 = vsel %vm153_vm0, %v141_v8, 4286644096  ;;  %v352_v31 = vmax.bf16 %v350_v20, %v348_v22  ;;  %v32_v32 = vld [vmem:[%s1400_s0 + $0x5c] sm:$0xf]  ;;  %v79_v33 = vld [vmem:[%s1400_s0 + $0x118] sm:$0xf]  ;;  %v371_v34 = vmax.bf16 %v369_v27, %v366_v26 }
  0x28   :  { %v358_v35 = vsel %vm153_vm0, %v126_v12, 4286644096  ;;  %v48_v36 = vld [vmem:[%s1400_s0 + $0x9c] sm:$0xf]  ;;  %v377_v37 = vsel %vm153_vm0, %v63_v25, 4286644096 }
  0x29   :  { %v356_v38 = vmax.bf16 %v354_v23, %v352_v31  ;;  %v362_v39 = vsel %vm153_vm0, %v142_v18, 4286644096  ;;  %v64_v40 = vld [vmem:[%s1400_s0 + $0xdc] sm:$0xf]  ;;  %v95_v41 = vld [vmem:[%s1400_s0 + $0x158] sm:$0xf]  ;;  %v375_v42 = vmax.bf16 %v373_v28, %v371_v34  ;;  %v329_v43 = vmax.bf16 %v327_v30, %v325_v29 }
  0x2a   :  { %v381_v44 = vsel %vm153_vm0, %v79_v33, 4286644096  ;;  %v401_v45 = vsel %vm153_vm0, %v16_v24, 4286644096  ;;  %v404_v46 = vsel %vm153_vm0, %v32_v32, 4286644096 }
  0x2b   :  { %v360_v47 = vmax.bf16 %v358_v35, %v356_v38  ;;  %v80_v48 = vld [vmem:[%s1400_s0 + $0x11c] sm:$0xf]  ;;  %v111_v49 = vld [vmem:[%s1400_s0 + $0x198] sm:$0xf]  ;;  %v379_v50 = vmax.bf16 %v377_v37, %v375_v42  ;;  %v406_v51 = vmax.bf16 %v404_v46, %v401_v45  ;;  %v408_v52 = vsel %vm153_vm0, %v48_v36, 4286644096 }
  0x2c   :  { %v385_v53 = vsel %vm153_vm0, %v95_v41, 4286644096  ;;  %v412_v54 = vsel %vm153_vm0, %v64_v40, 4286644096  ;;  %v96_v56 = vld [vmem:[%s1400_s0 + $0x15c] sm:$0xf] }
  0x2d   :  { %v364_v55 = vmax.bf16 %v362_v39, %v360_v47  ;;  %v112_v57 = vld [vmem:[%s1400_s0 + $0x19c] sm:$0xf]  ;;  %v127_v58 = vld [vmem:[%s1400_s0 + $0x1d8] sm:$0xf]  ;;  %v383_v59 = vmax.bf16 %v381_v44, %v379_v50  ;;  %v410_v60 = vmax.bf16 %v408_v52, %v406_v51  ;;  %v389_v62 = vsel %vm153_vm0, %v111_v49, 4286644096 }
  0x2e   :  { %v143_v61 = vld [vmem:[%s1400_s0 + $0x218] sm:$0xf]  ;;  %v416_v63 = vsel %vm153_vm0, %v80_v48, 4286644096  ;;  %v128_v1 = vld [vmem:[%s1400_s0 + $0x1dc] sm:$0xf] }
  0x2f   :  { %v778_v0 = vcombine.low %v329_v43, %v364_v55  ;;  %v387_v2 = vmax.bf16 %v385_v53, %v383_v59  ;;  %v414_v3 = vmax.bf16 %v412_v54, %v410_v60  ;;  %v17_v4 = vld [vmem:[%s1400_s0 + $0x20] sm:$0xf]  ;;  %v144_v7 = vld [vmem:[%s1400_s0 + $0x21c] sm:$0xf]  ;;  %v393_v8 = vsel %vm153_vm0, %v127_v58, 4286644096 }
  0x30   :  { %v33_v5 = vld [vmem:[%s1400_s0 + $0x60] sm:$0xf]  ;;  %v420_v9 = vsel %vm153_vm0, %v96_v56, 4286644096  ;;  %v424_v12 = vsel %vm153_vm0, %v112_v57, 4286644096 }
  0x31   :  { %v49_v6 = vld [vmem:[%s1400_s0 + $0xa0] sm:$0xf]  ;;  %779 = vst [vmem:[%s1401_s1 + $0x10] sm:$0xff] %v778_v0   ;;  %v391_v10 = vmax.bf16 %v389_v62, %v387_v2  ;;  %v418_v11 = vmax.bf16 %v416_v63, %v414_v3  ;;  %v18_v13 = vld [vmem:[%s1400_s0 + $0x24] sm:$0xf] }
  0x32   :  { %v65_v14 = vld [vmem:[%s1400_s0 + $0xe0] sm:$0xf]  ;;  %v436_v15 = vsel %vm153_vm0, %v17_v4, 4286644096  ;;  %v439_v16 = vsel %vm153_vm0, %v33_v5, 4286644096 }
  0x33   :  { %v443_v17 = vsel %vm153_vm0, %v49_v6, 4286644096  ;;  %v395_v18 = vmax.bf16 %v393_v8, %v391_v10  ;;  %v397_v19 = vsel %vm153_vm0, %v143_v61, 4286644096  ;;  %v422_v20 = vmax.bf16 %v420_v9, %v418_v11  ;;  %v34_v21 = vld [vmem:[%s1400_s0 + $0x64] sm:$0xf] }
  0x34   :  { %v81_v22 = vld [vmem:[%s1400_s0 + $0x120] sm:$0xf]  ;;  %v441_v23 = vmax.bf16 %v439_v16, %v436_v15  ;;  %v428_v24 = vsel %vm153_vm0, %v128_v1, 4286644096  ;;  %v50_v25 = vld [vmem:[%s1400_s0 + $0xa4] sm:$0xf] }
  0x35   :  { %v447_v26 = vsel %vm153_vm0, %v65_v14, 4286644096  ;;  %v426_v27 = vmax.bf16 %v424_v12, %v422_v20  ;;  %v432_v28 = vsel %vm153_vm0, %v144_v7, 4286644096  ;;  %v66_v29 = vld [vmem:[%s1400_s0 + $0xe4] sm:$0xf]  ;;  %v399_v32 = vmax.bf16 %v397_v19, %v395_v18 }
  0x36   :  { %v97_v30 = vld [vmem:[%s1400_s0 + $0x160] sm:$0xf]  ;;  %v445_v31 = vmax.bf16 %v443_v17, %v441_v23  ;;  %v451_v33 = vsel %vm153_vm0, %v81_v22, 4286644096  ;;  %v471_v34 = vsel %vm153_vm0, %v18_v13, 4286644096 }
  0x37   :  { %v474_v35 = vsel %vm153_vm0, %v34_v21, 4286644096  ;;  %v430_v36 = vmax.bf16 %v428_v24, %v426_v27  ;;  %v82_v37 = vld [vmem:[%s1400_s0 + $0x124] sm:$0xf]  ;;  %v113_v38 = vld [vmem:[%s1400_s0 + $0x1a0] sm:$0xf] }
  0x38   :  { %v449_v39 = vmax.bf16 %v447_v26, %v445_v31  ;;  %v476_v40 = vmax.bf16 %v474_v35, %v471_v34  ;;  %v478_v41 = vsel %vm153_vm0, %v50_v25, 4286644096  ;;  %v455_v42 = vsel %vm153_vm0, %v97_v30, 4286644096  ;;  %v98_v45 = vld [vmem:[%s1400_s0 + $0x164] sm:$0xf] }
  0x39   :  { %v482_v43 = vsel %vm153_vm0, %v66_v29, 4286644096  ;;  %v434_v44 = vmax.bf16 %v432_v28, %v430_v36  ;;  %v114_v46 = vld [vmem:[%s1400_s0 + $0x1a4] sm:$0xf]  ;;  %v129_v47 = vld [vmem:[%s1400_s0 + $0x1e0] sm:$0xf] }
  0x3a   :  { %v453_v48 = vmax.bf16 %v451_v33, %v449_v39  ;;  %v480_v49 = vmax.bf16 %v478_v41, %v476_v40  ;;  %v145_v50 = vld [vmem:[%s1400_s0 + $0x220] sm:$0xf]  ;;  %v459_v51 = vsel %vm153_vm0, %v113_v38, 4286644096  ;;  %v486_v52 = vsel %vm153_vm0, %v82_v37, 4286644096 }
  0x3b   :  { %v780_v53 = vcombine.low %v399_v32, %v434_v44  ;;  %v130_v54 = vld [vmem:[%s1400_s0 + $0x1e4] sm:$0xf]  ;;  %v19_v57 = vld [vmem:[%s1400_s0 + $0x28] sm:$0xf]  ;;  %v463_v61 = vsel %vm153_vm0, %v129_v47, 4286644096 }
  0x3c   :  { %v457_v55 = vmax.bf16 %v455_v42, %v453_v48  ;;  %v484_v56 = vmax.bf16 %v482_v43, %v480_v49  ;;  %v35_v58 = vld [vmem:[%s1400_s0 + $0x68] sm:$0xf]  ;;  %v146_v60 = vld [vmem:[%s1400_s0 + $0x224] sm:$0xf]  ;;  %v490_v62 = vsel %vm153_vm0, %v98_v45, 4286644096 }
  0x3d   :  { %v51_v59 = vld [vmem:[%s1400_s0 + $0xa8] sm:$0xf]  ;;  %781 = vst [vmem:[%s1401_s1 + $0x18] sm:$0xff] %v780_v53   ;;  %v494_v1 = vsel %vm153_vm0, %v114_v46, 4286644096 }
  0x3e   :  { %v461_v63 = vmax.bf16 %v459_v51, %v457_v55  ;;  %v488_v0 = vmax.bf16 %v486_v52, %v484_v56  ;;  %v20_v2 = vld [vmem:[%s1400_s0 + $0x2c] sm:$0xf]  ;;  %v67_v3 = vld [vmem:[%s1400_s0 + $0xe8] sm:$0xf]  ;;  %v506_v4 = vsel %vm153_vm0, %v19_v57, 4286644096 }
  0x3f   :  { %v509_v5 = vsel %vm153_vm0, %v35_v58, 4286644096  ;;  %v513_v6 = vsel %vm153_vm0, %v51_v59, 4286644096  ;;  %v467_v8 = vsel %vm153_vm0, %v145_v50, 4286644096 }
  0x40   :  { %v465_v7 = vmax.bf16 %v463_v61, %v461_v63  ;;  %v492_v9 = vmax.bf16 %v490_v62, %v488_v0  ;;  %v36_v10 = vld [vmem:[%s1400_s0 + $0x6c] sm:$0xf]  ;;  %v83_v11 = vld [vmem:[%s1400_s0 + $0x128] sm:$0xf]  ;;  %v511_v12 = vmax.bf16 %v509_v5, %v506_v4  ;;  %v498_v13 = vsel %vm153_vm0, %v130_v54, 4286644096 }
  0x41   :  { %v52_v14 = vld [vmem:[%s1400_s0 + $0xac] sm:$0xf]  ;;  %v517_v15 = vsel %vm153_vm0, %v67_v3, 4286644096  ;;  %v502_v17 = vsel %vm153_vm0, %v146_v60, 4286644096 }
  0x42   :  { %v496_v16 = vmax.bf16 %v494_v1, %v492_v9  ;;  %v68_v18 = vld [vmem:[%s1400_s0 + $0xec] sm:$0xf]  ;;  %v99_v19 = vld [vmem:[%s1400_s0 + $0x168] sm:$0xf]  ;;  %v515_v20 = vmax.bf16 %v513_v6, %v511_v12  ;;  %v469_v21 = vmax.bf16 %v467_v8, %v465_v7  ;;  %v521_v22 = vsel %vm153_vm0, %v83_v11, 4286644096 }
  0x43   :  { %v541_v23 = vsel %vm153_vm0, %v20_v2, 4286644096  ;;  %v544_v24 = vsel %vm153_vm0, %v36_v10, 4286644096  ;;  %v84_v26 = vld [vmem:[%s1400_s0 + $0x12c] sm:$0xf] }
  0x44   :  { %v500_v25 = vmax.bf16 %v498_v13, %v496_v16  ;;  %v115_v27 = vld [vmem:[%s1400_s0 + $0x1a8] sm:$0xf]  ;;  %v519_v28 = vmax.bf16 %v517_v15, %v515_v20  ;;  %v546_v29 = vmax.bf16 %v544_v24, %v541_v23  ;;  %v548_v30 = vsel %vm153_vm0, %v52_v14, 4286644096  ;;  %v100_v34 = vld [vmem:[%s1400_s0 + $0x16c] sm:$0xf] }
  0x45   :  { %v525_v31 = vsel %vm153_vm0, %v99_v19, 4286644096  ;;  %v552_v32 = vsel %vm153_vm0, %v68_v18, 4286644096  ;;  %v116_v35 = vld [vmem:[%s1400_s0 + $0x1ac] sm:$0xf] }
  0x46   :  { %v504_v33 = vmax.bf16 %v502_v17, %v500_v25  ;;  %v131_v36 = vld [vmem:[%s1400_s0 + $0x1e8] sm:$0xf]  ;;  %v523_v37 = vmax.bf16 %v521_v22, %v519_v28  ;;  %v550_v38 = vmax.bf16 %v548_v30, %v546_v29  ;;  %v529_v40 = vsel %vm153_vm0, %v115_v27, 4286644096  ;;  %v132_v43 = vld [vmem:[%s1400_s0 + $0x1ec] sm:$0xf] }
  0x47   :  { %v147_v39 = vld [vmem:[%s1400_s0 + $0x228] sm:$0xf]  ;;  %v556_v41 = vsel %vm153_vm0, %v84_v26, 4286644096  ;;  %v21_v46 = vld [vmem:[%s1400_s0 + $0x30] sm:$0xf] }
  0x48   :  { %v782_v42 = vcombine.low %v469_v21, %v504_v33  ;;  %v527_v44 = vmax.bf16 %v525_v31, %v523_v37  ;;  %v554_v45 = vmax.bf16 %v552_v32, %v550_v38  ;;  %v37_v47 = vld [vmem:[%s1400_s0 + $0x70] sm:$0xf]  ;;  %v148_v49 = vld [vmem:[%s1400_s0 + $0x22c] sm:$0xf]  ;;  %v533_v50 = vsel %vm153_vm0, %v131_v36, 4286644096 }
  0x49   :  { %v53_v48 = vld [vmem:[%s1400_s0 + $0xb0] sm:$0xf]  ;;  %v560_v51 = vsel %vm153_vm0, %v100_v34, 4286644096  ;;  %v564_v54 = vsel %vm153_vm0, %v116_v35, 4286644096 }
  0x4a   :  { %783 = vst [vmem:[%s1401_s1 + $0x20] sm:$0xff] %v782_v42   ;;  %v531_v52 = vmax.bf16 %v529_v40, %v527_v44  ;;  %v558_v53 = vmax.bf16 %v556_v41, %v554_v45  ;;  %v22_v55 = vld [vmem:[%s1400_s0 + $0x34] sm:$0xf]  ;;  %v69_v56 = vld [vmem:[%s1400_s0 + $0xf0] sm:$0xf] }
  0x4b   :  { %v576_v57 = vsel %vm153_vm0, %v21_v46, 4286644096  ;;  %v579_v58 = vsel %vm153_vm0, %v37_v47, 4286644096  ;;  %v583_v59 = vsel %vm153_vm0, %v53_v48, 4286644096 }
  0x4c   :  { %v535_v60 = vmax.bf16 %v533_v50, %v531_v52  ;;  %v537_v61 = vsel %vm153_vm0, %v147_v39, 4286644096  ;;  %v562_v62 = vmax.bf16 %v560_v51, %v558_v53  ;;  %v38_v63 = vld [vmem:[%s1400_s0 + $0x74] sm:$0xf]  ;;  %v85_v0 = vld [vmem:[%s1400_s0 + $0x130] sm:$0xf]  ;;  %v581_v1 = vmax.bf16 %v579_v58, %v576_v57 }
  0x4d   :  { %v568_v2 = vsel %vm153_vm0, %v132_v43, 4286644096  ;;  %v54_v3 = vld [vmem:[%s1400_s0 + $0xb4] sm:$0xf]  ;;  %v587_v4 = vsel %vm153_vm0, %v69_v56, 4286644096 }
  0x4e   :  { %v566_v5 = vmax.bf16 %v564_v54, %v562_v62  ;;  %v572_v6 = vsel %vm153_vm0, %v148_v49, 4286644096  ;;  %v70_v7 = vld [vmem:[%s1400_s0 + $0xf4] sm:$0xf]  ;;  %v101_v8 = vld [vmem:[%s1400_s0 + $0x170] sm:$0xf]  ;;  %v585_v9 = vmax.bf16 %v583_v59, %v581_v1  ;;  %v539_v10 = vmax.bf16 %v537_v61, %v535_v60 }
  0x4f   :  { %v591_v11 = vsel %vm153_vm0, %v85_v0, 4286644096  ;;  %v611_v12 = vsel %vm153_vm0, %v22_v55, 4286644096  ;;  %v614_v13 = vsel %vm153_vm0, %v38_v63, 4286644096 }
  0x50   :  { %v570_v14 = vmax.bf16 %v568_v2, %v566_v5  ;;  %v86_v15 = vld [vmem:[%s1400_s0 + $0x134] sm:$0xf]  ;;  %v117_v16 = vld [vmem:[%s1400_s0 + $0x1b0] sm:$0xf]  ;;  %v589_v17 = vmax.bf16 %v587_v4, %v585_v9  ;;  %v616_v18 = vmax.bf16 %v614_v13, %v611_v12  ;;  %v618_v19 = vsel %vm153_vm0, %v54_v3, 4286644096 }
  0x51   :  { %v595_v20 = vsel %vm153_vm0, %v101_v8, 4286644096  ;;  %v622_v21 = vsel %vm153_vm0, %v70_v7, 4286644096  ;;  %v102_v23 = vld [vmem:[%s1400_s0 + $0x174] sm:$0xf] }
  0x52   :  { %v574_v22 = vmax.bf16 %v572_v6, %v570_v14  ;;  %v118_v24 = vld [vmem:[%s1400_s0 + $0x1b4] sm:$0xf]  ;;  %v133_v25 = vld [vmem:[%s1400_s0 + $0x1f0] sm:$0xf]  ;;  %v593_v26 = vmax.bf16 %v591_v11, %v589_v17  ;;  %v620_v27 = vmax.bf16 %v618_v19, %v616_v18  ;;  %v599_v29 = vsel %vm153_vm0, %v117_v16, 4286644096 }
  0x53   :  { %v149_v28 = vld [vmem:[%s1400_s0 + $0x230] sm:$0xf]  ;;  %v626_v30 = vsel %vm153_vm0, %v86_v15, 4286644096  ;;  %v134_v32 = vld [vmem:[%s1400_s0 + $0x1f4] sm:$0xf] }
  0x54   :  { %v784_v31 = vcombine.low %v539_v10, %v574_v22  ;;  %v597_v33 = vmax.bf16 %v595_v20, %v593_v26  ;;  %v624_v34 = vmax.bf16 %v622_v21, %v620_v27  ;;  %v23_v35 = vld [vmem:[%s1400_s0 + $0x38] sm:$0xf]  ;;  %v150_v38 = vld [vmem:[%s1400_s0 + $0x234] sm:$0xf]  ;;  %v603_v39 = vsel %vm153_vm0, %v133_v25, 4286644096 }
  0x55   :  { %v39_v36 = vld [vmem:[%s1400_s0 + $0x78] sm:$0xf]  ;;  %v630_v40 = vsel %vm153_vm0, %v102_v23, 4286644096  ;;  %v634_v43 = vsel %vm153_vm0, %v118_v24, 4286644096 }
  0x56   :  { %v55_v37 = vld [vmem:[%s1400_s0 + $0xb8] sm:$0xf]  ;;  %785 = vst [vmem:[%s1401_s1 + $0x28] sm:$0xff] %v784_v31   ;;  %v601_v41 = vmax.bf16 %v599_v29, %v597_v33  ;;  %v628_v42 = vmax.bf16 %v626_v30, %v624_v34  ;;  %v24_v44 = vld [vmem:[%s1400_s0 + $0x3c] sm:$0xf] }
  0x57   :  { %v71_v45 = vld [vmem:[%s1400_s0 + $0xf8] sm:$0xf]  ;;  %v646_v46 = vsel %vm153_vm0, %v23_v35, 4286644096  ;;  %v649_v47 = vsel %vm153_vm0, %v39_v36, 4286644096 }
  0x58   :  { %v653_v48 = vsel %vm153_vm0, %v55_v37, 4286644096  ;;  %v605_v49 = vmax.bf16 %v603_v39, %v601_v41  ;;  %v607_v50 = vsel %vm153_vm0, %v149_v28, 4286644096  ;;  %v632_v51 = vmax.bf16 %v630_v40, %v628_v42  ;;  %v40_v52 = vld [vmem:[%s1400_s0 + $0x7c] sm:$0xf] }
  0x59   :  { %v87_v53 = vld [vmem:[%s1400_s0 + $0x138] sm:$0xf]  ;;  %v651_v54 = vmax.bf16 %v649_v47, %v646_v46  ;;  %v638_v55 = vsel %vm153_vm0, %v134_v32, 4286644096  ;;  %v56_v56 = vld [vmem:[%s1400_s0 + $0xbc] sm:$0xf] }
  0x5a   :  { %v657_v57 = vsel %vm153_vm0, %v71_v45, 4286644096  ;;  %v636_v58 = vmax.bf16 %v634_v43, %v632_v51  ;;  %v642_v59 = vsel %vm153_vm0, %v150_v38, 4286644096  ;;  %v72_v60 = vld [vmem:[%s1400_s0 + $0xfc] sm:$0xf]  ;;  %v609_v63 = vmax.bf16 %v607_v50, %v605_v49 }
  0x5b   :  { %v103_v61 = vld [vmem:[%s1400_s0 + $0x178] sm:$0xf]  ;;  %v655_v62 = vmax.bf16 %v653_v48, %v651_v54  ;;  %v661_v0 = vsel %vm153_vm0, %v87_v53, 4286644096  ;;  %v681_v1 = vsel %vm153_vm0, %v24_v44, 4286644096 }
  0x5c   :  { %v684_v2 = vsel %vm153_vm0, %v40_v52, 4286644096  ;;  %v640_v3 = vmax.bf16 %v638_v55, %v636_v58  ;;  %v88_v4 = vld [vmem:[%s1400_s0 + $0x13c] sm:$0xf]  ;;  %v119_v5 = vld [vmem:[%s1400_s0 + $0x1b8] sm:$0xf] }
  0x5d   :  { %v659_v6 = vmax.bf16 %v657_v57, %v655_v62  ;;  %v686_v7 = vmax.bf16 %v684_v2, %v681_v1  ;;  %v688_v8 = vsel %vm153_vm0, %v56_v56, 4286644096  ;;  %v665_v9 = vsel %vm153_vm0, %v103_v61, 4286644096  ;;  %v104_v12 = vld [vmem:[%s1400_s0 + $0x17c] sm:$0xf] }
  0x5e   :  { %v692_v10 = vsel %vm153_vm0, %v72_v60, 4286644096  ;;  %v644_v11 = vmax.bf16 %v642_v59, %v640_v3  ;;  %v135_v13 = vld [vmem:[%s1400_s0 + $0x1f8] sm:$0xf]  ;;  %v669_v16 = vsel %vm153_vm0, %v119_v5, 4286644096 }
  0x5f   :  { %v663_v14 = vmax.bf16 %v661_v0, %v659_v6  ;;  %v690_v15 = vmax.bf16 %v688_v8, %v686_v7  ;;  %v696_v17 = vsel %vm153_vm0, %v88_v4, 4286644096  ;;  %v120_v19 = vld [vmem:[%s1400_s0 + $0x1bc] sm:$0xf]  ;;  %v673_v22 = vsel %vm153_vm0, %v135_v13, 4286644096 }
  0x60   :  { %v786_v18 = vcombine.low %v609_v63, %v644_v11  ;;  %v700_v23 = vsel %vm153_vm0, %v104_v12, 4286644096  ;;  %v136_v24 = vld [vmem:[%s1400_s0 + $0x1fc] sm:$0xf]  ;;  %v151_v25 = vld [vmem:[%s1400_s0 + $0x238] sm:$0xf] }
  0x61   :  { %v667_v20 = vmax.bf16 %v665_v9, %v663_v14  ;;  %v694_v21 = vmax.bf16 %v692_v10, %v690_v15  ;;  %v704_v28 = vsel %vm153_vm0, %v120_v19, 4286644096  ;;  %v152_v29 = vld [vmem:[%s1400_s0 + $0x23c] sm:$0xf]  ;;  %v677_v32 = vsel %vm153_vm0, %v151_v25, 4286644096 }
  0x62   :  { %787 = vst [vmem:[%s1401_s1 + $0x30] sm:$0xff] %v786_v18   ;;  %v708_v33 = vsel %vm153_vm0, %v136_v24, 4286644096  ;;  %v712_v35 = vsel %vm153_vm0, %v152_v29, 4286644096 }
  0x63   :  { %v671_v26 = vmax.bf16 %v669_v16, %v667_v20  ;;  %v698_v27 = vmax.bf16 %v696_v17, %v694_v21 }
  0x65   :  { %v675_v30 = vmax.bf16 %v673_v22, %v671_v26  ;;  %v702_v31 = vmax.bf16 %v700_v23, %v698_v27 }
  0x67   :  { %v706_v34 = vmax.bf16 %v704_v28, %v702_v31  ;;  %v679_v36 = vmax.bf16 %v677_v32, %v675_v30 }
  0x69   :  { %v710_v37 = vmax.bf16 %v708_v33, %v706_v34 }
  0x6b   :  { %v714_v38 = vmax.bf16 %v712_v35, %v710_v37 }
  0x6d   :  { %v788_v39 = vcombine.low %v679_v36, %v714_v38 }
  0x6f   :  { %789 = vst [vmem:[%s1401_s1 + $0x38] sm:$0xff] %v788_v39  }

// kernel: _lambda_.25
= control target key start
LH: loop header
LB: loop body
LE: loop exit
PB: predicated region body
PF: predicated region fallthrough
CT: control target
= control target key end

     0   :  { %s1878_s1 = inlined_call_operand.vmem [shape: bf16[640,128], index: 1, kind: input, shape index: {}]   ;;  %s1879_s0 = inlined_call_operand.vmem [shape: bf16[128,640], index: 0, kind: input, shape index: {}]   ;;  %s1880_s2 = inlined_call_operand.vmem [shape: f32[1,128], index: 2, kind: input, shape index: {}]   ;;  %s1881_s3 = inlined_call_operand.vmem [shape: bf16[128,128], index: 3, kind: output, shape index: {}]  }
   0x1   :  { %v1444_v0 = vld [vmem:[%s1878_s1 + $0x40] sm:$0xff]   ;;  %v1448_v4 = vld [vmem:[%s1878_s1 + $0x48] sm:$0xff]   ;;  %v1452_v8 = vld [vmem:[%s1878_s1 + $0x50] sm:$0xff]  }
   0x2   :  { %v1445_v1 = vld [vmem:[%s1878_s1 + $0xc0] sm:$0xff]   ;;  %1252 = vmatprep.subr.bf16.mxu0 %v1444_v0  ;;  %v1449_v5 = vld [vmem:[%s1878_s1 + $0xc8] sm:$0xff]   ;;  %v1453_v9 = vld [vmem:[%s1878_s1 + $0xd0] sm:$0xff]  }
   0x3   :  { %v1446_v2 = vld [vmem:[%s1878_s1] sm:$0xff]   ;;  %1316 = vmatprep.subr.bf16.mxu1 %v1445_v1  ;;  %v1450_v6 = vld [vmem:[%s1878_s1 + $0x8] sm:$0xff]   ;;  %v1454_v10 = vld [vmem:[%s1878_s1 + $0x10] sm:$0xff]  }
   0x4   :  { %v1447_v3 = vld [vmem:[%s1878_s1 + $0x80] sm:$0xff]   ;;  %1253 = vmatpush3.bf16.msra.mxu0 %v1446_v2  ;;  %v1451_v7 = vld [vmem:[%s1878_s1 + $0x88] sm:$0xff]   ;;  %v1455_v11 = vld [vmem:[%s1878_s1 + $0x90] sm:$0xff]  }
   0x5   :  { %1317 = vmatpush3.bf16.msra.mxu1 %v1447_v3  ;;  %1254 = vmatprep.subr.bf16.mxu0 %v1448_v4  ;;  %v1456_v12 = vld [vmem:[%s1878_s1 + $0x58] sm:$0xff]   ;;  %v1460_v16 = vld [vmem:[%s1878_s1 + $0x60] sm:$0xff]   ;;  %v1464_v20 = vld [vmem:[%s1878_s1 + $0x68] sm:$0xff]  }
   0x6   :  { %1318 = vmatprep.subr.bf16.mxu1 %v1449_v5  ;;  %v1457_v13 = vld [vmem:[%s1878_s1 + $0xd8] sm:$0xff]   ;;  %v1461_v17 = vld [vmem:[%s1878_s1 + $0xe0] sm:$0xff]   ;;  %v1465_v21 = vld [vmem:[%s1878_s1 + $0xe8] sm:$0xff]  }
   0x7   :  { %v1458_v14 = vld [vmem:[%s1878_s1 + $0x18] sm:$0xff]   ;;  %v1462_v18 = vld [vmem:[%s1878_s1 + $0x20] sm:$0xff]   ;;  %v1466_v22 = vld [vmem:[%s1878_s1 + $0x28] sm:$0xff]  }
   0x8   :  { %1255 = vmatpush3.bf16.msra.mxu0 %v1450_v6  ;;  %v1459_v15 = vld [vmem:[%s1878_s1 + $0x98] sm:$0xff]   ;;  %v1463_v19 = vld [vmem:[%s1878_s1 + $0xa0] sm:$0xff]   ;;  %v1467_v23 = vld [vmem:[%s1878_s1 + $0xa8] sm:$0xff]  }
   0x9   :  { %1319 = vmatpush3.bf16.msra.mxu1 %v1451_v7  ;;  %1256 = vmatprep.subr.bf16.mxu0 %v1452_v8  ;;  %v1468_v24 = vld [vmem:[%s1878_s1 + $0x70] sm:$0xff]   ;;  %v1472_v28 = vld [vmem:[%s1878_s1 + $0x78] sm:$0xff]   ;;  %v1481_v35 = vld [vmem:[%s1879_s0 + $0xc] ss:$20 sps:$4 sm:$0xff]  }
   0xa   :  { %1320 = vmatprep.subr.bf16.mxu1 %v1453_v9  ;;  %v1469_v25 = vld [vmem:[%s1878_s1 + $0xf0] sm:$0xff]   ;;  %v1473_v29 = vld [vmem:[%s1878_s1 + $0xf8] sm:$0xff]   ;;  %v1482_v36 = vld [vmem:[%s1878_s1 + $0x100] sm:$0xff]   ;;  %756 = vmatprep.mubr.bf16.mxu1 %v1481_v35 }
   0xb   :  { %v1470_v26 = vld [vmem:[%s1878_s1 + $0x30] sm:$0xff]   ;;  %v1474_v30 = vld [vmem:[%s1878_s1 + $0x38] sm:$0xff]   ;;  %v1483_v37 = vld [vmem:[%s1879_s0 + $0x2c] ss:$20 sps:$4 sm:$0xff]  }
   0xc   :  { %1257 = vmatpush3.bf16.msra.mxu0 %v1454_v10  ;;  %v1471_v27 = vld [vmem:[%s1878_s1 + $0xb0] sm:$0xff]   ;;  %v1475_v31 = vld [vmem:[%s1878_s1 + $0xb8] sm:$0xff]   ;;  %v1489_v39 = vld [vmem:[%s1878_s1 + $0x108] sm:$0xff]  }
   0xd   :  { %1321 = vmatpush3.bf16.msra.mxu1 %v1455_v11  ;;  %1258 = vmatprep.subr.bf16.mxu0 %v1456_v12  ;;  %v1476_v32 = vld [vmem:[%s1879_s0] ss:$20 sps:$4 sm:$0xff]   ;;  %v1478_v33 = vld [vmem:[%s1879_s0 + $0x4] ss:$20 sps:$4 sm:$0xff]   ;;  %v1479_v34 = vld [vmem:[%s1879_s0 + $0x8] ss:$20 sps:$4 sm:$0xff]  }
   0xe   :  { %1322 = vmatprep.subr.bf16.mxu1 %v1457_v13  ;;  %659 = vmatprep.mubr.bf16.mxu0 %v1478_v33  ;;  %v1485_v38 = vld [vmem:[%s1879_s0 + $0x34] ss:$20 sps:$4 sm:$0xff]   ;;  %v1488_v41 = vld [vmem:[%s1879_s0 + $0x30] ss:$20 sps:$4 sm:$0xff]   ;;  %v1503_v45 = vld [vmem:[%s1878_s1 + $0x118] sm:$0xff]  }
   0xf   :  { %v1487_v40 = vld [vmem:[%s1879_s0 + $0x28] ss:$20 sps:$4 sm:$0xff]   ;;  %v1496_v44 = vld [vmem:[%s1878_s1 + $0x110] sm:$0xff]   ;;  %v1495_v47 = vld [vmem:[%s1879_s0 + $0x58] ss:$20 sps:$4 sm:$0xff]  }
  0x10   :  { %1259 = vmatpush3.bf16.msra.mxu0 %v1458_v14  ;;  %v1490_v42 = vld [vmem:[%s1879_s0 + $0x54] ss:$20 sps:$4 sm:$0xff]   ;;  %v1492_v43 = vld [vmem:[%s1879_s0 + $0x5c] ss:$20 sps:$4 sm:$0xff]   ;;  %v1499_v49 = vld [vmem:[%s1879_s0 + $0x84] ss:$20 sps:$4 sm:$0xff]  }
  0x11   :  { %1323 = vmatpush3.bf16.msra.mxu1 %v1459_v15  ;;  %1260 = vmatprep.subr.bf16.mxu0 %v1460_v16  ;;  %v1494_v46 = vld [vmem:[%s1879_s0 + $0x50] ss:$20 sps:$4 sm:$0xff]   ;;  %v1517_v51 = vld [vmem:[%s1878_s1 + $0x128] sm:$0xff]   ;;  %v1502_v53 = vld [vmem:[%s1879_s0 + $0x80] ss:$20 sps:$4 sm:$0xff]  }
  0x12   :  { %1324 = vmatprep.subr.bf16.mxu1 %v1461_v17  ;;  %v1497_v48 = vld [vmem:[%s1879_s0 + $0x7c] ss:$20 sps:$4 sm:$0xff]   ;;  %v1510_v50 = vld [vmem:[%s1878_s1 + $0x120] sm:$0xff]   ;;  %v1501_v52 = vld [vmem:[%s1879_s0 + $0x78] ss:$20 sps:$4 sm:$0xff]  }
  0x13   :  { %v1504_v54 = vld [vmem:[%s1879_s0 + $0xa4] ss:$20 sps:$4 sm:$0xff]   ;;  %v1524_v55 = vld [vmem:[%s1878_s1 + $0x130] sm:$0xff]   ;;  %v1506_v56 = vld [vmem:[%s1879_s0 + $0xac] ss:$20 sps:$4 sm:$0xff]  }
  0x14   :  { %1261 = vmatpush3.bf16.msra.mxu0 %v1462_v18  ;;  %v1531_v57 = vld [vmem:[%s1878_s1 + $0x138] sm:$0xff]   ;;  %v1508_v58 = vld [vmem:[%s1879_s0 + $0xa0] ss:$20 sps:$4 sm:$0xff]   ;;  %v1516_v63 = vld [vmem:[%s1879_s0 + $0xd0] ss:$20 sps:$4 sm:$0xff]  }
  0x15   :  { %1325 = vmatpush3.bf16.msra.mxu1 %v1463_v19  ;;  %1262 = vmatprep.subr.bf16.mxu0 %v1464_v20  ;;  %v1509_v59 = vld [vmem:[%s1879_s0 + $0xa8] ss:$20 sps:$4 sm:$0xff]   ;;  %v1511_v60 = vld [vmem:[%s1879_s0 + $0xcc] ss:$20 sps:$4 sm:$0xff]   ;;  %v1522_v2 = vld [vmem:[%s1879_s0 + $0xf0] ss:$20 sps:$4 sm:$0xff]  }
  0x16   :  { %1326 = vmatprep.subr.bf16.mxu1 %v1465_v21  ;;  %v1513_v61 = vld [vmem:[%s1879_s0 + $0xd4] ss:$20 sps:$4 sm:$0xff]   ;;  %v1520_v1 = vld [vmem:[%s1879_s0 + $0xfc] ss:$20 sps:$4 sm:$0xff]   ;;  %v1523_v3 = vld [vmem:[%s1879_s0 + $0xf8] ss:$20 sps:$4 sm:$0xff]  }
  0x17   :  { %v1515_v62 = vld [vmem:[%s1879_s0 + $0xc8] ss:$20 sps:$4 sm:$0xff]   ;;  %v1527_v5 = vld [vmem:[%s1879_s0 + $0x124] ss:$20 sps:$4 sm:$0xff]   ;;  %v1530_v7 = vld [vmem:[%s1879_s0 + $0x120] ss:$20 sps:$4 sm:$0xff]  }
  0x18   :  { %1263 = vmatpush3.bf16.msra.mxu0 %v1466_v22  ;;  %v1518_v0 = vld [vmem:[%s1879_s0 + $0xf4] ss:$20 sps:$4 sm:$0xff]   ;;  %v1525_v4 = vld [vmem:[%s1879_s0 + $0x11c] ss:$20 sps:$4 sm:$0xff]   ;;  %v1529_v6 = vld [vmem:[%s1879_s0 + $0x118] ss:$20 sps:$4 sm:$0xff]  }
  0x19   :  { %1327 = vmatpush3.bf16.msra.mxu1 %v1467_v23  ;;  %1264 = vmatprep.subr.bf16.mxu0 %v1468_v24  ;;  %v1532_v8 = vld [vmem:[%s1879_s0 + $0x10] ss:$20 sps:$4 sm:$0xff]   ;;  %v1534_v10 = vld [vmem:[%s1879_s0 + $0x38] ss:$20 sps:$4 sm:$0xff]   ;;  %v1536_v12 = vld [vmem:[%s1879_s0 + $0x60] ss:$20 sps:$4 sm:$0xff]  }
  0x1a   :  { %1328 = vmatprep.subr.bf16.mxu1 %v1469_v25  ;;  %v1533_v9 = vld [vmem:[%s1879_s0 + $0xb0] ss:$20 sps:$4 sm:$0xff]   ;;  %v1535_v11 = vld [vmem:[%s1879_s0 + $0xd8] ss:$20 sps:$4 sm:$0xff]   ;;  %v1537_v13 = vld [vmem:[%s1879_s0 + $0x100] ss:$20 sps:$4 sm:$0xff]  }
  0x1b   :  { %v1538_v14 = vld [vmem:[%s1879_s0 + $0x88] ss:$20 sps:$4 sm:$0xff]  }
  0x1c   :  { %1265 = vmatpush3.bf16.msra.mxu0 %v1470_v26  ;;  %v1539_v15 = vld [vmem:[%s1879_s0 + $0x128] ss:$20 sps:$4 sm:$0xff]  }
  0x1d   :  { %1329 = vmatpush3.bf16.msra.mxu1 %v1471_v27  ;;  %1266 = vmatprep.subr.bf16.mxu0 %v1472_v28 }
  0x1e   :  { %1330 = vmatprep.subr.bf16.mxu1 %v1473_v29 }
  0x20   :  { %1267 = vmatpush3.bf16.msra.mxu0 %v1474_v30 }
  0x21   :  { %1331 = vmatpush3.bf16.msra.mxu1 %v1475_v31  ;;  %1396 = vmatprep.subr.bf16.mxu0 %v1482_v36 }
  0x22   :  { %1428 = vmatprep.subr.bf16.mxu1 %v1482_v36 }
  0x23   :  { %660 = vmatmul.mubr.bf16.vlgmr.msra.gmra.mrb[0].mxu0 %v1476_v32 }
  0x24   :  { %757 = vmatmul.mubr.bf16.vlgmr.msra.gmra.mrb[0].mxu1 %v1479_v34  ;;  %1397 = vmatpush3.bf16.msra.mxu0 %v1482_v36 }
  0x25   :  { %1436 = vmatpush3.bf16.msra.mxu1 %v1482_v36  ;;  %667 = vmatprep.mubr.bf16.mxu0 %v1483_v37 }
  0x26   :  { %764 = vmatprep.mubr.bf16.mxu1 %v1485_v38  ;;  %1398 = vmatprep.subr.bf16.mxu0 %v1489_v39 }
  0x27   :  { %1429 = vmatprep.subr.bf16.mxu1 %v1489_v39 }
  0x28   :  { %1399 = vmatpush3.bf16.msra.mxu0 %v1489_v39 }
  0x29   :  { %1437 = vmatpush3.bf16.msra.mxu1 %v1489_v39  ;;  %1400 = vmatprep.subr.bf16.mxu0 %v1496_v44 }
  0x2a   :  { %1430 = vmatprep.subr.bf16.mxu1 %v1496_v44 }
  0x2b   :  { %668 = vmatmul.mubr.bf16.gmra.mrb[4].mxu0 %v1487_v40 }
  0x2c   :  { %765 = vmatmul.mubr.bf16.gmra.mrb[4].mxu1 %v1488_v41  ;;  %675 = vmatprep.mubr.bf16.mxu0 %v1490_v42 }
  0x2d   :  { %772 = vmatprep.mubr.bf16.mxu1 %v1492_v43  ;;  %1401 = vmatpush3.bf16.msra.mxu0 %v1496_v44 }
  0x2e   :  { %1438 = vmatpush3.bf16.msra.mxu1 %v1496_v44  ;;  %1402 = vmatprep.subr.bf16.mxu0 %v1503_v45 }
  0x2f   :  { %1431 = vmatprep.subr.bf16.mxu1 %v1503_v45 }
  0x31   :  { %1403 = vmatpush3.bf16.msra.mxu0 %v1503_v45 }
  0x32   :  { %1439 = vmatpush3.bf16.msra.mxu1 %v1503_v45  ;;  %1404 = vmatprep.subr.bf16.mxu0 %v1510_v50 }
  0x33   :  { %676 = vmatmul.mubr.bf16.gmra.mrb[8].mxu0 %v1494_v46  ;;  %1432 = vmatprep.subr.bf16.mxu1 %v1510_v50 }
  0x34   :  { %773 = vmatmul.mubr.bf16.gmra.mrb[8].mxu1 %v1495_v47  ;;  %683 = vmatprep.mubr.bf16.mxu0 %v1497_v48 }
  0x35   :  { %780 = vmatprep.mubr.bf16.mxu1 %v1499_v49  ;;  %1405 = vmatpush3.bf16.msra.mxu0 %v1510_v50 }
  0x36   :  { %1440 = vmatpush3.bf16.msra.mxu1 %v1510_v50  ;;  %1406 = vmatprep.subr.bf16.mxu0 %v1517_v51 }
  0x37   :  { %1433 = vmatprep.subr.bf16.mxu1 %v1517_v51 }
  0x39   :  { %1407 = vmatpush3.bf16.msra.mxu0 %v1517_v51 }
  0x3a   :  { %1441 = vmatpush3.bf16.msra.mxu1 %v1517_v51  ;;  %1408 = vmatprep.subr.bf16.mxu0 %v1524_v55 }
  0x3b   :  { %684 = vmatmul.mubr.bf16.gmra.mrb[12].mxu0 %v1501_v52  ;;  %1434 = vmatprep.subr.bf16.mxu1 %v1524_v55 }
  0x3c   :  { %781 = vmatmul.mubr.bf16.gmra.mrb[12].mxu1 %v1502_v53  ;;  %691 = vmatprep.mubr.bf16.mxu0 %v1504_v54 }
  0x3d   :  { %788 = vmatprep.mubr.bf16.mxu1 %v1506_v56  ;;  %1409 = vmatpush3.bf16.msra.mxu0 %v1524_v55 }
  0x3e   :  { %1442 = vmatpush3.bf16.msra.mxu1 %v1524_v55  ;;  %1410 = vmatprep.subr.bf16.mxu0 %v1531_v57 }
  0x3f   :  { %1435 = vmatprep.subr.bf16.mxu1 %v1531_v57 }
  0x41   :  { %1411 = vmatpush3.bf16.msra.mxu0 %v1531_v57 }
  0x42   :  { %1443 = vmatpush3.bf16.msra.mxu1 %v1531_v57 }
  0x43   :  { %692 = vmatmul.mubr.bf16.gmra.mrb[16].mxu0 %v1508_v58 }
  0x44   :  { %789 = vmatmul.mubr.bf16.gmra.mrb[16].mxu1 %v1509_v59  ;;  %699 = vmatprep.mubr.bf16.mxu0 %v1511_v60 }
  0x45   :  { %796 = vmatprep.mubr.bf16.mxu1 %v1513_v61 }
  0x4b   :  { %700 = vmatmul.mubr.bf16.gmra.mrb[20].mxu0 %v1515_v62 }
  0x4c   :  { %797 = vmatmul.mubr.bf16.gmra.mrb[20].mxu1 %v1516_v63  ;;  %707 = vmatprep.mubr.bf16.mxu0 %v1518_v0 }
  0x4d   :  { %804 = vmatprep.mubr.bf16.mxu1 %v1520_v1 }
  0x53   :  { %708 = vmatmul.mubr.bf16.gmra.mrb[24].mxu0 %v1522_v2 }
  0x54   :  { %805 = vmatmul.mubr.bf16.gmra.mrb[24].mxu1 %v1523_v3  ;;  %715 = vmatprep.mubr.bf16.mxu0 %v1525_v4 }
  0x55   :  { %812 = vmatprep.mubr.bf16.mxu1 %v1527_v5 }
  0x5b   :  { %716 = vmatmul.mubr.bf16.gmra.mrb[28].mxu0 %v1529_v6 }
  0x5c   :  { %813 = vmatmul.mubr.bf16.gmra.mrb[28].mxu1 %v1530_v7  ;;  %1412 = vmatprep.mubr.bf16.mxu0 %v1532_v8 }
  0x5d   :  { %1420 = vmatprep.mubr.bf16.mxu1 %v1533_v9 }
  0x63   :  { %1413 = vmatmul.mubr.bf16.vlgmr.msra.gmra.mrb[32].mxu0 %v1534_v10 }
  0x64   :  { %1421 = vmatmul.mubr.bf16.vlgmr.msra.gmra.mrb[32].mxu1 %v1535_v11  ;;  %1416 = vmatprep.mubr.bf16.mxu0 %v1536_v12 }
  0x65   :  { %1424 = vmatprep.mubr.bf16.mxu1 %v1537_v13 }
  0x6b   :  { %1417 = vmatmul.mubr.bf16.gmra.mrb[36].mxu0 %v1538_v14 }
  0x6c   :  { %1425 = vmatmul.mubr.bf16.gmra.mrb[36].mxu1 %v1539_v15 }
  0xf6   :  { %v1268_v16 = vpop.f32.mrb[0].mxu0 }
  0xf7   :  { %v1332_v17 = vpop.f32.mrb[0].mxu1  ;;  %v1269_v18 = vpop.f32.mrb[1].mxu0 }
  0xf8   :  { %v1270_v19 = vadd.f32 %v1269_v18, %v1268_v16  ;;  %v1333_v20 = vpop.f32.mrb[1].mxu1  ;;  %v1271_v21 = vpop.f32.mrb[2].mxu0 }
  0xf9   :  { %v1334_v22 = vadd.f32 %v1333_v20, %v1332_v17  ;;  %v1335_v23 = vpop.f32.mrb[2].mxu1  ;;  %v1272_v24 = vpop.f32.mrb[3].mxu0 }
  0xfa   :  { %v1273_v25 = vadd.f32 %v1272_v24, %v1271_v21  ;;  %v1336_v26 = vpop.f32.mrb[3].mxu1 }
  0xfb   :  { %v1337_v27 = vadd.f32 %v1336_v26, %v1335_v23  ;;  %v1800_v28 = vadd.f32 %v1334_v22, %v1270_v19 }
  0xfd   :  { %v1802_v29 = vadd.f32 %v1337_v27, %v1273_v25 }
  0xfe   :  { %v1274_v30 = vpop.f32.mrb[4].mxu0 }
  0xff   :  { %v1338_v31 = vpop.f32.mrb[4].mxu1  ;;  %v1275_v32 = vpop.f32.mrb[5].mxu0 }
 0x100   :  { %v1276_v33 = vadd.f32 %v1275_v32, %v1274_v30  ;;  %v1339_v34 = vpop.f32.mrb[5].mxu1  ;;  %v1277_v35 = vpop.f32.mrb[6].mxu0 }
 0x101   :  { %v1340_v36 = vadd.f32 %v1339_v34, %v1338_v31  ;;  %v1341_v37 = vpop.f32.mrb[6].mxu1  ;;  %v1278_v38 = vpop.f32.mrb[7].mxu0 }
 0x102   :  { %v1279_v39 = vadd.f32 %v1278_v38, %v1277_v35  ;;  %v1342_v40 = vpop.f32.mrb[7].mxu1 }
 0x103   :  { %v1343_v41 = vadd.f32 %v1342_v40, %v1341_v37  ;;  %v1804_v42 = vadd.f32 %v1340_v36, %v1276_v33 }
 0x105   :  { %v1806_v43 = vadd.f32 %v1343_v41, %v1279_v39 }
 0x106   :  { %v1280_v44 = vpop.f32.mrb[8].mxu0 }
 0x107   :  { %v1344_v45 = vpop.f32.mrb[8].mxu1  ;;  %v1281_v46 = vpop.f32.mrb[9].mxu0 }
 0x108   :  { %v1282_v47 = vadd.f32 %v1281_v46, %v1280_v44  ;;  %v1345_v48 = vpop.f32.mrb[9].mxu1  ;;  %v1283_v49 = vpop.f32.mrb[10].mxu0 }
 0x109   :  { %v1346_v50 = vadd.f32 %v1345_v48, %v1344_v45  ;;  %v1347_v51 = vpop.f32.mrb[10].mxu1  ;;  %v1284_v52 = vpop.f32.mrb[11].mxu0 }
 0x10a   :  { %v1285_v53 = vadd.f32 %v1284_v52, %v1283_v49  ;;  %v1348_v54 = vpop.f32.mrb[11].mxu1 }
 0x10b   :  { %v1349_v55 = vadd.f32 %v1348_v54, %v1347_v51  ;;  %v1808_v56 = vadd.f32 %v1346_v50, %v1282_v47 }
 0x10d   :  { %v1810_v57 = vadd.f32 %v1349_v55, %v1285_v53 }
 0x10e   :  { %v1286_v58 = vpop.f32.mrb[12].mxu0 }
 0x10f   :  { %v1350_v59 = vpop.f32.mrb[12].mxu1  ;;  %v1287_v60 = vpop.f32.mrb[13].mxu0 }
 0x110   :  { %v1288_v61 = vadd.f32 %v1287_v60, %v1286_v58  ;;  %v1351_v62 = vpop.f32.mrb[13].mxu1  ;;  %v1289_v63 = vpop.f32.mrb[14].mxu0 }
 0x111   :  { %v1352_v0 = vadd.f32 %v1351_v62, %v1350_v59  ;;  %v1353_v1 = vpop.f32.mrb[14].mxu1  ;;  %v1290_v2 = vpop.f32.mrb[15].mxu0 }
 0x112   :  { %v1291_v3 = vadd.f32 %v1290_v2, %v1289_v63  ;;  %v1354_v4 = vpop.f32.mrb[15].mxu1 }
 0x113   :  { %v1355_v5 = vadd.f32 %v1354_v4, %v1353_v1  ;;  %v1812_v6 = vadd.f32 %v1352_v0, %v1288_v61 }
 0x115   :  { %v1814_v7 = vadd.f32 %v1355_v5, %v1291_v3 }
 0x116   :  { %v1292_v8 = vpop.f32.mrb[16].mxu0 }
 0x117   :  { %v1356_v9 = vpop.f32.mrb[16].mxu1  ;;  %v1293_v10 = vpop.f32.mrb[17].mxu0 }
 0x118   :  { %v1294_v11 = vadd.f32 %v1293_v10, %v1292_v8  ;;  %v1357_v12 = vpop.f32.mrb[17].mxu1  ;;  %v1295_v13 = vpop.f32.mrb[18].mxu0 }
 0x119   :  { %v1358_v14 = vadd.f32 %v1357_v12, %v1356_v9  ;;  %v1359_v15 = vpop.f32.mrb[18].mxu1  ;;  %v1296_v16 = vpop.f32.mrb[19].mxu0  ;;  %v1825_v9 = vld [vmem:[%s1880_s2] ss:$0 sm:$0xff] }
 0x11a   :  { %v1297_v17 = vadd.f32 %v1296_v16, %v1295_v13  ;;  %v1360_v18 = vpop.f32.mrb[19].mxu1 }
 0x11b   :  { %v1361_v19 = vadd.f32 %v1360_v18, %v1359_v15  ;;  %v791_v20 = vadd.f32 %v1358_v14, %v1294_v11 }
 0x11d   :  { %v1816_v21 = vadd.f32 %v1361_v19, %v1297_v17 }
 0x11e   :  { %v1298_v22 = vpop.f32.mrb[20].mxu0 }
 0x11f   :  { %v1362_v23 = vpop.f32.mrb[20].mxu1  ;;  %v1299_v24 = vpop.f32.mrb[21].mxu0 }
 0x120   :  { %v1300_v25 = vadd.f32 %v1299_v24, %v1298_v22  ;;  %v1363_v26 = vpop.f32.mrb[21].mxu1  ;;  %v1301_v27 = vpop.f32.mrb[22].mxu0 }
 0x121   :  { %v1364_v30 = vadd.f32 %v1363_v26, %v1362_v23  ;;  %v1365_v31 = vpop.f32.mrb[22].mxu1  ;;  %v1302_v32 = vpop.f32.mrb[23].mxu0 }
 0x122   :  { %v1303_v33 = vadd.f32 %v1302_v32, %v1301_v27  ;;  %v1366_v34 = vpop.f32.mrb[23].mxu1 }
 0x123   :  { %v1367_v35 = vadd.f32 %v1366_v34, %v1365_v31  ;;  %v799_v36 = vadd.f32 %v1364_v30, %v1300_v25 }
 0x125   :  { %v802_v37 = vadd.f32 %v1367_v35, %v1303_v33 }
 0x126   :  { %v1304_v38 = vpop.f32.mrb[24].mxu0 }
 0x127   :  { %v1368_v39 = vpop.f32.mrb[24].mxu1  ;;  %v1305_v40 = vpop.f32.mrb[25].mxu0 }
 0x128   :  { %v1306_v41 = vadd.f32 %v1305_v40, %v1304_v38  ;;  %v1369_v44 = vpop.f32.mrb[25].mxu1  ;;  %v1307_v45 = vpop.f32.mrb[26].mxu0 }
 0x129   :  { %v1370_v46 = vadd.f32 %v1369_v44, %v1368_v39  ;;  %v1371_v47 = vpop.f32.mrb[26].mxu1  ;;  %v1308_v48 = vpop.f32.mrb[27].mxu0 }
 0x12a   :  { %v1309_v49 = vadd.f32 %v1308_v48, %v1307_v45  ;;  %v1372_v50 = vpop.f32.mrb[27].mxu1 }
 0x12b   :  { %v1373_v51 = vadd.f32 %v1372_v50, %v1371_v47  ;;  %v1818_v52 = vadd.f32 %v1370_v46, %v1306_v41 }
 0x12d   :  { %v1820_v53 = vadd.f32 %v1373_v51, %v1309_v49 }
 0x12e   :  { %v1310_v54 = vpop.f32.mrb[28].mxu0 }
 0x12f   :  { %v1374_v55 = vpop.f32.mrb[28].mxu1  ;;  %v1311_v58 = vpop.f32.mrb[29].mxu0 }
 0x130   :  { %v1312_v59 = vadd.f32 %v1311_v58, %v1310_v54  ;;  %v1375_v60 = vpop.f32.mrb[29].mxu1  ;;  %v1313_v61 = vpop.f32.mrb[30].mxu0 }
 0x131   :  { %v1376_v62 = vadd.f32 %v1375_v60, %v1374_v55  ;;  %v1377_v63 = vpop.f32.mrb[30].mxu1  ;;  %v1314_v0 = vpop.f32.mrb[31].mxu0 }
 0x132   :  { %v1315_v1 = vadd.f32 %v1314_v0, %v1313_v61  ;;  %v1378_v2 = vpop.f32.mrb[31].mxu1 }
 0x133   :  { %v1379_v3 = vadd.f32 %v1378_v2, %v1377_v63  ;;  %v815_v4 = vadd.f32 %v1376_v62, %v1312_v59 }
 0x135   :  { %v818_v5 = vadd.f32 %v1379_v3, %v1315_v1 }
 0x136   :  { %v1414_v8 = vpop.f32.mrb[32].mxu0 }
 0x137   :  { %v864_v10 = vadd.f32 %v1414_v8, %v1804_v42  ;;  %v1422_v11 = vpop.f32.mrb[32].mxu1  ;;  %v855_v12 = vpop.f32.mrb[33].mxu0 }
 0x138   :  { %v896_v13 = vadd.f32 %v1422_v11, %v799_v36  ;;  %v856_v14 = vadd.f32 %v855_v12, %v1800_v28  ;;  %v887_v15 = vpop.f32.mrb[33].mxu1  ;;  %v1415_v16 = vpop.f32.mrb[34].mxu0 }
 0x139   :  { %v978_v17 = vadd.f32 %v1825_v9, %v864_v10  ;;  %v888_v18 = vadd.f32 %v887_v15, %v791_v20  ;;  %v867_v19 = vadd.f32 %v1415_v16, %v1806_v43  ;;  %v1423_v22 = vpop.f32.mrb[34].mxu1  ;;  %v858_v23 = vpop.f32.mrb[35].mxu0 }
 0x13a   :  { %v986_v24 = vadd.f32 %v1825_v9, %v896_v13  ;;  %v976_v25 = vadd.f32 %v1825_v9, %v856_v14  ;;  %v899_v26 = vadd.f32 %v1423_v22, %v802_v37  ;;  %v859_v42 = vadd.f32 %v858_v23, %v1802_v29  ;;  %v890_v27 = vpop.f32.mrb[35].mxu1 }
 0x13b   :  { %v984_v30 = vadd.f32 %v1825_v9, %v888_v18  ;;  %v979_v28 = vadd.f32 %v1825_v9, %v867_v19  ;;  %v891_v31 = vadd.f32 %v890_v27, %v1816_v21  ;;  %v994_v32 = vmax.f32 %v978_v17, 0.0 }
 0x13c   :  { %v987_v20 = vadd.f32 %v1825_v9, %v899_v26  ;;  %v977_v43 = vadd.f32 %v1825_v9, %v859_v42  ;;  %v1002_v35 = vmax.f32 %v986_v24, 0.0  ;;  %v992_v36 = vmax.f32 %v976_v25, 0.0 }
 0x13d   :  { %v995_v33 = vmax.f32 %v979_v28, 0.0  ;;  %v985_v34 = vadd.f32 %v1825_v9, %v891_v31  ;;  %v1000_v39 = vmax.f32 %v984_v30, 0.0 }
 0x13e   :  { %v1003_v37 = vmax.f32 %v987_v20, 0.0  ;;  %v993_v38 = vmax.f32 %v977_v43, 0.0  ;;  %v1418_v29 = vpop.f32.mrb[36].mxu0 }
 0x13f   :  { %v1213_v40 = vpack.c.bf16 %v995_v33, %v994_v32  ;;  %v1001_v41 = vmax.f32 %v985_v34, 0.0  ;;  %v880_v44 = vadd.f32 %v1418_v29, %v1812_v6  ;;  %v1426_v45 = vpop.f32.mrb[36].mxu1  ;;  %v871_v21 = vpop.f32.mrb[37].mxu0 }
 0x140   :  { %v1233_v46 = vpack.c.bf16 %v1003_v37, %v1002_v35  ;;  %v1208_v47 = vpack.c.bf16 %v993_v38, %v992_v36  ;;  %v912_v48 = vadd.f32 %v1426_v45, %v815_v4  ;;  %v872_v49 = vadd.f32 %v871_v21, %v1808_v56  ;;  %v903_v50 = vpop.f32.mrb[37].mxu1  ;;  %v1419_v51 = vpop.f32.mrb[38].mxu0 }
 0x141   :  { %1245 = vst [vmem:[%s1881_s3 + $0x8] sm:$0xff] %v1213_v40   ;;  %v1228_v54 = vpack.c.bf16 %v1001_v41, %v1000_v39  ;;  %v982_v55 = vadd.f32 %v1825_v9, %v880_v44  ;;  %v904_v58 = vadd.f32 %v903_v50, %v1818_v52  ;;  %v883_v6 = vadd.f32 %v1419_v51, %v1814_v7  ;;  %v1427_v59 = vpop.f32.mrb[38].mxu1  ;;  %v874_v60 = vpop.f32.mrb[39].mxu0 }
 0x142   :  { %1249 = vst [vmem:[%s1881_s3 + $0x28] sm:$0xff] %v1233_v46   ;;  %1209 = vst [vmem:[%s1881_s3] sm:$0xff] %v1208_v47   ;;  %v990_v56 = vadd.f32 %v1825_v9, %v912_v48  ;;  %v980_v61 = vadd.f32 %v1825_v9, %v872_v49  ;;  %v915_v62 = vadd.f32 %v1427_v59, %v818_v5  ;;  %v906_v52 = vpop.f32.mrb[39].mxu1 }
 0x143   :  { %v875_v63 = vadd.f32 %v874_v60, %v1810_v57  ;;  %1248 = vst [vmem:[%s1881_s3 + $0x20] sm:$0xff] %v1228_v54   ;;  %v988_v7 = vadd.f32 %v1825_v9, %v904_v58  ;;  %v983_v0 = vadd.f32 %v1825_v9, %v883_v6  ;;  %v907_v1 = vadd.f32 %v906_v52, %v1820_v53 }
 0x144   :  { %v991_v2 = vadd.f32 %v1825_v9, %v915_v62  ;;  %v998_v4 = vmax.f32 %v982_v55, 0.0  ;;  %v1006_v57 = vmax.f32 %v990_v56, 0.0  ;;  %v996_v10 = vmax.f32 %v980_v61, 0.0 }
 0x145   :  { %v981_v3 = vadd.f32 %v1825_v9, %v875_v63  ;;  %v999_v8 = vmax.f32 %v983_v0, 0.0  ;;  %v989_v5 = vadd.f32 %v1825_v9, %v907_v1  ;;  %v1004_v13 = vmax.f32 %v988_v7, 0.0 }
 0x146   :  { %v1007_v11 = vmax.f32 %v991_v2, 0.0 }
 0x147   :  { %v997_v12 = vmax.f32 %v981_v3, 0.0  ;;  %v1223_v14 = vpack.c.bf16 %v999_v8, %v998_v4  ;;  %v1005_v15 = vmax.f32 %v989_v5, 0.0 }
 0x148   :  { %v1243_v16 = vpack.c.bf16 %v1007_v11, %v1006_v57 }
 0x149   :  { %v1218_v17 = vpack.c.bf16 %v997_v12, %v996_v10  ;;  %1247 = vst [vmem:[%s1881_s3 + $0x18] sm:$0xff] %v1223_v14   ;;  %v1238_v53 = vpack.c.bf16 %v1005_v15, %v1004_v13 }
 0x14a   :  { %1251 = vst [vmem:[%s1881_s3 + $0x38] sm:$0xff] %v1243_v16  }
 0x14b   :  { %1246 = vst [vmem:[%s1881_s3 + $0x10] sm:$0xff] %v1218_v17   ;;  %1250 = vst [vmem:[%s1881_s3 + $0x30] sm:$0xff] %v1238_v53  }

// kernel: _lambda_.26
= control target key start
LH: loop header
LB: loop body
LE: loop exit
PB: predicated region body
PF: predicated region fallthrough
CT: control target
= control target key end

     0   :  { %s2033_s1 = inlined_call_operand.vmem [shape: bf16[640,128], index: 1, kind: input, shape index: {}]   ;;  %s2034_s0 = inlined_call_operand.vmem [shape: bf16[128,640], index: 0, kind: input, shape index: {}]   ;;  %s2035_s3 = inlined_call_operand.vmem [shape: bf16[128,128], index: 3, kind: input, shape index: {}]   ;;  %s2036_s2 = inlined_call_operand.vmem [shape: f32[1,128], index: 2, kind: input, shape index: {}]   ;;  %s2037_s4 = inlined_call_operand.vmem [shape: bf16[128,128], index: 4, kind: output, shape index: {}]  }
   0x1   :  { %v1534_v0 = vld [vmem:[%s2033_s1 + $0x40] sm:$0xff]   ;;  %v1538_v4 = vld [vmem:[%s2033_s1 + $0x48] sm:$0xff]   ;;  %v1542_v8 = vld [vmem:[%s2033_s1 + $0x50] sm:$0xff]  }
   0x2   :  { %v1535_v1 = vld [vmem:[%s2033_s1 + $0xc0] sm:$0xff]   ;;  %1342 = vmatprep.subr.bf16.mxu0 %v1534_v0  ;;  %v1539_v5 = vld [vmem:[%s2033_s1 + $0xc8] sm:$0xff]   ;;  %v1543_v9 = vld [vmem:[%s2033_s1 + $0xd0] sm:$0xff]  }
   0x3   :  { %v1536_v2 = vld [vmem:[%s2033_s1] sm:$0xff]   ;;  %1406 = vmatprep.subr.bf16.mxu1 %v1535_v1  ;;  %v1540_v6 = vld [vmem:[%s2033_s1 + $0x8] sm:$0xff]   ;;  %v1544_v10 = vld [vmem:[%s2033_s1 + $0x10] sm:$0xff]  }
   0x4   :  { %v1537_v3 = vld [vmem:[%s2033_s1 + $0x80] sm:$0xff]   ;;  %1343 = vmatpush3.bf16.msra.mxu0 %v1536_v2  ;;  %v1541_v7 = vld [vmem:[%s2033_s1 + $0x88] sm:$0xff]   ;;  %v1545_v11 = vld [vmem:[%s2033_s1 + $0x90] sm:$0xff]  }
   0x5   :  { %1407 = vmatpush3.bf16.msra.mxu1 %v1537_v3  ;;  %1344 = vmatprep.subr.bf16.mxu0 %v1538_v4  ;;  %v1546_v12 = vld [vmem:[%s2033_s1 + $0x58] sm:$0xff]   ;;  %v1550_v16 = vld [vmem:[%s2033_s1 + $0x60] sm:$0xff]   ;;  %v1554_v20 = vld [vmem:[%s2033_s1 + $0x68] sm:$0xff]  }
   0x6   :  { %1408 = vmatprep.subr.bf16.mxu1 %v1539_v5  ;;  %v1547_v13 = vld [vmem:[%s2033_s1 + $0xd8] sm:$0xff]   ;;  %v1551_v17 = vld [vmem:[%s2033_s1 + $0xe0] sm:$0xff]   ;;  %v1555_v21 = vld [vmem:[%s2033_s1 + $0xe8] sm:$0xff]  }
   0x7   :  { %v1548_v14 = vld [vmem:[%s2033_s1 + $0x18] sm:$0xff]   ;;  %v1552_v18 = vld [vmem:[%s2033_s1 + $0x20] sm:$0xff]   ;;  %v1556_v22 = vld [vmem:[%s2033_s1 + $0x28] sm:$0xff]  }
   0x8   :  { %1345 = vmatpush3.bf16.msra.mxu0 %v1540_v6  ;;  %v1549_v15 = vld [vmem:[%s2033_s1 + $0x98] sm:$0xff]   ;;  %v1553_v19 = vld [vmem:[%s2033_s1 + $0xa0] sm:$0xff]   ;;  %v1557_v23 = vld [vmem:[%s2033_s1 + $0xa8] sm:$0xff]  }
   0x9   :  { %1409 = vmatpush3.bf16.msra.mxu1 %v1541_v7  ;;  %1346 = vmatprep.subr.bf16.mxu0 %v1542_v8  ;;  %v1558_v24 = vld [vmem:[%s2033_s1 + $0x70] sm:$0xff]   ;;  %v1562_v28 = vld [vmem:[%s2033_s1 + $0x78] sm:$0xff]   ;;  %v1571_v35 = vld [vmem:[%s2034_s0 + $0xc] ss:$20 sps:$4 sm:$0xff]  }
   0xa   :  { %1410 = vmatprep.subr.bf16.mxu1 %v1543_v9  ;;  %v1559_v25 = vld [vmem:[%s2033_s1 + $0xf0] sm:$0xff]   ;;  %v1563_v29 = vld [vmem:[%s2033_s1 + $0xf8] sm:$0xff]   ;;  %v1572_v36 = vld [vmem:[%s2033_s1 + $0x100] sm:$0xff]   ;;  %759 = vmatprep.mubr.bf16.mxu1 %v1571_v35 }
   0xb   :  { %v1560_v26 = vld [vmem:[%s2033_s1 + $0x30] sm:$0xff]   ;;  %v1564_v30 = vld [vmem:[%s2033_s1 + $0x38] sm:$0xff]   ;;  %v1573_v37 = vld [vmem:[%s2034_s0 + $0x2c] ss:$20 sps:$4 sm:$0xff]  }
   0xc   :  { %1347 = vmatpush3.bf16.msra.mxu0 %v1544_v10  ;;  %v1561_v27 = vld [vmem:[%s2033_s1 + $0xb0] sm:$0xff]   ;;  %v1565_v31 = vld [vmem:[%s2033_s1 + $0xb8] sm:$0xff]   ;;  %v1579_v39 = vld [vmem:[%s2033_s1 + $0x108] sm:$0xff]  }
   0xd   :  { %1411 = vmatpush3.bf16.msra.mxu1 %v1545_v11  ;;  %1348 = vmatprep.subr.bf16.mxu0 %v1546_v12  ;;  %v1566_v32 = vld [vmem:[%s2034_s0] ss:$20 sps:$4 sm:$0xff]   ;;  %v1568_v33 = vld [vmem:[%s2034_s0 + $0x4] ss:$20 sps:$4 sm:$0xff]   ;;  %v1569_v34 = vld [vmem:[%s2034_s0 + $0x8] ss:$20 sps:$4 sm:$0xff]  }
   0xe   :  { %1412 = vmatprep.subr.bf16.mxu1 %v1547_v13  ;;  %662 = vmatprep.mubr.bf16.mxu0 %v1568_v33  ;;  %v1575_v38 = vld [vmem:[%s2034_s0 + $0x34] ss:$20 sps:$4 sm:$0xff]   ;;  %v1578_v41 = vld [vmem:[%s2034_s0 + $0x30] ss:$20 sps:$4 sm:$0xff]   ;;  %v1593_v45 = vld [vmem:[%s2033_s1 + $0x118] sm:$0xff]  }
   0xf   :  { %v1577_v40 = vld [vmem:[%s2034_s0 + $0x28] ss:$20 sps:$4 sm:$0xff]   ;;  %v1586_v44 = vld [vmem:[%s2033_s1 + $0x110] sm:$0xff]   ;;  %v1585_v47 = vld [vmem:[%s2034_s0 + $0x58] ss:$20 sps:$4 sm:$0xff]  }
  0x10   :  { %1349 = vmatpush3.bf16.msra.mxu0 %v1548_v14  ;;  %v1580_v42 = vld [vmem:[%s2034_s0 + $0x54] ss:$20 sps:$4 sm:$0xff]   ;;  %v1582_v43 = vld [vmem:[%s2034_s0 + $0x5c] ss:$20 sps:$4 sm:$0xff]   ;;  %v1589_v49 = vld [vmem:[%s2034_s0 + $0x84] ss:$20 sps:$4 sm:$0xff]  }
  0x11   :  { %1413 = vmatpush3.bf16.msra.mxu1 %v1549_v15  ;;  %1350 = vmatprep.subr.bf16.mxu0 %v1550_v16  ;;  %v1584_v46 = vld [vmem:[%s2034_s0 + $0x50] ss:$20 sps:$4 sm:$0xff]   ;;  %v1607_v51 = vld [vmem:[%s2033_s1 + $0x128] sm:$0xff]   ;;  %v1592_v53 = vld [vmem:[%s2034_s0 + $0x80] ss:$20 sps:$4 sm:$0xff]  }
  0x12   :  { %1414 = vmatprep.subr.bf16.mxu1 %v1551_v17  ;;  %v1587_v48 = vld [vmem:[%s2034_s0 + $0x7c] ss:$20 sps:$4 sm:$0xff]   ;;  %v1600_v50 = vld [vmem:[%s2033_s1 + $0x120] sm:$0xff]   ;;  %v1591_v52 = vld [vmem:[%s2034_s0 + $0x78] ss:$20 sps:$4 sm:$0xff]  }
  0x13   :  { %v1594_v54 = vld [vmem:[%s2034_s0 + $0xa4] ss:$20 sps:$4 sm:$0xff]   ;;  %v1614_v55 = vld [vmem:[%s2033_s1 + $0x130] sm:$0xff]   ;;  %v1596_v56 = vld [vmem:[%s2034_s0 + $0xac] ss:$20 sps:$4 sm:$0xff]  }
  0x14   :  { %1351 = vmatpush3.bf16.msra.mxu0 %v1552_v18  ;;  %v1621_v57 = vld [vmem:[%s2033_s1 + $0x138] sm:$0xff]   ;;  %v1598_v58 = vld [vmem:[%s2034_s0 + $0xa0] ss:$20 sps:$4 sm:$0xff]   ;;  %v1606_v63 = vld [vmem:[%s2034_s0 + $0xd0] ss:$20 sps:$4 sm:$0xff]  }
  0x15   :  { %1415 = vmatpush3.bf16.msra.mxu1 %v1553_v19  ;;  %1352 = vmatprep.subr.bf16.mxu0 %v1554_v20  ;;  %v1599_v59 = vld [vmem:[%s2034_s0 + $0xa8] ss:$20 sps:$4 sm:$0xff]   ;;  %v1601_v60 = vld [vmem:[%s2034_s0 + $0xcc] ss:$20 sps:$4 sm:$0xff]   ;;  %v1612_v2 = vld [vmem:[%s2034_s0 + $0xf0] ss:$20 sps:$4 sm:$0xff]  }
  0x16   :  { %1416 = vmatprep.subr.bf16.mxu1 %v1555_v21  ;;  %v1603_v61 = vld [vmem:[%s2034_s0 + $0xd4] ss:$20 sps:$4 sm:$0xff]   ;;  %v1610_v1 = vld [vmem:[%s2034_s0 + $0xfc] ss:$20 sps:$4 sm:$0xff]   ;;  %v1613_v3 = vld [vmem:[%s2034_s0 + $0xf8] ss:$20 sps:$4 sm:$0xff]  }
  0x17   :  { %v1605_v62 = vld [vmem:[%s2034_s0 + $0xc8] ss:$20 sps:$4 sm:$0xff]   ;;  %v1617_v5 = vld [vmem:[%s2034_s0 + $0x124] ss:$20 sps:$4 sm:$0xff]   ;;  %v1620_v7 = vld [vmem:[%s2034_s0 + $0x120] ss:$20 sps:$4 sm:$0xff]  }
  0x18   :  { %1353 = vmatpush3.bf16.msra.mxu0 %v1556_v22  ;;  %v1608_v0 = vld [vmem:[%s2034_s0 + $0xf4] ss:$20 sps:$4 sm:$0xff]   ;;  %v1615_v4 = vld [vmem:[%s2034_s0 + $0x11c] ss:$20 sps:$4 sm:$0xff]   ;;  %v1619_v6 = vld [vmem:[%s2034_s0 + $0x118] ss:$20 sps:$4 sm:$0xff]  }
  0x19   :  { %1417 = vmatpush3.bf16.msra.mxu1 %v1557_v23  ;;  %1354 = vmatprep.subr.bf16.mxu0 %v1558_v24  ;;  %v1622_v8 = vld [vmem:[%s2034_s0 + $0x10] ss:$20 sps:$4 sm:$0xff]   ;;  %v1624_v10 = vld [vmem:[%s2034_s0 + $0x38] ss:$20 sps:$4 sm:$0xff]   ;;  %v1626_v12 = vld [vmem:[%s2034_s0 + $0x60] ss:$20 sps:$4 sm:$0xff]  }
  0x1a   :  { %1418 = vmatprep.subr.bf16.mxu1 %v1559_v25  ;;  %v1623_v9 = vld [vmem:[%s2034_s0 + $0xb0] ss:$20 sps:$4 sm:$0xff]   ;;  %v1625_v11 = vld [vmem:[%s2034_s0 + $0xd8] ss:$20 sps:$4 sm:$0xff]   ;;  %v1627_v13 = vld [vmem:[%s2034_s0 + $0x100] ss:$20 sps:$4 sm:$0xff]  }
  0x1b   :  { %v1628_v14 = vld [vmem:[%s2034_s0 + $0x88] ss:$20 sps:$4 sm:$0xff]  }
  0x1c   :  { %1355 = vmatpush3.bf16.msra.mxu0 %v1560_v26  ;;  %v1629_v15 = vld [vmem:[%s2034_s0 + $0x128] ss:$20 sps:$4 sm:$0xff]  }
  0x1d   :  { %1419 = vmatpush3.bf16.msra.mxu1 %v1561_v27  ;;  %1356 = vmatprep.subr.bf16.mxu0 %v1562_v28 }
  0x1e   :  { %1420 = vmatprep.subr.bf16.mxu1 %v1563_v29 }
  0x20   :  { %1357 = vmatpush3.bf16.msra.mxu0 %v1564_v30 }
  0x21   :  { %1421 = vmatpush3.bf16.msra.mxu1 %v1565_v31  ;;  %1486 = vmatprep.subr.bf16.mxu0 %v1572_v36 }
  0x22   :  { %1518 = vmatprep.subr.bf16.mxu1 %v1572_v36 }
  0x23   :  { %663 = vmatmul.mubr.bf16.vlgmr.msra.gmra.mrb[0].mxu0 %v1566_v32 }
  0x24   :  { %760 = vmatmul.mubr.bf16.vlgmr.msra.gmra.mrb[0].mxu1 %v1569_v34  ;;  %1487 = vmatpush3.bf16.msra.mxu0 %v1572_v36 }
  0x25   :  { %1526 = vmatpush3.bf16.msra.mxu1 %v1572_v36  ;;  %670 = vmatprep.mubr.bf16.mxu0 %v1573_v37 }
  0x26   :  { %767 = vmatprep.mubr.bf16.mxu1 %v1575_v38  ;;  %1488 = vmatprep.subr.bf16.mxu0 %v1579_v39 }
  0x27   :  { %1519 = vmatprep.subr.bf16.mxu1 %v1579_v39 }
  0x28   :  { %1489 = vmatpush3.bf16.msra.mxu0 %v1579_v39 }
  0x29   :  { %1527 = vmatpush3.bf16.msra.mxu1 %v1579_v39  ;;  %1490 = vmatprep.subr.bf16.mxu0 %v1586_v44 }
  0x2a   :  { %1520 = vmatprep.subr.bf16.mxu1 %v1586_v44 }
  0x2b   :  { %671 = vmatmul.mubr.bf16.gmra.mrb[4].mxu0 %v1577_v40 }
  0x2c   :  { %768 = vmatmul.mubr.bf16.gmra.mrb[4].mxu1 %v1578_v41  ;;  %678 = vmatprep.mubr.bf16.mxu0 %v1580_v42 }
  0x2d   :  { %775 = vmatprep.mubr.bf16.mxu1 %v1582_v43  ;;  %1491 = vmatpush3.bf16.msra.mxu0 %v1586_v44 }
  0x2e   :  { %1528 = vmatpush3.bf16.msra.mxu1 %v1586_v44  ;;  %1492 = vmatprep.subr.bf16.mxu0 %v1593_v45 }
  0x2f   :  { %1521 = vmatprep.subr.bf16.mxu1 %v1593_v45 }
  0x31   :  { %1493 = vmatpush3.bf16.msra.mxu0 %v1593_v45 }
  0x32   :  { %1529 = vmatpush3.bf16.msra.mxu1 %v1593_v45  ;;  %1494 = vmatprep.subr.bf16.mxu0 %v1600_v50 }
  0x33   :  { %679 = vmatmul.mubr.bf16.gmra.mrb[8].mxu0 %v1584_v46  ;;  %1522 = vmatprep.subr.bf16.mxu1 %v1600_v50 }
  0x34   :  { %776 = vmatmul.mubr.bf16.gmra.mrb[8].mxu1 %v1585_v47  ;;  %686 = vmatprep.mubr.bf16.mxu0 %v1587_v48 }
  0x35   :  { %783 = vmatprep.mubr.bf16.mxu1 %v1589_v49  ;;  %1495 = vmatpush3.bf16.msra.mxu0 %v1600_v50 }
  0x36   :  { %1530 = vmatpush3.bf16.msra.mxu1 %v1600_v50  ;;  %1496 = vmatprep.subr.bf16.mxu0 %v1607_v51 }
  0x37   :  { %1523 = vmatprep.subr.bf16.mxu1 %v1607_v51 }
  0x39   :  { %1497 = vmatpush3.bf16.msra.mxu0 %v1607_v51 }
  0x3a   :  { %1531 = vmatpush3.bf16.msra.mxu1 %v1607_v51  ;;  %1498 = vmatprep.subr.bf16.mxu0 %v1614_v55 }
  0x3b   :  { %687 = vmatmul.mubr.bf16.gmra.mrb[12].mxu0 %v1591_v52  ;;  %1524 = vmatprep.subr.bf16.mxu1 %v1614_v55 }
  0x3c   :  { %784 = vmatmul.mubr.bf16.gmra.mrb[12].mxu1 %v1592_v53  ;;  %694 = vmatprep.mubr.bf16.mxu0 %v1594_v54 }
  0x3d   :  { %791 = vmatprep.mubr.bf16.mxu1 %v1596_v56  ;;  %1499 = vmatpush3.bf16.msra.mxu0 %v1614_v55 }
  0x3e   :  { %1532 = vmatpush3.bf16.msra.mxu1 %v1614_v55  ;;  %1500 = vmatprep.subr.bf16.mxu0 %v1621_v57 }
  0x3f   :  { %1525 = vmatprep.subr.bf16.mxu1 %v1621_v57 }
  0x41   :  { %1501 = vmatpush3.bf16.msra.mxu0 %v1621_v57 }
  0x42   :  { %1533 = vmatpush3.bf16.msra.mxu1 %v1621_v57 }
  0x43   :  { %695 = vmatmul.mubr.bf16.gmra.mrb[16].mxu0 %v1598_v58 }
  0x44   :  { %792 = vmatmul.mubr.bf16.gmra.mrb[16].mxu1 %v1599_v59  ;;  %702 = vmatprep.mubr.bf16.mxu0 %v1601_v60 }
  0x45   :  { %799 = vmatprep.mubr.bf16.mxu1 %v1603_v61 }
  0x4b   :  { %703 = vmatmul.mubr.bf16.gmra.mrb[20].mxu0 %v1605_v62 }
  0x4c   :  { %800 = vmatmul.mubr.bf16.gmra.mrb[20].mxu1 %v1606_v63  ;;  %710 = vmatprep.mubr.bf16.mxu0 %v1608_v0 }
  0x4d   :  { %807 = vmatprep.mubr.bf16.mxu1 %v1610_v1 }
  0x53   :  { %711 = vmatmul.mubr.bf16.gmra.mrb[24].mxu0 %v1612_v2 }
  0x54   :  { %808 = vmatmul.mubr.bf16.gmra.mrb[24].mxu1 %v1613_v3  ;;  %718 = vmatprep.mubr.bf16.mxu0 %v1615_v4 }
  0x55   :  { %815 = vmatprep.mubr.bf16.mxu1 %v1617_v5 }
  0x5b   :  { %719 = vmatmul.mubr.bf16.gmra.mrb[28].mxu0 %v1619_v6 }
  0x5c   :  { %816 = vmatmul.mubr.bf16.gmra.mrb[28].mxu1 %v1620_v7  ;;  %1502 = vmatprep.mubr.bf16.mxu0 %v1622_v8 }
  0x5d   :  { %1510 = vmatprep.mubr.bf16.mxu1 %v1623_v9 }
  0x63   :  { %1503 = vmatmul.mubr.bf16.vlgmr.msra.gmra.mrb[32].mxu0 %v1624_v10 }
  0x64   :  { %1511 = vmatmul.mubr.bf16.vlgmr.msra.gmra.mrb[32].mxu1 %v1625_v11  ;;  %1506 = vmatprep.mubr.bf16.mxu0 %v1626_v12 }
  0x65   :  { %1514 = vmatprep.mubr.bf16.mxu1 %v1627_v13 }
  0x6b   :  { %1507 = vmatmul.mubr.bf16.gmra.mrb[36].mxu0 %v1628_v14 }
  0x6c   :  { %1515 = vmatmul.mubr.bf16.gmra.mrb[36].mxu1 %v1629_v15 }
  0xf6   :  { %v1358_v16 = vpop.f32.mrb[0].mxu0 }
  0xf7   :  { %v1422_v17 = vpop.f32.mrb[0].mxu1  ;;  %v1359_v18 = vpop.f32.mrb[1].mxu0 }
  0xf8   :  { %v1360_v19 = vadd.f32 %v1359_v18, %v1358_v16  ;;  %v1423_v20 = vpop.f32.mrb[1].mxu1  ;;  %v1361_v21 = vpop.f32.mrb[2].mxu0 }
  0xf9   :  { %v1424_v22 = vadd.f32 %v1423_v20, %v1422_v17  ;;  %v1425_v23 = vpop.f32.mrb[2].mxu1  ;;  %v1362_v24 = vpop.f32.mrb[3].mxu0 }
  0xfa   :  { %v1363_v25 = vadd.f32 %v1362_v24, %v1361_v21  ;;  %v1426_v26 = vpop.f32.mrb[3].mxu1 }
  0xfb   :  { %v1427_v27 = vadd.f32 %v1426_v26, %v1425_v23  ;;  %v1895_v28 = vadd.f32 %v1424_v22, %v1360_v19 }
  0xfd   :  { %v1897_v29 = vadd.f32 %v1427_v27, %v1363_v25 }
  0xfe   :  { %v1364_v30 = vpop.f32.mrb[4].mxu0 }
  0xff   :  { %v1428_v31 = vpop.f32.mrb[4].mxu1  ;;  %v1365_v32 = vpop.f32.mrb[5].mxu0 }
 0x100   :  { %v1366_v33 = vadd.f32 %v1365_v32, %v1364_v30  ;;  %v1429_v34 = vpop.f32.mrb[5].mxu1  ;;  %v1367_v35 = vpop.f32.mrb[6].mxu0 }
 0x101   :  { %v1430_v36 = vadd.f32 %v1429_v34, %v1428_v31  ;;  %v1431_v37 = vpop.f32.mrb[6].mxu1  ;;  %v1368_v38 = vpop.f32.mrb[7].mxu0 }
 0x102   :  { %v1369_v39 = vadd.f32 %v1368_v38, %v1367_v35  ;;  %v1432_v40 = vpop.f32.mrb[7].mxu1 }
 0x103   :  { %v1433_v41 = vadd.f32 %v1432_v40, %v1431_v37  ;;  %v1899_v42 = vadd.f32 %v1430_v36, %v1366_v33 }
 0x105   :  { %v1901_v43 = vadd.f32 %v1433_v41, %v1369_v39 }
 0x106   :  { %v1370_v44 = vpop.f32.mrb[8].mxu0 }
 0x107   :  { %v1434_v45 = vpop.f32.mrb[8].mxu1  ;;  %v1371_v46 = vpop.f32.mrb[9].mxu0 }
 0x108   :  { %v1372_v47 = vadd.f32 %v1371_v46, %v1370_v44  ;;  %v1435_v48 = vpop.f32.mrb[9].mxu1  ;;  %v1373_v49 = vpop.f32.mrb[10].mxu0 }
 0x109   :  { %v1436_v50 = vadd.f32 %v1435_v48, %v1434_v45  ;;  %v1437_v51 = vpop.f32.mrb[10].mxu1  ;;  %v1374_v52 = vpop.f32.mrb[11].mxu0 }
 0x10a   :  { %v1375_v53 = vadd.f32 %v1374_v52, %v1373_v49  ;;  %v1438_v54 = vpop.f32.mrb[11].mxu1 }
 0x10b   :  { %v1439_v55 = vadd.f32 %v1438_v54, %v1437_v51  ;;  %v1903_v56 = vadd.f32 %v1436_v50, %v1372_v47 }
 0x10d   :  { %v1905_v57 = vadd.f32 %v1439_v55, %v1375_v53 }
 0x10e   :  { %v1376_v58 = vpop.f32.mrb[12].mxu0 }
 0x10f   :  { %v1440_v59 = vpop.f32.mrb[12].mxu1  ;;  %v1377_v60 = vpop.f32.mrb[13].mxu0 }
 0x110   :  { %v1378_v61 = vadd.f32 %v1377_v60, %v1376_v58  ;;  %v1441_v62 = vpop.f32.mrb[13].mxu1  ;;  %v1379_v63 = vpop.f32.mrb[14].mxu0 }
 0x111   :  { %v1442_v0 = vadd.f32 %v1441_v62, %v1440_v59  ;;  %v1443_v1 = vpop.f32.mrb[14].mxu1  ;;  %v1380_v2 = vpop.f32.mrb[15].mxu0 }
 0x112   :  { %v1381_v3 = vadd.f32 %v1380_v2, %v1379_v63  ;;  %v1444_v4 = vpop.f32.mrb[15].mxu1 }
 0x113   :  { %v1445_v5 = vadd.f32 %v1444_v4, %v1443_v1  ;;  %v1907_v6 = vadd.f32 %v1442_v0, %v1378_v61  ;;  %v1332_v4 = vld [vmem:[%s2035_s3 + $0x28] sm:$0xff]  }
 0x115   :  { %v1909_v7 = vadd.f32 %v1445_v5, %v1381_v3  ;;  %v1328_v3 = vld [vmem:[%s2035_s3 + $0x8] sm:$0xff]  }
 0x116   :  { %v1382_v8 = vpop.f32.mrb[16].mxu0 }
 0x117   :  { %v1446_v9 = vpop.f32.mrb[16].mxu1  ;;  %v1383_v10 = vpop.f32.mrb[17].mxu0 }
 0x118   :  { %v1384_v11 = vadd.f32 %v1383_v10, %v1382_v8  ;;  %v1447_v12 = vpop.f32.mrb[17].mxu1  ;;  %v1385_v13 = vpop.f32.mrb[18].mxu0  ;;  %v1257_v8 = vld [vmem:[%s2035_s3] sm:$0xff]  }
 0x119   :  { %v1448_v14 = vadd.f32 %v1447_v12, %v1446_v9  ;;  %v1449_v15 = vpop.f32.mrb[18].mxu1  ;;  %v1386_v16 = vpop.f32.mrb[19].mxu0  ;;  %v1331_v9 = vld [vmem:[%s2035_s3 + $0x20] sm:$0xff]   ;;  %v1262_v12 = vunpack.c.l.bf16 %v1328_v3 }
 0x11a   :  { %v1387_v17 = vadd.f32 %v1386_v16, %v1385_v13  ;;  %v1450_v18 = vpop.f32.mrb[19].mxu1  ;;  %v1278_v13 = vunpack.c.l.bf16 %v1332_v4 }
 0x11b   :  { %v1451_v19 = vadd.f32 %v1450_v18, %v1449_v15  ;;  %v1911_v20 = vadd.f32 %v1448_v14, %v1384_v11  ;;  %v1938_v11 = vld [vmem:[%s2035_s3 + $0x18] sm:$0xff]   ;;  %v1948_v15 = vld [vmem:[%s2035_s3 + $0x10] sm:$0xff]   ;;  %v1955_v18 = vld [vmem:[%s2036_s2] ss:$0 sm:$0xff] }
 0x11c   :  { %v1943_v14 = vld [vmem:[%s2035_s3 + $0x38] sm:$0xff]  }
 0x11d   :  { %v1913_v21 = vadd.f32 %v1451_v19, %v1387_v17  ;;  %v1258_v19 = vunpack.c.l.bf16 %v1257_v8 }
 0x11e   :  { %v1388_v22 = vpop.f32.mrb[20].mxu0 }
 0x11f   :  { %v1452_v23 = vpop.f32.mrb[20].mxu1  ;;  %v1389_v24 = vpop.f32.mrb[21].mxu0 }
 0x120   :  { %v1390_v25 = vadd.f32 %v1389_v24, %v1388_v22  ;;  %v1453_v26 = vpop.f32.mrb[21].mxu1  ;;  %v1391_v27 = vpop.f32.mrb[22].mxu0  ;;  %v1274_v22 = vunpack.c.l.bf16 %v1331_v9  ;;  %v1279_v24 = vunpack.c.h.bf16 %v1332_v4 }
 0x121   :  { %v1454_v30 = vadd.f32 %v1453_v26, %v1452_v23  ;;  %v1455_v31 = vpop.f32.mrb[22].mxu1  ;;  %v1392_v32 = vpop.f32.mrb[23].mxu0  ;;  %v1263_v23 = vunpack.c.h.bf16 %v1328_v3 }
 0x122   :  { %v1393_v33 = vadd.f32 %v1392_v32, %v1391_v27  ;;  %v1456_v34 = vpop.f32.mrb[23].mxu1  ;;  %v1275_v32 = vunpack.c.h.bf16 %v1331_v9 }
 0x123   :  { %v1457_v35 = vadd.f32 %v1456_v34, %v1455_v31  ;;  %v802_v36 = vadd.f32 %v1454_v30, %v1390_v25  ;;  %v1960_v25 = vld [vmem:[%s2035_s3 + $0x30] sm:$0xff]   ;;  %v1259_v31 = vunpack.c.h.bf16 %v1257_v8 }
 0x125   :  { %v1915_v37 = vadd.f32 %v1457_v35, %v1393_v33  ;;  %v1270_v33 = vunpack.c.l.bf16 %v1938_v11 }
 0x126   :  { %v1394_v38 = vpop.f32.mrb[24].mxu0 }
 0x127   :  { %v1458_v39 = vpop.f32.mrb[24].mxu1  ;;  %v1395_v40 = vpop.f32.mrb[25].mxu0 }
 0x128   :  { %v1396_v41 = vadd.f32 %v1395_v40, %v1394_v38  ;;  %v1459_v44 = vpop.f32.mrb[25].mxu1  ;;  %v1397_v45 = vpop.f32.mrb[26].mxu0  ;;  %v1286_v40 = vunpack.c.l.bf16 %v1943_v14 }
 0x129   :  { %v1460_v46 = vadd.f32 %v1459_v44, %v1458_v39  ;;  %v1461_v47 = vpop.f32.mrb[26].mxu1  ;;  %v1398_v48 = vpop.f32.mrb[27].mxu0 }
 0x12a   :  { %v1399_v49 = vadd.f32 %v1398_v48, %v1397_v45  ;;  %v1462_v50 = vpop.f32.mrb[27].mxu1  ;;  %v1282_v48 = vunpack.c.l.bf16 %v1960_v25 }
 0x12b   :  { %v1463_v51 = vadd.f32 %v1462_v50, %v1461_v47  ;;  %v1917_v52 = vadd.f32 %v1460_v46, %v1396_v41  ;;  %v1266_v41 = vunpack.c.l.bf16 %v1948_v15 }
 0x12d   :  { %v1919_v53 = vadd.f32 %v1463_v51, %v1399_v49 }
 0x12e   :  { %v1400_v54 = vpop.f32.mrb[28].mxu0 }
 0x12f   :  { %v1464_v55 = vpop.f32.mrb[28].mxu1  ;;  %v1401_v58 = vpop.f32.mrb[29].mxu0 }
 0x130   :  { %v1402_v59 = vadd.f32 %v1401_v58, %v1400_v54  ;;  %v1465_v60 = vpop.f32.mrb[29].mxu1  ;;  %v1403_v61 = vpop.f32.mrb[30].mxu0 }
 0x131   :  { %v1466_v62 = vadd.f32 %v1465_v60, %v1464_v55  ;;  %v1467_v63 = vpop.f32.mrb[30].mxu1  ;;  %v1404_v0 = vpop.f32.mrb[31].mxu0 }
 0x132   :  { %v1405_v1 = vadd.f32 %v1404_v0, %v1403_v61  ;;  %v1468_v2 = vpop.f32.mrb[31].mxu1 }
 0x133   :  { %v1469_v5 = vadd.f32 %v1468_v2, %v1467_v63  ;;  %v1933_v10 = vadd.f32 %v1466_v62, %v1402_v59 }
 0x135   :  { %v1950_v16 = vadd.f32 %v1469_v5, %v1405_v1 }
 0x136   :  { %v1504_v17 = vpop.f32.mrb[32].mxu0 }
 0x137   :  { %v867_v26 = vadd.f32 %v1504_v17, %v1899_v42  ;;  %v1512_v27 = vpop.f32.mrb[32].mxu1  ;;  %v858_v30 = vpop.f32.mrb[33].mxu0 }
 0x138   :  { %v899_v34 = vadd.f32 %v1512_v27, %v802_v36  ;;  %v859_v35 = vadd.f32 %v858_v30, %v1895_v28  ;;  %v890_v38 = vpop.f32.mrb[33].mxu1  ;;  %v1505_v39 = vpop.f32.mrb[34].mxu0 }
 0x139   :  { %v981_v44 = vadd.f32 %v1955_v18, %v867_v26  ;;  %v891_v45 = vadd.f32 %v890_v38, %v1911_v20  ;;  %v870_v42 = vadd.f32 %v1505_v39, %v1901_v43  ;;  %v1513_v46 = vpop.f32.mrb[34].mxu1  ;;  %v861_v47 = vpop.f32.mrb[35].mxu0 }
 0x13a   :  { %v989_v36 = vadd.f32 %v1955_v18, %v899_v34  ;;  %v979_v28 = vadd.f32 %v1955_v18, %v859_v35  ;;  %v902_v49 = vadd.f32 %v1513_v46, %v1915_v37  ;;  %v862_v50 = vadd.f32 %v861_v47, %v1897_v29  ;;  %v893_v51 = vpop.f32.mrb[35].mxu1 }
 0x13b   :  { %v1029_v54 = vadd.f32 %v1262_v12, %v981_v44  ;;  %v987_v55 = vadd.f32 %v1955_v18, %v891_v45  ;;  %v982_v20 = vadd.f32 %v1955_v18, %v870_v42  ;;  %v894_v43 = vadd.f32 %v893_v51, %v1913_v21 }
 0x13c   :  { %v1037_v58 = vadd.f32 %v1278_v13, %v989_v36  ;;  %v1027_v59 = vadd.f32 %v1258_v19, %v979_v28  ;;  %v990_v60 = vadd.f32 %v1955_v18, %v902_v49  ;;  %v980_v61 = vadd.f32 %v1955_v18, %v862_v50 }
 0x13d   :  { %v1045_v62 = vmax.f32 %v1029_v54, 0.0  ;;  %v1035_v63 = vadd.f32 %v1274_v22, %v987_v55  ;;  %v1030_v0 = vadd.f32 %v1263_v23, %v982_v20  ;;  %v988_v37 = vadd.f32 %v1955_v18, %v894_v43 }
 0x13e   :  { %v1053_v29 = vmax.f32 %v1037_v58, 0.0  ;;  %v1043_v1 = vmax.f32 %v1027_v59, 0.0  ;;  %v1038_v2 = vadd.f32 %v1279_v24, %v990_v60  ;;  %v1028_v3 = vadd.f32 %v1259_v31, %v980_v61  ;;  %v1508_v4 = vpop.f32.mrb[36].mxu0 }
 0x13f   :  { %v1051_v5 = vmax.f32 %v1035_v63, 0.0  ;;  %v1046_v8 = vmax.f32 %v1030_v0, 0.0  ;;  %v1036_v9 = vadd.f32 %v1275_v32, %v988_v37  ;;  %v883_v21 = vadd.f32 %v1508_v4, %v1907_v6  ;;  %v1516_v12 = vpop.f32.mrb[36].mxu1  ;;  %v874_v13 = vpop.f32.mrb[37].mxu0 }
 0x140   :  { %v1054_v17 = vmax.f32 %v1038_v2, 0.0  ;;  %v1044_v19 = vmax.f32 %v1028_v3, 0.0  ;;  %v915_v26 = vadd.f32 %v1516_v12, %v1933_v10  ;;  %v875_v22 = vadd.f32 %v874_v13, %v1903_v56  ;;  %v906_v23 = vpop.f32.mrb[37].mxu1  ;;  %v1509_v27 = vpop.f32.mrb[38].mxu0 }
 0x141   :  { %v1296_v30 = vpack.c.bf16 %v1046_v8, %v1045_v62  ;;  %v1052_v34 = vmax.f32 %v1036_v9, 0.0  ;;  %v985_v24 = vadd.f32 %v1955_v18, %v883_v21  ;;  %v907_v31 = vadd.f32 %v906_v23, %v1917_v52  ;;  %v1517_v35 = vpop.f32.mrb[38].mxu1  ;;  %v877_v32 = vpop.f32.mrb[39].mxu0 }
 0x142   :  { %v1316_v38 = vpack.c.bf16 %v1054_v17, %v1053_v29  ;;  %v1291_v6 = vpack.c.bf16 %v1044_v19, %v1043_v1  ;;  %v993_v39 = vadd.f32 %v1955_v18, %v915_v26  ;;  %v983_v44 = vadd.f32 %v1955_v18, %v875_v22  ;;  %v909_v45 = vpop.f32.mrb[39].mxu1 }
 0x143   :  { %1335 = vst [vmem:[%s2037_s4 + $0x8] sm:$0xff] %v1296_v30   ;;  %v1311_v56 = vpack.c.bf16 %v1052_v34, %v1051_v5  ;;  %v991_v10 = vadd.f32 %v1955_v18, %v907_v31  ;;  %v886_v42 = vadd.f32 %v1509_v27, %v1909_v7  ;;  %v1271_v52 = vunpack.c.h.bf16 %v1938_v11 }
 0x144   :  { %1339 = vst [vmem:[%s2037_s4 + $0x28] sm:$0xff] %v1316_v38   ;;  %1292 = vst [vmem:[%s2037_s4] sm:$0xff] %v1291_v6   ;;  %v918_v46 = vadd.f32 %v1517_v35, %v1950_v16  ;;  %v1287_v47 = vunpack.c.h.bf16 %v1943_v14  ;;  %v878_v36 = vadd.f32 %v877_v32, %v1905_v57  ;;  %v1267_v28 = vunpack.c.h.bf16 %v1948_v15 }
 0x145   :  { %1338 = vst [vmem:[%s2037_s4 + $0x20] sm:$0xff] %v1311_v56   ;;  %v1033_v7 = vadd.f32 %v1270_v33, %v985_v24  ;;  %v986_v49 = vadd.f32 %v1955_v18, %v886_v42  ;;  %v910_v50 = vadd.f32 %v909_v45, %v1919_v53  ;;  %v1283_v51 = vunpack.c.h.bf16 %v1960_v25 }
 0x146   :  { %v1041_v16 = vadd.f32 %v1286_v40, %v993_v39  ;;  %v1031_v57 = vadd.f32 %v1266_v41, %v983_v44  ;;  %v994_v54 = vadd.f32 %v1955_v18, %v918_v46  ;;  %v984_v55 = vadd.f32 %v1955_v18, %v878_v36 }
 0x147   :  { %v1039_v11 = vadd.f32 %v1282_v48, %v991_v10  ;;  %v1034_v33 = vadd.f32 %v1271_v52, %v986_v49  ;;  %v992_v20 = vadd.f32 %v1955_v18, %v910_v50  ;;  %v1049_v58 = vmax.f32 %v1033_v7, 0.0 }
 0x148   :  { %v1042_v43 = vadd.f32 %v1287_v47, %v994_v54  ;;  %v1032_v53 = vadd.f32 %v1267_v28, %v984_v55  ;;  %v1057_v14 = vmax.f32 %v1041_v16, 0.0  ;;  %v1047_v40 = vmax.f32 %v1031_v57, 0.0 }
 0x149   :  { %v1050_v59 = vmax.f32 %v1034_v33, 0.0  ;;  %v1040_v60 = vadd.f32 %v1283_v51, %v992_v20  ;;  %v1055_v41 = vmax.f32 %v1039_v11, 0.0 }
 0x14a   :  { %v1058_v61 = vmax.f32 %v1042_v43, 0.0  ;;  %v1048_v15 = vmax.f32 %v1032_v53, 0.0 }
 0x14b   :  { %v1306_v62 = vpack.c.bf16 %v1050_v59, %v1049_v58  ;;  %v1056_v63 = vmax.f32 %v1040_v60, 0.0 }
 0x14c   :  { %v1326_v0 = vpack.c.bf16 %v1058_v61, %v1057_v14  ;;  %v1301_v37 = vpack.c.bf16 %v1048_v15, %v1047_v40 }
 0x14d   :  { %1337 = vst [vmem:[%s2037_s4 + $0x18] sm:$0xff] %v1306_v62   ;;  %v1321_v25 = vpack.c.bf16 %v1056_v63, %v1055_v41 }
 0x14e   :  { %1341 = vst [vmem:[%s2037_s4 + $0x38] sm:$0xff] %v1326_v0   ;;  %1336 = vst [vmem:[%s2037_s4 + $0x10] sm:$0xff] %v1301_v37  }
 0x14f   :  { %1340 = vst [vmem:[%s2037_s4 + $0x30] sm:$0xff] %v1321_v25  }

// kernel: _lambda_.29
= control target key start
LH: loop header
LB: loop body
LE: loop exit
PB: predicated region body
PF: predicated region fallthrough
CT: control target
= control target key end

     0   :  { %s1001_s1 = inlined_call_operand.vmem [shape: bf16[640,128], index: 1, kind: input, shape index: {}]   ;;  %s1002_s0 = inlined_call_operand.vmem [shape: bf16[32,640], index: 0, kind: input, shape index: {}]   ;;  %s1003_s2 = inlined_call_operand.vmem [shape: f32[1,128], index: 2, kind: input, shape index: {}]   ;;  %s1004_s3 = inlined_call_operand.vmem [shape: bf16[32,128], index: 3, kind: output, shape index: {}]  }
   0x1   :  { %v768_v0 = vld [vmem:[%s1001_s1 + $0x40] sm:$0xff]   ;;  %v772_v4 = vld [vmem:[%s1001_s1 + $0x48] sm:$0xff]   ;;  %v776_v8 = vld [vmem:[%s1001_s1 + $0x50] sm:$0xff]  }
   0x2   :  { %v769_v1 = vld [vmem:[%s1001_s1 + $0xc0] sm:$0xff]   ;;  %682 = vmatprep.subr.bf16.mxu0 %v768_v0  ;;  %v773_v5 = vld [vmem:[%s1001_s1 + $0xc8] sm:$0xff]   ;;  %v777_v9 = vld [vmem:[%s1001_s1 + $0xd0] sm:$0xff]  }
   0x3   :  { %v770_v2 = vld [vmem:[%s1001_s1] sm:$0xff]   ;;  %710 = vmatprep.subr.bf16.mxu1 %v769_v1  ;;  %v774_v6 = vld [vmem:[%s1001_s1 + $0x8] sm:$0xff]   ;;  %v778_v10 = vld [vmem:[%s1001_s1 + $0x10] sm:$0xff]  }
   0x4   :  { %v771_v3 = vld [vmem:[%s1001_s1 + $0x80] sm:$0xff]   ;;  %683 = vmatpush3.bf16.msra.mxu0 %v770_v2  ;;  %v775_v7 = vld [vmem:[%s1001_s1 + $0x88] sm:$0xff]   ;;  %v779_v11 = vld [vmem:[%s1001_s1 + $0x90] sm:$0xff]  }
   0x5   :  { %711 = vmatpush3.bf16.msra.mxu1 %v771_v3  ;;  %684 = vmatprep.subr.bf16.mxu0 %v772_v4  ;;  %v780_v12 = vld [vmem:[%s1001_s1 + $0x58] sm:$0xff]   ;;  %v784_v16 = vld [vmem:[%s1001_s1 + $0x60] sm:$0xff]   ;;  %v788_v20 = vld [vmem:[%s1001_s1 + $0x68] sm:$0xff]  }
   0x6   :  { %712 = vmatprep.subr.bf16.mxu1 %v773_v5  ;;  %v781_v13 = vld [vmem:[%s1001_s1 + $0xd8] sm:$0xff]   ;;  %v785_v17 = vld [vmem:[%s1001_s1 + $0xe0] sm:$0xff]   ;;  %v789_v21 = vld [vmem:[%s1001_s1 + $0xe8] sm:$0xff]  }
   0x7   :  { %v782_v14 = vld [vmem:[%s1001_s1 + $0x18] sm:$0xff]   ;;  %v786_v18 = vld [vmem:[%s1001_s1 + $0x20] sm:$0xff]   ;;  %v790_v22 = vld [vmem:[%s1001_s1 + $0x28] sm:$0xff]  }
   0x8   :  { %685 = vmatpush3.bf16.msra.mxu0 %v774_v6  ;;  %v783_v15 = vld [vmem:[%s1001_s1 + $0x98] sm:$0xff]   ;;  %v787_v19 = vld [vmem:[%s1001_s1 + $0xa0] sm:$0xff]   ;;  %v791_v23 = vld [vmem:[%s1001_s1 + $0xa8] sm:$0xff]  }
   0x9   :  { %713 = vmatpush3.bf16.msra.mxu1 %v775_v7  ;;  %686 = vmatprep.subr.bf16.mxu0 %v776_v8  ;;  %v792_v24 = vld [vmem:[%s1001_s1 + $0x70] sm:$0xff]   ;;  %v796_v28 = vld [vmem:[%s1001_s1 + $0x78] sm:$0xff]   ;;  %v805_v35 = vld [vmem:[%s1002_s0 + $0xc] ss:$20 sps:$4 sm:$0xff]  }
   0xa   :  { %714 = vmatprep.subr.bf16.mxu1 %v777_v9  ;;  %v793_v25 = vld [vmem:[%s1001_s1 + $0xf0] sm:$0xff]   ;;  %v797_v29 = vld [vmem:[%s1001_s1 + $0xf8] sm:$0xff]   ;;  %v806_v36 = vld [vmem:[%s1001_s1 + $0x100] sm:$0xff]   ;;  %492 = vmatprep.mubr.bf16.mxu1 %v805_v35 }
   0xb   :  { %v794_v26 = vld [vmem:[%s1001_s1 + $0x30] sm:$0xff]   ;;  %v798_v30 = vld [vmem:[%s1001_s1 + $0x38] sm:$0xff]   ;;  %v807_v37 = vld [vmem:[%s1001_s1 + $0x108] sm:$0xff]  }
   0xc   :  { %687 = vmatpush3.bf16.msra.mxu0 %v778_v10  ;;  %v795_v27 = vld [vmem:[%s1001_s1 + $0xb0] sm:$0xff]   ;;  %v799_v31 = vld [vmem:[%s1001_s1 + $0xb8] sm:$0xff]   ;;  %v811_v39 = vld [vmem:[%s1002_s0 + $0x2c] ss:$20 sps:$4 sm:$0xff]  }
   0xd   :  { %715 = vmatpush3.bf16.msra.mxu1 %v779_v11  ;;  %688 = vmatprep.subr.bf16.mxu0 %v780_v12  ;;  %v800_v32 = vld [vmem:[%s1002_s0] ss:$20 sps:$4 sm:$0xff]   ;;  %v802_v33 = vld [vmem:[%s1002_s0 + $0x4] ss:$20 sps:$4 sm:$0xff]   ;;  %v803_v34 = vld [vmem:[%s1002_s0 + $0x8] ss:$20 sps:$4 sm:$0xff]  }
   0xe   :  { %716 = vmatprep.subr.bf16.mxu1 %v781_v13  ;;  %443 = vmatprep.mubr.bf16.mxu0 %v802_v33  ;;  %v808_v38 = vld [vmem:[%s1001_s1 + $0x110] sm:$0xff]   ;;  %v809_v41 = vld [vmem:[%s1001_s1 + $0x118] sm:$0xff]   ;;  %v810_v45 = vld [vmem:[%s1001_s1 + $0x120] sm:$0xff]  }
   0xf   :  { %v813_v40 = vld [vmem:[%s1002_s0 + $0x34] ss:$20 sps:$4 sm:$0xff]   ;;  %v817_v43 = vld [vmem:[%s1002_s0 + $0x30] ss:$20 sps:$4 sm:$0xff]   ;;  %v819_v48 = vld [vmem:[%s1001_s1 + $0x138] sm:$0xff]  }
  0x10   :  { %689 = vmatpush3.bf16.msra.mxu0 %v782_v14  ;;  %v816_v42 = vld [vmem:[%s1002_s0 + $0x28] ss:$20 sps:$4 sm:$0xff]   ;;  %v820_v44 = vld [vmem:[%s1002_s0 + $0x10] ss:$20 sps:$4 sm:$0xff]   ;;  %v821_v49 = vld [vmem:[%s1002_s0 + $0x38] ss:$20 sps:$4 sm:$0xff]  }
  0x11   :  { %717 = vmatpush3.bf16.msra.mxu1 %v783_v15  ;;  %690 = vmatprep.subr.bf16.mxu0 %v784_v16  ;;  %v815_v46 = vld [vmem:[%s1001_s1 + $0x128] sm:$0xff]   ;;  %v818_v47 = vld [vmem:[%s1001_s1 + $0x130] sm:$0xff]   ;;  %v662_v15 = vld [vmem:[%s1003_s2] ss:$0 sm:$0xff] }
  0x12   :  { %718 = vmatprep.subr.bf16.mxu1 %v785_v17 }
  0x14   :  { %691 = vmatpush3.bf16.msra.mxu0 %v786_v18 }
  0x15   :  { %719 = vmatpush3.bf16.msra.mxu1 %v787_v19  ;;  %692 = vmatprep.subr.bf16.mxu0 %v788_v20 }
  0x16   :  { %720 = vmatprep.subr.bf16.mxu1 %v789_v21 }
  0x18   :  { %693 = vmatpush3.bf16.msra.mxu0 %v790_v22 }
  0x19   :  { %721 = vmatpush3.bf16.msra.mxu1 %v791_v23  ;;  %694 = vmatprep.subr.bf16.mxu0 %v792_v24 }
  0x1a   :  { %722 = vmatprep.subr.bf16.mxu1 %v793_v25 }
  0x1c   :  { %695 = vmatpush3.bf16.msra.mxu0 %v794_v26 }
  0x1d   :  { %723 = vmatpush3.bf16.msra.mxu1 %v795_v27  ;;  %696 = vmatprep.subr.bf16.mxu0 %v796_v28 }
  0x1e   :  { %724 = vmatprep.subr.bf16.mxu1 %v797_v29 }
  0x20   :  { %697 = vmatpush3.bf16.msra.mxu0 %v798_v30 }
  0x21   :  { %725 = vmatpush3.bf16.msra.mxu1 %v799_v31  ;;  %748 = vmatprep.subr.bf16.mxu0 %v806_v36 }
  0x23   :  { %444 = vmatmul.mubr.bf16.vlgmr.msra.gmra.mrb[0].mxu0 %v800_v32 }
  0x24   :  { %493 = vmatmul.mubr.bf16.vlgmr.msra.gmra.mrb[0].mxu1 %v803_v34  ;;  %749 = vmatpush3.bf16.msra.mxu0 %v806_v36 }
  0x25   :  { %750 = vmatprep.subr.bf16.mxu0 %v807_v37  ;;  %451 = vmatprep.mubr.bf16.mxu0 %v811_v39 }
  0x26   :  { %500 = vmatprep.mubr.bf16.mxu1 %v813_v40 }
  0x28   :  { %751 = vmatpush3.bf16.msra.mxu0 %v807_v37 }
  0x29   :  { %752 = vmatprep.subr.bf16.mxu0 %v808_v38 }
  0x2b   :  { %452 = vmatmul.mubr.bf16.gmra.mrb[4].mxu0 %v816_v42 }
  0x2c   :  { %501 = vmatmul.mubr.bf16.gmra.mrb[4].mxu1 %v817_v43  ;;  %753 = vmatpush3.bf16.msra.mxu0 %v808_v38 }
  0x2d   :  { %754 = vmatprep.subr.bf16.mxu0 %v809_v41  ;;  %764 = vmatprep.mubr.bf16.mxu0 %v820_v44 }
  0x30   :  { %755 = vmatpush3.bf16.msra.mxu0 %v809_v41 }
  0x31   :  { %756 = vmatprep.subr.bf16.mxu0 %v810_v45 }
  0x34   :  { %757 = vmatpush3.bf16.msra.mxu0 %v810_v45 }
  0x35   :  { %758 = vmatprep.subr.bf16.mxu0 %v815_v46 }
  0x38   :  { %759 = vmatpush3.bf16.msra.mxu0 %v815_v46 }
  0x39   :  { %760 = vmatprep.subr.bf16.mxu0 %v818_v47 }
  0x3c   :  { %761 = vmatpush3.bf16.msra.mxu0 %v818_v47 }
  0x3d   :  { %762 = vmatprep.subr.bf16.mxu0 %v819_v48 }
  0x40   :  { %763 = vmatpush3.bf16.msra.mxu0 %v819_v48 }
  0x43   :  { %765 = vmatmul.mubr.bf16.vlgmr.msra.gmra.mrb[8].mxu0 %v821_v49 }
  0xf6   :  { %v698_v50 = vpop.f32.mrb[0].mxu0 }
  0xf7   :  { %v726_v51 = vpop.f32.mrb[0].mxu1  ;;  %v699_v52 = vpop.f32.mrb[1].mxu0 }
  0xf8   :  { %v700_v53 = vadd.f32 %v699_v52, %v698_v50  ;;  %v727_v54 = vpop.f32.mrb[1].mxu1  ;;  %v701_v55 = vpop.f32.mrb[2].mxu0 }
  0xf9   :  { %v728_v56 = vadd.f32 %v727_v54, %v726_v51  ;;  %v729_v57 = vpop.f32.mrb[2].mxu1  ;;  %v702_v58 = vpop.f32.mrb[3].mxu0 }
  0xfa   :  { %v703_v59 = vadd.f32 %v702_v58, %v701_v55  ;;  %v730_v60 = vpop.f32.mrb[3].mxu1 }
  0xfb   :  { %v731_v61 = vadd.f32 %v730_v60, %v729_v57  ;;  %v495_v62 = vadd.f32 %v728_v56, %v700_v53 }
  0xfd   :  { %v498_v63 = vadd.f32 %v731_v61, %v703_v59 }
  0xfe   :  { %v704_v0 = vpop.f32.mrb[4].mxu0 }
  0xff   :  { %v732_v1 = vpop.f32.mrb[4].mxu1  ;;  %v705_v2 = vpop.f32.mrb[5].mxu0 }
 0x100   :  { %v706_v3 = vadd.f32 %v705_v2, %v704_v0  ;;  %v733_v4 = vpop.f32.mrb[5].mxu1  ;;  %v707_v5 = vpop.f32.mrb[6].mxu0 }
 0x101   :  { %v734_v6 = vadd.f32 %v733_v4, %v732_v1  ;;  %v735_v7 = vpop.f32.mrb[6].mxu1  ;;  %v708_v8 = vpop.f32.mrb[7].mxu0 }
 0x102   :  { %v709_v9 = vadd.f32 %v708_v8, %v707_v5  ;;  %v736_v10 = vpop.f32.mrb[7].mxu1 }
 0x103   :  { %v737_v11 = vadd.f32 %v736_v10, %v735_v7  ;;  %v503_v12 = vadd.f32 %v734_v6, %v706_v3 }
 0x105   :  { %v506_v13 = vadd.f32 %v737_v11, %v709_v9 }
 0x116   :  { %v766_v14 = vpop.f32.mrb[8].mxu0 }
 0x117   :  { %v552_v16 = vadd.f32 %v766_v14, %v503_v12  ;;  %v543_v17 = vpop.f32.mrb[9].mxu0 }
 0x118   :  { %v544_v18 = vadd.f32 %v543_v17, %v495_v62  ;;  %v767_v19 = vpop.f32.mrb[10].mxu0 }
 0x119   :  { %v582_v20 = vadd.f32 %v662_v15, %v552_v16  ;;  %v555_v21 = vadd.f32 %v767_v19, %v506_v13  ;;  %v546_v22 = vpop.f32.mrb[11].mxu0 }
 0x11a   :  { %v580_v23 = vadd.f32 %v662_v15, %v544_v18  ;;  %v547_v24 = vadd.f32 %v546_v22, %v498_v63 }
 0x11b   :  { %v583_v25 = vadd.f32 %v662_v15, %v555_v21  ;;  %v586_v27 = vmax.f32 %v582_v20, 0.0 }
 0x11c   :  { %v581_v26 = vadd.f32 %v662_v15, %v547_v24  ;;  %v584_v29 = vmax.f32 %v580_v23, 0.0 }
 0x11d   :  { %v587_v28 = vmax.f32 %v583_v25, 0.0 }
 0x11e   :  { %v585_v30 = vmax.f32 %v581_v26, 0.0 }
 0x11f   :  { %v679_v31 = vpack.c.bf16 %v587_v28, %v586_v27 }
 0x120   :  { %v674_v32 = vpack.c.bf16 %v585_v30, %v584_v29 }
 0x121   :  { %681 = vst [vmem:[%s1004_s3 + $0x8] sm:$0xff] %v679_v31  }
 0x122   :  { %675 = vst [vmem:[%s1004_s3] sm:$0xff] %v674_v32  }

// kernel: _lambda_.30
= control target key start
LH: loop header
LB: loop body
LE: loop exit
PB: predicated region body
PF: predicated region fallthrough
CT: control target
= control target key end

     0   :  { %s335_s1 = inlined_call_operand.vmem [shape: bf16[128,128], index: 1, kind: input, shape index: {}]   ;;  %s336_s0 = inlined_call_operand.vmem [shape: bf16[32,128], index: 0, kind: input, shape index: {}]   ;;  %s337_s2 = inlined_call_operand.vmem [shape: f32[1,128], index: 2, kind: input, shape index: {}]   ;;  %s338_s3 = inlined_call_operand.vmem [shape: bf16[32,128], index: 3, kind: output, shape index: {}]  }
   0x1   :  { %v266_v0 = vld [vmem:[%s335_s1] sm:$0xff]   ;;  %v267_v1 = vld [vmem:[%s335_s1 + $0x8] sm:$0xff]   ;;  %v268_v2 = vld [vmem:[%s335_s1 + $0x10] sm:$0xff]  }
   0x2   :  { %246 = vmatprep.subr.bf16.mxu0 %v266_v0  ;;  %v269_v3 = vld [vmem:[%s335_s1 + $0x18] sm:$0xff]   ;;  %v274_v4 = vld [vmem:[%s336_s0] sm:$0xff]   ;;  %v271_v6 = vld [vmem:[%s335_s1 + $0x28] sm:$0xff]  }
   0x3   :  { %247 = vmatpush3.bf16.msra.mxu0 %v266_v0  ;;  %262 = vmatprep.mubr.bf16.mxu0 %v274_v4  ;;  %v270_v5 = vld [vmem:[%s335_s1 + $0x20] sm:$0xff]   ;;  %v272_v7 = vld [vmem:[%s335_s1 + $0x30] sm:$0xff]   ;;  %v273_v8 = vld [vmem:[%s335_s1 + $0x38] sm:$0xff]  }
   0x4   :  { %248 = vmatprep.subr.bf16.mxu0 %v267_v1  ;;  %v275_v9 = vld [vmem:[%s336_s0 + $0x8] sm:$0xff]   ;;  %v216_v11 = vld [vmem:[%s337_s2] ss:$0 sm:$0xff] }
   0x7   :  { %249 = vmatpush3.bf16.msra.mxu0 %v267_v1 }
   0x8   :  { %250 = vmatprep.subr.bf16.mxu0 %v268_v2 }
   0xb   :  { %251 = vmatpush3.bf16.msra.mxu0 %v268_v2 }
   0xc   :  { %252 = vmatprep.subr.bf16.mxu0 %v269_v3 }
   0xf   :  { %253 = vmatpush3.bf16.msra.mxu0 %v269_v3 }
  0x10   :  { %254 = vmatprep.subr.bf16.mxu0 %v270_v5 }
  0x13   :  { %255 = vmatpush3.bf16.msra.mxu0 %v270_v5 }
  0x14   :  { %256 = vmatprep.subr.bf16.mxu0 %v271_v6 }
  0x17   :  { %257 = vmatpush3.bf16.msra.mxu0 %v271_v6 }
  0x18   :  { %258 = vmatprep.subr.bf16.mxu0 %v272_v7 }
  0x1b   :  { %259 = vmatpush3.bf16.msra.mxu0 %v272_v7 }
  0x1c   :  { %260 = vmatprep.subr.bf16.mxu0 %v273_v8 }
  0x1f   :  { %261 = vmatpush3.bf16.msra.mxu0 %v273_v8 }
  0x22   :  { %263 = vmatmul.mubr.bf16.vlgmr.msra.gmra.mrb[0].mxu0 %v275_v9 }
  0xf5   :  { %v264_v10 = vpop.f32.mrb[0].mxu0 }
  0xf6   :  { %v141_v12 = vpop.f32.mrb[1].mxu0  ;;  %v180_v14 = vadd.f32 %v264_v10, %v216_v11 }
  0xf7   :  { %v265_v13 = vpop.f32.mrb[2].mxu0  ;;  %v178_v17 = vadd.f32 %v216_v11, %v141_v12 }
  0xf8   :  { %v181_v15 = vadd.f32 %v265_v13, %v216_v11  ;;  %v144_v16 = vpop.f32.mrb[3].mxu0 }
  0xf9   :  { %v179_v18 = vadd.f32 %v216_v11, %v144_v16 }
  0xfa   :  { %v233_v19 = vpack.c.bf16 %v181_v15, %v180_v14 }
  0xfb   :  { %v228_v20 = vpack.c.bf16 %v179_v18, %v178_v17 }
  0xfc   :  { %235 = vst [vmem:[%s338_s3 + $0x8] sm:$0xff] %v233_v19  }
  0xfd   :  { %229 = vst [vmem:[%s338_s3] sm:$0xff] %v228_v20  }

// kernel: _lambda_.31
= control target key start
LH: loop header
LB: loop body
LE: loop exit
PB: predicated region body
PF: predicated region fallthrough
CT: control target
= control target key end

     0   :  { %s1176_s15 = smov 0   ;;  %s1178_s16 = smov 0   ;;  %s1292_s0 = inlined_call_operand.vmem [shape: bf16[32,1152], index: 0, kind: input, shape index: {}]   ;;  %s1293_s1 = inlined_call_operand.vmem [shape: bf16[1152,128], index: 1, kind: input, shape index: {}]   ;;  %s1294_s2 = inlined_call_operand.vmem [shape: f32[1,128], index: 2, kind: input, shape index: {}]   ;;  %s1295_s3 = inlined_call_operand.vmem [shape: bf16[32,128], index: 3, kind: input, shape index: {}]   ;;  %s1296_s4 = inlined_call_operand.vmem [shape: bf16[32,128], index: 4, kind: output, shape index: {}]  }
   0x1   :  { %s1180_s17 = smov 0   ;;  %s1182_s18 = smov 0  }
   0x2   :  { %s1184_s19 = smov 0  }
   0x3 LB: > { %s26_s20 = sadd.s32 1, %s1144_s18  ;;  %p49_p1 = scmp.ne.s32.totalorder %s1136_s16, %s1132_s15  ;;  %s1148_s19 = sphi %s1184_s19, %s14_s19   ;;  %s1144_s18 = sphi %s1182_s18, %s1300_s18   ;;  %s1140_s17 = sphi %s1180_s17, %s1299_s17   ;;  %s1136_s16 = sphi %s1178_s16, %s1298_s16   ;;  %s1132_s15 = sphi %s1176_s15, %s1297_s15  }
   0x4   : > { %p27_p0 = scmp.ge.s32.totalorder %s26_s20, 3  ;;  %p50_p2 = scmp.eq.s32.totalorder %s1148_s19, 0 }
   0x5   : > { %s42_s22 = sadd.s32 1, %s1136_s16  ;;  %p899_p5 = scmp.ge.s32.totalorder %s1148_s19, 3 }
   0x6   : > { %s1302_s20 = smov (%p27_p0, %s26_s20), 0  ;;  %p51_p3 = por %p50_p2, %p49_p1 }
   0x7   : > { %s38_s21 = ssub.s32 %s1144_s18, %s1302_s20  ;;  %203 = sbr.rel (%p899_p5) target bundleno = 23 (0x17), region = 24 }
   0x8   : > { %p40_p4 = scmp.eq.s32.totalorder %s38_s21, 0 }
   0xa   : > { %s1211_s23 = scalar_select %p40_p4, %s1136_s16, %s42_s22  }
   0xe   : > { %206 = sbr.rel (!%p51_p3) target bundleno = 23 (0x17), region = 28  ;;  %s208_s24 = sand.u32 (%p51_p3), 1, %s1136_s16  }
   0xf   : > { %s952_s25 = smul.u32 (%p51_p3), 12, %s1144_s18 }
  0x10   : > { %s1035_s26 = smul.u32 (%p51_p3), 48, %s208_s24 }
  0x11   : > { %s216_s29 = scalar_lea.vmem (%p51_p3), %s1292_s0, %s952_s25 }
  0x12   : > { %v231_v0 = vld [vmem:[%s216_s29] sm:$0xff] (%p51_p3)  ;;  %v235_v2 = vld [vmem:[%s216_s29 + $0x48] sm:$0xff] (%p51_p3)  ;;  %s210_s30 = scalar_lea.vmem (%p51_p3), [#allocation3], %s1035_s26  ;;  %v905_v6 = vld [vmem:[%s216_s29 + $0x50] sm:$0xf] (%p51_p3) }
  0x13   : > { %v233_v1 = vld [vmem:[%s216_s29 + $0x24] sm:$0xff] (%p51_p3)  ;;  %232 = vst [vmem:[%s210_s30] sm:$0xff] (%p51_p3), %v231_v0  ;;  %236 = vst [vmem:[%s210_s30 + $0x18] sm:$0xff] (%p51_p3), %v235_v2  ;;  %v237_v3 = vld [vmem:[%s216_s29 + $0x6c] sm:$0xff] (%p51_p3) }
  0x14   : > { %234 = vst [vmem:[%s210_s30 + $0xc] sm:$0xff] (%p51_p3), %v233_v1  ;;  %v901_v4 = vld [vmem:[%s216_s29 + $0x8] sm:$0xf] (%p51_p3)  ;;  %v903_v5 = vld [vmem:[%s216_s29 + $0x2c] sm:$0xf] (%p51_p3)  ;;  %238 = vst [vmem:[%s210_s30 + $0x24] sm:$0xff] (%p51_p3), %v237_v3 }
  0x15   : > { %902 = vst [vmem:[%s210_s30 + $0x8] sm:$0xf] %v901_v4  ;;  %904 = vst [vmem:[%s210_s30 + $0x14] sm:$0xf] %v903_v5  ;;  %v907_v7 = vld [vmem:[%s216_s29 + $0x74] sm:$0xf] }
  0x16   : > { %906 = vst [vmem:[%s210_s30 + $0x20] sm:$0xf] %v905_v6  ;;  %908 = vst [vmem:[%s210_s30 + $0x2c] sm:$0xf] %v907_v7 }
  0x17 PF: > { %p909_p6 = scmp.ge.s32.totalorder %s1148_s19, 1  ;;  %p270_p7 = scmp.lt.s32.totalorder %s1148_s19, 4 }
  0x19   : > { %p271_p8 = pnand %p909_p6, %p270_p7 }
  0x1a   : > { %s277_s5 = sand.u32 (!%p271_p8), 1, %s1132_s15   ;;  %s326_s6 = smul.u32 (!%p271_p8), 48, %s1140_s17 }
  0x1b   : > { %274 = sbr.rel (%p271_p8) target bundleno = 320 (0x140), region = 58  ;;  %p911_p10 = scmp.ne.s32.totalorder (!%p271_p8), %s1140_s17, 0 }
  0x1c   : > { %s1036_s7 = smul.u32 (!%p271_p8), 48, %s277_s5  ;;  %p327_p9 = scmp.lt.s32.totalorder (!%p271_p8), %s326_s6, 143 }
  0x1e   : > { %s1228_s12 = scalar_lea.vmem (!%p271_p8), [#allocation3], %s1036_s7 }
  0x22   : > { %s1304_s6 = smov (!%p327_p9, %s326_s6), 143  ;;  %360 = sbr.rel (%p911_p10) target bundleno = 41 (0x29), region = 66 }
  0x23   : > { %s910_s8 = sshll.u32 %s1304_s6, 2  ;;  %v1150_v8 = vmov (!%p911_p10), 0.0  }
  0x24   : > { %s1226_s11 = scalar_lea.vmem %s1293_s1, %s910_s8  ;;  %361 = vst [vmem:[#allocation2] sm:$0xff] (!%p911_p10), %v1150_v8  ;;  %362 = vst [vmem:[#allocation2 + $0x8] sm:$0xff] (!%p911_p10), %v1150_v8 }
  0x25   : > { %363 = vst [vmem:[#allocation2 + $0x10] sm:$0xff] (!%p911_p10), %v1150_v8  ;;  %364 = vst [vmem:[#allocation2 + $0x18] sm:$0xff] (!%p911_p10), %v1150_v8 }
  0x29 PF: > { %v1078_v9 = vld [vmem:[%s1226_s11 + $0x40] sm:$0xff]   ;;  %v1081_v12 = vld [vmem:[%s1226_s11 + $0x48] sm:$0xff]   ;;  %v1084_v15 = vld [vmem:[%s1226_s11 + $0x50] sm:$0xff]   ;;  %p942_p11 = scmp.ne.s32.totalorder %s1140_s17, 2 }
  0x2a   : > { %v1079_v10 = vld [vmem:[%s1226_s11] sm:$0xff]   ;;  %977 = vmatprep.subr.bf16.mxu0 %v1078_v9  ;;  %v1082_v13 = vld [vmem:[%s1226_s11 + $0x8] sm:$0xff]   ;;  %v1085_v16 = vld [vmem:[%s1226_s11 + $0x10] sm:$0xff]  }
  0x2b   : > { %v1080_v11 = vld [vmem:[%s1226_s11 + $0x80] sm:$0xff]   ;;  %978 = vmatpush3.bf16.msra.mxu0 %v1079_v10  ;;  %v1083_v14 = vld [vmem:[%s1226_s11 + $0x88] sm:$0xff]   ;;  %v1086_v17 = vld [vmem:[%s1226_s11 + $0x90] sm:$0xff]  }
  0x2c   : > { %1015 = vmatprep.subr.bf16.mxu1 %v1080_v11  ;;  %979 = vmatprep.subr.bf16.mxu0 %v1081_v12  ;;  %v1087_v18 = vld [vmem:[%s1226_s11 + $0x58] sm:$0xff]   ;;  %v1090_v21 = vld [vmem:[%s1226_s11 + $0x60] sm:$0xff]   ;;  %v1093_v24 = vld [vmem:[%s1226_s11 + $0x68] sm:$0xff]  }
  0x2d   : > { %1016 = vmatpush3.bf16.msra.mxu1 %v1080_v11  ;;  %v1088_v19 = vld [vmem:[%s1226_s11 + $0x18] sm:$0xff]   ;;  %v1092_v22 = vld [vmem:[%s1226_s11 + $0xa0] sm:$0xff]   ;;  %v1095_v25 = vld [vmem:[%s1226_s11 + $0xa8] sm:$0xff]  }
  0x2e   : > { %1017 = vmatprep.subr.bf16.mxu1 %v1083_v14  ;;  %v1089_v20 = vld [vmem:[%s1226_s11 + $0x98] sm:$0xff]   ;;  %v1091_v23 = vld [vmem:[%s1226_s11 + $0x20] sm:$0xff]   ;;  %v1094_v26 = vld [vmem:[%s1226_s11 + $0x28] sm:$0xff]  }
  0x2f   : > { %980 = vmatpush3.bf16.msra.mxu0 %v1082_v13  ;;  %v1096_v27 = vld [vmem:[%s1226_s11 + $0x70] sm:$0xff]   ;;  %v1099_v30 = vld [vmem:[%s1226_s11 + $0x78] sm:$0xff]   ;;  %v365_v45 = vld [vmem:[#allocation2] sm:$0xff] }
  0x30   : > { %981 = vmatprep.subr.bf16.mxu0 %v1084_v15  ;;  %v1097_v28 = vld [vmem:[%s1226_s11 + $0x30] sm:$0xff]   ;;  %v1101_v31 = vld [vmem:[%s1226_s11 + $0xb8] sm:$0xff]   ;;  %v366_v50 = vld [vmem:[#allocation2 + $0x8] sm:$0xff] }
  0x31   : > { %1018 = vmatpush3.bf16.msra.mxu1 %v1083_v14  ;;  %v1098_v29 = vld [vmem:[%s1226_s11 + $0xb0] sm:$0xff]   ;;  %v1100_v34 = vld [vmem:[%s1226_s11 + $0x38] sm:$0xff]   ;;  %v943_v5 = vld [vmem:[%s1294_s2] ss:$0 sm:$0xff] (!%p942_p11) }
  0x32   : > { %1019 = vmatprep.subr.bf16.mxu1 %v1086_v17  ;;  %v1104_v32 = vld [vmem:[%s1228_s12 + $0x4] ss:$12 sps:$4 sm:$0xff]   ;;  %v1105_v33 = vld [vmem:[%s1228_s12 + $0x8] ss:$12 sps:$4 sm:$0xff]   ;;  %v1102_v35 = vld [vmem:[%s1228_s12] ss:$12 sps:$4 sm:$0xff]  }
  0x33   : > { %982 = vmatpush3.bf16.msra.mxu0 %v1085_v16  ;;  %633 = vmatprep.mubr.bf16.mxu0 %v1104_v32  ;;  %v1107_v36 = vld [vmem:[%s1228_s12 + $0x1c] ss:$12 sps:$4 sm:$0xff]   ;;  %v1106_v37 = vld [vmem:[%s1228_s12 + $0x20] ss:$12 sps:$4 sm:$0xff]   ;;  %v1109_v38 = vld [vmem:[%s1228_s12 + $0x18] ss:$12 sps:$4 sm:$0xff]  }
  0x34   : > { %983 = vmatprep.subr.bf16.mxu0 %v1087_v18  ;;  %1031 = vmatprep.mubr.bf16.mxu1 %v1105_v33  ;;  %v367_v59 = vld [vmem:[#allocation2 + $0x10] sm:$0xff]  ;;  %v368_v63 = vld [vmem:[#allocation2 + $0x18] sm:$0xff]  ;;  %v958_v8 = vld [vmem:[%s1295_s3] sm:$0xff] (!%p942_p11)  }
  0x35   : > { %1020 = vmatpush3.bf16.msra.mxu1 %v1086_v17  ;;  %v959_v11 = vunpack.c.l.bf16 (!%p942_p11), %v958_v8  ;;  %v960_v12 = vunpack.c.h.bf16 (!%p942_p11), %v958_v8  ;;  %v975_v15 = vld [vmem:[%s1295_s3 + $0x8] sm:$0xff] (!%p942_p11)  }
  0x36   : > { %1021 = vmatprep.subr.bf16.mxu1 %v1089_v20  ;;  %v963_v16 = vunpack.c.l.bf16 (!%p942_p11), %v975_v15  ;;  %v964_v17 = vunpack.c.h.bf16 (!%p942_p11), %v975_v15 }
  0x37   : > { %984 = vmatpush3.bf16.msra.mxu0 %v1088_v19 }
  0x38   : > { %985 = vmatprep.subr.bf16.mxu0 %v1090_v21 }
  0x39   : > { %1022 = vmatpush3.bf16.msra.mxu1 %v1089_v20 }
  0x3a   : > { %1023 = vmatprep.subr.bf16.mxu1 %v1092_v22 }
  0x3b   : > { %986 = vmatpush3.bf16.msra.mxu0 %v1091_v23 }
  0x3c   : > { %987 = vmatprep.subr.bf16.mxu0 %v1093_v24 }
  0x3d   : > { %1024 = vmatpush3.bf16.msra.mxu1 %v1092_v22 }
  0x3e   : > { %1025 = vmatprep.subr.bf16.mxu1 %v1095_v25 }
  0x3f   : > { %988 = vmatpush3.bf16.msra.mxu0 %v1094_v26 }
  0x40   : > { %989 = vmatprep.subr.bf16.mxu0 %v1096_v27 }
  0x41   : > { %1026 = vmatpush3.bf16.msra.mxu1 %v1095_v25 }
  0x42   : > { %1027 = vmatprep.subr.bf16.mxu1 %v1098_v29 }
  0x43   : > { %990 = vmatpush3.bf16.msra.mxu0 %v1097_v28 }
  0x44   : > { %991 = vmatprep.subr.bf16.mxu0 %v1099_v30 }
  0x45   : > { %1028 = vmatpush3.bf16.msra.mxu1 %v1098_v29 }
  0x46   : > { %1029 = vmatprep.subr.bf16.mxu1 %v1101_v31 }
  0x47   : > { %992 = vmatpush3.bf16.msra.mxu0 %v1100_v34 }
  0x49   : > { %1030 = vmatpush3.bf16.msra.mxu1 %v1101_v31 }
  0x4a   : > { %634 = vmatmul.mubr.bf16.vlgmr.msra.gmra.mrb[0].mxu0 %v1102_v35 }
  0x4b   : > { %641 = vmatprep.mubr.bf16.mxu0 %v1107_v36 }
  0x4c   : > { %1032 = vmatmul.mubr.bf16.vlgmr.msra.gmra.mrb[0].mxu1 %v1106_v37 }
  0x52   : > { %642 = vmatmul.mubr.bf16.gmra.mrb[4].mxu0 %v1109_v38 }
 0x11d   : > { %v993_v39 = vpop.f32.mrb[0].mxu0 }
 0x11e   : > { %v994_v40 = vpop.f32.mrb[1].mxu0 }
 0x11f   : > { %v995_v41 = vadd.f32 %v994_v40, %v993_v39  ;;  %v996_v42 = vpop.f32.mrb[2].mxu0  ;;  %v1033_v43 = vpop.f32.mrb[0].mxu1 }
 0x120   : > { %v997_v44 = vpop.f32.mrb[3].mxu0  ;;  %v684_v46 = vpop.f32.mrb[1].mxu1 }
 0x121   : > { %v998_v47 = vadd.f32 %v997_v44, %v996_v42  ;;  %v685_v48 = vadd.f32 %v995_v41, %v684_v46  ;;  %v1034_v49 = vpop.f32.mrb[2].mxu1 }
 0x122   : > { %v687_v51 = vpop.f32.mrb[3].mxu1 }
 0x123   : > { %v699_v52 = vadd.f32 %v685_v48, %v365_v45  ;;  %v688_v53 = vadd.f32 %v998_v47, %v687_v51 }
 0x125   : > { %703 = vst [vmem:[#allocation2] sm:$0xff] %v699_v52  ;;  %v700_v54 = vadd.f32 %v688_v53, %v366_v50  ;;  %v999_v55 = vpop.f32.mrb[4].mxu0 }
 0x126   : > { %v1000_v56 = vpop.f32.mrb[5].mxu0 }
 0x127   : > { %704 = vst [vmem:[#allocation2 + $0x8] sm:$0xff] %v700_v54  ;;  %v1001_v57 = vadd.f32 %v1000_v56, %v999_v55  ;;  %v1002_v58 = vpop.f32.mrb[6].mxu0 }
 0x128   : > { %v1003_v60 = vpop.f32.mrb[7].mxu0 }
 0x129   : > { %v693_v61 = vadd.f32 %v1033_v43, %v1001_v57  ;;  %v1004_v62 = vadd.f32 %v1003_v60, %v1002_v58  ;;  %710 = sbr.rel (%p942_p11) target bundleno = 320 (0x140), region = 70 }
 0x12b   : > { %v701_v0 = vadd.f32 %v693_v61, %v367_v59  ;;  %v696_v1 = vadd.f32 %v1034_v49, %v1004_v62 }
 0x12c   : > { %v711_v3 = vld [vmem:[#allocation2] sm:$0xff] (!%p942_p11) }
 0x12d   : > { %705 = vst [vmem:[#allocation2 + $0x10] sm:$0xff] %v701_v0  ;;  %v702_v2 = vadd.f32 %v696_v1, %v368_v63  ;;  %v722_v6 = vadd.f32 (!%p942_p11), %v943_v5, %v711_v3 }
 0x12e   : > { %v712_v4 = vld [vmem:[#allocation2 + $0x8] sm:$0xff] (!%p942_p11) }
 0x12f   : > { %706 = vst [vmem:[#allocation2 + $0x18] sm:$0xff] %v702_v2  ;;  %v723_v7 = vadd.f32 (!%p942_p11), %v943_v5, %v712_v4  ;;  %v734_v18 = vadd.f32 (!%p942_p11), %v959_v11, %v722_v6 }
 0x131   : > { %v735_v19 = vadd.f32 %v960_v12, %v723_v7  ;;  %v738_v22 = vmax.f32 %v734_v18, 0.0 }
 0x133   : > { %v739_v23 = vmax.f32 %v735_v19, 0.0 }
 0x134   : > { %v713_v9 = vld [vmem:[#allocation2 + $0x10] sm:$0xff] }
 0x135   : > { %v724_v13 = vadd.f32 %v943_v5, %v713_v9  ;;  %v968_v26 = vpack.c.bf16 %v739_v23, %v738_v22 }
 0x136   : > { %v714_v10 = vld [vmem:[#allocation2 + $0x18] sm:$0xff] }
 0x137   : > { %v725_v14 = vadd.f32 %v943_v5, %v714_v10  ;;  %v736_v20 = vadd.f32 %v963_v16, %v724_v13  ;;  %969 = vst [vmem:[%s1296_s4] sm:$0xff] %v968_v26  }
 0x139   : > { %v737_v21 = vadd.f32 %v964_v17, %v725_v14  ;;  %v740_v24 = vmax.f32 %v736_v20, 0.0 }
 0x13b   : > { %v741_v25 = vmax.f32 %v737_v21, 0.0 }
 0x13d   : > { %v973_v27 = vpack.c.bf16 %v741_v25, %v740_v24 }
 0x13f   : > { %976 = vst [vmem:[%s1296_s4 + $0x8] sm:$0xff] %v973_v27  }
 0x140 PF: > { %s14_s19 = sadd.s32 1, %s1148_s19   ;;  %s1297_s15 = smov %s1136_s16 }
 0x141   : > { %p11_p12 = scmp.ge.s32.totalorder %s14_s19, 5   ;;  %s1298_s16 = smov %s1211_s23 }
 0x142   : > { %s1299_s17 = smov %s1144_s18  ;;  %s1300_s18 = smov %s1302_s20 }
 0x143   :  { %13 = sbr.rel (!%p11_p12) target bundleno = 3 (0x3), region = 120 }

// kernel: _lambda_.32
= control target key start
LH: loop header
LB: loop body
LE: loop exit
PB: predicated region body
PF: predicated region fallthrough
CT: control target
= control target key end

     0   :  { %s1071_s12 = smov 0   ;;  %s1073_s13 = smov 0   ;;  %s1181_s0 = inlined_call_operand.vmem [shape: bf16[32,1152], index: 0, kind: input, shape index: {}]   ;;  %s1182_s1 = inlined_call_operand.vmem [shape: bf16[1152,128], index: 1, kind: input, shape index: {}]   ;;  %s1183_s2 = inlined_call_operand.vmem [shape: f32[1,128], index: 2, kind: input, shape index: {}]   ;;  %s1184_s3 = inlined_call_operand.vmem [shape: bf16[32,128], index: 3, kind: output, shape index: {}]  }
   0x1   :  { %s1075_s14 = smov 0   ;;  %s1077_s15 = smov 0  }
   0x2   :  { %s1079_s16 = smov 0  }
   0x3 LB: > { %s25_s17 = sadd.s32 1, %s1044_s15  ;;  %p48_p1 = scmp.ne.s32.totalorder %s1036_s13, %s1032_s12  ;;  %s1048_s16 = sphi %s1079_s16, %s13_s16   ;;  %s1044_s15 = sphi %s1077_s15, %s1188_s15   ;;  %s1040_s14 = sphi %s1075_s14, %s1187_s14   ;;  %s1036_s13 = sphi %s1073_s13, %s1186_s13   ;;  %s1032_s12 = sphi %s1071_s12, %s1185_s12  }
   0x4   : > { %p26_p0 = scmp.ge.s32.totalorder %s25_s17, 3  ;;  %p49_p2 = scmp.eq.s32.totalorder %s1048_s16, 0 }
   0x5   : > { %s41_s19 = sadd.s32 1, %s1036_s13  ;;  %p808_p5 = scmp.ge.s32.totalorder %s1048_s16, 3 }
   0x6   : > { %s1190_s17 = smov (%p26_p0, %s25_s17), 0  ;;  %p50_p3 = por %p49_p2, %p48_p1 }
   0x7   : > { %s37_s18 = ssub.s32 %s1044_s15, %s1190_s17  ;;  %162 = sbr.rel (%p808_p5) target bundleno = 23 (0x17), region = 20 }
   0x8   : > { %p39_p4 = scmp.eq.s32.totalorder %s37_s18, 0 }
   0xa   : > { %s1106_s20 = scalar_select %p39_p4, %s1036_s13, %s41_s19  }
   0xe   : > { %165 = sbr.rel (!%p50_p3) target bundleno = 23 (0x17), region = 24  ;;  %s167_s21 = sand.u32 (%p50_p3), 1, %s1036_s13  }
   0xf   : > { %s861_s22 = smul.u32 (%p50_p3), 12, %s1044_s15 }
  0x10   : > { %s935_s23 = smul.u32 (%p50_p3), 48, %s167_s21 }
  0x11   : > { %s175_s26 = scalar_lea.vmem (%p50_p3), %s1181_s0, %s861_s22 }
  0x12   : > { %v190_v0 = vld [vmem:[%s175_s26] sm:$0xff] (%p50_p3)  ;;  %v194_v2 = vld [vmem:[%s175_s26 + $0x48] sm:$0xff] (%p50_p3)  ;;  %s169_s27 = scalar_lea.vmem (%p50_p3), [#allocation3], %s935_s23  ;;  %v814_v6 = vld [vmem:[%s175_s26 + $0x50] sm:$0xf] (%p50_p3) }
  0x13   : > { %v192_v1 = vld [vmem:[%s175_s26 + $0x24] sm:$0xff] (%p50_p3)  ;;  %191 = vst [vmem:[%s169_s27] sm:$0xff] (%p50_p3), %v190_v0  ;;  %195 = vst [vmem:[%s169_s27 + $0x18] sm:$0xff] (%p50_p3), %v194_v2  ;;  %v196_v3 = vld [vmem:[%s175_s26 + $0x6c] sm:$0xff] (%p50_p3) }
  0x14   : > { %193 = vst [vmem:[%s169_s27 + $0xc] sm:$0xff] (%p50_p3), %v192_v1  ;;  %v810_v4 = vld [vmem:[%s175_s26 + $0x8] sm:$0xf] (%p50_p3)  ;;  %v812_v5 = vld [vmem:[%s175_s26 + $0x2c] sm:$0xf] (%p50_p3)  ;;  %197 = vst [vmem:[%s169_s27 + $0x24] sm:$0xff] (%p50_p3), %v196_v3 }
  0x15   : > { %811 = vst [vmem:[%s169_s27 + $0x8] sm:$0xf] %v810_v4  ;;  %813 = vst [vmem:[%s169_s27 + $0x14] sm:$0xf] %v812_v5  ;;  %v816_v7 = vld [vmem:[%s175_s26 + $0x74] sm:$0xf] }
  0x16   : > { %815 = vst [vmem:[%s169_s27 + $0x20] sm:$0xf] %v814_v6  ;;  %817 = vst [vmem:[%s169_s27 + $0x2c] sm:$0xf] %v816_v7 }
  0x17 PF: > { %p818_p6 = scmp.ge.s32.totalorder %s1048_s16, 1  ;;  %p229_p7 = scmp.lt.s32.totalorder %s1048_s16, 4 }
  0x19   : > { %p230_p8 = pnand %p818_p6, %p229_p7 }
  0x1a   : > { %s236_s28 = sand.u32 (!%p230_p8), 1, %s1032_s12   ;;  %s275_s29 = smul.u32 (!%p230_p8), 48, %s1040_s14 }
  0x1b   : > { %233 = sbr.rel (%p230_p8) target bundleno = 318 (0x13e), region = 54  ;;  %p820_p10 = scmp.ne.s32.totalorder (!%p230_p8), %s1040_s14, 0 }
  0x1c   : > { %s936_s30 = smul.u32 (!%p230_p8), 48, %s236_s28  ;;  %p276_p9 = scmp.lt.s32.totalorder (!%p230_p8), %s275_s29, 143 }
  0x1e   : > { %s1123_s8 = scalar_lea.vmem (!%p230_p8), [#allocation3], %s936_s30 }
  0x22   : > { %s1192_s29 = smov (!%p276_p9, %s275_s29), 143  ;;  %300 = sbr.rel (%p820_p10) target bundleno = 41 (0x29), region = 62 }
  0x23   : > { %s819_s4 = sshll.u32 %s1192_s29, 2  ;;  %v1050_v8 = vmov (!%p820_p10), 0.0  }
  0x24   : > { %s1121_s7 = scalar_lea.vmem %s1182_s1, %s819_s4  ;;  %301 = vst [vmem:[#allocation2] sm:$0xff] (!%p820_p10), %v1050_v8  ;;  %302 = vst [vmem:[#allocation2 + $0x8] sm:$0xff] (!%p820_p10), %v1050_v8 }
  0x25   : > { %303 = vst [vmem:[#allocation2 + $0x10] sm:$0xff] (!%p820_p10), %v1050_v8  ;;  %304 = vst [vmem:[#allocation2 + $0x18] sm:$0xff] (!%p820_p10), %v1050_v8 }
  0x29 PF: > { %v978_v9 = vld [vmem:[%s1121_s7 + $0x40] sm:$0xff]   ;;  %v981_v12 = vld [vmem:[%s1121_s7 + $0x48] sm:$0xff]   ;;  %v984_v15 = vld [vmem:[%s1121_s7 + $0x50] sm:$0xff]   ;;  %p851_p11 = scmp.ne.s32.totalorder %s1040_s14, 2 }
  0x2a   : > { %v979_v10 = vld [vmem:[%s1121_s7] sm:$0xff]   ;;  %877 = vmatprep.subr.bf16.mxu0 %v978_v9  ;;  %v982_v13 = vld [vmem:[%s1121_s7 + $0x8] sm:$0xff]   ;;  %v985_v16 = vld [vmem:[%s1121_s7 + $0x10] sm:$0xff]  }
  0x2b   : > { %v980_v11 = vld [vmem:[%s1121_s7 + $0x80] sm:$0xff]   ;;  %878 = vmatpush3.bf16.msra.mxu0 %v979_v10  ;;  %v983_v14 = vld [vmem:[%s1121_s7 + $0x88] sm:$0xff]   ;;  %v986_v17 = vld [vmem:[%s1121_s7 + $0x90] sm:$0xff]  }
  0x2c   : > { %915 = vmatprep.subr.bf16.mxu1 %v980_v11  ;;  %879 = vmatprep.subr.bf16.mxu0 %v981_v12  ;;  %v987_v18 = vld [vmem:[%s1121_s7 + $0x58] sm:$0xff]   ;;  %v990_v21 = vld [vmem:[%s1121_s7 + $0x60] sm:$0xff]   ;;  %v993_v24 = vld [vmem:[%s1121_s7 + $0x68] sm:$0xff]  }
  0x2d   : > { %916 = vmatpush3.bf16.msra.mxu1 %v980_v11  ;;  %v988_v19 = vld [vmem:[%s1121_s7 + $0x18] sm:$0xff]   ;;  %v992_v22 = vld [vmem:[%s1121_s7 + $0xa0] sm:$0xff]   ;;  %v995_v25 = vld [vmem:[%s1121_s7 + $0xa8] sm:$0xff]  }
  0x2e   : > { %917 = vmatprep.subr.bf16.mxu1 %v983_v14  ;;  %v989_v20 = vld [vmem:[%s1121_s7 + $0x98] sm:$0xff]   ;;  %v991_v23 = vld [vmem:[%s1121_s7 + $0x20] sm:$0xff]   ;;  %v994_v26 = vld [vmem:[%s1121_s7 + $0x28] sm:$0xff]  }
  0x2f   : > { %880 = vmatpush3.bf16.msra.mxu0 %v982_v13  ;;  %v996_v27 = vld [vmem:[%s1121_s7 + $0x70] sm:$0xff]   ;;  %v999_v30 = vld [vmem:[%s1121_s7 + $0x78] sm:$0xff]   ;;  %v305_v45 = vld [vmem:[#allocation2] sm:$0xff] }
  0x30   : > { %881 = vmatprep.subr.bf16.mxu0 %v984_v15  ;;  %v997_v28 = vld [vmem:[%s1121_s7 + $0x30] sm:$0xff]   ;;  %v1001_v31 = vld [vmem:[%s1121_s7 + $0xb8] sm:$0xff]   ;;  %v306_v50 = vld [vmem:[#allocation2 + $0x8] sm:$0xff] }
  0x31   : > { %918 = vmatpush3.bf16.msra.mxu1 %v983_v14  ;;  %v998_v29 = vld [vmem:[%s1121_s7 + $0xb0] sm:$0xff]   ;;  %v1000_v34 = vld [vmem:[%s1121_s7 + $0x38] sm:$0xff]   ;;  %v852_v5 = vld [vmem:[%s1183_s2] ss:$0 sm:$0xff] (!%p851_p11) }
  0x32   : > { %919 = vmatprep.subr.bf16.mxu1 %v986_v17  ;;  %v1004_v32 = vld [vmem:[%s1123_s8 + $0x4] ss:$12 sps:$4 sm:$0xff]   ;;  %v1005_v33 = vld [vmem:[%s1123_s8 + $0x8] ss:$12 sps:$4 sm:$0xff]   ;;  %v1002_v35 = vld [vmem:[%s1123_s8] ss:$12 sps:$4 sm:$0xff]  }
  0x33   : > { %882 = vmatpush3.bf16.msra.mxu0 %v985_v16  ;;  %573 = vmatprep.mubr.bf16.mxu0 %v1004_v32  ;;  %v1007_v36 = vld [vmem:[%s1123_s8 + $0x1c] ss:$12 sps:$4 sm:$0xff]   ;;  %v1006_v37 = vld [vmem:[%s1123_s8 + $0x20] ss:$12 sps:$4 sm:$0xff]   ;;  %v1009_v38 = vld [vmem:[%s1123_s8 + $0x18] ss:$12 sps:$4 sm:$0xff]  }
  0x34   : > { %883 = vmatprep.subr.bf16.mxu0 %v987_v18  ;;  %931 = vmatprep.mubr.bf16.mxu1 %v1005_v33  ;;  %v307_v59 = vld [vmem:[#allocation2 + $0x10] sm:$0xff]  ;;  %v308_v63 = vld [vmem:[#allocation2 + $0x18] sm:$0xff] }
  0x35   : > { %920 = vmatpush3.bf16.msra.mxu1 %v986_v17 }
  0x36   : > { %921 = vmatprep.subr.bf16.mxu1 %v989_v20 }
  0x37   : > { %884 = vmatpush3.bf16.msra.mxu0 %v988_v19 }
  0x38   : > { %885 = vmatprep.subr.bf16.mxu0 %v990_v21 }
  0x39   : > { %922 = vmatpush3.bf16.msra.mxu1 %v989_v20 }
  0x3a   : > { %923 = vmatprep.subr.bf16.mxu1 %v992_v22 }
  0x3b   : > { %886 = vmatpush3.bf16.msra.mxu0 %v991_v23 }
  0x3c   : > { %887 = vmatprep.subr.bf16.mxu0 %v993_v24 }
  0x3d   : > { %924 = vmatpush3.bf16.msra.mxu1 %v992_v22 }
  0x3e   : > { %925 = vmatprep.subr.bf16.mxu1 %v995_v25 }
  0x3f   : > { %888 = vmatpush3.bf16.msra.mxu0 %v994_v26 }
  0x40   : > { %889 = vmatprep.subr.bf16.mxu0 %v996_v27 }
  0x41   : > { %926 = vmatpush3.bf16.msra.mxu1 %v995_v25 }
  0x42   : > { %927 = vmatprep.subr.bf16.mxu1 %v998_v29 }
  0x43   : > { %890 = vmatpush3.bf16.msra.mxu0 %v997_v28 }
  0x44   : > { %891 = vmatprep.subr.bf16.mxu0 %v999_v30 }
  0x45   : > { %928 = vmatpush3.bf16.msra.mxu1 %v998_v29 }
  0x46   : > { %929 = vmatprep.subr.bf16.mxu1 %v1001_v31 }
  0x47   : > { %892 = vmatpush3.bf16.msra.mxu0 %v1000_v34 }
  0x49   : > { %930 = vmatpush3.bf16.msra.mxu1 %v1001_v31 }
  0x4a   : > { %574 = vmatmul.mubr.bf16.vlgmr.msra.gmra.mrb[0].mxu0 %v1002_v35 }
  0x4b   : > { %581 = vmatprep.mubr.bf16.mxu0 %v1007_v36 }
  0x4c   : > { %932 = vmatmul.mubr.bf16.vlgmr.msra.gmra.mrb[0].mxu1 %v1006_v37 }
  0x52   : > { %582 = vmatmul.mubr.bf16.gmra.mrb[4].mxu0 %v1009_v38 }
 0x11d   : > { %v893_v39 = vpop.f32.mrb[0].mxu0 }
 0x11e   : > { %v894_v40 = vpop.f32.mrb[1].mxu0 }
 0x11f   : > { %v895_v41 = vadd.f32 %v894_v40, %v893_v39  ;;  %v896_v42 = vpop.f32.mrb[2].mxu0  ;;  %v933_v43 = vpop.f32.mrb[0].mxu1 }
 0x120   : > { %v897_v44 = vpop.f32.mrb[3].mxu0  ;;  %v624_v46 = vpop.f32.mrb[1].mxu1 }
 0x121   : > { %v898_v47 = vadd.f32 %v897_v44, %v896_v42  ;;  %v625_v48 = vadd.f32 %v895_v41, %v624_v46  ;;  %v934_v49 = vpop.f32.mrb[2].mxu1 }
 0x122   : > { %v627_v51 = vpop.f32.mrb[3].mxu1 }
 0x123   : > { %v639_v52 = vadd.f32 %v625_v48, %v305_v45  ;;  %v628_v53 = vadd.f32 %v898_v47, %v627_v51 }
 0x125   : > { %643 = vst [vmem:[#allocation2] sm:$0xff] %v639_v52  ;;  %v640_v54 = vadd.f32 %v628_v53, %v306_v50  ;;  %v899_v55 = vpop.f32.mrb[4].mxu0 }
 0x126   : > { %v900_v56 = vpop.f32.mrb[5].mxu0 }
 0x127   : > { %644 = vst [vmem:[#allocation2 + $0x8] sm:$0xff] %v640_v54  ;;  %v901_v57 = vadd.f32 %v900_v56, %v899_v55  ;;  %v902_v58 = vpop.f32.mrb[6].mxu0 }
 0x128   : > { %v903_v60 = vpop.f32.mrb[7].mxu0 }
 0x129   : > { %v633_v61 = vadd.f32 %v933_v43, %v901_v57  ;;  %v904_v62 = vadd.f32 %v903_v60, %v902_v58  ;;  %650 = sbr.rel (%p851_p11) target bundleno = 318 (0x13e), region = 66 }
 0x12b   : > { %v641_v0 = vadd.f32 %v633_v61, %v307_v59  ;;  %v636_v1 = vadd.f32 %v934_v49, %v904_v62 }
 0x12c   : > { %v651_v3 = vld [vmem:[#allocation2] sm:$0xff] (!%p851_p11) }
 0x12d   : > { %645 = vst [vmem:[#allocation2 + $0x10] sm:$0xff] %v641_v0  ;;  %v642_v2 = vadd.f32 %v636_v1, %v308_v63  ;;  %v662_v6 = vadd.f32 (!%p851_p11), %v852_v5, %v651_v3 }
 0x12e   : > { %v652_v4 = vld [vmem:[#allocation2 + $0x8] sm:$0xff] (!%p851_p11) }
 0x12f   : > { %646 = vst [vmem:[#allocation2 + $0x18] sm:$0xff] %v642_v2  ;;  %v663_v7 = vadd.f32 (!%p851_p11), %v852_v5, %v652_v4  ;;  %v666_v12 = vmax.f32 (!%p851_p11), %v662_v6, 0.0 }
 0x131   : > { %v667_v13 = vmax.f32 %v663_v7, 0.0 }
 0x133   : > { %v869_v16 = vpack.c.bf16 %v667_v13, %v666_v12 }
 0x134   : > { %v653_v8 = vld [vmem:[#allocation2 + $0x10] sm:$0xff] }
 0x135   : > { %v664_v10 = vadd.f32 %v852_v5, %v653_v8  ;;  %870 = vst [vmem:[%s1184_s3] sm:$0xff] %v869_v16  }
 0x136   : > { %v654_v9 = vld [vmem:[#allocation2 + $0x18] sm:$0xff] }
 0x137   : > { %v665_v11 = vadd.f32 %v852_v5, %v654_v9  ;;  %v668_v14 = vmax.f32 %v664_v10, 0.0 }
 0x139   : > { %v669_v15 = vmax.f32 %v665_v11, 0.0 }
 0x13b   : > { %v874_v17 = vpack.c.bf16 %v669_v15, %v668_v14 }
 0x13d   : > { %876 = vst [vmem:[%s1184_s3 + $0x8] sm:$0xff] %v874_v17  }
 0x13e PF: > { %s13_s16 = sadd.s32 1, %s1048_s16   ;;  %s1185_s12 = smov %s1036_s13 }
 0x13f   : > { %p10_p12 = scmp.ge.s32.totalorder %s13_s16, 5   ;;  %s1186_s13 = smov %s1106_s20 }
 0x140   : > { %s1187_s14 = smov %s1044_s15  ;;  %s1188_s15 = smov %s1190_s17 }
 0x141   :  { %12 = sbr.rel (!%p10_p12) target bundleno = 3 (0x3), region = 113 }

// kernel: _lambda_.34
= control target key start
LH: loop header
LB: loop body
LE: loop exit
PB: predicated region body
PF: predicated region fallthrough
CT: control target
= control target key end

     0   :  { %s1036_s12 = smov 0   ;;  %s1038_s13 = smov 0   ;;  %s1135_s0 = inlined_call_operand.vmem [shape: bf16[8,1152], index: 0, kind: input, shape index: {}]   ;;  %s1136_s1 = inlined_call_operand.vmem [shape: bf16[1152,256], index: 1, kind: input, shape index: {}]   ;;  %s1137_s2 = inlined_call_operand.vmem [shape: f32[1,256], index: 2, kind: input, shape index: {}]   ;;  %s1138_s3 = inlined_call_operand.vmem [shape: bf16[8,256], index: 3, kind: output, shape index: {}]  }
   0x1   :  { %s1040_s14 = smov 0  }
   0x2 LB: > { %s25_s15 = sadd.s32 1, %s1008_s13  ;;  %p825_p0 = scmp.ge.s32.totalorder %s1012_s14, 1  ;;  %s1012_s14 = sphi %s1040_s14, %s13_s14   ;;  %s1008_s13 = sphi %s1038_s13, %s1140_s13   ;;  %s1004_s12 = sphi %s1036_s12, %s1139_s12  }
   0x3   : > { %p26_p1 = scmp.ge.s32.totalorder %s25_s15, 3  ;;  %p194_p2 = scmp.lt.s32.totalorder %s1012_s14, 4 }
   0x5   : > { %s1142_s15 = smov (%p26_p1, %s25_s15), 0  ;;  %p195_p3 = pnand %p825_p0, %p194_p2 }
   0x6   : > { %s240_s16 = smul.u32 (!%p195_p3), 3, %s1004_s12  ;;  %p829_p6 = scmp.ne.s32.totalorder (!%p195_p3), %s1004_s12, 0 }
   0x7   : > { %198 = sbr.rel (%p195_p3) target bundleno = 321 (0x141), region = 32 }
   0x8   : > { %s250_s17 = smul.u32 (!%p195_p3), 48, %s1004_s12  ;;  %p243_p4 = scmp.lt.s32.totalorder (!%p195_p3), %s240_s16, 8 }
   0xa   : > { %p252_p5 = scmp.lt.s32.totalorder (!%p195_p3), %s250_s17, 143 }
   0xe   : > { %s1144_s16 = smov (!%p243_p4, %s240_s16), 8  ;;  %s1146_s17 = smov (!%p252_p5, %s250_s17), 143 }
   0xf   : > { %s826_s18 = sshll.u32 %s1144_s16, 2  ;;  %s887_s22 = sshll.u32 %s1146_s17, 3  ;;  %v1014_v0 = vmov (!%p829_p6), 0.0  }
  0x10   : > { %s1061_s21 = scalar_lea.vmem %s1135_s0, %s826_s18  ;;  %s1066_s25 = scalar_lea.vmem %s1136_s1, %s887_s22  ;;  %282 = vst [vmem:[#allocation2] sm:$0xff] (!%p829_p6), %v1014_v0  ;;  %283 = vst [vmem:[#allocation2 + $0x8] sm:$0xff] (!%p829_p6), %v1014_v0 }
  0x11   : > { %281 = sbr.rel (%p829_p6) target bundleno = 24 (0x18), region = 36 }
  0x18 PF: > { %v915_v1 = vld [vmem:[%s1066_s25 + $0x4] ss:$8 sps:$4 sm:$0xff]   ;;  %v917_v2 = vld [vmem:[%s1066_s25] ss:$8 sps:$4 sm:$0xff]   ;;  %v1015_v3 = vmov 0   ;;  %p881_p7 = scmp.ne.s32.totalorder %s1004_s12, 2 }
  0x19   : > { %660 = vmatprep.mubr.bf16.mxu1 %v1015_v3  ;;  %587 = vmatprep.subr.bf16.mxu0 %v915_v1  ;;  %v918_v4 = vld [vmem:[%s1066_s25 + $0x14] ss:$8 sps:$4 sm:$0xff]   ;;  %v920_v5 = vld [vmem:[%s1066_s25 + $0x10] ss:$8 sps:$4 sm:$0xff]   ;;  %v921_v6 = vld [vmem:[%s1066_s25 + $0x24] ss:$8 sps:$4 sm:$0xff]  }
  0x1a   : > { %588 = vmatpush1.bf16.msra.mxu0 %v917_v2  ;;  %v923_v7 = vld [vmem:[%s1066_s25 + $0x20] ss:$8 sps:$4 sm:$0xff]   ;;  %v924_v8 = vld [vmem:[%s1066_s25 + $0x34] ss:$8 sps:$4 sm:$0xff]   ;;  %v926_v9 = vld [vmem:[%s1066_s25 + $0x30] ss:$8 sps:$4 sm:$0xff]  }
  0x1b   : > { %589 = vmatprep.subr.bf16.mxu0 %v918_v4  ;;  %v939_v10 = vld [vmem:[%s1066_s25 + $0x104] ss:$8 sps:$4 sm:$0xff]   ;;  %v941_v11 = vld [vmem:[%s1066_s25 + $0x100] ss:$8 sps:$4 sm:$0xff]   ;;  %v945_v13 = vld [vmem:[%s1066_s25 + $0x114] ss:$8 sps:$4 sm:$0xff]   ;;  %v681_v4 = vlaneseq (!%p881_p7) }
  0x1c   : > { %v927_v12 = vld [vmem:[%s1066_s25 + $0x44] ss:$8 sps:$4 sm:$0xff]   ;;  %628 = vmatprep.subr.bf16.mxu1 %v939_v10  ;;  %v947_v14 = vld [vmem:[%s1066_s25 + $0x110] ss:$8 sps:$4 sm:$0xff]   ;;  %v929_v15 = vld [vmem:[%s1066_s25 + $0x40] ss:$8 sps:$4 sm:$0xff]  }
  0x1d   : > { %629 = vmatpush1.bf16.msra.mxu1 %v941_v11  ;;  %v930_v16 = vld [vmem:[%s1066_s25 + $0x54] ss:$8 sps:$4 sm:$0xff]   ;;  %v951_v17 = vld [vmem:[%s1066_s25 + $0x124] ss:$8 sps:$4 sm:$0xff]   ;;  %v953_v18 = vld [vmem:[%s1066_s25 + $0x120] ss:$8 sps:$4 sm:$0xff]  }
  0x1e   : > { %590 = vmatpush1.bf16.msra.mxu0 %v920_v5  ;;  %630 = vmatprep.subr.bf16.mxu1 %v945_v13  ;;  %v932_v19 = vld [vmem:[%s1066_s25 + $0x50] ss:$8 sps:$4 sm:$0xff]   ;;  %v957_v20 = vld [vmem:[%s1066_s25 + $0x134] ss:$8 sps:$4 sm:$0xff]   ;;  %v933_v21 = vld [vmem:[%s1066_s25 + $0x64] ss:$8 sps:$4 sm:$0xff]  }
  0x1f   : > { %591 = vmatprep.subr.bf16.mxu0 %v921_v6  ;;  %v959_v22 = vld [vmem:[%s1066_s25 + $0x130] ss:$8 sps:$4 sm:$0xff]   ;;  %v935_v23 = vld [vmem:[%s1066_s25 + $0x60] ss:$8 sps:$4 sm:$0xff]   ;;  %v963_v24 = vld [vmem:[%s1066_s25 + $0x144] ss:$8 sps:$4 sm:$0xff]  }
  0x20   : > { %v936_v25 = vld [vmem:[%s1066_s25 + $0x74] ss:$8 sps:$4 sm:$0xff]   ;;  %v965_v26 = vld [vmem:[%s1066_s25 + $0x140] ss:$8 sps:$4 sm:$0xff]   ;;  %v938_v27 = vld [vmem:[%s1066_s25 + $0x70] ss:$8 sps:$4 sm:$0xff]  }
  0x21   : > { %631 = vmatpush1.bf16.msra.mxu1 %v947_v14  ;;  %v969_v28 = vld [vmem:[%s1066_s25 + $0x154] ss:$8 sps:$4 sm:$0xff]   ;;  %v942_v29 = vld [vmem:[%s1066_s25 + $0x84] ss:$8 sps:$4 sm:$0xff]   ;;  %v971_v30 = vld [vmem:[%s1066_s25 + $0x150] ss:$8 sps:$4 sm:$0xff]  }
  0x22   : > { %592 = vmatpush1.bf16.msra.mxu0 %v923_v7  ;;  %632 = vmatprep.subr.bf16.mxu1 %v951_v17  ;;  %v944_v31 = vld [vmem:[%s1066_s25 + $0x80] ss:$8 sps:$4 sm:$0xff]   ;;  %v975_v32 = vld [vmem:[%s1066_s25 + $0x164] ss:$8 sps:$4 sm:$0xff]   ;;  %v948_v33 = vld [vmem:[%s1066_s25 + $0x94] ss:$8 sps:$4 sm:$0xff]  }
  0x23   : > { %593 = vmatprep.subr.bf16.mxu0 %v924_v8  ;;  %v286_v34 = vld [vmem:[%s1061_s21] sm:$0xff]  ;;  %v950_v37 = vld [vmem:[%s1066_s25 + $0x90] ss:$8 sps:$4 sm:$0xff]   ;;  %v981_v38 = vld [vmem:[%s1066_s25 + $0x174] ss:$8 sps:$4 sm:$0xff]   ;;  %v682_v5 = vshrl.u32 (!%p881_p7), %v681_v4, 7 }
  0x24   : > { %v831_v35 = vcombine.high %v286_v34, %v286_v34  ;;  %v977_v36 = vld [vmem:[%s1066_s25 + $0x160] ss:$8 sps:$4 sm:$0xff]   ;;  %v954_v39 = vld [vmem:[%s1066_s25 + $0xa4] ss:$8 sps:$4 sm:$0xff]   ;;  %v983_v40 = vld [vmem:[%s1066_s25 + $0x170] ss:$8 sps:$4 sm:$0xff]   ;;  %v830_v53 = vcombine.low %v286_v34, %v286_v34 }
  0x25   : > { %633 = vmatpush1.bf16.msra.mxu1 %v953_v18  ;;  %v956_v41 = vld [vmem:[%s1066_s25 + $0xa0] ss:$8 sps:$4 sm:$0xff]   ;;  %v960_v42 = vld [vmem:[%s1066_s25 + $0xb4] ss:$8 sps:$4 sm:$0xff]   ;;  %v962_v44 = vld [vmem:[%s1066_s25 + $0xb0] ss:$8 sps:$4 sm:$0xff]  }
  0x26   : > { %594 = vmatpush1.bf16.msra.mxu0 %v926_v9  ;;  %634 = vmatprep.subr.bf16.mxu1 %v957_v20  ;;  %v987_v43 = vld [vmem:[%s1061_s21 + $0x8] ss:$0 sps:$4 sm:$0xff]   ;;  %v966_v45 = vld [vmem:[%s1066_s25 + $0xc4] ss:$8 sps:$4 sm:$0xff]   ;;  %v972_v47 = vld [vmem:[%s1066_s25 + $0xd4] ss:$8 sps:$4 sm:$0xff]  }
  0x27   : > { %595 = vmatprep.subr.bf16.mxu0 %v927_v12  ;;  %619 = vmatprep.mubr.bf16.mxu0 %v831_v35  ;;  %v968_v46 = vld [vmem:[%s1066_s25 + $0xc0] ss:$8 sps:$4 sm:$0xff]   ;;  %v974_v48 = vld [vmem:[%s1066_s25 + $0xd0] ss:$8 sps:$4 sm:$0xff]   ;;  %v978_v49 = vld [vmem:[%s1066_s25 + $0xe4] ss:$8 sps:$4 sm:$0xff]  }
  0x28   : > { %v980_v50 = vld [vmem:[%s1066_s25 + $0xe0] ss:$8 sps:$4 sm:$0xff]   ;;  %v984_v51 = vld [vmem:[%s1066_s25 + $0xf4] ss:$8 sps:$4 sm:$0xff]   ;;  %v986_v52 = vld [vmem:[%s1066_s25 + $0xf0] ss:$8 sps:$4 sm:$0xff]  }
  0x29   : > { %635 = vmatpush1.bf16.msra.mxu1 %v959_v22  ;;  %v284_v58 = vld [vmem:[#allocation2] sm:$0xff]  ;;  %v285_v61 = vld [vmem:[#allocation2 + $0x8] sm:$0xff]  ;;  %v683_v7 = vsub.s32 (!%p881_p7), 0, %v682_v5  ;;  %v687_v8 = vsub.s32 (!%p881_p7), 1, %v682_v5 }
  0x2a   : > { %596 = vmatpush1.bf16.msra.mxu0 %v929_v15  ;;  %636 = vmatprep.subr.bf16.mxu1 %v963_v24  ;;  %v679_v6 = vld [vmem:[%s1137_s2] sm:$0x3] (!%p881_p7) }
  0x2b   : > { %597 = vmatprep.subr.bf16.mxu0 %v930_v16  ;;  %v684_v11 = vrot.slane (!%p881_p7), %v679_v6, %v683_v7  ;;  %v688_v12 = vrot.slane (!%p881_p7), %v679_v6, %v687_v8 }
  0x2d   : > { %637 = vmatpush1.bf16.msra.mxu1 %v965_v26 }
  0x2e   : > { %598 = vmatpush1.bf16.msra.mxu0 %v932_v19  ;;  %638 = vmatprep.subr.bf16.mxu1 %v969_v28 }
  0x2f   : > { %599 = vmatprep.subr.bf16.mxu0 %v933_v21 }
  0x31   : > { %639 = vmatpush1.bf16.msra.mxu1 %v971_v30 }
  0x32   : > { %600 = vmatpush1.bf16.msra.mxu0 %v935_v23  ;;  %640 = vmatprep.subr.bf16.mxu1 %v975_v32 }
  0x33   : > { %601 = vmatprep.subr.bf16.mxu0 %v936_v25 }
  0x35   : > { %641 = vmatpush1.bf16.msra.mxu1 %v977_v36 }
  0x36   : > { %602 = vmatpush1.bf16.msra.mxu0 %v938_v27  ;;  %642 = vmatprep.subr.bf16.mxu1 %v981_v38 }
  0x37   : > { %603 = vmatprep.subr.bf16.mxu0 %v942_v29 }
  0x39   : > { %643 = vmatpush1.bf16.msra.mxu1 %v983_v40 }
  0x3a   : > { %604 = vmatpush1.bf16.msra.mxu0 %v944_v31 }
  0x3b   : > { %605 = vmatprep.subr.bf16.mxu0 %v948_v33 }
  0x3c   : > { %661 = vmatmul.mubr.bf16.vlgmr.msra.gmra.mrb[0].mxu1 %v987_v43 }
  0x3e   : > { %606 = vmatpush1.bf16.msra.mxu0 %v950_v37 }
  0x3f   : > { %607 = vmatprep.subr.bf16.mxu0 %v954_v39 }
  0x42   : > { %608 = vmatpush1.bf16.msra.mxu0 %v956_v41 }
  0x43   : > { %609 = vmatprep.subr.bf16.mxu0 %v960_v42 }
  0x46   : > { %610 = vmatpush1.bf16.msra.mxu0 %v962_v44 }
  0x47   : > { %611 = vmatprep.subr.bf16.mxu0 %v966_v45 }
  0x4a   : > { %612 = vmatpush1.bf16.msra.mxu0 %v968_v46 }
  0x4b   : > { %613 = vmatprep.subr.bf16.mxu0 %v972_v47 }
  0x4e   : > { %614 = vmatpush1.bf16.msra.mxu0 %v974_v48 }
  0x4f   : > { %615 = vmatprep.subr.bf16.mxu0 %v978_v49 }
  0x52   : > { %616 = vmatpush1.bf16.msra.mxu0 %v980_v50 }
  0x53   : > { %617 = vmatprep.subr.bf16.mxu0 %v984_v51 }
  0x56   : > { %618 = vmatpush1.bf16.msra.mxu0 %v986_v52 }
  0x59   : > { %620 = vmatmul.mubr.bf16.vlgmr.msra.gmra.mrb[0].mxu0 %v830_v53 }
 0x10f   : > { %v662_v54 = vpop.f32.mrb[0].mxu1 }
 0x110   : > { %v664_v55 = vpop.f32.mrb[1].mxu1 }
 0x111   : > { %v666_v56 = vpop.f32.mrb[2].mxu1 }
 0x112   : > { %v667_v57 = vpop.f32.mrb[3].mxu1 }
 0x12c   : > { %v621_v59 = vpop.f32.mrb[0].mxu0  ;;  %676 = sbr.rel (%p881_p7) target bundleno = 321 (0x141), region = 40 }
 0x12d   : > { %v663_v60 = vadd.f32 %v662_v54, %v621_v59  ;;  %v623_v62 = vpop.f32.mrb[1].mxu0 }
 0x12e   : > { %v665_v63 = vadd.f32 %v664_v55, %v623_v62  ;;  %v625_v0 = vpop.f32.mrb[2].mxu0 }
 0x12f   : > { %v669_v1 = vadd.f32 %v663_v60, %v284_v58  ;;  %v626_v2 = vpop.f32.mrb[3].mxu0 }
 0x130   : > { %v670_v3 = vadd.f32 %v665_v63, %v285_v61 }
 0x131   : > { %671 = vst [vmem:[#allocation2] sm:$0xff] %v669_v1 }
 0x132   : > { %672 = vst [vmem:[#allocation2 + $0x8] sm:$0xff] %v670_v3 }
 0x138   : > { %v677_v9 = vld [vmem:[#allocation2] sm:$0xff] }
 0x139   : > { %v678_v10 = vld [vmem:[#allocation2 + $0x8] sm:$0xff]  ;;  %v691_v13 = vadd.f32 %v684_v11, %v677_v9 }
 0x13a   : > { %v692_v14 = vadd.f32 %v688_v12, %v678_v10 }
 0x13b   : > { %v693_v15 = vmax.f32 %v691_v13, 0.0 }
 0x13c   : > { %v694_v16 = vmax.f32 %v692_v14, 0.0 }
 0x13e   : > { %v888_v17 = vpack.c.bf16 %v694_v16, %v693_v15 }
 0x140   : > { %703 = vst [vmem:[%s1138_s3] sm:$0xff] %v888_v17 }
 0x141 PF: > { %s13_s14 = sadd.s32 1, %s1012_s14   ;;  %s1139_s12 = smov %s1008_s13 }
 0x142   : > { %p10_p8 = scmp.ge.s32.totalorder %s13_s14, 5   ;;  %s1140_s13 = smov %s1142_s15 }
 0x144   :  { %12 = sbr.rel (!%p10_p8) target bundleno = 2 (0x2), region = 76 }

// kernel: _lambda_.35
= control target key start
LH: loop header
LB: loop body
LE: loop exit
PB: predicated region body
PF: predicated region fallthrough
CT: control target
= control target key end

     0   :  { %v240_v1 = vmov 0   ;;  %v172_v18 = vlaneseq  ;;  %s318_s1 = inlined_call_operand.vmem [shape: bf16[128,256], index: 1, kind: input, shape index: {}]   ;;  %s319_s0 = inlined_call_operand.vmem [shape: bf16[8,128], index: 0, kind: input, shape index: {}]   ;;  %s320_s2 = inlined_call_operand.vmem [shape: f32[1,256], index: 2, kind: input, shape index: {}]   ;;  %s321_s3 = inlined_call_operand.vmem [shape: bf16[8,256], index: 3, kind: output, shape index: {}]  }
   0x1   :  { %v216_v0 = vld [vmem:[%s318_s1 + $0x4] ss:$8 sps:$4 sm:$0xff]   ;;  %152 = vmatprep.mubr.bf16.mxu0 %v240_v1  ;;  %v218_v2 = vld [vmem:[%s318_s1] ss:$8 sps:$4 sm:$0xff]   ;;  %v219_v3 = vld [vmem:[%s318_s1 + $0x14] ss:$8 sps:$4 sm:$0xff]  }
   0x2   :  { %120 = vmatprep.subr.bf16.mxu0 %v216_v0  ;;  %v221_v4 = vld [vmem:[%s318_s1 + $0x10] ss:$8 sps:$4 sm:$0xff]   ;;  %v222_v5 = vld [vmem:[%s318_s1 + $0x24] ss:$8 sps:$4 sm:$0xff]   ;;  %v224_v6 = vld [vmem:[%s318_s1 + $0x20] ss:$8 sps:$4 sm:$0xff]  }
   0x3   :  { %121 = vmatpush1.bf16.msra.mxu0 %v218_v2  ;;  %v225_v7 = vld [vmem:[%s318_s1 + $0x34] ss:$8 sps:$4 sm:$0xff]   ;;  %v227_v8 = vld [vmem:[%s318_s1 + $0x30] ss:$8 sps:$4 sm:$0xff]   ;;  %v228_v9 = vld [vmem:[%s318_s1 + $0x44] ss:$8 sps:$4 sm:$0xff]  }
   0x4   :  { %122 = vmatprep.subr.bf16.mxu0 %v219_v3  ;;  %v230_v10 = vld [vmem:[%s318_s1 + $0x40] ss:$8 sps:$4 sm:$0xff]   ;;  %v231_v11 = vld [vmem:[%s318_s1 + $0x54] ss:$8 sps:$4 sm:$0xff]   ;;  %v233_v12 = vld [vmem:[%s318_s1 + $0x50] ss:$8 sps:$4 sm:$0xff]  }
   0x5   :  { %v234_v13 = vld [vmem:[%s318_s1 + $0x64] ss:$8 sps:$4 sm:$0xff]   ;;  %v236_v14 = vld [vmem:[%s318_s1 + $0x60] ss:$8 sps:$4 sm:$0xff]   ;;  %v237_v15 = vld [vmem:[%s318_s1 + $0x74] ss:$8 sps:$4 sm:$0xff]  }
   0x6   :  { %v239_v16 = vld [vmem:[%s318_s1 + $0x70] ss:$8 sps:$4 sm:$0xff]   ;;  %v23_v17 = vld [vmem:[%s319_s0] sm:$0xf]  ;;  %v173_v19 = vshrl.u32 %v172_v18, 7 }
   0x7   :  { %123 = vmatpush1.bf16.msra.mxu0 %v221_v4  ;;  %v170_v21 = vld [vmem:[%s320_s2] sm:$0x3] }
   0x8   :  { %124 = vmatprep.subr.bf16.mxu0 %v222_v5  ;;  %v174_v20 = vsub.s32 0, %v173_v19  ;;  %v178_v22 = vsub.s32 1, %v173_v19 }
   0xa   :  { %v175_v23 = vrot.slane %v170_v21, %v174_v20  ;;  %v179_v24 = vrot.slane %v170_v21, %v178_v22 }
   0xb   :  { %125 = vmatpush1.bf16.msra.mxu0 %v224_v6 }
   0xc   :  { %126 = vmatprep.subr.bf16.mxu0 %v225_v7 }
   0xf   :  { %127 = vmatpush1.bf16.msra.mxu0 %v227_v8 }
  0x10   :  { %128 = vmatprep.subr.bf16.mxu0 %v228_v9 }
  0x13   :  { %129 = vmatpush1.bf16.msra.mxu0 %v230_v10 }
  0x14   :  { %130 = vmatprep.subr.bf16.mxu0 %v231_v11 }
  0x17   :  { %131 = vmatpush1.bf16.msra.mxu0 %v233_v12 }
  0x18   :  { %132 = vmatprep.subr.bf16.mxu0 %v234_v13 }
  0x1b   :  { %133 = vmatpush1.bf16.msra.mxu0 %v236_v14 }
  0x1c   :  { %134 = vmatprep.subr.bf16.mxu0 %v237_v15 }
  0x1f   :  { %135 = vmatpush1.bf16.msra.mxu0 %v239_v16 }
  0x22   :  { %153 = vmatmul.mubr.bf16.vlgmr.msra.gmra.mrb[0].mxu0 %v23_v17 }
  0xf5   :  { %v154_v25 = vpop.f32.mrb[0].mxu0 }
  0xf6   :  { %v182_v26 = vadd.f32 %v175_v23, %v154_v25  ;;  %v156_v27 = vpop.f32.mrb[1].mxu0 }
  0xf7   :  { %v183_v28 = vadd.f32 %v179_v24, %v156_v27  ;;  %v158_v29 = vpop.f32.mrb[2].mxu0 }
  0xf8   :  { %v159_v30 = vpop.f32.mrb[3].mxu0 }
  0xf9   :  { %v214_v31 = vpack.c.bf16 %v183_v28, %v182_v26 }
  0xfb   :  { %192 = vst [vmem:[%s321_s3] sm:$0xff] %v214_v31 }

// kernel: _lambda_.36
= control target key start
LH: loop header
LB: loop body
LE: loop exit
PB: predicated region body
PF: predicated region fallthrough
CT: control target
= control target key end

     0   :  { %s1131_s15 = smov 0   ;;  %s1133_s16 = smov 0   ;;  %s1233_s0 = inlined_call_operand.vmem [shape: bf16[8,2304], index: 0, kind: input, shape index: {}]   ;;  %s1234_s1 = inlined_call_operand.vmem [shape: bf16[2304,256], index: 1, kind: input, shape index: {}]   ;;  %s1235_s2 = inlined_call_operand.vmem [shape: f32[1,256], index: 2, kind: input, shape index: {}]   ;;  %s1236_s3 = inlined_call_operand.vmem [shape: bf16[8,256], index: 3, kind: input, shape index: {}]   ;;  %s1237_s4 = inlined_call_operand.vmem [shape: bf16[8,256], index: 4, kind: output, shape index: {}]  }
   0x1   :  { %s1135_s17 = smov 0  }
   0x2 LB: > { %s26_s18 = sadd.s32 1, %s1098_s16  ;;  %p915_p0 = scmp.ge.s32.totalorder %s1102_s17, 1  ;;  %s1102_s17 = sphi %s1135_s17, %s14_s17   ;;  %s1098_s16 = sphi %s1133_s16, %s1239_s16   ;;  %s1094_s15 = sphi %s1131_s15, %s1238_s15  }
   0x3   : > { %p27_p1 = scmp.ge.s32.totalorder %s26_s18, 6  ;;  %p236_p2 = scmp.lt.s32.totalorder %s1102_s17, 7 }
   0x5   : > { %s1241_s18 = smov (%p27_p1, %s26_s18), 0  ;;  %p237_p3 = pnand %p915_p0, %p236_p2 }
   0x6   : > { %s293_s19 = smul.u32 (!%p237_p3), 3, %s1094_s15  ;;  %p919_p6 = scmp.ne.s32.totalorder (!%p237_p3), %s1094_s15, 0 }
   0x7   : > { %240 = sbr.rel (%p237_p3) target bundleno = 323 (0x143), region = 36 }
   0x8   : > { %s303_s20 = smul.u32 (!%p237_p3), 48, %s1094_s15  ;;  %p296_p4 = scmp.lt.s32.totalorder (!%p237_p3), %s293_s19, 17 }
   0xa   : > { %p305_p5 = scmp.lt.s32.totalorder (!%p237_p3), %s303_s20, 287 }
   0xe   : > { %s1243_s19 = smov (!%p296_p4, %s293_s19), 17  ;;  %s1245_s20 = smov (!%p305_p5, %s303_s20), 287 }
   0xf   : > { %s916_s21 = sshll.u32 %s1243_s19, 2  ;;  %s977_s25 = sshll.u32 %s1245_s20, 3  ;;  %v1104_v0 = vmov (!%p919_p6), 0.0  }
  0x10   : > { %s1156_s24 = scalar_lea.vmem %s1233_s0, %s916_s21  ;;  %s1161_s28 = scalar_lea.vmem %s1234_s1, %s977_s25  ;;  %345 = vst [vmem:[#allocation2] sm:$0xff] (!%p919_p6), %v1104_v0  ;;  %346 = vst [vmem:[#allocation2 + $0x8] sm:$0xff] (!%p919_p6), %v1104_v0 }
  0x11   : > { %344 = sbr.rel (%p919_p6) target bundleno = 24 (0x18), region = 40 }
  0x18 PF: > { %v1005_v1 = vld [vmem:[%s1161_s28 + $0x4] ss:$8 sps:$4 sm:$0xff]   ;;  %v1007_v2 = vld [vmem:[%s1161_s28] ss:$8 sps:$4 sm:$0xff]   ;;  %v1105_v3 = vmov 0   ;;  %p971_p7 = scmp.ne.s32.totalorder %s1094_s15, 5 }
  0x19   : > { %723 = vmatprep.mubr.bf16.mxu1 %v1105_v3  ;;  %650 = vmatprep.subr.bf16.mxu0 %v1005_v1  ;;  %v1008_v4 = vld [vmem:[%s1161_s28 + $0x14] ss:$8 sps:$4 sm:$0xff]   ;;  %v1010_v5 = vld [vmem:[%s1161_s28 + $0x10] ss:$8 sps:$4 sm:$0xff]   ;;  %v1011_v6 = vld [vmem:[%s1161_s28 + $0x24] ss:$8 sps:$4 sm:$0xff]  }
  0x1a   : > { %651 = vmatpush1.bf16.msra.mxu0 %v1007_v2  ;;  %v1013_v7 = vld [vmem:[%s1161_s28 + $0x20] ss:$8 sps:$4 sm:$0xff]   ;;  %v1014_v8 = vld [vmem:[%s1161_s28 + $0x34] ss:$8 sps:$4 sm:$0xff]   ;;  %v1016_v9 = vld [vmem:[%s1161_s28 + $0x30] ss:$8 sps:$4 sm:$0xff]  }
  0x1b   : > { %652 = vmatprep.subr.bf16.mxu0 %v1008_v4  ;;  %v1029_v10 = vld [vmem:[%s1161_s28 + $0x104] ss:$8 sps:$4 sm:$0xff]   ;;  %v1031_v11 = vld [vmem:[%s1161_s28 + $0x100] ss:$8 sps:$4 sm:$0xff]   ;;  %v1035_v13 = vld [vmem:[%s1161_s28 + $0x114] ss:$8 sps:$4 sm:$0xff]   ;;  %v744_v4 = vlaneseq (!%p971_p7) }
  0x1c   : > { %v1017_v12 = vld [vmem:[%s1161_s28 + $0x44] ss:$8 sps:$4 sm:$0xff]   ;;  %691 = vmatprep.subr.bf16.mxu1 %v1029_v10  ;;  %v1037_v14 = vld [vmem:[%s1161_s28 + $0x110] ss:$8 sps:$4 sm:$0xff]   ;;  %v1019_v15 = vld [vmem:[%s1161_s28 + $0x40] ss:$8 sps:$4 sm:$0xff]  }
  0x1d   : > { %692 = vmatpush1.bf16.msra.mxu1 %v1031_v11  ;;  %v1020_v16 = vld [vmem:[%s1161_s28 + $0x54] ss:$8 sps:$4 sm:$0xff]   ;;  %v1041_v17 = vld [vmem:[%s1161_s28 + $0x124] ss:$8 sps:$4 sm:$0xff]   ;;  %v1043_v18 = vld [vmem:[%s1161_s28 + $0x120] ss:$8 sps:$4 sm:$0xff]  }
  0x1e   : > { %653 = vmatpush1.bf16.msra.mxu0 %v1010_v5  ;;  %693 = vmatprep.subr.bf16.mxu1 %v1035_v13  ;;  %v1022_v19 = vld [vmem:[%s1161_s28 + $0x50] ss:$8 sps:$4 sm:$0xff]   ;;  %v1047_v20 = vld [vmem:[%s1161_s28 + $0x134] ss:$8 sps:$4 sm:$0xff]   ;;  %v1023_v21 = vld [vmem:[%s1161_s28 + $0x64] ss:$8 sps:$4 sm:$0xff]  }
  0x1f   : > { %654 = vmatprep.subr.bf16.mxu0 %v1011_v6  ;;  %v1049_v22 = vld [vmem:[%s1161_s28 + $0x130] ss:$8 sps:$4 sm:$0xff]   ;;  %v1025_v23 = vld [vmem:[%s1161_s28 + $0x60] ss:$8 sps:$4 sm:$0xff]   ;;  %v1053_v24 = vld [vmem:[%s1161_s28 + $0x144] ss:$8 sps:$4 sm:$0xff]  }
  0x20   : > { %v1026_v25 = vld [vmem:[%s1161_s28 + $0x74] ss:$8 sps:$4 sm:$0xff]   ;;  %v1055_v26 = vld [vmem:[%s1161_s28 + $0x140] ss:$8 sps:$4 sm:$0xff]   ;;  %v1028_v27 = vld [vmem:[%s1161_s28 + $0x70] ss:$8 sps:$4 sm:$0xff]  }
  0x21   : > { %694 = vmatpush1.bf16.msra.mxu1 %v1037_v14  ;;  %v1059_v28 = vld [vmem:[%s1161_s28 + $0x154] ss:$8 sps:$4 sm:$0xff]   ;;  %v1032_v29 = vld [vmem:[%s1161_s28 + $0x84] ss:$8 sps:$4 sm:$0xff]   ;;  %v1061_v30 = vld [vmem:[%s1161_s28 + $0x150] ss:$8 sps:$4 sm:$0xff]  }
  0x22   : > { %655 = vmatpush1.bf16.msra.mxu0 %v1013_v7  ;;  %695 = vmatprep.subr.bf16.mxu1 %v1041_v17  ;;  %v1034_v31 = vld [vmem:[%s1161_s28 + $0x80] ss:$8 sps:$4 sm:$0xff]   ;;  %v1065_v32 = vld [vmem:[%s1161_s28 + $0x164] ss:$8 sps:$4 sm:$0xff]   ;;  %v1038_v33 = vld [vmem:[%s1161_s28 + $0x94] ss:$8 sps:$4 sm:$0xff]  }
  0x23   : > { %656 = vmatprep.subr.bf16.mxu0 %v1014_v8  ;;  %v349_v34 = vld [vmem:[%s1156_s24] sm:$0xff]  ;;  %v1040_v37 = vld [vmem:[%s1161_s28 + $0x90] ss:$8 sps:$4 sm:$0xff]   ;;  %v1071_v38 = vld [vmem:[%s1161_s28 + $0x174] ss:$8 sps:$4 sm:$0xff]   ;;  %v745_v5 = vshrl.u32 (!%p971_p7), %v744_v4, 7 }
  0x24   : > { %v921_v35 = vcombine.high %v349_v34, %v349_v34  ;;  %v1067_v36 = vld [vmem:[%s1161_s28 + $0x160] ss:$8 sps:$4 sm:$0xff]   ;;  %v1044_v39 = vld [vmem:[%s1161_s28 + $0xa4] ss:$8 sps:$4 sm:$0xff]   ;;  %v1073_v40 = vld [vmem:[%s1161_s28 + $0x170] ss:$8 sps:$4 sm:$0xff]   ;;  %v920_v53 = vcombine.low %v349_v34, %v349_v34 }
  0x25   : > { %696 = vmatpush1.bf16.msra.mxu1 %v1043_v18  ;;  %v1046_v41 = vld [vmem:[%s1161_s28 + $0xa0] ss:$8 sps:$4 sm:$0xff]   ;;  %v1050_v42 = vld [vmem:[%s1161_s28 + $0xb4] ss:$8 sps:$4 sm:$0xff]   ;;  %v1052_v44 = vld [vmem:[%s1161_s28 + $0xb0] ss:$8 sps:$4 sm:$0xff]  }
  0x26   : > { %657 = vmatpush1.bf16.msra.mxu0 %v1016_v9  ;;  %697 = vmatprep.subr.bf16.mxu1 %v1047_v20  ;;  %v1077_v43 = vld [vmem:[%s1156_s24 + $0x8] ss:$0 sps:$4 sm:$0xff]   ;;  %v1056_v45 = vld [vmem:[%s1161_s28 + $0xc4] ss:$8 sps:$4 sm:$0xff]   ;;  %v1062_v47 = vld [vmem:[%s1161_s28 + $0xd4] ss:$8 sps:$4 sm:$0xff]  }
  0x27   : > { %658 = vmatprep.subr.bf16.mxu0 %v1017_v12  ;;  %682 = vmatprep.mubr.bf16.mxu0 %v921_v35  ;;  %v1058_v46 = vld [vmem:[%s1161_s28 + $0xc0] ss:$8 sps:$4 sm:$0xff]   ;;  %v1064_v48 = vld [vmem:[%s1161_s28 + $0xd0] ss:$8 sps:$4 sm:$0xff]   ;;  %v1068_v49 = vld [vmem:[%s1161_s28 + $0xe4] ss:$8 sps:$4 sm:$0xff]  }
  0x28   : > { %v1070_v50 = vld [vmem:[%s1161_s28 + $0xe0] ss:$8 sps:$4 sm:$0xff]   ;;  %v1074_v51 = vld [vmem:[%s1161_s28 + $0xf4] ss:$8 sps:$4 sm:$0xff]   ;;  %v1076_v52 = vld [vmem:[%s1161_s28 + $0xf0] ss:$8 sps:$4 sm:$0xff]  }
  0x29   : > { %698 = vmatpush1.bf16.msra.mxu1 %v1049_v22  ;;  %v347_v58 = vld [vmem:[#allocation2] sm:$0xff]  ;;  %v348_v61 = vld [vmem:[#allocation2 + $0x8] sm:$0xff]  ;;  %v746_v8 = vsub.s32 (!%p971_p7), 0, %v745_v5  ;;  %v750_v9 = vsub.s32 (!%p971_p7), 1, %v745_v5 }
  0x2a   : > { %659 = vmatpush1.bf16.msra.mxu0 %v1019_v15  ;;  %699 = vmatprep.subr.bf16.mxu1 %v1053_v24  ;;  %v742_v6 = vld [vmem:[%s1235_s2] sm:$0x3] (!%p971_p7) }
  0x2b   : > { %660 = vmatprep.subr.bf16.mxu0 %v1020_v16  ;;  %v756_v7 = vld [vmem:[%s1236_s3] sm:$0xff] (!%p971_p7)  ;;  %v747_v12 = vrot.slane (!%p971_p7), %v742_v6, %v746_v8  ;;  %v751_v13 = vrot.slane (!%p971_p7), %v742_v6, %v750_v9 }
  0x2c   : > { %v757_v14 = vunpack.c.l.bf16 (!%p971_p7), %v756_v7  ;;  %v758_v15 = vunpack.c.h.bf16 (!%p971_p7), %v756_v7 }
  0x2d   : > { %700 = vmatpush1.bf16.msra.mxu1 %v1055_v26 }
  0x2e   : > { %661 = vmatpush1.bf16.msra.mxu0 %v1022_v19  ;;  %701 = vmatprep.subr.bf16.mxu1 %v1059_v28 }
  0x2f   : > { %662 = vmatprep.subr.bf16.mxu0 %v1023_v21 }
  0x31   : > { %702 = vmatpush1.bf16.msra.mxu1 %v1061_v30 }
  0x32   : > { %663 = vmatpush1.bf16.msra.mxu0 %v1025_v23  ;;  %703 = vmatprep.subr.bf16.mxu1 %v1065_v32 }
  0x33   : > { %664 = vmatprep.subr.bf16.mxu0 %v1026_v25 }
  0x35   : > { %704 = vmatpush1.bf16.msra.mxu1 %v1067_v36 }
  0x36   : > { %665 = vmatpush1.bf16.msra.mxu0 %v1028_v27  ;;  %705 = vmatprep.subr.bf16.mxu1 %v1071_v38 }
  0x37   : > { %666 = vmatprep.subr.bf16.mxu0 %v1032_v29 }
  0x39   : > { %706 = vmatpush1.bf16.msra.mxu1 %v1073_v40 }
  0x3a   : > { %667 = vmatpush1.bf16.msra.mxu0 %v1034_v31 }
  0x3b   : > { %668 = vmatprep.subr.bf16.mxu0 %v1038_v33 }
  0x3c   : > { %724 = vmatmul.mubr.bf16.vlgmr.msra.gmra.mrb[0].mxu1 %v1077_v43 }
  0x3e   : > { %669 = vmatpush1.bf16.msra.mxu0 %v1040_v37 }
  0x3f   : > { %670 = vmatprep.subr.bf16.mxu0 %v1044_v39 }
  0x42   : > { %671 = vmatpush1.bf16.msra.mxu0 %v1046_v41 }
  0x43   : > { %672 = vmatprep.subr.bf16.mxu0 %v1050_v42 }
  0x46   : > { %673 = vmatpush1.bf16.msra.mxu0 %v1052_v44 }
  0x47   : > { %674 = vmatprep.subr.bf16.mxu0 %v1056_v45 }
  0x4a   : > { %675 = vmatpush1.bf16.msra.mxu0 %v1058_v46 }
  0x4b   : > { %676 = vmatprep.subr.bf16.mxu0 %v1062_v47 }
  0x4e   : > { %677 = vmatpush1.bf16.msra.mxu0 %v1064_v48 }
  0x4f   : > { %678 = vmatprep.subr.bf16.mxu0 %v1068_v49 }
  0x52   : > { %679 = vmatpush1.bf16.msra.mxu0 %v1070_v50 }
  0x53   : > { %680 = vmatprep.subr.bf16.mxu0 %v1074_v51 }
  0x56   : > { %681 = vmatpush1.bf16.msra.mxu0 %v1076_v52 }
  0x59   : > { %683 = vmatmul.mubr.bf16.vlgmr.msra.gmra.mrb[0].mxu0 %v920_v53 }
 0x10f   : > { %v725_v54 = vpop.f32.mrb[0].mxu1 }
 0x110   : > { %v727_v55 = vpop.f32.mrb[1].mxu1 }
 0x111   : > { %v729_v56 = vpop.f32.mrb[2].mxu1 }
 0x112   : > { %v730_v57 = vpop.f32.mrb[3].mxu1 }
 0x12c   : > { %v684_v59 = vpop.f32.mrb[0].mxu0  ;;  %739 = sbr.rel (%p971_p7) target bundleno = 323 (0x143), region = 44 }
 0x12d   : > { %v726_v60 = vadd.f32 %v725_v54, %v684_v59  ;;  %v686_v62 = vpop.f32.mrb[1].mxu0 }
 0x12e   : > { %v728_v63 = vadd.f32 %v727_v55, %v686_v62  ;;  %v688_v0 = vpop.f32.mrb[2].mxu0 }
 0x12f   : > { %v732_v1 = vadd.f32 %v726_v60, %v347_v58  ;;  %v689_v2 = vpop.f32.mrb[3].mxu0 }
 0x130   : > { %v733_v3 = vadd.f32 %v728_v63, %v348_v61 }
 0x131   : > { %734 = vst [vmem:[#allocation2] sm:$0xff] %v732_v1 }
 0x132   : > { %735 = vst [vmem:[#allocation2 + $0x8] sm:$0xff] %v733_v3 }
 0x138   : > { %v740_v10 = vld [vmem:[#allocation2] sm:$0xff] }
 0x139   : > { %v741_v11 = vld [vmem:[#allocation2 + $0x8] sm:$0xff]  ;;  %v754_v16 = vadd.f32 %v747_v12, %v740_v10 }
 0x13a   : > { %v755_v17 = vadd.f32 %v751_v13, %v741_v11 }
 0x13b   : > { %v759_v18 = vadd.f32 %v757_v14, %v754_v16 }
 0x13c   : > { %v760_v19 = vadd.f32 %v758_v15, %v755_v17 }
 0x13d   : > { %v761_v20 = vmax.f32 %v759_v18, 0.0 }
 0x13e   : > { %v762_v21 = vmax.f32 %v760_v19, 0.0 }
 0x140   : > { %v978_v22 = vpack.c.bf16 %v762_v21, %v761_v20 }
 0x142   : > { %771 = vst [vmem:[%s1237_s4] sm:$0xff] %v978_v22 }
 0x143 PF: > { %s14_s17 = sadd.s32 1, %s1102_s17   ;;  %s1238_s15 = smov %s1098_s16 }
 0x144   : > { %p11_p8 = scmp.ge.s32.totalorder %s14_s17, 8   ;;  %s1239_s16 = smov %s1241_s18 }
 0x146   :  { %13 = sbr.rel (!%p11_p8) target bundleno = 2 (0x2), region = 83 }

// kernel: _lambda_.37
= control target key start
LH: loop header
LB: loop body
LE: loop exit
PB: predicated region body
PF: predicated region fallthrough
CT: control target
= control target key end

     0   :  { %s1036_s12 = smov 0   ;;  %s1038_s13 = smov 0   ;;  %s1135_s0 = inlined_call_operand.vmem [shape: bf16[8,2304], index: 0, kind: input, shape index: {}]   ;;  %s1136_s1 = inlined_call_operand.vmem [shape: bf16[2304,256], index: 1, kind: input, shape index: {}]   ;;  %s1137_s2 = inlined_call_operand.vmem [shape: f32[1,256], index: 2, kind: input, shape index: {}]   ;;  %s1138_s3 = inlined_call_operand.vmem [shape: bf16[8,256], index: 3, kind: output, shape index: {}]  }
   0x1   :  { %s1040_s14 = smov 0  }
   0x2 LB: > { %s25_s15 = sadd.s32 1, %s1008_s13  ;;  %p825_p0 = scmp.ge.s32.totalorder %s1012_s14, 1  ;;  %s1012_s14 = sphi %s1040_s14, %s13_s14   ;;  %s1008_s13 = sphi %s1038_s13, %s1140_s13   ;;  %s1004_s12 = sphi %s1036_s12, %s1139_s12  }
   0x3   : > { %p26_p1 = scmp.ge.s32.totalorder %s25_s15, 6  ;;  %p194_p2 = scmp.lt.s32.totalorder %s1012_s14, 7 }
   0x5   : > { %s1142_s15 = smov (%p26_p1, %s25_s15), 0  ;;  %p195_p3 = pnand %p825_p0, %p194_p2 }
   0x6   : > { %s240_s16 = smul.u32 (!%p195_p3), 3, %s1004_s12  ;;  %p829_p6 = scmp.ne.s32.totalorder (!%p195_p3), %s1004_s12, 0 }
   0x7   : > { %198 = sbr.rel (%p195_p3) target bundleno = 321 (0x141), region = 32 }
   0x8   : > { %s250_s17 = smul.u32 (!%p195_p3), 48, %s1004_s12  ;;  %p243_p4 = scmp.lt.s32.totalorder (!%p195_p3), %s240_s16, 17 }
   0xa   : > { %p252_p5 = scmp.lt.s32.totalorder (!%p195_p3), %s250_s17, 287 }
   0xe   : > { %s1144_s16 = smov (!%p243_p4, %s240_s16), 17  ;;  %s1146_s17 = smov (!%p252_p5, %s250_s17), 287 }
   0xf   : > { %s826_s18 = sshll.u32 %s1144_s16, 2  ;;  %s887_s22 = sshll.u32 %s1146_s17, 3  ;;  %v1014_v0 = vmov (!%p829_p6), 0.0  }
  0x10   : > { %s1061_s21 = scalar_lea.vmem %s1135_s0, %s826_s18  ;;  %s1066_s25 = scalar_lea.vmem %s1136_s1, %s887_s22  ;;  %282 = vst [vmem:[#allocation2] sm:$0xff] (!%p829_p6), %v1014_v0  ;;  %283 = vst [vmem:[#allocation2 + $0x8] sm:$0xff] (!%p829_p6), %v1014_v0 }
  0x11   : > { %281 = sbr.rel (%p829_p6) target bundleno = 24 (0x18), region = 36 }
  0x18 PF: > { %v915_v1 = vld [vmem:[%s1066_s25 + $0x4] ss:$8 sps:$4 sm:$0xff]   ;;  %v917_v2 = vld [vmem:[%s1066_s25] ss:$8 sps:$4 sm:$0xff]   ;;  %v1015_v3 = vmov 0   ;;  %p881_p7 = scmp.ne.s32.totalorder %s1004_s12, 5 }
  0x19   : > { %660 = vmatprep.mubr.bf16.mxu1 %v1015_v3  ;;  %587 = vmatprep.subr.bf16.mxu0 %v915_v1  ;;  %v918_v4 = vld [vmem:[%s1066_s25 + $0x14] ss:$8 sps:$4 sm:$0xff]   ;;  %v920_v5 = vld [vmem:[%s1066_s25 + $0x10] ss:$8 sps:$4 sm:$0xff]   ;;  %v921_v6 = vld [vmem:[%s1066_s25 + $0x24] ss:$8 sps:$4 sm:$0xff]  }
  0x1a   : > { %588 = vmatpush1.bf16.msra.mxu0 %v917_v2  ;;  %v923_v7 = vld [vmem:[%s1066_s25 + $0x20] ss:$8 sps:$4 sm:$0xff]   ;;  %v924_v8 = vld [vmem:[%s1066_s25 + $0x34] ss:$8 sps:$4 sm:$0xff]   ;;  %v926_v9 = vld [vmem:[%s1066_s25 + $0x30] ss:$8 sps:$4 sm:$0xff]  }
  0x1b   : > { %589 = vmatprep.subr.bf16.mxu0 %v918_v4  ;;  %v939_v10 = vld [vmem:[%s1066_s25 + $0x104] ss:$8 sps:$4 sm:$0xff]   ;;  %v941_v11 = vld [vmem:[%s1066_s25 + $0x100] ss:$8 sps:$4 sm:$0xff]   ;;  %v945_v13 = vld [vmem:[%s1066_s25 + $0x114] ss:$8 sps:$4 sm:$0xff]   ;;  %v681_v4 = vlaneseq (!%p881_p7) }
  0x1c   : > { %v927_v12 = vld [vmem:[%s1066_s25 + $0x44] ss:$8 sps:$4 sm:$0xff]   ;;  %628 = vmatprep.subr.bf16.mxu1 %v939_v10  ;;  %v947_v14 = vld [vmem:[%s1066_s25 + $0x110] ss:$8 sps:$4 sm:$0xff]   ;;  %v929_v15 = vld [vmem:[%s1066_s25 + $0x40] ss:$8 sps:$4 sm:$0xff]  }
  0x1d   : > { %629 = vmatpush1.bf16.msra.mxu1 %v941_v11  ;;  %v930_v16 = vld [vmem:[%s1066_s25 + $0x54] ss:$8 sps:$4 sm:$0xff]   ;;  %v951_v17 = vld [vmem:[%s1066_s25 + $0x124] ss:$8 sps:$4 sm:$0xff]   ;;  %v953_v18 = vld [vmem:[%s1066_s25 + $0x120] ss:$8 sps:$4 sm:$0xff]  }
  0x1e   : > { %590 = vmatpush1.bf16.msra.mxu0 %v920_v5  ;;  %630 = vmatprep.subr.bf16.mxu1 %v945_v13  ;;  %v932_v19 = vld [vmem:[%s1066_s25 + $0x50] ss:$8 sps:$4 sm:$0xff]   ;;  %v957_v20 = vld [vmem:[%s1066_s25 + $0x134] ss:$8 sps:$4 sm:$0xff]   ;;  %v933_v21 = vld [vmem:[%s1066_s25 + $0x64] ss:$8 sps:$4 sm:$0xff]  }
  0x1f   : > { %591 = vmatprep.subr.bf16.mxu0 %v921_v6  ;;  %v959_v22 = vld [vmem:[%s1066_s25 + $0x130] ss:$8 sps:$4 sm:$0xff]   ;;  %v935_v23 = vld [vmem:[%s1066_s25 + $0x60] ss:$8 sps:$4 sm:$0xff]   ;;  %v963_v24 = vld [vmem:[%s1066_s25 + $0x144] ss:$8 sps:$4 sm:$0xff]  }
  0x20   : > { %v936_v25 = vld [vmem:[%s1066_s25 + $0x74] ss:$8 sps:$4 sm:$0xff]   ;;  %v965_v26 = vld [vmem:[%s1066_s25 + $0x140] ss:$8 sps:$4 sm:$0xff]   ;;  %v938_v27 = vld [vmem:[%s1066_s25 + $0x70] ss:$8 sps:$4 sm:$0xff]  }
  0x21   : > { %631 = vmatpush1.bf16.msra.mxu1 %v947_v14  ;;  %v969_v28 = vld [vmem:[%s1066_s25 + $0x154] ss:$8 sps:$4 sm:$0xff]   ;;  %v942_v29 = vld [vmem:[%s1066_s25 + $0x84] ss:$8 sps:$4 sm:$0xff]   ;;  %v971_v30 = vld [vmem:[%s1066_s25 + $0x150] ss:$8 sps:$4 sm:$0xff]  }
  0x22   : > { %592 = vmatpush1.bf16.msra.mxu0 %v923_v7  ;;  %632 = vmatprep.subr.bf16.mxu1 %v951_v17  ;;  %v944_v31 = vld [vmem:[%s1066_s25 + $0x80] ss:$8 sps:$4 sm:$0xff]   ;;  %v975_v32 = vld [vmem:[%s1066_s25 + $0x164] ss:$8 sps:$4 sm:$0xff]   ;;  %v948_v33 = vld [vmem:[%s1066_s25 + $0x94] ss:$8 sps:$4 sm:$0xff]  }
  0x23   : > { %593 = vmatprep.subr.bf16.mxu0 %v924_v8  ;;  %v286_v34 = vld [vmem:[%s1061_s21] sm:$0xff]  ;;  %v950_v37 = vld [vmem:[%s1066_s25 + $0x90] ss:$8 sps:$4 sm:$0xff]   ;;  %v981_v38 = vld [vmem:[%s1066_s25 + $0x174] ss:$8 sps:$4 sm:$0xff]   ;;  %v682_v5 = vshrl.u32 (!%p881_p7), %v681_v4, 7 }
  0x24   : > { %v831_v35 = vcombine.high %v286_v34, %v286_v34  ;;  %v977_v36 = vld [vmem:[%s1066_s25 + $0x160] ss:$8 sps:$4 sm:$0xff]   ;;  %v954_v39 = vld [vmem:[%s1066_s25 + $0xa4] ss:$8 sps:$4 sm:$0xff]   ;;  %v983_v40 = vld [vmem:[%s1066_s25 + $0x170] ss:$8 sps:$4 sm:$0xff]   ;;  %v830_v53 = vcombine.low %v286_v34, %v286_v34 }
  0x25   : > { %633 = vmatpush1.bf16.msra.mxu1 %v953_v18  ;;  %v956_v41 = vld [vmem:[%s1066_s25 + $0xa0] ss:$8 sps:$4 sm:$0xff]   ;;  %v960_v42 = vld [vmem:[%s1066_s25 + $0xb4] ss:$8 sps:$4 sm:$0xff]   ;;  %v962_v44 = vld [vmem:[%s1066_s25 + $0xb0] ss:$8 sps:$4 sm:$0xff]  }
  0x26   : > { %594 = vmatpush1.bf16.msra.mxu0 %v926_v9  ;;  %634 = vmatprep.subr.bf16.mxu1 %v957_v20  ;;  %v987_v43 = vld [vmem:[%s1061_s21 + $0x8] ss:$0 sps:$4 sm:$0xff]   ;;  %v966_v45 = vld [vmem:[%s1066_s25 + $0xc4] ss:$8 sps:$4 sm:$0xff]   ;;  %v972_v47 = vld [vmem:[%s1066_s25 + $0xd4] ss:$8 sps:$4 sm:$0xff]  }
  0x27   : > { %595 = vmatprep.subr.bf16.mxu0 %v927_v12  ;;  %619 = vmatprep.mubr.bf16.mxu0 %v831_v35  ;;  %v968_v46 = vld [vmem:[%s1066_s25 + $0xc0] ss:$8 sps:$4 sm:$0xff]   ;;  %v974_v48 = vld [vmem:[%s1066_s25 + $0xd0] ss:$8 sps:$4 sm:$0xff]   ;;  %v978_v49 = vld [vmem:[%s1066_s25 + $0xe4] ss:$8 sps:$4 sm:$0xff]  }
  0x28   : > { %v980_v50 = vld [vmem:[%s1066_s25 + $0xe0] ss:$8 sps:$4 sm:$0xff]   ;;  %v984_v51 = vld [vmem:[%s1066_s25 + $0xf4] ss:$8 sps:$4 sm:$0xff]   ;;  %v986_v52 = vld [vmem:[%s1066_s25 + $0xf0] ss:$8 sps:$4 sm:$0xff]  }
  0x29   : > { %635 = vmatpush1.bf16.msra.mxu1 %v959_v22  ;;  %v284_v58 = vld [vmem:[#allocation2] sm:$0xff]  ;;  %v285_v61 = vld [vmem:[#allocation2 + $0x8] sm:$0xff]  ;;  %v683_v7 = vsub.s32 (!%p881_p7), 0, %v682_v5  ;;  %v687_v8 = vsub.s32 (!%p881_p7), 1, %v682_v5 }
  0x2a   : > { %596 = vmatpush1.bf16.msra.mxu0 %v929_v15  ;;  %636 = vmatprep.subr.bf16.mxu1 %v963_v24  ;;  %v679_v6 = vld [vmem:[%s1137_s2] sm:$0x3] (!%p881_p7) }
  0x2b   : > { %597 = vmatprep.subr.bf16.mxu0 %v930_v16  ;;  %v684_v11 = vrot.slane (!%p881_p7), %v679_v6, %v683_v7  ;;  %v688_v12 = vrot.slane (!%p881_p7), %v679_v6, %v687_v8 }
  0x2d   : > { %637 = vmatpush1.bf16.msra.mxu1 %v965_v26 }
  0x2e   : > { %598 = vmatpush1.bf16.msra.mxu0 %v932_v19  ;;  %638 = vmatprep.subr.bf16.mxu1 %v969_v28 }
  0x2f   : > { %599 = vmatprep.subr.bf16.mxu0 %v933_v21 }
  0x31   : > { %639 = vmatpush1.bf16.msra.mxu1 %v971_v30 }
  0x32   : > { %600 = vmatpush1.bf16.msra.mxu0 %v935_v23  ;;  %640 = vmatprep.subr.bf16.mxu1 %v975_v32 }
  0x33   : > { %601 = vmatprep.subr.bf16.mxu0 %v936_v25 }
  0x35   : > { %641 = vmatpush1.bf16.msra.mxu1 %v977_v36 }
  0x36   : > { %602 = vmatpush1.bf16.msra.mxu0 %v938_v27  ;;  %642 = vmatprep.subr.bf16.mxu1 %v981_v38 }
  0x37   : > { %603 = vmatprep.subr.bf16.mxu0 %v942_v29 }
  0x39   : > { %643 = vmatpush1.bf16.msra.mxu1 %v983_v40 }
  0x3a   : > { %604 = vmatpush1.bf16.msra.mxu0 %v944_v31 }
  0x3b   : > { %605 = vmatprep.subr.bf16.mxu0 %v948_v33 }
  0x3c   : > { %661 = vmatmul.mubr.bf16.vlgmr.msra.gmra.mrb[0].mxu1 %v987_v43 }
  0x3e   : > { %606 = vmatpush1.bf16.msra.mxu0 %v950_v37 }
  0x3f   : > { %607 = vmatprep.subr.bf16.mxu0 %v954_v39 }
  0x42   : > { %608 = vmatpush1.bf16.msra.mxu0 %v956_v41 }
  0x43   : > { %609 = vmatprep.subr.bf16.mxu0 %v960_v42 }
  0x46   : > { %610 = vmatpush1.bf16.msra.mxu0 %v962_v44 }
  0x47   : > { %611 = vmatprep.subr.bf16.mxu0 %v966_v45 }
  0x4a   : > { %612 = vmatpush1.bf16.msra.mxu0 %v968_v46 }
  0x4b   : > { %613 = vmatprep.subr.bf16.mxu0 %v972_v47 }
  0x4e   : > { %614 = vmatpush1.bf16.msra.mxu0 %v974_v48 }
  0x4f   : > { %615 = vmatprep.subr.bf16.mxu0 %v978_v49 }
  0x52   : > { %616 = vmatpush1.bf16.msra.mxu0 %v980_v50 }
  0x53   : > { %617 = vmatprep.subr.bf16.mxu0 %v984_v51 }
  0x56   : > { %618 = vmatpush1.bf16.msra.mxu0 %v986_v52 }
  0x59   : > { %620 = vmatmul.mubr.bf16.vlgmr.msra.gmra.mrb[0].mxu0 %v830_v53 }
 0x10f   : > { %v662_v54 = vpop.f32.mrb[0].mxu1 }
 0x110   : > { %v664_v55 = vpop.f32.mrb[1].mxu1 }
 0x111   : > { %v666_v56 = vpop.f32.mrb[2].mxu1 }
 0x112   : > { %v667_v57 = vpop.f32.mrb[3].mxu1 }
 0x12c   : > { %v621_v59 = vpop.f32.mrb[0].mxu0  ;;  %676 = sbr.rel (%p881_p7) target bundleno = 321 (0x141), region = 40 }
 0x12d   : > { %v663_v60 = vadd.f32 %v662_v54, %v621_v59  ;;  %v623_v62 = vpop.f32.mrb[1].mxu0 }
 0x12e   : > { %v665_v63 = vadd.f32 %v664_v55, %v623_v62  ;;  %v625_v0 = vpop.f32.mrb[2].mxu0 }
 0x12f   : > { %v669_v1 = vadd.f32 %v663_v60, %v284_v58  ;;  %v626_v2 = vpop.f32.mrb[3].mxu0 }
 0x130   : > { %v670_v3 = vadd.f32 %v665_v63, %v285_v61 }
 0x131   : > { %671 = vst [vmem:[#allocation2] sm:$0xff] %v669_v1 }
 0x132   : > { %672 = vst [vmem:[#allocation2 + $0x8] sm:$0xff] %v670_v3 }
 0x138   : > { %v677_v9 = vld [vmem:[#allocation2] sm:$0xff] }
 0x139   : > { %v678_v10 = vld [vmem:[#allocation2 + $0x8] sm:$0xff]  ;;  %v691_v13 = vadd.f32 %v684_v11, %v677_v9 }
 0x13a   : > { %v692_v14 = vadd.f32 %v688_v12, %v678_v10 }
 0x13b   : > { %v693_v15 = vmax.f32 %v691_v13, 0.0 }
 0x13c   : > { %v694_v16 = vmax.f32 %v692_v14, 0.0 }
 0x13e   : > { %v888_v17 = vpack.c.bf16 %v694_v16, %v693_v15 }
 0x140   : > { %703 = vst [vmem:[%s1138_s3] sm:$0xff] %v888_v17 }
 0x141 PF: > { %s13_s14 = sadd.s32 1, %s1012_s14   ;;  %s1139_s12 = smov %s1008_s13 }
 0x142   : > { %p10_p8 = scmp.ge.s32.totalorder %s13_s14, 8   ;;  %s1140_s13 = smov %s1142_s15 }
 0x144   :  { %12 = sbr.rel (!%p10_p8) target bundleno = 2 (0x2), region = 76 }

// kernel: _lambda_.39
= control target key start
LH: loop header
LB: loop body
LE: loop exit
PB: predicated region body
PF: predicated region fallthrough
CT: control target
= control target key end

     0   :  { %s1319_s12 = smov 0   ;;  %s1321_s13 = smov 0   ;;  %s1582_s0 = inlined_call_operand.vmem [shape: bf16[8,2304], index: 0, kind: input, shape index: {}]   ;;  %s1583_s1 = inlined_call_operand.vmem [shape: bf16[2304,512], index: 1, kind: input, shape index: {}]   ;;  %s1584_s2 = inlined_call_operand.vmem [shape: f32[1,512], index: 2, kind: input, shape index: {}]   ;;  %s1585_s3 = inlined_call_operand.vmem [shape: bf16[8,512], index: 3, kind: output, shape index: {}]  }
   0x1   :  { %s1323_s14 = smov 0   ;;  %s1325_s15 = smov 0  }
   0x2   :  { %s1327_s16 = smov 0   ;;  %s1329_s17 = smov 0  }
   0x3   :  { %s1331_s18 = smov 0  }
   0x4 LB: > { %s25_s19 = sadd.s32 1, %s1287_s16  ;;  %s28_s20 = sadd.s32 1, %s1291_s17  ;;  %s1295_s18 = sphi %s1331_s18, %s13_s18   ;;  %s1291_s17 = sphi %s1329_s17, %s1591_s17   ;;  %s1287_s16 = sphi %s1327_s16, %s1590_s16   ;;  %s1283_s15 = sphi %s1325_s15, %s1589_s15   ;;  %s1279_s14 = sphi %s1323_s14, %s1588_s14   ;;  %s1275_s13 = sphi %s1321_s13, %s1587_s13   ;;  %s1271_s12 = sphi %s1319_s12, %s1586_s12  }
   0x5   : > { %p26_p0 = scmp.ge.s32.totalorder %s25_s19, 6  ;;  %p76_p1 = scmp.ne.s32.totalorder %s1275_s13, %s1271_s12 }
   0x6   : > { %p77_p2 = scmp.eq.s32.totalorder %s1295_s18, 0  ;;  %s69_s24 = sadd.s32 1, %s1275_s13 }
   0x7   : > { %s1593_s19 = smov (%p26_p0, %s25_s19), 0  ;;  %s1595_s20 = smov (!%p26_p0, %s28_s20), %s1291_s17 }
   0x8   : > { %p78_p3 = por %p77_p2, %p76_p1  ;;  %p30_p4 = scmp.ge.s32.totalorder %s1595_s20, 2 }
   0x9   : > { %s64_s21 = ssub.s32 %s1287_s16, %s1593_s19  ;;  %p1039_p6 = scmp.ge.s32.totalorder %s1295_s18, 12 }
   0xa   : > { %s1597_s20 = smov (%p30_p4, %s1595_s20), 0 }
   0xb   : > { %s65_s22 = ssub.s32 %s1291_s17, %s1597_s20  ;;  %156 = sbr.rel (%p1039_p6) target bundleno = 50 (0x32), region = 16 }
   0xc   : > { %s66_s23 = sor.u32 %s65_s22, %s64_s21 }
   0xd   : > { %p67_p5 = scmp.eq.s32.totalorder %s66_s23, 0 }
   0xf   : > { %s1370_s25 = scalar_select %p67_p5, %s1275_s13, %s69_s24  }
  0x12   : > { %172 = sbr.rel (!%p78_p3) target bundleno = 50 (0x32), region = 24  ;;  %s174_s26 = sand.u32 (%p78_p3), 1, %s1275_s13  }
  0x13   : > { %s1106_s27 = smul.u32 (%p78_p3), 384, %s174_s26  ;;  %s1040_s28 = sshll.u32 (%p78_p3), %s1291_s17, 1 }
  0x14   : > { %s1104_s29 = smul.u32 (%p78_p3), 192, %s1287_s16 }
  0x15   : > { %s1384_s8 = scalar_lea.vmem (%p78_p3), [#allocation3], %s1106_s27 }
  0x16   : > { %s180_s30 = sadd.s32 (%p78_p3), %s1104_s29, %s1040_s28 }
  0x17   : > { %s1042_s4 = sshll.u32 (%p78_p3), %s180_s30, 2 }
  0x18   : > { %s1379_s7 = scalar_lea.vmem (%p78_p3), %s1583_s1, %s1042_s4 }
  0x19   : > { %v304_v0 = vld [vmem:[%s1379_s7] sm:$0xff]  ;;  %v306_v1 = vld [vmem:[%s1379_s7 + $0x10] sm:$0xff] }
  0x1a   : > { %v308_v2 = vld [vmem:[%s1379_s7 + $0x20] sm:$0xff]  ;;  %305 = vst [vmem:[%s1384_s8] sm:$0xff] %v304_v0  ;;  %307 = vst [vmem:[%s1384_s8 + $0x8] sm:$0xff] %v306_v1  ;;  %v310_v3 = vld [vmem:[%s1379_s7 + $0x30] sm:$0xff] }
  0x1b   : > { %309 = vst [vmem:[%s1384_s8 + $0x10] sm:$0xff] %v308_v2  ;;  %v312_v4 = vld [vmem:[%s1379_s7 + $0x40] sm:$0xff]  ;;  %v314_v5 = vld [vmem:[%s1379_s7 + $0x50] sm:$0xff]  ;;  %311 = vst [vmem:[%s1384_s8 + $0x18] sm:$0xff] %v310_v3 }
  0x1c   : > { %313 = vst [vmem:[%s1384_s8 + $0x20] sm:$0xff] %v312_v4  ;;  %315 = vst [vmem:[%s1384_s8 + $0x28] sm:$0xff] %v314_v5  ;;  %v316_v6 = vld [vmem:[%s1379_s7 + $0x60] sm:$0xff]  ;;  %v318_v7 = vld [vmem:[%s1379_s7 + $0x70] sm:$0xff] }
  0x1d   : > { %v320_v8 = vld [vmem:[%s1379_s7 + $0x80] sm:$0xff]  ;;  %317 = vst [vmem:[%s1384_s8 + $0x30] sm:$0xff] %v316_v6  ;;  %319 = vst [vmem:[%s1384_s8 + $0x38] sm:$0xff] %v318_v7  ;;  %v322_v9 = vld [vmem:[%s1379_s7 + $0x90] sm:$0xff] }
  0x1e   : > { %321 = vst [vmem:[%s1384_s8 + $0x40] sm:$0xff] %v320_v8  ;;  %v324_v10 = vld [vmem:[%s1379_s7 + $0xa0] sm:$0xff]  ;;  %v326_v11 = vld [vmem:[%s1379_s7 + $0xb0] sm:$0xff]  ;;  %323 = vst [vmem:[%s1384_s8 + $0x48] sm:$0xff] %v322_v9 }
  0x1f   : > { %325 = vst [vmem:[%s1384_s8 + $0x50] sm:$0xff] %v324_v10  ;;  %327 = vst [vmem:[%s1384_s8 + $0x58] sm:$0xff] %v326_v11  ;;  %v328_v12 = vld [vmem:[%s1379_s7 + $0xc0] sm:$0xff]  ;;  %v330_v13 = vld [vmem:[%s1379_s7 + $0xd0] sm:$0xff] }
  0x20   : > { %v332_v14 = vld [vmem:[%s1379_s7 + $0xe0] sm:$0xff]  ;;  %329 = vst [vmem:[%s1384_s8 + $0x60] sm:$0xff] %v328_v12  ;;  %331 = vst [vmem:[%s1384_s8 + $0x68] sm:$0xff] %v330_v13  ;;  %v334_v15 = vld [vmem:[%s1379_s7 + $0xf0] sm:$0xff] }
  0x21   : > { %333 = vst [vmem:[%s1384_s8 + $0x70] sm:$0xff] %v332_v14  ;;  %v336_v16 = vld [vmem:[%s1379_s7 + $0x100] sm:$0xff]  ;;  %v338_v17 = vld [vmem:[%s1379_s7 + $0x110] sm:$0xff]  ;;  %335 = vst [vmem:[%s1384_s8 + $0x78] sm:$0xff] %v334_v15 }
  0x22   : > { %337 = vst [vmem:[%s1384_s8 + $0x80] sm:$0xff] %v336_v16  ;;  %339 = vst [vmem:[%s1384_s8 + $0x88] sm:$0xff] %v338_v17  ;;  %v340_v18 = vld [vmem:[%s1379_s7 + $0x120] sm:$0xff]  ;;  %v342_v19 = vld [vmem:[%s1379_s7 + $0x130] sm:$0xff] }
  0x23   : > { %v344_v20 = vld [vmem:[%s1379_s7 + $0x140] sm:$0xff]  ;;  %341 = vst [vmem:[%s1384_s8 + $0x90] sm:$0xff] %v340_v18  ;;  %343 = vst [vmem:[%s1384_s8 + $0x98] sm:$0xff] %v342_v19  ;;  %v346_v21 = vld [vmem:[%s1379_s7 + $0x150] sm:$0xff] }
  0x24   : > { %345 = vst [vmem:[%s1384_s8 + $0xa0] sm:$0xff] %v344_v20  ;;  %v348_v22 = vld [vmem:[%s1379_s7 + $0x160] sm:$0xff]  ;;  %v350_v23 = vld [vmem:[%s1379_s7 + $0x170] sm:$0xff]  ;;  %347 = vst [vmem:[%s1384_s8 + $0xa8] sm:$0xff] %v346_v21 }
  0x25   : > { %349 = vst [vmem:[%s1384_s8 + $0xb0] sm:$0xff] %v348_v22  ;;  %351 = vst [vmem:[%s1384_s8 + $0xb8] sm:$0xff] %v350_v23  ;;  %v352_v24 = vld [vmem:[%s1379_s7 + $0x180] sm:$0xff]  ;;  %v354_v25 = vld [vmem:[%s1379_s7 + $0x190] sm:$0xff] }
  0x26   : > { %v356_v26 = vld [vmem:[%s1379_s7 + $0x1a0] sm:$0xff]  ;;  %353 = vst [vmem:[%s1384_s8 + $0xc0] sm:$0xff] %v352_v24  ;;  %355 = vst [vmem:[%s1384_s8 + $0xc8] sm:$0xff] %v354_v25  ;;  %v358_v27 = vld [vmem:[%s1379_s7 + $0x1b0] sm:$0xff] }
  0x27   : > { %357 = vst [vmem:[%s1384_s8 + $0xd0] sm:$0xff] %v356_v26  ;;  %v360_v28 = vld [vmem:[%s1379_s7 + $0x1c0] sm:$0xff]  ;;  %v362_v29 = vld [vmem:[%s1379_s7 + $0x1d0] sm:$0xff]  ;;  %359 = vst [vmem:[%s1384_s8 + $0xd8] sm:$0xff] %v358_v27 }
  0x28   : > { %361 = vst [vmem:[%s1384_s8 + $0xe0] sm:$0xff] %v360_v28  ;;  %363 = vst [vmem:[%s1384_s8 + $0xe8] sm:$0xff] %v362_v29  ;;  %v364_v30 = vld [vmem:[%s1379_s7 + $0x1e0] sm:$0xff]  ;;  %v366_v31 = vld [vmem:[%s1379_s7 + $0x1f0] sm:$0xff] }
  0x29   : > { %v368_v32 = vld [vmem:[%s1379_s7 + $0x200] sm:$0xff]  ;;  %365 = vst [vmem:[%s1384_s8 + $0xf0] sm:$0xff] %v364_v30  ;;  %367 = vst [vmem:[%s1384_s8 + $0xf8] sm:$0xff] %v366_v31  ;;  %v370_v33 = vld [vmem:[%s1379_s7 + $0x210] sm:$0xff] }
  0x2a   : > { %369 = vst [vmem:[%s1384_s8 + $0x100] sm:$0xff] %v368_v32  ;;  %v372_v34 = vld [vmem:[%s1379_s7 + $0x220] sm:$0xff]  ;;  %v374_v35 = vld [vmem:[%s1379_s7 + $0x230] sm:$0xff]  ;;  %371 = vst [vmem:[%s1384_s8 + $0x108] sm:$0xff] %v370_v33 }
  0x2b   : > { %373 = vst [vmem:[%s1384_s8 + $0x110] sm:$0xff] %v372_v34  ;;  %375 = vst [vmem:[%s1384_s8 + $0x118] sm:$0xff] %v374_v35  ;;  %v376_v36 = vld [vmem:[%s1379_s7 + $0x240] sm:$0xff]  ;;  %v378_v37 = vld [vmem:[%s1379_s7 + $0x250] sm:$0xff] }
  0x2c   : > { %v380_v38 = vld [vmem:[%s1379_s7 + $0x260] sm:$0xff]  ;;  %377 = vst [vmem:[%s1384_s8 + $0x120] sm:$0xff] %v376_v36  ;;  %379 = vst [vmem:[%s1384_s8 + $0x128] sm:$0xff] %v378_v37  ;;  %v382_v39 = vld [vmem:[%s1379_s7 + $0x270] sm:$0xff] }
  0x2d   : > { %381 = vst [vmem:[%s1384_s8 + $0x130] sm:$0xff] %v380_v38  ;;  %v384_v40 = vld [vmem:[%s1379_s7 + $0x280] sm:$0xff]  ;;  %v386_v41 = vld [vmem:[%s1379_s7 + $0x290] sm:$0xff]  ;;  %383 = vst [vmem:[%s1384_s8 + $0x138] sm:$0xff] %v382_v39 }
  0x2e   : > { %385 = vst [vmem:[%s1384_s8 + $0x140] sm:$0xff] %v384_v40  ;;  %387 = vst [vmem:[%s1384_s8 + $0x148] sm:$0xff] %v386_v41  ;;  %v388_v42 = vld [vmem:[%s1379_s7 + $0x2a0] sm:$0xff]  ;;  %v390_v43 = vld [vmem:[%s1379_s7 + $0x2b0] sm:$0xff] }
  0x2f   : > { %v392_v44 = vld [vmem:[%s1379_s7 + $0x2c0] sm:$0xff]  ;;  %389 = vst [vmem:[%s1384_s8 + $0x150] sm:$0xff] %v388_v42  ;;  %391 = vst [vmem:[%s1384_s8 + $0x158] sm:$0xff] %v390_v43  ;;  %v394_v45 = vld [vmem:[%s1379_s7 + $0x2d0] sm:$0xff] }
  0x30   : > { %393 = vst [vmem:[%s1384_s8 + $0x160] sm:$0xff] %v392_v44  ;;  %v396_v46 = vld [vmem:[%s1379_s7 + $0x2e0] sm:$0xff]  ;;  %v398_v47 = vld [vmem:[%s1379_s7 + $0x2f0] sm:$0xff]  ;;  %395 = vst [vmem:[%s1384_s8 + $0x168] sm:$0xff] %v394_v45 }
  0x31   : > { %397 = vst [vmem:[%s1384_s8 + $0x170] sm:$0xff] %v396_v46  ;;  %399 = vst [vmem:[%s1384_s8 + $0x178] sm:$0xff] %v398_v47 }
  0x32 PF: > { %p1043_p7 = scmp.ge.s32.totalorder %s1295_s18, 1  ;;  %p412_p8 = scmp.lt.s32.totalorder %s1295_s18, 13 }
  0x34   : > { %p413_p9 = pnand %p1043_p7, %p412_p8 }
  0x35   : > { %s419_s9 = sand.u32 (!%p413_p9), 1, %s1271_s12   ;;  %s459_s10 = smul.u32 (!%p413_p9), 3, %s1279_s14 }
  0x36   : > { %416 = sbr.rel (%p413_p9) target bundleno = 368 (0x170), region = 66  ;;  %s1045_s21 = sshll.u32 (!%p413_p9), %s1283_s15, 1 }
  0x37   : > { %s1107_s11 = smul.u32 (!%p413_p9), 384, %s419_s9  ;;  %p462_p10 = scmp.lt.s32.totalorder (!%p413_p9), %s459_s10, 17 }
  0x38   : > { %p472_p11 = scmp.lt.s32.totalorder (!%p413_p9), %s1045_s21, 3  ;;  %p1048_p12 = scmp.ne.s32.totalorder (!%p413_p9), %s1279_s14, 0 }
  0x39   : > { %s1501_s5 = scalar_lea.vmem (!%p413_p9), [#allocation3], %s1107_s11 }
  0x3d   : > { %s1599_s10 = smov (!%p462_p10, %s459_s10), 17  ;;  %s1601_s21 = smov (!%p472_p11, %s1045_s21), 3 }
  0x3e   : > { %s1044_s22 = sshll.u32 %s1599_s10, 2  ;;  %s474_s12 = scalar_lea.vmem %s1584_s2, %s1601_s21  ;;  %v1297_v48 = vmov (!%p1048_p12), 0.0  }
  0x3f   : > { %s1489_s26 = scalar_lea.vmem %s1582_s0, %s1044_s22  ;;  %s1047_s29 = sshll.u32 %s1601_s21, 2  ;;  %491 = vst [vmem:[#allocation2] sm:$0xff] (!%p1048_p12), %v1297_v48  ;;  %492 = vst [vmem:[#allocation2 + $0x8] sm:$0xff] (!%p1048_p12), %v1297_v48 }
  0x40   : > { %s1499_s4 = scalar_lea.vmem %s1585_s3, %s1047_s29  ;;  %490 = sbr.rel (%p1048_p12) target bundleno = 71 (0x47), region = 74 }
  0x47 PF: > { %v1166_v49 = vld [vmem:[%s1501_s5 + $0x4] ss:$8 sps:$4 sm:$0xff]   ;;  %v1168_v50 = vld [vmem:[%s1501_s5] ss:$8 sps:$4 sm:$0xff]   ;;  %v1298_v51 = vmov 0   ;;  %v495_v18 = vld [vmem:[%s1489_s26] sm:$0xff] }
  0x48   : > { %869 = vmatprep.mubr.bf16.mxu1 %v1298_v51  ;;  %796 = vmatprep.subr.bf16.mxu0 %v1166_v49  ;;  %v1169_v52 = vld [vmem:[%s1501_s5 + $0x14] ss:$8 sps:$4 sm:$0xff]   ;;  %v1171_v53 = vld [vmem:[%s1501_s5 + $0x10] ss:$8 sps:$4 sm:$0xff]   ;;  %v1172_v54 = vld [vmem:[%s1501_s5 + $0x24] ss:$8 sps:$4 sm:$0xff]   ;;  %v1050_v19 = vcombine.high %v495_v18, %v495_v18  ;;  %v1049_v37 = vcombine.low %v495_v18, %v495_v18 }
  0x49   : > { %797 = vmatpush1.bf16.msra.mxu0 %v1168_v50  ;;  %v1174_v55 = vld [vmem:[%s1501_s5 + $0x20] ss:$8 sps:$4 sm:$0xff]   ;;  %v1175_v56 = vld [vmem:[%s1501_s5 + $0x34] ss:$8 sps:$4 sm:$0xff]   ;;  %v1177_v57 = vld [vmem:[%s1501_s5 + $0x30] ss:$8 sps:$4 sm:$0xff]  }
  0x4a   : > { %798 = vmatprep.subr.bf16.mxu0 %v1169_v52  ;;  %v1190_v58 = vld [vmem:[%s1501_s5 + $0x104] ss:$8 sps:$4 sm:$0xff]   ;;  %v1192_v59 = vld [vmem:[%s1501_s5 + $0x100] ss:$8 sps:$4 sm:$0xff]   ;;  %v1196_v61 = vld [vmem:[%s1501_s5 + $0x114] ss:$8 sps:$4 sm:$0xff]   ;;  %828 = vmatprep.mubr.bf16.mxu0 %v1050_v19 }
  0x4b   : > { %v1178_v60 = vld [vmem:[%s1501_s5 + $0x44] ss:$8 sps:$4 sm:$0xff]   ;;  %837 = vmatprep.subr.bf16.mxu1 %v1190_v58  ;;  %v1198_v62 = vld [vmem:[%s1501_s5 + $0x110] ss:$8 sps:$4 sm:$0xff]   ;;  %v1180_v63 = vld [vmem:[%s1501_s5 + $0x40] ss:$8 sps:$4 sm:$0xff]  }
  0x4c   : > { %838 = vmatpush1.bf16.msra.mxu1 %v1192_v59  ;;  %v1181_v0 = vld [vmem:[%s1501_s5 + $0x54] ss:$8 sps:$4 sm:$0xff]   ;;  %v1202_v1 = vld [vmem:[%s1501_s5 + $0x124] ss:$8 sps:$4 sm:$0xff]   ;;  %v1204_v2 = vld [vmem:[%s1501_s5 + $0x120] ss:$8 sps:$4 sm:$0xff]  }
  0x4d   : > { %799 = vmatpush1.bf16.msra.mxu0 %v1171_v53  ;;  %839 = vmatprep.subr.bf16.mxu1 %v1196_v61  ;;  %v1183_v3 = vld [vmem:[%s1501_s5 + $0x50] ss:$8 sps:$4 sm:$0xff]   ;;  %v1208_v4 = vld [vmem:[%s1501_s5 + $0x134] ss:$8 sps:$4 sm:$0xff]   ;;  %v1184_v5 = vld [vmem:[%s1501_s5 + $0x64] ss:$8 sps:$4 sm:$0xff]  }
  0x4e   : > { %800 = vmatprep.subr.bf16.mxu0 %v1172_v54  ;;  %v1210_v6 = vld [vmem:[%s1501_s5 + $0x130] ss:$8 sps:$4 sm:$0xff]   ;;  %v1186_v7 = vld [vmem:[%s1501_s5 + $0x60] ss:$8 sps:$4 sm:$0xff]   ;;  %v1214_v8 = vld [vmem:[%s1501_s5 + $0x144] ss:$8 sps:$4 sm:$0xff]  }
  0x4f   : > { %v1187_v9 = vld [vmem:[%s1501_s5 + $0x74] ss:$8 sps:$4 sm:$0xff]   ;;  %v1216_v10 = vld [vmem:[%s1501_s5 + $0x140] ss:$8 sps:$4 sm:$0xff]   ;;  %v1189_v11 = vld [vmem:[%s1501_s5 + $0x70] ss:$8 sps:$4 sm:$0xff]  }
  0x50   : > { %840 = vmatpush1.bf16.msra.mxu1 %v1198_v62  ;;  %v1220_v12 = vld [vmem:[%s1501_s5 + $0x154] ss:$8 sps:$4 sm:$0xff]   ;;  %v1193_v13 = vld [vmem:[%s1501_s5 + $0x84] ss:$8 sps:$4 sm:$0xff]   ;;  %v1222_v14 = vld [vmem:[%s1501_s5 + $0x150] ss:$8 sps:$4 sm:$0xff]  }
  0x51   : > { %801 = vmatpush1.bf16.msra.mxu0 %v1174_v55  ;;  %841 = vmatprep.subr.bf16.mxu1 %v1202_v1  ;;  %v1195_v15 = vld [vmem:[%s1501_s5 + $0x80] ss:$8 sps:$4 sm:$0xff]   ;;  %v1226_v16 = vld [vmem:[%s1501_s5 + $0x164] ss:$8 sps:$4 sm:$0xff]   ;;  %v1199_v17 = vld [vmem:[%s1501_s5 + $0x94] ss:$8 sps:$4 sm:$0xff]  }
  0x52   : > { %802 = vmatprep.subr.bf16.mxu0 %v1175_v56  ;;  %v1228_v20 = vld [vmem:[%s1501_s5 + $0x160] ss:$8 sps:$4 sm:$0xff]   ;;  %v1201_v21 = vld [vmem:[%s1501_s5 + $0x90] ss:$8 sps:$4 sm:$0xff]   ;;  %v1232_v22 = vld [vmem:[%s1501_s5 + $0x174] ss:$8 sps:$4 sm:$0xff]  }
  0x53   : > { %v1205_v23 = vld [vmem:[%s1501_s5 + $0xa4] ss:$8 sps:$4 sm:$0xff]   ;;  %v1234_v24 = vld [vmem:[%s1501_s5 + $0x170] ss:$8 sps:$4 sm:$0xff]   ;;  %v1207_v25 = vld [vmem:[%s1501_s5 + $0xa0] ss:$8 sps:$4 sm:$0xff]  }
  0x54   : > { %842 = vmatpush1.bf16.msra.mxu1 %v1204_v2  ;;  %v1211_v26 = vld [vmem:[%s1501_s5 + $0xb4] ss:$8 sps:$4 sm:$0xff]   ;;  %v1238_v27 = vld [vmem:[%s1489_s26 + $0x8] ss:$0 sps:$4 sm:$0xff]   ;;  %v1217_v29 = vld [vmem:[%s1501_s5 + $0xc4] ss:$8 sps:$4 sm:$0xff]  }
  0x55   : > { %803 = vmatpush1.bf16.msra.mxu0 %v1177_v57  ;;  %843 = vmatprep.subr.bf16.mxu1 %v1208_v4  ;;  %v1213_v28 = vld [vmem:[%s1501_s5 + $0xb0] ss:$8 sps:$4 sm:$0xff]   ;;  %v1219_v30 = vld [vmem:[%s1501_s5 + $0xc0] ss:$8 sps:$4 sm:$0xff]   ;;  %v1223_v31 = vld [vmem:[%s1501_s5 + $0xd4] ss:$8 sps:$4 sm:$0xff]  }
  0x56   : > { %804 = vmatprep.subr.bf16.mxu0 %v1178_v60  ;;  %v1225_v32 = vld [vmem:[%s1501_s5 + $0xd0] ss:$8 sps:$4 sm:$0xff]   ;;  %v1229_v33 = vld [vmem:[%s1501_s5 + $0xe4] ss:$8 sps:$4 sm:$0xff]   ;;  %v1231_v34 = vld [vmem:[%s1501_s5 + $0xe0] ss:$8 sps:$4 sm:$0xff]  }
  0x57   : > { %v1235_v35 = vld [vmem:[%s1501_s5 + $0xf4] ss:$8 sps:$4 sm:$0xff]   ;;  %v1237_v36 = vld [vmem:[%s1501_s5 + $0xf0] ss:$8 sps:$4 sm:$0xff]   ;;  %p1100_p13 = scmp.ne.s32.totalorder %s1279_s14, 5 }
  0x58   : > { %844 = vmatpush1.bf16.msra.mxu1 %v1210_v6  ;;  %v493_v42 = vld [vmem:[#allocation2] sm:$0xff]  ;;  %v494_v45 = vld [vmem:[#allocation2 + $0x8] sm:$0xff]  ;;  %v890_v52 = vlaneseq (!%p1100_p13) }
  0x59   : > { %805 = vmatpush1.bf16.msra.mxu0 %v1180_v63  ;;  %845 = vmatprep.subr.bf16.mxu1 %v1214_v8  ;;  %v888_v54 = vld [vmem:[%s474_s12] sm:$0x3] (!%p1100_p13) }
  0x5a   : > { %806 = vmatprep.subr.bf16.mxu0 %v1181_v0  ;;  %v891_v53 = vshrl.u32 (!%p1100_p13), %v890_v52, 7 }
  0x5c   : > { %846 = vmatpush1.bf16.msra.mxu1 %v1216_v10  ;;  %v892_v55 = vsub.s32 (!%p1100_p13), 0, %v891_v53  ;;  %v896_v56 = vsub.s32 (!%p1100_p13), 1, %v891_v53 }
  0x5d   : > { %807 = vmatpush1.bf16.msra.mxu0 %v1183_v3  ;;  %847 = vmatprep.subr.bf16.mxu1 %v1220_v12 }
  0x5e   : > { %808 = vmatprep.subr.bf16.mxu0 %v1184_v5  ;;  %v893_v59 = vrot.slane (!%p1100_p13), %v888_v54, %v892_v55  ;;  %v897_v60 = vrot.slane (!%p1100_p13), %v888_v54, %v896_v56 }
  0x60   : > { %848 = vmatpush1.bf16.msra.mxu1 %v1222_v14 }
  0x61   : > { %809 = vmatpush1.bf16.msra.mxu0 %v1186_v7  ;;  %849 = vmatprep.subr.bf16.mxu1 %v1226_v16 }
  0x62   : > { %810 = vmatprep.subr.bf16.mxu0 %v1187_v9 }
  0x64   : > { %850 = vmatpush1.bf16.msra.mxu1 %v1228_v20 }
  0x65   : > { %811 = vmatpush1.bf16.msra.mxu0 %v1189_v11  ;;  %851 = vmatprep.subr.bf16.mxu1 %v1232_v22 }
  0x66   : > { %812 = vmatprep.subr.bf16.mxu0 %v1193_v13 }
  0x68   : > { %852 = vmatpush1.bf16.msra.mxu1 %v1234_v24 }
  0x69   : > { %813 = vmatpush1.bf16.msra.mxu0 %v1195_v15 }
  0x6a   : > { %814 = vmatprep.subr.bf16.mxu0 %v1199_v17 }
  0x6b   : > { %870 = vmatmul.mubr.bf16.vlgmr.msra.gmra.mrb[0].mxu1 %v1238_v27 }
  0x6d   : > { %815 = vmatpush1.bf16.msra.mxu0 %v1201_v21 }
  0x6e   : > { %816 = vmatprep.subr.bf16.mxu0 %v1205_v23 }
  0x71   : > { %817 = vmatpush1.bf16.msra.mxu0 %v1207_v25 }
  0x72   : > { %818 = vmatprep.subr.bf16.mxu0 %v1211_v26 }
  0x75   : > { %819 = vmatpush1.bf16.msra.mxu0 %v1213_v28 }
  0x76   : > { %820 = vmatprep.subr.bf16.mxu0 %v1217_v29 }
  0x79   : > { %821 = vmatpush1.bf16.msra.mxu0 %v1219_v30 }
  0x7a   : > { %822 = vmatprep.subr.bf16.mxu0 %v1223_v31 }
  0x7d   : > { %823 = vmatpush1.bf16.msra.mxu0 %v1225_v32 }
  0x7e   : > { %824 = vmatprep.subr.bf16.mxu0 %v1229_v33 }
  0x81   : > { %825 = vmatpush1.bf16.msra.mxu0 %v1231_v34 }
  0x82   : > { %826 = vmatprep.subr.bf16.mxu0 %v1235_v35 }
  0x85   : > { %827 = vmatpush1.bf16.msra.mxu0 %v1237_v36 }
  0x88   : > { %829 = vmatmul.mubr.bf16.vlgmr.msra.gmra.mrb[0].mxu0 %v1049_v37 }
 0x13e   : > { %v871_v38 = vpop.f32.mrb[0].mxu1 }
 0x13f   : > { %v873_v39 = vpop.f32.mrb[1].mxu1 }
 0x140   : > { %v875_v40 = vpop.f32.mrb[2].mxu1 }
 0x141   : > { %v876_v41 = vpop.f32.mrb[3].mxu1 }
 0x15b   : > { %v830_v43 = vpop.f32.mrb[0].mxu0  ;;  %885 = sbr.rel (%p1100_p13) target bundleno = 368 (0x170), region = 78 }
 0x15c   : > { %v872_v44 = vadd.f32 %v871_v38, %v830_v43  ;;  %v832_v46 = vpop.f32.mrb[1].mxu0 }
 0x15d   : > { %v874_v47 = vadd.f32 %v873_v39, %v832_v46  ;;  %v834_v48 = vpop.f32.mrb[2].mxu0 }
 0x15e   : > { %v878_v49 = vadd.f32 %v872_v44, %v493_v42  ;;  %v835_v50 = vpop.f32.mrb[3].mxu0 }
 0x15f   : > { %v879_v51 = vadd.f32 %v874_v47, %v494_v45 }
 0x160   : > { %880 = vst [vmem:[#allocation2] sm:$0xff] %v878_v49 }
 0x161   : > { %881 = vst [vmem:[#allocation2 + $0x8] sm:$0xff] %v879_v51 }
 0x167   : > { %v886_v57 = vld [vmem:[#allocation2] sm:$0xff] }
 0x168   : > { %v887_v58 = vld [vmem:[#allocation2 + $0x8] sm:$0xff]  ;;  %v900_v61 = vadd.f32 %v893_v59, %v886_v57 }
 0x169   : > { %v901_v62 = vadd.f32 %v897_v60, %v887_v58 }
 0x16a   : > { %v902_v63 = vmax.f32 %v900_v61, 0.0 }
 0x16b   : > { %v903_v0 = vmax.f32 %v901_v62, 0.0 }
 0x16d   : > { %v1105_v1 = vpack.c.bf16 %v903_v0, %v902_v63 }
 0x16f   : > { %912 = vst [vmem:[%s1499_s4] sm:$0xff] %v1105_v1 }
 0x170 PF: > { %s13_s18 = sadd.s32 1, %s1295_s18   ;;  %s1586_s12 = smov %s1275_s13 }
 0x171   : > { %p10_p0 = scmp.ge.s32.totalorder %s13_s18, 14   ;;  %s1587_s13 = smov %s1370_s25 }
 0x172   : > { %s1588_s14 = smov %s1287_s16  ;;  %s1589_s15 = smov %s1291_s17 }
 0x173   : > { %s1590_s16 = smov %s1593_s19  ;;  %s1591_s17 = smov %s1597_s20 }
 0x174   :  { %12 = sbr.rel (!%p10_p0) target bundleno = 4 (0x4), region = 119 }

// kernel: _lambda_.40
= control target key start
LH: loop header
LB: loop body
LE: loop exit
PB: predicated region body
PF: predicated region fallthrough
CT: control target
= control target key end

     0   :  { %s1028_s12 = smov 0   ;;  %s1030_s13 = smov 0   ;;  %s1207_s0 = inlined_call_operand.vmem [shape: bf16[8,256], index: 0, kind: input, shape index: {}]   ;;  %s1208_s1 = inlined_call_operand.vmem [shape: bf16[256,512], index: 1, kind: input, shape index: {}]   ;;  %s1209_s2 = inlined_call_operand.vmem [shape: f32[1,512], index: 2, kind: input, shape index: {}]   ;;  %s1210_s3 = inlined_call_operand.vmem [shape: bf16[8,512], index: 3, kind: output, shape index: {}]  }
   0x1   :  { %s1032_s14 = smov 0   ;;  %s1034_s15 = smov 0  }
   0x2   :  { %s1036_s16 = smov 0  }
   0x3 LB: > { %s28_s17 = sadd.s32 1, %s1002_s15  ;;  %p76_p1 = scmp.ne.s32.totalorder %s994_s13, %s990_s12  ;;  %s1006_s16 = sphi %s1036_s16, %s13_s16   ;;  %s1002_s15 = sphi %s1034_s15, %s1214_s15   ;;  %s998_s14 = sphi %s1032_s14, %s1213_s14   ;;  %s994_s13 = sphi %s1030_s13, %s1212_s13   ;;  %s990_s12 = sphi %s1028_s12, %s1211_s12  }
   0x4   : > { %p30_p0 = scmp.ge.s32.totalorder %s28_s17, 2  ;;  %p77_p2 = scmp.eq.s32.totalorder %s1006_s16, 0 }
   0x5   : > { %s69_s19 = sadd.s32 1, %s994_s13  ;;  %p830_p5 = scmp.ge.s32.totalorder %s1006_s16, 2 }
   0x6   : > { %s1216_s17 = smov (%p30_p0, %s28_s17), 0  ;;  %p78_p3 = por %p77_p2, %p76_p1 }
   0x7   : > { %s65_s18 = ssub.s32 %s1002_s15, %s1216_s17  ;;  %169 = sbr.rel (%p830_p5) target bundleno = 34 (0x22), region = 20 }
   0x8   : > { %p67_p4 = scmp.eq.s32.totalorder %s65_s18, 0 }
   0xa   : > { %s1063_s20 = scalar_select %p67_p4, %s994_s13, %s69_s19  }
   0xe   : > { %172 = sbr.rel (!%p78_p3) target bundleno = 34 (0x22), region = 24  ;;  %s174_s21 = sand.u32 (%p78_p3), 1, %s994_s13  }
   0xf   : > { %s876_s22 = sshll.u32 (%p78_p3), %s1002_s15, 3  ;;  %s831_s23 = sshll.u32 (%p78_p3), %s174_s21, 8 }
  0x10   : > { %s1071_s26 = scalar_lea.vmem (%p78_p3), %s1208_s1, %s876_s22  ;;  %s1076_s27 = scalar_lea.vmem (%p78_p3), [#allocation3], %s831_s23 }
  0x11   : > { %v272_v0 = vld [vmem:[%s1071_s26] sm:$0xff] (%p78_p3)  ;;  %v274_v1 = vld [vmem:[%s1071_s26 + $0x10] sm:$0xff] (%p78_p3) }
  0x12   : > { %v276_v2 = vld [vmem:[%s1071_s26 + $0x20] sm:$0xff] (%p78_p3)  ;;  %273 = vst [vmem:[%s1076_s27] sm:$0xff] (%p78_p3), %v272_v0  ;;  %275 = vst [vmem:[%s1076_s27 + $0x8] sm:$0xff] (%p78_p3), %v274_v1  ;;  %v278_v3 = vld [vmem:[%s1071_s26 + $0x30] sm:$0xff] (%p78_p3) }
  0x13   : > { %277 = vst [vmem:[%s1076_s27 + $0x10] sm:$0xff] (%p78_p3), %v276_v2  ;;  %v280_v4 = vld [vmem:[%s1071_s26 + $0x40] sm:$0xff] (%p78_p3)  ;;  %v282_v5 = vld [vmem:[%s1071_s26 + $0x50] sm:$0xff] (%p78_p3)  ;;  %279 = vst [vmem:[%s1076_s27 + $0x18] sm:$0xff] (%p78_p3), %v278_v3 }
  0x14   : > { %281 = vst [vmem:[%s1076_s27 + $0x20] sm:$0xff] (%p78_p3), %v280_v4  ;;  %283 = vst [vmem:[%s1076_s27 + $0x28] sm:$0xff] (%p78_p3), %v282_v5  ;;  %v284_v6 = vld [vmem:[%s1071_s26 + $0x60] sm:$0xff] (%p78_p3)  ;;  %v286_v7 = vld [vmem:[%s1071_s26 + $0x70] sm:$0xff] (%p78_p3) }
  0x15   : > { %v288_v8 = vld [vmem:[%s1071_s26 + $0x80] sm:$0xff]  ;;  %285 = vst [vmem:[%s1076_s27 + $0x30] sm:$0xff] %v284_v6  ;;  %287 = vst [vmem:[%s1076_s27 + $0x38] sm:$0xff] %v286_v7  ;;  %v290_v9 = vld [vmem:[%s1071_s26 + $0x90] sm:$0xff] }
  0x16   : > { %289 = vst [vmem:[%s1076_s27 + $0x40] sm:$0xff] %v288_v8  ;;  %v292_v10 = vld [vmem:[%s1071_s26 + $0xa0] sm:$0xff]  ;;  %v294_v11 = vld [vmem:[%s1071_s26 + $0xb0] sm:$0xff]  ;;  %291 = vst [vmem:[%s1076_s27 + $0x48] sm:$0xff] %v290_v9 }
  0x17   : > { %293 = vst [vmem:[%s1076_s27 + $0x50] sm:$0xff] %v292_v10  ;;  %295 = vst [vmem:[%s1076_s27 + $0x58] sm:$0xff] %v294_v11  ;;  %v296_v12 = vld [vmem:[%s1071_s26 + $0xc0] sm:$0xff]  ;;  %v298_v13 = vld [vmem:[%s1071_s26 + $0xd0] sm:$0xff] }
  0x18   : > { %v300_v14 = vld [vmem:[%s1071_s26 + $0xe0] sm:$0xff]  ;;  %297 = vst [vmem:[%s1076_s27 + $0x60] sm:$0xff] %v296_v12  ;;  %299 = vst [vmem:[%s1076_s27 + $0x68] sm:$0xff] %v298_v13  ;;  %v302_v15 = vld [vmem:[%s1071_s26 + $0xf0] sm:$0xff] }
  0x19   : > { %301 = vst [vmem:[%s1076_s27 + $0x70] sm:$0xff] %v300_v14  ;;  %v304_v16 = vld [vmem:[%s1071_s26 + $0x100] sm:$0xff]  ;;  %v306_v17 = vld [vmem:[%s1071_s26 + $0x110] sm:$0xff]  ;;  %303 = vst [vmem:[%s1076_s27 + $0x78] sm:$0xff] %v302_v15 }
  0x1a   : > { %305 = vst [vmem:[%s1076_s27 + $0x80] sm:$0xff] %v304_v16  ;;  %307 = vst [vmem:[%s1076_s27 + $0x88] sm:$0xff] %v306_v17  ;;  %v308_v18 = vld [vmem:[%s1071_s26 + $0x120] sm:$0xff]  ;;  %v310_v19 = vld [vmem:[%s1071_s26 + $0x130] sm:$0xff] }
  0x1b   : > { %v312_v20 = vld [vmem:[%s1071_s26 + $0x140] sm:$0xff]  ;;  %309 = vst [vmem:[%s1076_s27 + $0x90] sm:$0xff] %v308_v18  ;;  %311 = vst [vmem:[%s1076_s27 + $0x98] sm:$0xff] %v310_v19  ;;  %v314_v21 = vld [vmem:[%s1071_s26 + $0x150] sm:$0xff] }
  0x1c   : > { %313 = vst [vmem:[%s1076_s27 + $0xa0] sm:$0xff] %v312_v20  ;;  %v316_v22 = vld [vmem:[%s1071_s26 + $0x160] sm:$0xff]  ;;  %v318_v23 = vld [vmem:[%s1071_s26 + $0x170] sm:$0xff]  ;;  %315 = vst [vmem:[%s1076_s27 + $0xa8] sm:$0xff] %v314_v21 }
  0x1d   : > { %317 = vst [vmem:[%s1076_s27 + $0xb0] sm:$0xff] %v316_v22  ;;  %319 = vst [vmem:[%s1076_s27 + $0xb8] sm:$0xff] %v318_v23  ;;  %v320_v24 = vld [vmem:[%s1071_s26 + $0x180] sm:$0xff]  ;;  %v322_v25 = vld [vmem:[%s1071_s26 + $0x190] sm:$0xff] }
  0x1e   : > { %v324_v26 = vld [vmem:[%s1071_s26 + $0x1a0] sm:$0xff]  ;;  %321 = vst [vmem:[%s1076_s27 + $0xc0] sm:$0xff] %v320_v24  ;;  %323 = vst [vmem:[%s1076_s27 + $0xc8] sm:$0xff] %v322_v25  ;;  %v326_v27 = vld [vmem:[%s1071_s26 + $0x1b0] sm:$0xff] }
  0x1f   : > { %325 = vst [vmem:[%s1076_s27 + $0xd0] sm:$0xff] %v324_v26  ;;  %v328_v28 = vld [vmem:[%s1071_s26 + $0x1c0] sm:$0xff]  ;;  %v330_v29 = vld [vmem:[%s1071_s26 + $0x1d0] sm:$0xff]  ;;  %327 = vst [vmem:[%s1076_s27 + $0xd8] sm:$0xff] %v326_v27 }
  0x20   : > { %329 = vst [vmem:[%s1076_s27 + $0xe0] sm:$0xff] %v328_v28  ;;  %331 = vst [vmem:[%s1076_s27 + $0xe8] sm:$0xff] %v330_v29  ;;  %v332_v30 = vld [vmem:[%s1071_s26 + $0x1e0] sm:$0xff]  ;;  %v334_v31 = vld [vmem:[%s1071_s26 + $0x1f0] sm:$0xff] }
  0x21   : > { %333 = vst [vmem:[%s1076_s27 + $0xf0] sm:$0xff] %v332_v30  ;;  %335 = vst [vmem:[%s1076_s27 + $0xf8] sm:$0xff] %v334_v31 }
  0x22 PF: > { %p834_p6 = scmp.ge.s32.totalorder %s1006_s16, 1  ;;  %p348_p7 = scmp.lt.s32.totalorder %s1006_s16, 3 }
  0x24   : > { %p349_p8 = pnand %p834_p6, %p348_p7 }
  0x25   : > { %s355_s28 = sand.u32 (!%p349_p8), 1, %s990_s12   ;;  %v1145_v32 = vld [vmem:[%s1207_s0] sm:$0xff] (!%p349_p8)  ;;  %s836_s6 = sshll.u32 (!%p349_p8), %s998_s14, 1  ;;  %v682_v3 = vlaneseq (!%p349_p8) }
  0x26   : > { %352 = sbr.rel (%p349_p8) target bundleno = 323 (0x143), region = 66  ;;  %s835_s4 = sshll.u32 (!%p349_p8), %s355_s28, 8  ;;  %v840_v33 = vcombine.high (!%p349_p8), %v1145_v32, %v1145_v32  ;;  %v839_v2 = vcombine.low (!%p349_p8), %v1145_v32, %v1145_v32 }
  0x27   : > { %s1149_s5 = scalar_lea.vmem (!%p349_p8), [#allocation3], %s835_s4  ;;  %p408_p9 = scmp.lt.s32.totalorder (!%p349_p8), %s836_s6, 3  ;;  %v683_v4 = vshrl.u32 (!%p349_p8), %v682_v3, 7 }
  0x28   : > { %v918_v34 = vld [vmem:[%s1149_s5 + $0x4] ss:$8 sps:$4 sm:$0xff] (!%p349_p8)   ;;  %662 = vmatprep.mubr.bf16.mxu0 (!%p349_p8), %v840_v33  ;;  %v920_v35 = vld [vmem:[%s1149_s5] ss:$8 sps:$4 sm:$0xff] (!%p349_p8)   ;;  %v921_v36 = vld [vmem:[%s1149_s5 + $0x14] ss:$8 sps:$4 sm:$0xff] (!%p349_p8)  }
  0x29   : > { %630 = vmatprep.subr.bf16.mxu0 (!%p349_p8), %v918_v34  ;;  %v923_v37 = vld [vmem:[%s1149_s5 + $0x10] ss:$8 sps:$4 sm:$0xff] (!%p349_p8)   ;;  %v924_v38 = vld [vmem:[%s1149_s5 + $0x24] ss:$8 sps:$4 sm:$0xff] (!%p349_p8)   ;;  %v926_v39 = vld [vmem:[%s1149_s5 + $0x20] ss:$8 sps:$4 sm:$0xff] (!%p349_p8)  }
  0x2a   : > { %631 = vmatpush1.bf16.msra.mxu0 (!%p349_p8), %v920_v35  ;;  %v927_v40 = vld [vmem:[%s1149_s5 + $0x34] ss:$8 sps:$4 sm:$0xff] (!%p349_p8)   ;;  %v929_v41 = vld [vmem:[%s1149_s5 + $0x30] ss:$8 sps:$4 sm:$0xff] (!%p349_p8)   ;;  %v930_v42 = vld [vmem:[%s1149_s5 + $0x44] ss:$8 sps:$4 sm:$0xff] (!%p349_p8)  }
  0x2b   : > { %632 = vmatprep.subr.bf16.mxu0 (!%p349_p8), %v921_v36  ;;  %v932_v43 = vld [vmem:[%s1149_s5 + $0x40] ss:$8 sps:$4 sm:$0xff] (!%p349_p8)   ;;  %v933_v44 = vld [vmem:[%s1149_s5 + $0x54] ss:$8 sps:$4 sm:$0xff] (!%p349_p8)   ;;  %v935_v45 = vld [vmem:[%s1149_s5 + $0x50] ss:$8 sps:$4 sm:$0xff] (!%p349_p8)  }
  0x2c   : > { %v936_v46 = vld [vmem:[%s1149_s5 + $0x64] ss:$8 sps:$4 sm:$0xff] (!%p349_p8)   ;;  %v938_v47 = vld [vmem:[%s1149_s5 + $0x60] ss:$8 sps:$4 sm:$0xff] (!%p349_p8)   ;;  %v939_v48 = vld [vmem:[%s1149_s5 + $0x74] ss:$8 sps:$4 sm:$0xff] (!%p349_p8)  }
  0x2d   : > { %v941_v49 = vld [vmem:[%s1149_s5 + $0x70] ss:$8 sps:$4 sm:$0xff]   ;;  %v942_v50 = vld [vmem:[%s1149_s5 + $0x84] ss:$8 sps:$4 sm:$0xff]   ;;  %v944_v51 = vld [vmem:[%s1149_s5 + $0x80] ss:$8 sps:$4 sm:$0xff]  }
  0x2e   : > { %633 = vmatpush1.bf16.msra.mxu0 %v923_v37  ;;  %v945_v52 = vld [vmem:[%s1149_s5 + $0x94] ss:$8 sps:$4 sm:$0xff]   ;;  %v947_v53 = vld [vmem:[%s1149_s5 + $0x90] ss:$8 sps:$4 sm:$0xff]   ;;  %v948_v54 = vld [vmem:[%s1149_s5 + $0xa4] ss:$8 sps:$4 sm:$0xff]  }
  0x2f   : > { %634 = vmatprep.subr.bf16.mxu0 %v924_v38  ;;  %v950_v55 = vld [vmem:[%s1149_s5 + $0xa0] ss:$8 sps:$4 sm:$0xff]   ;;  %v951_v56 = vld [vmem:[%s1149_s5 + $0xb4] ss:$8 sps:$4 sm:$0xff]   ;;  %v953_v57 = vld [vmem:[%s1149_s5 + $0xb0] ss:$8 sps:$4 sm:$0xff]  }
  0x30   : > { %v954_v58 = vld [vmem:[%s1149_s5 + $0xc4] ss:$8 sps:$4 sm:$0xff]   ;;  %v956_v59 = vld [vmem:[%s1149_s5 + $0xc0] ss:$8 sps:$4 sm:$0xff]   ;;  %v957_v60 = vld [vmem:[%s1149_s5 + $0xd4] ss:$8 sps:$4 sm:$0xff]  }
  0x31   : > { %v959_v61 = vld [vmem:[%s1149_s5 + $0xd0] ss:$8 sps:$4 sm:$0xff]   ;;  %v960_v62 = vld [vmem:[%s1149_s5 + $0xe4] ss:$8 sps:$4 sm:$0xff]   ;;  %v962_v63 = vld [vmem:[%s1149_s5 + $0xe0] ss:$8 sps:$4 sm:$0xff]  }
  0x32   : > { %635 = vmatpush1.bf16.msra.mxu0 %v926_v39  ;;  %v963_v0 = vld [vmem:[%s1149_s5 + $0xf4] ss:$8 sps:$4 sm:$0xff]   ;;  %v965_v1 = vld [vmem:[%s1149_s5 + $0xf0] ss:$8 sps:$4 sm:$0xff]   ;;  %s1218_s6 = smov (!%p408_p9, %s836_s6), 3  ;;  %v684_v5 = vsub.s32 0, %v683_v4 }
  0x33   : > { %636 = vmatprep.subr.bf16.mxu0 %v927_v40  ;;  %s410_s9 = scalar_lea.vmem %s1209_s2, %s1218_s6  ;;  %v688_v7 = vsub.s32 1, %v683_v4  ;;  %s838_s10 = sshll.u32 %s1218_s6, 2 }
  0x34   : > { %v680_v6 = vld [vmem:[%s410_s9] sm:$0x3]  ;;  %s420_s14 = scalar_lea.vmem %s1210_s3, %s838_s10 }
  0x35   : > { %v685_v8 = vrot.slane %v680_v6, %v684_v5  ;;  %v689_v9 = vrot.slane %v680_v6, %v688_v7 }
  0x36   : > { %637 = vmatpush1.bf16.msra.mxu0 %v929_v41 }
  0x37   : > { %638 = vmatprep.subr.bf16.mxu0 %v930_v42 }
  0x3a   : > { %639 = vmatpush1.bf16.msra.mxu0 %v932_v43 }
  0x3b   : > { %640 = vmatprep.subr.bf16.mxu0 %v933_v44 }
  0x3e   : > { %641 = vmatpush1.bf16.msra.mxu0 %v935_v45 }
  0x3f   : > { %642 = vmatprep.subr.bf16.mxu0 %v936_v46 }
  0x42   : > { %643 = vmatpush1.bf16.msra.mxu0 %v938_v47 }
  0x43   : > { %644 = vmatprep.subr.bf16.mxu0 %v939_v48 }
  0x46   : > { %645 = vmatpush1.bf16.msra.mxu0 %v941_v49 }
  0x47   : > { %646 = vmatprep.subr.bf16.mxu0 %v942_v50 }
  0x4a   : > { %647 = vmatpush1.bf16.msra.mxu0 %v944_v51 }
  0x4b   : > { %648 = vmatprep.subr.bf16.mxu0 %v945_v52 }
  0x4e   : > { %649 = vmatpush1.bf16.msra.mxu0 %v947_v53 }
  0x4f   : > { %650 = vmatprep.subr.bf16.mxu0 %v948_v54 }
  0x52   : > { %651 = vmatpush1.bf16.msra.mxu0 %v950_v55 }
  0x53   : > { %652 = vmatprep.subr.bf16.mxu0 %v951_v56 }
  0x56   : > { %653 = vmatpush1.bf16.msra.mxu0 %v953_v57 }
  0x57   : > { %654 = vmatprep.subr.bf16.mxu0 %v954_v58 }
  0x5a   : > { %655 = vmatpush1.bf16.msra.mxu0 %v956_v59 }
  0x5b   : > { %656 = vmatprep.subr.bf16.mxu0 %v957_v60 }
  0x5e   : > { %657 = vmatpush1.bf16.msra.mxu0 %v959_v61 }
  0x5f   : > { %658 = vmatprep.subr.bf16.mxu0 %v960_v62 }
  0x62   : > { %659 = vmatpush1.bf16.msra.mxu0 %v962_v63 }
  0x63   : > { %660 = vmatprep.subr.bf16.mxu0 %v963_v0 }
  0x66   : > { %661 = vmatpush1.bf16.msra.mxu0 %v965_v1 }
  0x69   : > { %663 = vmatmul.mubr.bf16.vlgmr.msra.gmra.mrb[0].mxu0 %v839_v2 }
 0x13c   : > { %v664_v10 = vpop.f32.mrb[0].mxu0 }
 0x13d   : > { %v692_v11 = vadd.f32 %v685_v8, %v664_v10  ;;  %v666_v12 = vpop.f32.mrb[1].mxu0 }
 0x13e   : > { %v693_v13 = vadd.f32 %v689_v9, %v666_v12  ;;  %v668_v14 = vpop.f32.mrb[2].mxu0 }
 0x13f   : > { %v669_v15 = vpop.f32.mrb[3].mxu0 }
 0x140   : > { %v877_v16 = vpack.c.bf16 %v693_v13, %v692_v11 }
 0x142   : > { %702 = vst [vmem:[%s420_s14] sm:$0xff] %v877_v16 }
 0x143 PF: > { %s13_s16 = sadd.s32 1, %s1006_s16   ;;  %s1211_s12 = smov %s994_s13 }
 0x144   : > { %p10_p10 = scmp.ge.s32.totalorder %s13_s16, 4   ;;  %s1212_s13 = smov %s1063_s20 }
 0x145   : > { %s1213_s14 = smov %s1002_s15  ;;  %s1214_s15 = smov %s1216_s17 }
 0x146   :  { %12 = sbr.rel (!%p10_p10) target bundleno = 3 (0x3), region = 119 }

// kernel: _lambda_.41
= control target key start
LH: loop header
LB: loop body
LE: loop exit
PB: predicated region body
PF: predicated region fallthrough
CT: control target
= control target key end

     0   :  { %s1616_s15 = smov 0   ;;  %s1618_s16 = smov 0   ;;  %s1933_s0 = inlined_call_operand.vmem [shape: bf16[8,4608], index: 0, kind: input, shape index: {}]   ;;  %s1934_s1 = inlined_call_operand.vmem [shape: bf16[4608,512], index: 1, kind: input, shape index: {}]   ;;  %s1935_s2 = inlined_call_operand.vmem [shape: f32[1,512], index: 2, kind: input, shape index: {}]   ;;  %s1936_s3 = inlined_call_operand.vmem [shape: bf16[8,512], index: 3, kind: input, shape index: {}]   ;;  %s1937_s4 = inlined_call_operand.vmem [shape: bf16[8,512], index: 4, kind: output, shape index: {}]  }
   0x1   :  { %s1620_s17 = smov 0   ;;  %s1622_s18 = smov 0  }
   0x2   :  { %s1624_s19 = smov 0   ;;  %s1626_s20 = smov 0  }
   0x3   :  { %s1628_s21 = smov 0  }
   0x4 LB: > { %s26_s22 = sadd.s32 1, %s1580_s19  ;;  %s29_s23 = sadd.s32 1, %s1584_s20  ;;  %s1588_s21 = sphi %s1628_s21, %s14_s21   ;;  %s1584_s20 = sphi %s1626_s20, %s1943_s20   ;;  %s1580_s19 = sphi %s1624_s19, %s1942_s19   ;;  %s1576_s18 = sphi %s1622_s18, %s1941_s18   ;;  %s1572_s17 = sphi %s1620_s17, %s1940_s17   ;;  %s1568_s16 = sphi %s1618_s16, %s1939_s16   ;;  %s1564_s15 = sphi %s1616_s15, %s1938_s15  }
   0x5   : > { %p27_p0 = scmp.ge.s32.totalorder %s26_s22, 9  ;;  %p77_p1 = scmp.ne.s32.totalorder %s1568_s16, %s1564_s15 }
   0x6   : > { %p78_p2 = scmp.eq.s32.totalorder %s1588_s21, 0  ;;  %s70_s27 = sadd.s32 1, %s1568_s16 }
   0x7   : > { %s1945_s22 = smov (%p27_p0, %s26_s22), 0  ;;  %s1947_s23 = smov (!%p27_p0, %s29_s23), %s1584_s20 }
   0x8   : > { %p79_p3 = por %p78_p2, %p77_p1  ;;  %p31_p4 = scmp.ge.s32.totalorder %s1947_s23, 2 }
   0x9   : > { %s65_s24 = ssub.s32 %s1580_s19, %s1945_s22  ;;  %p1287_p6 = scmp.ge.s32.totalorder %s1588_s21, 18 }
   0xa   : > { %s1949_s23 = smov (%p31_p4, %s1947_s23), 0 }
   0xb   : > { %s66_s25 = ssub.s32 %s1584_s20, %s1949_s23  ;;  %185 = sbr.rel (%p1287_p6) target bundleno = 57 (0x39), region = 16 }
   0xc   : > { %s67_s26 = sor.u32 %s66_s25, %s65_s24 }
   0xd   : > { %p68_p5 = scmp.eq.s32.totalorder %s67_s26, 0 }
   0xf   : > { %s1667_s28 = scalar_select %p68_p5, %s1568_s16, %s70_s27  }
  0x12   : > { %201 = sbr.rel (!%p79_p3) target bundleno = 57 (0x39), region = 24  ;;  %s203_s29 = sand.u32 (%p79_p3), 1, %s1568_s16  }
  0x13   : > { %s1290_s30 = sshll.u32 (%p79_p3), %s1584_s20, 1  ;;  %s1288_s5 = sshll.u32 (%p79_p3), %s203_s29, 9 }
  0x14   : > { %s1375_s6 = sshll.u32 (%p79_p3), %s1580_s19, 8  ;;  %s1681_s12 = scalar_lea.vmem (%p79_p3), [#allocation3], %s1288_s5 }
  0x15   : > { %s209_s7 = sadd.s32 (%p79_p3), %s1375_s6, %s1290_s30 }
  0x16   : > { %s1292_s8 = sshll.u32 (%p79_p3), %s209_s7, 2 }
  0x17   : > { %s1676_s11 = scalar_lea.vmem (%p79_p3), %s1934_s1, %s1292_s8 }
  0x18   : > { %v365_v0 = vld [vmem:[%s1676_s11] sm:$0xff] (%p79_p3)  ;;  %v367_v1 = vld [vmem:[%s1676_s11 + $0x10] sm:$0xff] (%p79_p3) }
  0x19   : > { %v369_v2 = vld [vmem:[%s1676_s11 + $0x20] sm:$0xff]  ;;  %366 = vst [vmem:[%s1681_s12] sm:$0xff] %v365_v0  ;;  %368 = vst [vmem:[%s1681_s12 + $0x8] sm:$0xff] %v367_v1  ;;  %v371_v3 = vld [vmem:[%s1676_s11 + $0x30] sm:$0xff] }
  0x1a   : > { %370 = vst [vmem:[%s1681_s12 + $0x10] sm:$0xff] %v369_v2  ;;  %v373_v4 = vld [vmem:[%s1676_s11 + $0x40] sm:$0xff]  ;;  %v375_v5 = vld [vmem:[%s1676_s11 + $0x50] sm:$0xff]  ;;  %372 = vst [vmem:[%s1681_s12 + $0x18] sm:$0xff] %v371_v3 }
  0x1b   : > { %374 = vst [vmem:[%s1681_s12 + $0x20] sm:$0xff] %v373_v4  ;;  %376 = vst [vmem:[%s1681_s12 + $0x28] sm:$0xff] %v375_v5  ;;  %v377_v6 = vld [vmem:[%s1676_s11 + $0x60] sm:$0xff]  ;;  %v379_v7 = vld [vmem:[%s1676_s11 + $0x70] sm:$0xff] }
  0x1c   : > { %v381_v8 = vld [vmem:[%s1676_s11 + $0x80] sm:$0xff]  ;;  %378 = vst [vmem:[%s1681_s12 + $0x30] sm:$0xff] %v377_v6  ;;  %380 = vst [vmem:[%s1681_s12 + $0x38] sm:$0xff] %v379_v7  ;;  %v383_v9 = vld [vmem:[%s1676_s11 + $0x90] sm:$0xff] }
  0x1d   : > { %382 = vst [vmem:[%s1681_s12 + $0x40] sm:$0xff] %v381_v8  ;;  %v385_v10 = vld [vmem:[%s1676_s11 + $0xa0] sm:$0xff]  ;;  %v387_v11 = vld [vmem:[%s1676_s11 + $0xb0] sm:$0xff]  ;;  %384 = vst [vmem:[%s1681_s12 + $0x48] sm:$0xff] %v383_v9 }
  0x1e   : > { %386 = vst [vmem:[%s1681_s12 + $0x50] sm:$0xff] %v385_v10  ;;  %388 = vst [vmem:[%s1681_s12 + $0x58] sm:$0xff] %v387_v11  ;;  %v389_v12 = vld [vmem:[%s1676_s11 + $0xc0] sm:$0xff]  ;;  %v391_v13 = vld [vmem:[%s1676_s11 + $0xd0] sm:$0xff] }
  0x1f   : > { %v393_v14 = vld [vmem:[%s1676_s11 + $0xe0] sm:$0xff]  ;;  %390 = vst [vmem:[%s1681_s12 + $0x60] sm:$0xff] %v389_v12  ;;  %392 = vst [vmem:[%s1681_s12 + $0x68] sm:$0xff] %v391_v13  ;;  %v395_v15 = vld [vmem:[%s1676_s11 + $0xf0] sm:$0xff] }
  0x20   : > { %394 = vst [vmem:[%s1681_s12 + $0x70] sm:$0xff] %v393_v14  ;;  %v397_v16 = vld [vmem:[%s1676_s11 + $0x100] sm:$0xff]  ;;  %v399_v17 = vld [vmem:[%s1676_s11 + $0x110] sm:$0xff]  ;;  %396 = vst [vmem:[%s1681_s12 + $0x78] sm:$0xff] %v395_v15 }
  0x21   : > { %398 = vst [vmem:[%s1681_s12 + $0x80] sm:$0xff] %v397_v16  ;;  %400 = vst [vmem:[%s1681_s12 + $0x88] sm:$0xff] %v399_v17  ;;  %v401_v18 = vld [vmem:[%s1676_s11 + $0x120] sm:$0xff]  ;;  %v403_v19 = vld [vmem:[%s1676_s11 + $0x130] sm:$0xff] }
  0x22   : > { %v405_v20 = vld [vmem:[%s1676_s11 + $0x140] sm:$0xff]  ;;  %402 = vst [vmem:[%s1681_s12 + $0x90] sm:$0xff] %v401_v18  ;;  %404 = vst [vmem:[%s1681_s12 + $0x98] sm:$0xff] %v403_v19  ;;  %v407_v21 = vld [vmem:[%s1676_s11 + $0x150] sm:$0xff] }
  0x23   : > { %406 = vst [vmem:[%s1681_s12 + $0xa0] sm:$0xff] %v405_v20  ;;  %v409_v22 = vld [vmem:[%s1676_s11 + $0x160] sm:$0xff]  ;;  %v411_v23 = vld [vmem:[%s1676_s11 + $0x170] sm:$0xff]  ;;  %408 = vst [vmem:[%s1681_s12 + $0xa8] sm:$0xff] %v407_v21 }
  0x24   : > { %410 = vst [vmem:[%s1681_s12 + $0xb0] sm:$0xff] %v409_v22  ;;  %412 = vst [vmem:[%s1681_s12 + $0xb8] sm:$0xff] %v411_v23  ;;  %v413_v24 = vld [vmem:[%s1676_s11 + $0x180] sm:$0xff]  ;;  %v415_v25 = vld [vmem:[%s1676_s11 + $0x190] sm:$0xff] }
  0x25   : > { %v417_v26 = vld [vmem:[%s1676_s11 + $0x1a0] sm:$0xff]  ;;  %414 = vst [vmem:[%s1681_s12 + $0xc0] sm:$0xff] %v413_v24  ;;  %416 = vst [vmem:[%s1681_s12 + $0xc8] sm:$0xff] %v415_v25  ;;  %v419_v27 = vld [vmem:[%s1676_s11 + $0x1b0] sm:$0xff] }
  0x26   : > { %418 = vst [vmem:[%s1681_s12 + $0xd0] sm:$0xff] %v417_v26  ;;  %v421_v28 = vld [vmem:[%s1676_s11 + $0x1c0] sm:$0xff]  ;;  %v423_v29 = vld [vmem:[%s1676_s11 + $0x1d0] sm:$0xff]  ;;  %420 = vst [vmem:[%s1681_s12 + $0xd8] sm:$0xff] %v419_v27 }
  0x27   : > { %422 = vst [vmem:[%s1681_s12 + $0xe0] sm:$0xff] %v421_v28  ;;  %424 = vst [vmem:[%s1681_s12 + $0xe8] sm:$0xff] %v423_v29  ;;  %v425_v30 = vld [vmem:[%s1676_s11 + $0x1e0] sm:$0xff]  ;;  %v427_v31 = vld [vmem:[%s1676_s11 + $0x1f0] sm:$0xff] }
  0x28   : > { %v429_v32 = vld [vmem:[%s1676_s11 + $0x200] sm:$0xff]  ;;  %426 = vst [vmem:[%s1681_s12 + $0xf0] sm:$0xff] %v425_v30  ;;  %428 = vst [vmem:[%s1681_s12 + $0xf8] sm:$0xff] %v427_v31  ;;  %v431_v33 = vld [vmem:[%s1676_s11 + $0x210] sm:$0xff] }
  0x29   : > { %430 = vst [vmem:[%s1681_s12 + $0x100] sm:$0xff] %v429_v32  ;;  %v433_v34 = vld [vmem:[%s1676_s11 + $0x220] sm:$0xff]  ;;  %v435_v35 = vld [vmem:[%s1676_s11 + $0x230] sm:$0xff]  ;;  %432 = vst [vmem:[%s1681_s12 + $0x108] sm:$0xff] %v431_v33 }
  0x2a   : > { %434 = vst [vmem:[%s1681_s12 + $0x110] sm:$0xff] %v433_v34  ;;  %436 = vst [vmem:[%s1681_s12 + $0x118] sm:$0xff] %v435_v35  ;;  %v437_v36 = vld [vmem:[%s1676_s11 + $0x240] sm:$0xff]  ;;  %v439_v37 = vld [vmem:[%s1676_s11 + $0x250] sm:$0xff] }
  0x2b   : > { %v441_v38 = vld [vmem:[%s1676_s11 + $0x260] sm:$0xff]  ;;  %438 = vst [vmem:[%s1681_s12 + $0x120] sm:$0xff] %v437_v36  ;;  %440 = vst [vmem:[%s1681_s12 + $0x128] sm:$0xff] %v439_v37  ;;  %v443_v39 = vld [vmem:[%s1676_s11 + $0x270] sm:$0xff] }
  0x2c   : > { %442 = vst [vmem:[%s1681_s12 + $0x130] sm:$0xff] %v441_v38  ;;  %v445_v40 = vld [vmem:[%s1676_s11 + $0x280] sm:$0xff]  ;;  %v447_v41 = vld [vmem:[%s1676_s11 + $0x290] sm:$0xff]  ;;  %444 = vst [vmem:[%s1681_s12 + $0x138] sm:$0xff] %v443_v39 }
  0x2d   : > { %446 = vst [vmem:[%s1681_s12 + $0x140] sm:$0xff] %v445_v40  ;;  %448 = vst [vmem:[%s1681_s12 + $0x148] sm:$0xff] %v447_v41  ;;  %v449_v42 = vld [vmem:[%s1676_s11 + $0x2a0] sm:$0xff]  ;;  %v451_v43 = vld [vmem:[%s1676_s11 + $0x2b0] sm:$0xff] }
  0x2e   : > { %v453_v44 = vld [vmem:[%s1676_s11 + $0x2c0] sm:$0xff]  ;;  %450 = vst [vmem:[%s1681_s12 + $0x150] sm:$0xff] %v449_v42  ;;  %452 = vst [vmem:[%s1681_s12 + $0x158] sm:$0xff] %v451_v43  ;;  %v455_v45 = vld [vmem:[%s1676_s11 + $0x2d0] sm:$0xff] }
  0x2f   : > { %454 = vst [vmem:[%s1681_s12 + $0x160] sm:$0xff] %v453_v44  ;;  %v457_v46 = vld [vmem:[%s1676_s11 + $0x2e0] sm:$0xff]  ;;  %v459_v47 = vld [vmem:[%s1676_s11 + $0x2f0] sm:$0xff]  ;;  %456 = vst [vmem:[%s1681_s12 + $0x168] sm:$0xff] %v455_v45 }
  0x30   : > { %458 = vst [vmem:[%s1681_s12 + $0x170] sm:$0xff] %v457_v46  ;;  %460 = vst [vmem:[%s1681_s12 + $0x178] sm:$0xff] %v459_v47  ;;  %v461_v48 = vld [vmem:[%s1676_s11 + $0x300] sm:$0xff]  ;;  %v463_v49 = vld [vmem:[%s1676_s11 + $0x310] sm:$0xff] }
  0x31   : > { %v465_v50 = vld [vmem:[%s1676_s11 + $0x320] sm:$0xff]  ;;  %462 = vst [vmem:[%s1681_s12 + $0x180] sm:$0xff] %v461_v48  ;;  %464 = vst [vmem:[%s1681_s12 + $0x188] sm:$0xff] %v463_v49  ;;  %v467_v51 = vld [vmem:[%s1676_s11 + $0x330] sm:$0xff] }
  0x32   : > { %466 = vst [vmem:[%s1681_s12 + $0x190] sm:$0xff] %v465_v50  ;;  %v469_v52 = vld [vmem:[%s1676_s11 + $0x340] sm:$0xff]  ;;  %v471_v53 = vld [vmem:[%s1676_s11 + $0x350] sm:$0xff]  ;;  %468 = vst [vmem:[%s1681_s12 + $0x198] sm:$0xff] %v467_v51 }
  0x33   : > { %470 = vst [vmem:[%s1681_s12 + $0x1a0] sm:$0xff] %v469_v52  ;;  %472 = vst [vmem:[%s1681_s12 + $0x1a8] sm:$0xff] %v471_v53  ;;  %v473_v54 = vld [vmem:[%s1676_s11 + $0x360] sm:$0xff]  ;;  %v475_v55 = vld [vmem:[%s1676_s11 + $0x370] sm:$0xff] }
  0x34   : > { %v477_v56 = vld [vmem:[%s1676_s11 + $0x380] sm:$0xff]  ;;  %474 = vst [vmem:[%s1681_s12 + $0x1b0] sm:$0xff] %v473_v54  ;;  %476 = vst [vmem:[%s1681_s12 + $0x1b8] sm:$0xff] %v475_v55  ;;  %v479_v57 = vld [vmem:[%s1676_s11 + $0x390] sm:$0xff] }
  0x35   : > { %478 = vst [vmem:[%s1681_s12 + $0x1c0] sm:$0xff] %v477_v56  ;;  %v481_v58 = vld [vmem:[%s1676_s11 + $0x3a0] sm:$0xff]  ;;  %v483_v59 = vld [vmem:[%s1676_s11 + $0x3b0] sm:$0xff]  ;;  %480 = vst [vmem:[%s1681_s12 + $0x1c8] sm:$0xff] %v479_v57 }
  0x36   : > { %482 = vst [vmem:[%s1681_s12 + $0x1d0] sm:$0xff] %v481_v58  ;;  %484 = vst [vmem:[%s1681_s12 + $0x1d8] sm:$0xff] %v483_v59  ;;  %v485_v60 = vld [vmem:[%s1676_s11 + $0x3c0] sm:$0xff]  ;;  %v487_v61 = vld [vmem:[%s1676_s11 + $0x3d0] sm:$0xff] }
  0x37   : > { %v489_v62 = vld [vmem:[%s1676_s11 + $0x3e0] sm:$0xff]  ;;  %486 = vst [vmem:[%s1681_s12 + $0x1e0] sm:$0xff] %v485_v60  ;;  %488 = vst [vmem:[%s1681_s12 + $0x1e8] sm:$0xff] %v487_v61  ;;  %v491_v63 = vld [vmem:[%s1676_s11 + $0x3f0] sm:$0xff] }
  0x38   : > { %490 = vst [vmem:[%s1681_s12 + $0x1f0] sm:$0xff] %v489_v62  ;;  %492 = vst [vmem:[%s1681_s12 + $0x1f8] sm:$0xff] %v491_v63 }
  0x39 PF: > { %p1293_p7 = scmp.ge.s32.totalorder %s1588_s21, 1  ;;  %p518_p8 = scmp.lt.s32.totalorder %s1588_s21, 19 }
  0x3b   : > { %p519_p9 = pnand %p1293_p7, %p518_p8 }
  0x3c   : > { %s525_s13 = sand.u32 (!%p519_p9), 1, %s1564_s15   ;;  %s1295_s14 = sshll.u32 (!%p519_p9), %s1572_s17, 2 }
  0x3d   : > { %522 = sbr.rel (%p519_p9) target bundleno = 379 (0x17b), region = 70  ;;  %s1294_s24 = sshll.u32 (!%p519_p9), %s525_s13, 9 }
  0x3e   : > { %p579_p10 = scmp.lt.s32.totalorder (!%p519_p9), %s1295_s14, 35  ;;  %s1297_s25 = sshll.u32 (!%p519_p9), %s1576_s18, 1 }
  0x3f   : > { %p589_p11 = scmp.lt.s32.totalorder (!%p519_p9), %s1297_s25, 3  ;;  %s1835_s13 = scalar_lea.vmem (!%p519_p9), [#allocation3], %s1294_s24 }
  0x40   : > { %p1302_p12 = scmp.ne.s32.totalorder (!%p519_p9), %s1572_s17, 0 }
  0x44   : > { %s1951_s14 = smov (!%p579_p10, %s1295_s14), 35  ;;  %s1953_s25 = smov (!%p589_p11, %s1297_s25), 3 }
  0x45   : > { %s1296_s26 = sshll.u32 %s1951_s14, 2  ;;  %s591_s15 = scalar_lea.vmem %s1935_s2, %s1953_s25  ;;  %v1590_v0 = vmov (!%p1302_p12), 0.0  }
  0x46   : > { %s1816_s30 = scalar_lea.vmem %s1933_s0, %s1296_s26  ;;  %s1299_s7 = sshll.u32 %s1953_s25, 2  ;;  %617 = vst [vmem:[#allocation2] sm:$0xff] (!%p1302_p12), %v1590_v0  ;;  %618 = vst [vmem:[#allocation2 + $0x8] sm:$0xff] (!%p1302_p12), %v1590_v0 }
  0x47   : > { %s1828_s18 = scalar_lea.vmem %s1936_s3, %s1299_s7  ;;  %s1833_s12 = scalar_lea.vmem %s1937_s4, %s1299_s7 }
  0x48   : > { %616 = sbr.rel (%p1302_p12) target bundleno = 79 (0x4f), region = 78 }
  0x4f PF: > { %v1434_v1 = vld [vmem:[%s1835_s13 + $0x4] ss:$8 sps:$4 sm:$0xff]   ;;  %v1438_v3 = vld [vmem:[%s1835_s13] ss:$8 sps:$4 sm:$0xff]   ;;  %v1440_v5 = vld [vmem:[%s1835_s13 + $0x14] ss:$8 sps:$4 sm:$0xff]  }
  0x50   : > { %v1436_v2 = vld [vmem:[%s1835_s13 + $0x104] ss:$8 sps:$4 sm:$0xff]   ;;  %1021 = vmatprep.subr.bf16.mxu0 %v1434_v1  ;;  %v1439_v4 = vld [vmem:[%s1835_s13 + $0x100] ss:$8 sps:$4 sm:$0xff]   ;;  %v1442_v6 = vld [vmem:[%s1835_s13 + $0x114] ss:$8 sps:$4 sm:$0xff]  }
  0x51   : > { %1062 = vmatprep.subr.bf16.mxu1 %v1436_v2  ;;  %1022 = vmatpush1.bf16.msra.mxu0 %v1438_v3  ;;  %v1444_v7 = vld [vmem:[%s1835_s13 + $0x10] ss:$8 sps:$4 sm:$0xff]   ;;  %v1446_v9 = vld [vmem:[%s1835_s13 + $0x24] ss:$8 sps:$4 sm:$0xff]   ;;  %v1450_v11 = vld [vmem:[%s1835_s13 + $0x20] ss:$8 sps:$4 sm:$0xff]  }
  0x52   : > { %1063 = vmatpush1.bf16.msra.mxu1 %v1439_v4  ;;  %1023 = vmatprep.subr.bf16.mxu0 %v1440_v5  ;;  %v1445_v8 = vld [vmem:[%s1835_s13 + $0x110] ss:$8 sps:$4 sm:$0xff]   ;;  %v1448_v10 = vld [vmem:[%s1835_s13 + $0x124] ss:$8 sps:$4 sm:$0xff]   ;;  %v1451_v12 = vld [vmem:[%s1835_s13 + $0x120] ss:$8 sps:$4 sm:$0xff]  }
  0x53   : > { %1064 = vmatprep.subr.bf16.mxu1 %v1442_v6  ;;  %v1452_v13 = vld [vmem:[%s1835_s13 + $0x34] ss:$8 sps:$4 sm:$0xff]   ;;  %v1456_v15 = vld [vmem:[%s1835_s13 + $0x30] ss:$8 sps:$4 sm:$0xff]   ;;  %v1458_v17 = vld [vmem:[%s1835_s13 + $0x44] ss:$8 sps:$4 sm:$0xff]  }
  0x54   : > { %v1454_v14 = vld [vmem:[%s1835_s13 + $0x134] ss:$8 sps:$4 sm:$0xff]   ;;  %v1457_v16 = vld [vmem:[%s1835_s13 + $0x130] ss:$8 sps:$4 sm:$0xff]   ;;  %v1460_v18 = vld [vmem:[%s1835_s13 + $0x144] ss:$8 sps:$4 sm:$0xff]  }
  0x55   : > { %1024 = vmatpush1.bf16.msra.mxu0 %v1444_v7  ;;  %v1462_v19 = vld [vmem:[%s1835_s13 + $0x40] ss:$8 sps:$4 sm:$0xff]   ;;  %v1464_v21 = vld [vmem:[%s1835_s13 + $0x54] ss:$8 sps:$4 sm:$0xff]   ;;  %v1468_v23 = vld [vmem:[%s1835_s13 + $0x50] ss:$8 sps:$4 sm:$0xff]  }
  0x56   : > { %1065 = vmatpush1.bf16.msra.mxu1 %v1445_v8  ;;  %1025 = vmatprep.subr.bf16.mxu0 %v1446_v9  ;;  %v1463_v20 = vld [vmem:[%s1835_s13 + $0x140] ss:$8 sps:$4 sm:$0xff]   ;;  %v1466_v22 = vld [vmem:[%s1835_s13 + $0x154] ss:$8 sps:$4 sm:$0xff]   ;;  %v1469_v24 = vld [vmem:[%s1835_s13 + $0x150] ss:$8 sps:$4 sm:$0xff]  }
  0x57   : > { %1066 = vmatprep.subr.bf16.mxu1 %v1448_v10  ;;  %v1470_v25 = vld [vmem:[%s1835_s13 + $0x64] ss:$8 sps:$4 sm:$0xff]   ;;  %v1474_v27 = vld [vmem:[%s1835_s13 + $0x60] ss:$8 sps:$4 sm:$0xff]   ;;  %v1476_v29 = vld [vmem:[%s1835_s13 + $0x74] ss:$8 sps:$4 sm:$0xff]  }
  0x58   : > { %v1472_v26 = vld [vmem:[%s1835_s13 + $0x164] ss:$8 sps:$4 sm:$0xff]   ;;  %v1475_v28 = vld [vmem:[%s1835_s13 + $0x160] ss:$8 sps:$4 sm:$0xff]   ;;  %v1478_v30 = vld [vmem:[%s1835_s13 + $0x174] ss:$8 sps:$4 sm:$0xff]  }
  0x59   : > { %1026 = vmatpush1.bf16.msra.mxu0 %v1450_v11  ;;  %v1480_v31 = vld [vmem:[%s1835_s13 + $0x70] ss:$8 sps:$4 sm:$0xff]   ;;  %v1482_v33 = vld [vmem:[%s1835_s13 + $0x84] ss:$8 sps:$4 sm:$0xff]   ;;  %v1486_v35 = vld [vmem:[%s1835_s13 + $0x80] ss:$8 sps:$4 sm:$0xff]  }
  0x5a   : > { %1067 = vmatpush1.bf16.msra.mxu1 %v1451_v12  ;;  %1027 = vmatprep.subr.bf16.mxu0 %v1452_v13  ;;  %v1481_v32 = vld [vmem:[%s1835_s13 + $0x170] ss:$8 sps:$4 sm:$0xff]   ;;  %v1484_v34 = vld [vmem:[%s1835_s13 + $0x184] ss:$8 sps:$4 sm:$0xff]   ;;  %v1487_v36 = vld [vmem:[%s1835_s13 + $0x180] ss:$8 sps:$4 sm:$0xff]  }
  0x5b   : > { %1068 = vmatprep.subr.bf16.mxu1 %v1454_v14  ;;  %v1488_v37 = vld [vmem:[%s1835_s13 + $0x94] ss:$8 sps:$4 sm:$0xff]   ;;  %v1492_v39 = vld [vmem:[%s1835_s13 + $0x90] ss:$8 sps:$4 sm:$0xff]   ;;  %v1494_v41 = vld [vmem:[%s1835_s13 + $0xa4] ss:$8 sps:$4 sm:$0xff]  }
  0x5c   : > { %v1490_v38 = vld [vmem:[%s1835_s13 + $0x194] ss:$8 sps:$4 sm:$0xff]   ;;  %v1493_v40 = vld [vmem:[%s1835_s13 + $0x190] ss:$8 sps:$4 sm:$0xff]   ;;  %v1496_v42 = vld [vmem:[%s1835_s13 + $0x1a4] ss:$8 sps:$4 sm:$0xff]  }
  0x5d   : > { %1028 = vmatpush1.bf16.msra.mxu0 %v1456_v15  ;;  %v1498_v43 = vld [vmem:[%s1835_s13 + $0xa0] ss:$8 sps:$4 sm:$0xff]   ;;  %v1500_v45 = vld [vmem:[%s1835_s13 + $0xb4] ss:$8 sps:$4 sm:$0xff]   ;;  %v1504_v50 = vld [vmem:[%s1835_s13 + $0xb0] ss:$8 sps:$4 sm:$0xff]  }
  0x5e   : > { %1069 = vmatpush1.bf16.msra.mxu1 %v1457_v16  ;;  %1029 = vmatprep.subr.bf16.mxu0 %v1458_v17  ;;  %v1499_v44 = vld [vmem:[%s1835_s13 + $0x1a0] ss:$8 sps:$4 sm:$0xff]   ;;  %v1502_v46 = vld [vmem:[%s1835_s13 + $0x1b4] ss:$8 sps:$4 sm:$0xff]   ;;  %v1505_v51 = vld [vmem:[%s1835_s13 + $0x1b0] ss:$8 sps:$4 sm:$0xff]  }
  0x5f   : > { %1070 = vmatprep.subr.bf16.mxu1 %v1460_v18  ;;  %v621_v47 = vld [vmem:[%s1816_s30] sm:$0xff]  ;;  %v622_v49 = vld [vmem:[%s1816_s30 + $0x8] sm:$0xff]  ;;  %v1506_v53 = vld [vmem:[%s1835_s13 + $0xc4] ss:$8 sps:$4 sm:$0xff]   ;;  %p1371_p13 = scmp.ne.s32.totalorder %s1572_s17, 8 }
  0x60   : > { %v1304_v48 = vcombine.high %v621_v47, %v621_v47  ;;  %v1306_v52 = vcombine.high %v622_v49, %v622_v49  ;;  %v1508_v54 = vld [vmem:[%s1835_s13 + $0x1c4] ss:$8 sps:$4 sm:$0xff]   ;;  %v1510_v55 = vld [vmem:[%s1835_s13 + $0xc0] ss:$8 sps:$4 sm:$0xff]   ;;  %v1512_v57 = vld [vmem:[%s1835_s13 + $0xd4] ss:$8 sps:$4 sm:$0xff]   ;;  %v1303_v5 = vcombine.low %v621_v47, %v621_v47  ;;  %v1305_v6 = vcombine.low %v622_v49, %v622_v49 }
  0x61   : > { %1030 = vmatpush1.bf16.msra.mxu0 %v1462_v19  ;;  %v1511_v56 = vld [vmem:[%s1835_s13 + $0x1c0] ss:$8 sps:$4 sm:$0xff]   ;;  %v1514_v58 = vld [vmem:[%s1835_s13 + $0x1d4] ss:$8 sps:$4 sm:$0xff]   ;;  %v1516_v59 = vld [vmem:[%s1835_s13 + $0xd0] ss:$8 sps:$4 sm:$0xff]  }
  0x62   : > { %1071 = vmatpush1.bf16.msra.mxu1 %v1463_v20  ;;  %1031 = vmatprep.subr.bf16.mxu0 %v1464_v21  ;;  %v1517_v60 = vld [vmem:[%s1835_s13 + $0x1d0] ss:$8 sps:$4 sm:$0xff]   ;;  %v1518_v61 = vld [vmem:[%s1835_s13 + $0xe4] ss:$8 sps:$4 sm:$0xff]   ;;  %v1522_v63 = vld [vmem:[%s1835_s13 + $0xe0] ss:$8 sps:$4 sm:$0xff]   ;;  %v1115_v21 = vlaneseq (!%p1371_p13) }
  0x63   : > { %1072 = vmatprep.subr.bf16.mxu1 %v1466_v22  ;;  %1053 = vmatprep.mubr.bf16.mxu0 %v1304_v48  ;;  %v1520_v62 = vld [vmem:[%s1835_s13 + $0x1e4] ss:$8 sps:$4 sm:$0xff]   ;;  %v1523_v0 = vld [vmem:[%s1835_s13 + $0x1e0] ss:$8 sps:$4 sm:$0xff]   ;;  %v1524_v1 = vld [vmem:[%s1835_s13 + $0xf4] ss:$8 sps:$4 sm:$0xff]  }
  0x64   : > { %1094 = vmatprep.mubr.bf16.mxu1 %v1306_v52  ;;  %v1526_v2 = vld [vmem:[%s1835_s13 + $0x1f4] ss:$8 sps:$4 sm:$0xff]   ;;  %v1528_v3 = vld [vmem:[%s1835_s13 + $0xf0] ss:$8 sps:$4 sm:$0xff]   ;;  %v1116_v22 = vshrl.u32 (!%p1371_p13), %v1115_v21, 7 }
  0x65   : > { %1032 = vmatpush1.bf16.msra.mxu0 %v1468_v23  ;;  %v1529_v4 = vld [vmem:[%s1835_s13 + $0x1f0] ss:$8 sps:$4 sm:$0xff]  }
  0x66   : > { %1073 = vmatpush1.bf16.msra.mxu1 %v1469_v24  ;;  %1033 = vmatprep.subr.bf16.mxu0 %v1470_v25  ;;  %v619_v8 = vld [vmem:[#allocation2] sm:$0xff]  ;;  %v620_v12 = vld [vmem:[#allocation2 + $0x8] sm:$0xff]  ;;  %v1117_v25 = vsub.s32 (!%p1371_p13), 0, %v1116_v22 }
  0x67   : > { %1074 = vmatprep.subr.bf16.mxu1 %v1472_v26  ;;  %v1113_v23 = vld [vmem:[%s591_s15] sm:$0x3] (!%p1371_p13)  ;;  %v1121_v26 = vsub.s32 (!%p1371_p13), 1, %v1116_v22 }
  0x68   : > { %v1127_v24 = vld [vmem:[%s1828_s18] sm:$0xff] (!%p1371_p13) }
  0x69   : > { %1034 = vmatpush1.bf16.msra.mxu0 %v1474_v27 }
  0x6a   : > { %1075 = vmatpush1.bf16.msra.mxu1 %v1475_v28  ;;  %1035 = vmatprep.subr.bf16.mxu0 %v1476_v29  ;;  %v1118_v29 = vrot.slane (!%p1371_p13), %v1113_v23, %v1117_v25 }
  0x6b   : > { %1076 = vmatprep.subr.bf16.mxu1 %v1478_v30  ;;  %v1122_v30 = vrot.slane (!%p1371_p13), %v1113_v23, %v1121_v26 }
  0x6d   : > { %1036 = vmatpush1.bf16.msra.mxu0 %v1480_v31  ;;  %v1128_v31 = vunpack.c.l.bf16 (!%p1371_p13), %v1127_v24 }
  0x6e   : > { %1077 = vmatpush1.bf16.msra.mxu1 %v1481_v32  ;;  %1037 = vmatprep.subr.bf16.mxu0 %v1482_v33  ;;  %v1129_v32 = vunpack.c.h.bf16 (!%p1371_p13), %v1127_v24 }
  0x6f   : > { %1078 = vmatprep.subr.bf16.mxu1 %v1484_v34 }
  0x71   : > { %1038 = vmatpush1.bf16.msra.mxu0 %v1486_v35 }
  0x72   : > { %1079 = vmatpush1.bf16.msra.mxu1 %v1487_v36  ;;  %1039 = vmatprep.subr.bf16.mxu0 %v1488_v37 }
  0x73   : > { %1080 = vmatprep.subr.bf16.mxu1 %v1490_v38 }
  0x75   : > { %1040 = vmatpush1.bf16.msra.mxu0 %v1492_v39 }
  0x76   : > { %1081 = vmatpush1.bf16.msra.mxu1 %v1493_v40  ;;  %1041 = vmatprep.subr.bf16.mxu0 %v1494_v41 }
  0x77   : > { %1082 = vmatprep.subr.bf16.mxu1 %v1496_v42 }
  0x79   : > { %1042 = vmatpush1.bf16.msra.mxu0 %v1498_v43 }
  0x7a   : > { %1083 = vmatpush1.bf16.msra.mxu1 %v1499_v44  ;;  %1043 = vmatprep.subr.bf16.mxu0 %v1500_v45 }
  0x7b   : > { %1084 = vmatprep.subr.bf16.mxu1 %v1502_v46 }
  0x7d   : > { %1044 = vmatpush1.bf16.msra.mxu0 %v1504_v50 }
  0x7e   : > { %1085 = vmatpush1.bf16.msra.mxu1 %v1505_v51  ;;  %1045 = vmatprep.subr.bf16.mxu0 %v1506_v53 }
  0x7f   : > { %1086 = vmatprep.subr.bf16.mxu1 %v1508_v54 }
  0x81   : > { %1046 = vmatpush1.bf16.msra.mxu0 %v1510_v55 }
  0x82   : > { %1087 = vmatpush1.bf16.msra.mxu1 %v1511_v56  ;;  %1047 = vmatprep.subr.bf16.mxu0 %v1512_v57 }
  0x83   : > { %1088 = vmatprep.subr.bf16.mxu1 %v1514_v58 }
  0x85   : > { %1048 = vmatpush1.bf16.msra.mxu0 %v1516_v59 }
  0x86   : > { %1089 = vmatpush1.bf16.msra.mxu1 %v1517_v60  ;;  %1049 = vmatprep.subr.bf16.mxu0 %v1518_v61 }
  0x87   : > { %1090 = vmatprep.subr.bf16.mxu1 %v1520_v62 }
  0x89   : > { %1050 = vmatpush1.bf16.msra.mxu0 %v1522_v63 }
  0x8a   : > { %1091 = vmatpush1.bf16.msra.mxu1 %v1523_v0  ;;  %1051 = vmatprep.subr.bf16.mxu0 %v1524_v1 }
  0x8b   : > { %1092 = vmatprep.subr.bf16.mxu1 %v1526_v2 }
  0x8d   : > { %1052 = vmatpush1.bf16.msra.mxu0 %v1528_v3 }
  0x8e   : > { %1093 = vmatpush1.bf16.msra.mxu1 %v1529_v4 }
  0x90   : > { %1054 = vmatmul.mubr.bf16.vlgmr.msra.gmra.mrb[0].mxu0 %v1303_v5 }
  0x91   : > { %1095 = vmatmul.mubr.bf16.vlgmr.msra.gmra.mrb[0].mxu1 %v1305_v6 }
 0x163   : > { %v1055_v7 = vpop.f32.mrb[0].mxu0 }
 0x164   : > { %v1096_v9 = vpop.f32.mrb[0].mxu1  ;;  %v1057_v11 = vpop.f32.mrb[1].mxu0  ;;  %1110 = sbr.rel (%p1371_p13) target bundleno = 379 (0x17b), region = 82 }
 0x165   : > { %v1097_v10 = vadd.f32 %v1096_v9, %v1055_v7  ;;  %v1098_v13 = vpop.f32.mrb[1].mxu1  ;;  %v1059_v15 = vpop.f32.mrb[2].mxu0 }
 0x166   : > { %v1099_v14 = vadd.f32 %v1098_v13, %v1057_v11  ;;  %v1100_v16 = vpop.f32.mrb[2].mxu1  ;;  %v1060_v18 = vpop.f32.mrb[3].mxu0 }
 0x167   : > { %v1103_v17 = vadd.f32 %v1097_v10, %v619_v8  ;;  %v1101_v19 = vpop.f32.mrb[3].mxu1 }
 0x168   : > { %v1104_v20 = vadd.f32 %v1099_v14, %v620_v12 }
 0x169   : > { %1105 = vst [vmem:[#allocation2] sm:$0xff] %v1103_v17 }
 0x16a   : > { %1106 = vst [vmem:[#allocation2 + $0x8] sm:$0xff] %v1104_v20 }
 0x170   : > { %v1111_v27 = vld [vmem:[#allocation2] sm:$0xff] }
 0x171   : > { %v1112_v28 = vld [vmem:[#allocation2 + $0x8] sm:$0xff]  ;;  %v1125_v33 = vadd.f32 %v1118_v29, %v1111_v27 }
 0x172   : > { %v1126_v34 = vadd.f32 %v1122_v30, %v1112_v28 }
 0x173   : > { %v1130_v35 = vadd.f32 %v1128_v31, %v1125_v33 }
 0x174   : > { %v1131_v36 = vadd.f32 %v1129_v32, %v1126_v34 }
 0x175   : > { %v1132_v37 = vmax.f32 %v1130_v35, 0.0 }
 0x176   : > { %v1133_v38 = vmax.f32 %v1131_v36, 0.0 }
 0x178   : > { %v1376_v39 = vpack.c.bf16 %v1133_v38, %v1132_v37 }
 0x17a   : > { %1142 = vst [vmem:[%s1833_s12] sm:$0xff] %v1376_v39 }
 0x17b PF: > { %s14_s21 = sadd.s32 1, %s1588_s21   ;;  %s1938_s15 = smov %s1568_s16 }
 0x17c   : > { %p11_p0 = scmp.ge.s32.totalorder %s14_s21, 20   ;;  %s1939_s16 = smov %s1667_s28 }
 0x17d   : > { %s1940_s17 = smov %s1580_s19  ;;  %s1941_s18 = smov %s1584_s20 }
 0x17e   : > { %s1942_s19 = smov %s1945_s22  ;;  %s1943_s20 = smov %s1949_s23 }
 0x17f   :  { %13 = sbr.rel (!%p11_p0) target bundleno = 4 (0x4), region = 126 }

// kernel: _lambda_.44
= control target key start
LH: loop header
LB: loop body
LE: loop exit
PB: predicated region body
PF: predicated region fallthrough
CT: control target
= control target key end

     0   :  { %vm21_vm0 = vcmask 1041409   ;;  %vm23_vm1 = vcmask 1043459   ;;  %vm25_vm2 = vcmask 1045509   ;;  %vm27_vm3 = vcmask 1047559   ;;  %s55_s0 = inlined_call_operand.vmem [shape: bf16[2,1,512], index: 0, kind: input, shape index: {}]   ;;  %s56_s1 = inlined_call_operand.vmem [shape: f32[2,512], index: 1, kind: output, shape index: {}]  }
   0x1   :  { %v36_v0 = vld [vmem:[%s55_s0] sm:$0xff]  }
   0x2   :  { %v37_v1 = vunpack.c.l.bf16 %v36_v0  ;;  %v38_v2 = vunpack.c.h.bf16 %v36_v0 }
   0x4   :  { %v20_v3 = vrot.slane %v38_v2, 7 }
   0x6   :  { %v22_v4 = vsel %vm21_vm0, %v20_v3, %v37_v1 }
   0x7   :  { %v24_v5 = vsel %vm23_vm1, %v20_v3, %v22_v4 }
   0x8   :  { %v26_v6 = vsel %vm25_vm2, %v20_v3, %v24_v5 }
   0x9   :  { %v28_v7 = vsel %vm27_vm3, %v20_v3, %v26_v6 }
   0xa   :  { %30 = vst [vmem:[%s56_s1] sm:$0xff] %v28_v7 }

// kernel: _lambda_.42
= control target key start
LH: loop header
LB: loop body
LE: loop exit
PB: predicated region body
PF: predicated region fallthrough
CT: control target
= control target key end

     0   :  { %s1523_s12 = smov 0   ;;  %s1525_s13 = smov 0   ;;  %s1834_s0 = inlined_call_operand.vmem [shape: bf16[8,4608], index: 0, kind: input, shape index: {}]   ;;  %s1835_s1 = inlined_call_operand.vmem [shape: bf16[4608,512], index: 1, kind: input, shape index: {}]   ;;  %s1836_s2 = inlined_call_operand.vmem [shape: f32[1,512], index: 2, kind: input, shape index: {}]   ;;  %s1837_s3 = inlined_call_operand.vmem [shape: bf16[8,512], index: 3, kind: output, shape index: {}]  }
   0x1   :  { %s1527_s14 = smov 0   ;;  %s1529_s15 = smov 0  }
   0x2   :  { %s1531_s16 = smov 0   ;;  %s1533_s17 = smov 0  }
   0x3   :  { %s1535_s18 = smov 0  }
   0x4 LB: > { %s25_s19 = sadd.s32 1, %s1492_s16  ;;  %s28_s20 = sadd.s32 1, %s1496_s17  ;;  %s1500_s18 = sphi %s1535_s18, %s13_s18   ;;  %s1496_s17 = sphi %s1533_s17, %s1843_s17   ;;  %s1492_s16 = sphi %s1531_s16, %s1842_s16   ;;  %s1488_s15 = sphi %s1529_s15, %s1841_s15   ;;  %s1484_s14 = sphi %s1527_s14, %s1840_s14   ;;  %s1480_s13 = sphi %s1525_s13, %s1839_s13   ;;  %s1476_s12 = sphi %s1523_s12, %s1838_s12  }
   0x5   : > { %p26_p0 = scmp.ge.s32.totalorder %s25_s19, 9  ;;  %p76_p1 = scmp.ne.s32.totalorder %s1480_s13, %s1476_s12 }
   0x6   : > { %p77_p2 = scmp.eq.s32.totalorder %s1500_s18, 0  ;;  %s69_s24 = sadd.s32 1, %s1480_s13 }
   0x7   : > { %s1845_s19 = smov (%p26_p0, %s25_s19), 0  ;;  %s1847_s20 = smov (!%p26_p0, %s28_s20), %s1496_s17 }
   0x8   : > { %p78_p3 = por %p77_p2, %p76_p1  ;;  %p30_p4 = scmp.ge.s32.totalorder %s1847_s20, 2 }
   0x9   : > { %s64_s21 = ssub.s32 %s1492_s16, %s1845_s19  ;;  %p1201_p6 = scmp.ge.s32.totalorder %s1500_s18, 18 }
   0xa   : > { %s1849_s20 = smov (%p30_p4, %s1847_s20), 0 }
   0xb   : > { %s65_s22 = ssub.s32 %s1496_s17, %s1849_s20  ;;  %156 = sbr.rel (%p1201_p6) target bundleno = 57 (0x39), region = 16 }
   0xc   : > { %s66_s23 = sor.u32 %s65_s22, %s64_s21 }
   0xd   : > { %p67_p5 = scmp.eq.s32.totalorder %s66_s23, 0 }
   0xf   : > { %s1574_s25 = scalar_select %p67_p5, %s1480_s13, %s69_s24  }
  0x12   : > { %172 = sbr.rel (!%p78_p3) target bundleno = 57 (0x39), region = 24  ;;  %s174_s26 = sand.u32 (%p78_p3), 1, %s1480_s13  }
  0x13   : > { %s1204_s27 = sshll.u32 (%p78_p3), %s1496_s17, 1  ;;  %s1202_s28 = sshll.u32 (%p78_p3), %s174_s26, 9 }
  0x14   : > { %s1287_s29 = sshll.u32 (%p78_p3), %s1492_s16, 8  ;;  %s1588_s8 = scalar_lea.vmem (%p78_p3), [#allocation3], %s1202_s28 }
  0x15   : > { %s180_s30 = sadd.s32 (%p78_p3), %s1287_s29, %s1204_s27 }
  0x16   : > { %s1206_s4 = sshll.u32 (%p78_p3), %s180_s30, 2 }
  0x17   : > { %s1583_s7 = scalar_lea.vmem (%p78_p3), %s1835_s1, %s1206_s4 }
  0x18   : > { %v336_v0 = vld [vmem:[%s1583_s7] sm:$0xff] (%p78_p3)  ;;  %v338_v1 = vld [vmem:[%s1583_s7 + $0x10] sm:$0xff] (%p78_p3) }
  0x19   : > { %v340_v2 = vld [vmem:[%s1583_s7 + $0x20] sm:$0xff]  ;;  %337 = vst [vmem:[%s1588_s8] sm:$0xff] %v336_v0  ;;  %339 = vst [vmem:[%s1588_s8 + $0x8] sm:$0xff] %v338_v1  ;;  %v342_v3 = vld [vmem:[%s1583_s7 + $0x30] sm:$0xff] }
  0x1a   : > { %341 = vst [vmem:[%s1588_s8 + $0x10] sm:$0xff] %v340_v2  ;;  %v344_v4 = vld [vmem:[%s1583_s7 + $0x40] sm:$0xff]  ;;  %v346_v5 = vld [vmem:[%s1583_s7 + $0x50] sm:$0xff]  ;;  %343 = vst [vmem:[%s1588_s8 + $0x18] sm:$0xff] %v342_v3 }
  0x1b   : > { %345 = vst [vmem:[%s1588_s8 + $0x20] sm:$0xff] %v344_v4  ;;  %347 = vst [vmem:[%s1588_s8 + $0x28] sm:$0xff] %v346_v5  ;;  %v348_v6 = vld [vmem:[%s1583_s7 + $0x60] sm:$0xff]  ;;  %v350_v7 = vld [vmem:[%s1583_s7 + $0x70] sm:$0xff] }
  0x1c   : > { %v352_v8 = vld [vmem:[%s1583_s7 + $0x80] sm:$0xff]  ;;  %349 = vst [vmem:[%s1588_s8 + $0x30] sm:$0xff] %v348_v6  ;;  %351 = vst [vmem:[%s1588_s8 + $0x38] sm:$0xff] %v350_v7  ;;  %v354_v9 = vld [vmem:[%s1583_s7 + $0x90] sm:$0xff] }
  0x1d   : > { %353 = vst [vmem:[%s1588_s8 + $0x40] sm:$0xff] %v352_v8  ;;  %v356_v10 = vld [vmem:[%s1583_s7 + $0xa0] sm:$0xff]  ;;  %v358_v11 = vld [vmem:[%s1583_s7 + $0xb0] sm:$0xff]  ;;  %355 = vst [vmem:[%s1588_s8 + $0x48] sm:$0xff] %v354_v9 }
  0x1e   : > { %357 = vst [vmem:[%s1588_s8 + $0x50] sm:$0xff] %v356_v10  ;;  %359 = vst [vmem:[%s1588_s8 + $0x58] sm:$0xff] %v358_v11  ;;  %v360_v12 = vld [vmem:[%s1583_s7 + $0xc0] sm:$0xff]  ;;  %v362_v13 = vld [vmem:[%s1583_s7 + $0xd0] sm:$0xff] }
  0x1f   : > { %v364_v14 = vld [vmem:[%s1583_s7 + $0xe0] sm:$0xff]  ;;  %361 = vst [vmem:[%s1588_s8 + $0x60] sm:$0xff] %v360_v12  ;;  %363 = vst [vmem:[%s1588_s8 + $0x68] sm:$0xff] %v362_v13  ;;  %v366_v15 = vld [vmem:[%s1583_s7 + $0xf0] sm:$0xff] }
  0x20   : > { %365 = vst [vmem:[%s1588_s8 + $0x70] sm:$0xff] %v364_v14  ;;  %v368_v16 = vld [vmem:[%s1583_s7 + $0x100] sm:$0xff]  ;;  %v370_v17 = vld [vmem:[%s1583_s7 + $0x110] sm:$0xff]  ;;  %367 = vst [vmem:[%s1588_s8 + $0x78] sm:$0xff] %v366_v15 }
  0x21   : > { %369 = vst [vmem:[%s1588_s8 + $0x80] sm:$0xff] %v368_v16  ;;  %371 = vst [vmem:[%s1588_s8 + $0x88] sm:$0xff] %v370_v17  ;;  %v372_v18 = vld [vmem:[%s1583_s7 + $0x120] sm:$0xff]  ;;  %v374_v19 = vld [vmem:[%s1583_s7 + $0x130] sm:$0xff] }
  0x22   : > { %v376_v20 = vld [vmem:[%s1583_s7 + $0x140] sm:$0xff]  ;;  %373 = vst [vmem:[%s1588_s8 + $0x90] sm:$0xff] %v372_v18  ;;  %375 = vst [vmem:[%s1588_s8 + $0x98] sm:$0xff] %v374_v19  ;;  %v378_v21 = vld [vmem:[%s1583_s7 + $0x150] sm:$0xff] }
  0x23   : > { %377 = vst [vmem:[%s1588_s8 + $0xa0] sm:$0xff] %v376_v20  ;;  %v380_v22 = vld [vmem:[%s1583_s7 + $0x160] sm:$0xff]  ;;  %v382_v23 = vld [vmem:[%s1583_s7 + $0x170] sm:$0xff]  ;;  %379 = vst [vmem:[%s1588_s8 + $0xa8] sm:$0xff] %v378_v21 }
  0x24   : > { %381 = vst [vmem:[%s1588_s8 + $0xb0] sm:$0xff] %v380_v22  ;;  %383 = vst [vmem:[%s1588_s8 + $0xb8] sm:$0xff] %v382_v23  ;;  %v384_v24 = vld [vmem:[%s1583_s7 + $0x180] sm:$0xff]  ;;  %v386_v25 = vld [vmem:[%s1583_s7 + $0x190] sm:$0xff] }
  0x25   : > { %v388_v26 = vld [vmem:[%s1583_s7 + $0x1a0] sm:$0xff]  ;;  %385 = vst [vmem:[%s1588_s8 + $0xc0] sm:$0xff] %v384_v24  ;;  %387 = vst [vmem:[%s1588_s8 + $0xc8] sm:$0xff] %v386_v25  ;;  %v390_v27 = vld [vmem:[%s1583_s7 + $0x1b0] sm:$0xff] }
  0x26   : > { %389 = vst [vmem:[%s1588_s8 + $0xd0] sm:$0xff] %v388_v26  ;;  %v392_v28 = vld [vmem:[%s1583_s7 + $0x1c0] sm:$0xff]  ;;  %v394_v29 = vld [vmem:[%s1583_s7 + $0x1d0] sm:$0xff]  ;;  %391 = vst [vmem:[%s1588_s8 + $0xd8] sm:$0xff] %v390_v27 }
  0x27   : > { %393 = vst [vmem:[%s1588_s8 + $0xe0] sm:$0xff] %v392_v28  ;;  %395 = vst [vmem:[%s1588_s8 + $0xe8] sm:$0xff] %v394_v29  ;;  %v396_v30 = vld [vmem:[%s1583_s7 + $0x1e0] sm:$0xff]  ;;  %v398_v31 = vld [vmem:[%s1583_s7 + $0x1f0] sm:$0xff] }
  0x28   : > { %v400_v32 = vld [vmem:[%s1583_s7 + $0x200] sm:$0xff]  ;;  %397 = vst [vmem:[%s1588_s8 + $0xf0] sm:$0xff] %v396_v30  ;;  %399 = vst [vmem:[%s1588_s8 + $0xf8] sm:$0xff] %v398_v31  ;;  %v402_v33 = vld [vmem:[%s1583_s7 + $0x210] sm:$0xff] }
  0x29   : > { %401 = vst [vmem:[%s1588_s8 + $0x100] sm:$0xff] %v400_v32  ;;  %v404_v34 = vld [vmem:[%s1583_s7 + $0x220] sm:$0xff]  ;;  %v406_v35 = vld [vmem:[%s1583_s7 + $0x230] sm:$0xff]  ;;  %403 = vst [vmem:[%s1588_s8 + $0x108] sm:$0xff] %v402_v33 }
  0x2a   : > { %405 = vst [vmem:[%s1588_s8 + $0x110] sm:$0xff] %v404_v34  ;;  %407 = vst [vmem:[%s1588_s8 + $0x118] sm:$0xff] %v406_v35  ;;  %v408_v36 = vld [vmem:[%s1583_s7 + $0x240] sm:$0xff]  ;;  %v410_v37 = vld [vmem:[%s1583_s7 + $0x250] sm:$0xff] }
  0x2b   : > { %v412_v38 = vld [vmem:[%s1583_s7 + $0x260] sm:$0xff]  ;;  %409 = vst [vmem:[%s1588_s8 + $0x120] sm:$0xff] %v408_v36  ;;  %411 = vst [vmem:[%s1588_s8 + $0x128] sm:$0xff] %v410_v37  ;;  %v414_v39 = vld [vmem:[%s1583_s7 + $0x270] sm:$0xff] }
  0x2c   : > { %413 = vst [vmem:[%s1588_s8 + $0x130] sm:$0xff] %v412_v38  ;;  %v416_v40 = vld [vmem:[%s1583_s7 + $0x280] sm:$0xff]  ;;  %v418_v41 = vld [vmem:[%s1583_s7 + $0x290] sm:$0xff]  ;;  %415 = vst [vmem:[%s1588_s8 + $0x138] sm:$0xff] %v414_v39 }
  0x2d   : > { %417 = vst [vmem:[%s1588_s8 + $0x140] sm:$0xff] %v416_v40  ;;  %419 = vst [vmem:[%s1588_s8 + $0x148] sm:$0xff] %v418_v41  ;;  %v420_v42 = vld [vmem:[%s1583_s7 + $0x2a0] sm:$0xff]  ;;  %v422_v43 = vld [vmem:[%s1583_s7 + $0x2b0] sm:$0xff] }
  0x2e   : > { %v424_v44 = vld [vmem:[%s1583_s7 + $0x2c0] sm:$0xff]  ;;  %421 = vst [vmem:[%s1588_s8 + $0x150] sm:$0xff] %v420_v42  ;;  %423 = vst [vmem:[%s1588_s8 + $0x158] sm:$0xff] %v422_v43  ;;  %v426_v45 = vld [vmem:[%s1583_s7 + $0x2d0] sm:$0xff] }
  0x2f   : > { %425 = vst [vmem:[%s1588_s8 + $0x160] sm:$0xff] %v424_v44  ;;  %v428_v46 = vld [vmem:[%s1583_s7 + $0x2e0] sm:$0xff]  ;;  %v430_v47 = vld [vmem:[%s1583_s7 + $0x2f0] sm:$0xff]  ;;  %427 = vst [vmem:[%s1588_s8 + $0x168] sm:$0xff] %v426_v45 }
  0x30   : > { %429 = vst [vmem:[%s1588_s8 + $0x170] sm:$0xff] %v428_v46  ;;  %431 = vst [vmem:[%s1588_s8 + $0x178] sm:$0xff] %v430_v47  ;;  %v432_v48 = vld [vmem:[%s1583_s7 + $0x300] sm:$0xff]  ;;  %v434_v49 = vld [vmem:[%s1583_s7 + $0x310] sm:$0xff] }
  0x31   : > { %v436_v50 = vld [vmem:[%s1583_s7 + $0x320] sm:$0xff]  ;;  %433 = vst [vmem:[%s1588_s8 + $0x180] sm:$0xff] %v432_v48  ;;  %435 = vst [vmem:[%s1588_s8 + $0x188] sm:$0xff] %v434_v49  ;;  %v438_v51 = vld [vmem:[%s1583_s7 + $0x330] sm:$0xff] }
  0x32   : > { %437 = vst [vmem:[%s1588_s8 + $0x190] sm:$0xff] %v436_v50  ;;  %v440_v52 = vld [vmem:[%s1583_s7 + $0x340] sm:$0xff]  ;;  %v442_v53 = vld [vmem:[%s1583_s7 + $0x350] sm:$0xff]  ;;  %439 = vst [vmem:[%s1588_s8 + $0x198] sm:$0xff] %v438_v51 }
  0x33   : > { %441 = vst [vmem:[%s1588_s8 + $0x1a0] sm:$0xff] %v440_v52  ;;  %443 = vst [vmem:[%s1588_s8 + $0x1a8] sm:$0xff] %v442_v53  ;;  %v444_v54 = vld [vmem:[%s1583_s7 + $0x360] sm:$0xff]  ;;  %v446_v55 = vld [vmem:[%s1583_s7 + $0x370] sm:$0xff] }
  0x34   : > { %v448_v56 = vld [vmem:[%s1583_s7 + $0x380] sm:$0xff]  ;;  %445 = vst [vmem:[%s1588_s8 + $0x1b0] sm:$0xff] %v444_v54  ;;  %447 = vst [vmem:[%s1588_s8 + $0x1b8] sm:$0xff] %v446_v55  ;;  %v450_v57 = vld [vmem:[%s1583_s7 + $0x390] sm:$0xff] }
  0x35   : > { %449 = vst [vmem:[%s1588_s8 + $0x1c0] sm:$0xff] %v448_v56  ;;  %v452_v58 = vld [vmem:[%s1583_s7 + $0x3a0] sm:$0xff]  ;;  %v454_v59 = vld [vmem:[%s1583_s7 + $0x3b0] sm:$0xff]  ;;  %451 = vst [vmem:[%s1588_s8 + $0x1c8] sm:$0xff] %v450_v57 }
  0x36   : > { %453 = vst [vmem:[%s1588_s8 + $0x1d0] sm:$0xff] %v452_v58  ;;  %455 = vst [vmem:[%s1588_s8 + $0x1d8] sm:$0xff] %v454_v59  ;;  %v456_v60 = vld [vmem:[%s1583_s7 + $0x3c0] sm:$0xff]  ;;  %v458_v61 = vld [vmem:[%s1583_s7 + $0x3d0] sm:$0xff] }
  0x37   : > { %v460_v62 = vld [vmem:[%s1583_s7 + $0x3e0] sm:$0xff]  ;;  %457 = vst [vmem:[%s1588_s8 + $0x1e0] sm:$0xff] %v456_v60  ;;  %459 = vst [vmem:[%s1588_s8 + $0x1e8] sm:$0xff] %v458_v61  ;;  %v462_v63 = vld [vmem:[%s1583_s7 + $0x3f0] sm:$0xff] }
  0x38   : > { %461 = vst [vmem:[%s1588_s8 + $0x1f0] sm:$0xff] %v460_v62  ;;  %463 = vst [vmem:[%s1588_s8 + $0x1f8] sm:$0xff] %v462_v63 }
  0x39 PF: > { %p1207_p7 = scmp.ge.s32.totalorder %s1500_s18, 1  ;;  %p476_p8 = scmp.lt.s32.totalorder %s1500_s18, 19 }
  0x3b   : > { %p477_p9 = pnand %p1207_p7, %p476_p8 }
  0x3c   : > { %s483_s9 = sand.u32 (!%p477_p9), 1, %s1476_s12   ;;  %s1209_s10 = sshll.u32 (!%p477_p9), %s1484_s14, 2 }
  0x3d   : > { %480 = sbr.rel (%p477_p9) target bundleno = 376 (0x178), region = 66  ;;  %s1208_s11 = sshll.u32 (!%p477_p9), %s483_s9, 9 }
  0x3e   : > { %p526_p10 = scmp.lt.s32.totalorder (!%p477_p9), %s1209_s10, 35  ;;  %s1211_s21 = sshll.u32 (!%p477_p9), %s1488_s15, 1 }
  0x3f   : > { %p536_p11 = scmp.lt.s32.totalorder (!%p477_p9), %s1211_s21, 3  ;;  %s1737_s5 = scalar_lea.vmem (!%p477_p9), [#allocation3], %s1208_s11 }
  0x40   : > { %p1214_p12 = scmp.ne.s32.totalorder (!%p477_p9), %s1484_s14, 0 }
  0x44   : > { %s1851_s10 = smov (!%p526_p10, %s1209_s10), 35  ;;  %s1853_s21 = smov (!%p536_p11, %s1211_s21), 3 }
  0x45   : > { %s1210_s22 = sshll.u32 %s1851_s10, 2  ;;  %s538_s12 = scalar_lea.vmem %s1836_s2, %s1853_s21  ;;  %v1502_v0 = vmov (!%p1214_p12), 0.0  }
  0x46   : > { %s1723_s26 = scalar_lea.vmem %s1834_s0, %s1210_s22  ;;  %s1213_s29 = sshll.u32 %s1853_s21, 2  ;;  %554 = vst [vmem:[#allocation2] sm:$0xff] (!%p1214_p12), %v1502_v0  ;;  %555 = vst [vmem:[#allocation2 + $0x8] sm:$0xff] (!%p1214_p12), %v1502_v0 }
  0x47   : > { %s1735_s15 = scalar_lea.vmem %s1837_s3, %s1213_s29  ;;  %553 = sbr.rel (%p1214_p12) target bundleno = 78 (0x4e), region = 74 }
  0x4e PF: > { %v1346_v1 = vld [vmem:[%s1737_s5 + $0x4] ss:$8 sps:$4 sm:$0xff]   ;;  %v1350_v3 = vld [vmem:[%s1737_s5] ss:$8 sps:$4 sm:$0xff]   ;;  %v1352_v5 = vld [vmem:[%s1737_s5 + $0x14] ss:$8 sps:$4 sm:$0xff]  }
  0x4f   : > { %v1348_v2 = vld [vmem:[%s1737_s5 + $0x104] ss:$8 sps:$4 sm:$0xff]   ;;  %958 = vmatprep.subr.bf16.mxu0 %v1346_v1  ;;  %v1351_v4 = vld [vmem:[%s1737_s5 + $0x100] ss:$8 sps:$4 sm:$0xff]   ;;  %v1354_v6 = vld [vmem:[%s1737_s5 + $0x114] ss:$8 sps:$4 sm:$0xff]  }
  0x50   : > { %999 = vmatprep.subr.bf16.mxu1 %v1348_v2  ;;  %959 = vmatpush1.bf16.msra.mxu0 %v1350_v3  ;;  %v1356_v7 = vld [vmem:[%s1737_s5 + $0x10] ss:$8 sps:$4 sm:$0xff]   ;;  %v1358_v9 = vld [vmem:[%s1737_s5 + $0x24] ss:$8 sps:$4 sm:$0xff]   ;;  %v1362_v11 = vld [vmem:[%s1737_s5 + $0x20] ss:$8 sps:$4 sm:$0xff]  }
  0x51   : > { %1000 = vmatpush1.bf16.msra.mxu1 %v1351_v4  ;;  %960 = vmatprep.subr.bf16.mxu0 %v1352_v5  ;;  %v1357_v8 = vld [vmem:[%s1737_s5 + $0x110] ss:$8 sps:$4 sm:$0xff]   ;;  %v1360_v10 = vld [vmem:[%s1737_s5 + $0x124] ss:$8 sps:$4 sm:$0xff]   ;;  %v1363_v12 = vld [vmem:[%s1737_s5 + $0x120] ss:$8 sps:$4 sm:$0xff]  }
  0x52   : > { %1001 = vmatprep.subr.bf16.mxu1 %v1354_v6  ;;  %v1364_v13 = vld [vmem:[%s1737_s5 + $0x34] ss:$8 sps:$4 sm:$0xff]   ;;  %v1368_v15 = vld [vmem:[%s1737_s5 + $0x30] ss:$8 sps:$4 sm:$0xff]   ;;  %v1370_v17 = vld [vmem:[%s1737_s5 + $0x44] ss:$8 sps:$4 sm:$0xff]  }
  0x53   : > { %v1366_v14 = vld [vmem:[%s1737_s5 + $0x134] ss:$8 sps:$4 sm:$0xff]   ;;  %v1369_v16 = vld [vmem:[%s1737_s5 + $0x130] ss:$8 sps:$4 sm:$0xff]   ;;  %v1372_v18 = vld [vmem:[%s1737_s5 + $0x144] ss:$8 sps:$4 sm:$0xff]  }
  0x54   : > { %961 = vmatpush1.bf16.msra.mxu0 %v1356_v7  ;;  %v1374_v19 = vld [vmem:[%s1737_s5 + $0x40] ss:$8 sps:$4 sm:$0xff]   ;;  %v1376_v21 = vld [vmem:[%s1737_s5 + $0x54] ss:$8 sps:$4 sm:$0xff]   ;;  %v1380_v23 = vld [vmem:[%s1737_s5 + $0x50] ss:$8 sps:$4 sm:$0xff]  }
  0x55   : > { %1002 = vmatpush1.bf16.msra.mxu1 %v1357_v8  ;;  %962 = vmatprep.subr.bf16.mxu0 %v1358_v9  ;;  %v1375_v20 = vld [vmem:[%s1737_s5 + $0x140] ss:$8 sps:$4 sm:$0xff]   ;;  %v1378_v22 = vld [vmem:[%s1737_s5 + $0x154] ss:$8 sps:$4 sm:$0xff]   ;;  %v1381_v24 = vld [vmem:[%s1737_s5 + $0x150] ss:$8 sps:$4 sm:$0xff]  }
  0x56   : > { %1003 = vmatprep.subr.bf16.mxu1 %v1360_v10  ;;  %v1382_v25 = vld [vmem:[%s1737_s5 + $0x64] ss:$8 sps:$4 sm:$0xff]   ;;  %v1386_v27 = vld [vmem:[%s1737_s5 + $0x60] ss:$8 sps:$4 sm:$0xff]   ;;  %v1388_v29 = vld [vmem:[%s1737_s5 + $0x74] ss:$8 sps:$4 sm:$0xff]  }
  0x57   : > { %v1384_v26 = vld [vmem:[%s1737_s5 + $0x164] ss:$8 sps:$4 sm:$0xff]   ;;  %v1387_v28 = vld [vmem:[%s1737_s5 + $0x160] ss:$8 sps:$4 sm:$0xff]   ;;  %v1390_v30 = vld [vmem:[%s1737_s5 + $0x174] ss:$8 sps:$4 sm:$0xff]  }
  0x58   : > { %963 = vmatpush1.bf16.msra.mxu0 %v1362_v11  ;;  %v1392_v31 = vld [vmem:[%s1737_s5 + $0x70] ss:$8 sps:$4 sm:$0xff]   ;;  %v1394_v33 = vld [vmem:[%s1737_s5 + $0x84] ss:$8 sps:$4 sm:$0xff]   ;;  %v1398_v35 = vld [vmem:[%s1737_s5 + $0x80] ss:$8 sps:$4 sm:$0xff]  }
  0x59   : > { %1004 = vmatpush1.bf16.msra.mxu1 %v1363_v12  ;;  %964 = vmatprep.subr.bf16.mxu0 %v1364_v13  ;;  %v1393_v32 = vld [vmem:[%s1737_s5 + $0x170] ss:$8 sps:$4 sm:$0xff]   ;;  %v1396_v34 = vld [vmem:[%s1737_s5 + $0x184] ss:$8 sps:$4 sm:$0xff]   ;;  %v1399_v36 = vld [vmem:[%s1737_s5 + $0x180] ss:$8 sps:$4 sm:$0xff]  }
  0x5a   : > { %1005 = vmatprep.subr.bf16.mxu1 %v1366_v14  ;;  %v1400_v37 = vld [vmem:[%s1737_s5 + $0x94] ss:$8 sps:$4 sm:$0xff]   ;;  %v1404_v39 = vld [vmem:[%s1737_s5 + $0x90] ss:$8 sps:$4 sm:$0xff]   ;;  %v1406_v41 = vld [vmem:[%s1737_s5 + $0xa4] ss:$8 sps:$4 sm:$0xff]  }
  0x5b   : > { %v1402_v38 = vld [vmem:[%s1737_s5 + $0x194] ss:$8 sps:$4 sm:$0xff]   ;;  %v1405_v40 = vld [vmem:[%s1737_s5 + $0x190] ss:$8 sps:$4 sm:$0xff]   ;;  %v1408_v42 = vld [vmem:[%s1737_s5 + $0x1a4] ss:$8 sps:$4 sm:$0xff]  }
  0x5c   : > { %965 = vmatpush1.bf16.msra.mxu0 %v1368_v15  ;;  %v1410_v43 = vld [vmem:[%s1737_s5 + $0xa0] ss:$8 sps:$4 sm:$0xff]   ;;  %v1412_v45 = vld [vmem:[%s1737_s5 + $0xb4] ss:$8 sps:$4 sm:$0xff]   ;;  %v1416_v50 = vld [vmem:[%s1737_s5 + $0xb0] ss:$8 sps:$4 sm:$0xff]  }
  0x5d   : > { %1006 = vmatpush1.bf16.msra.mxu1 %v1369_v16  ;;  %966 = vmatprep.subr.bf16.mxu0 %v1370_v17  ;;  %v1411_v44 = vld [vmem:[%s1737_s5 + $0x1a0] ss:$8 sps:$4 sm:$0xff]   ;;  %v1414_v46 = vld [vmem:[%s1737_s5 + $0x1b4] ss:$8 sps:$4 sm:$0xff]   ;;  %v1417_v51 = vld [vmem:[%s1737_s5 + $0x1b0] ss:$8 sps:$4 sm:$0xff]  }
  0x5e   : > { %1007 = vmatprep.subr.bf16.mxu1 %v1372_v18  ;;  %v558_v47 = vld [vmem:[%s1723_s26] sm:$0xff]  ;;  %v559_v49 = vld [vmem:[%s1723_s26 + $0x8] sm:$0xff]  ;;  %v1418_v53 = vld [vmem:[%s1737_s5 + $0xc4] ss:$8 sps:$4 sm:$0xff]   ;;  %p1283_p13 = scmp.ne.s32.totalorder %s1484_s14, 8 }
  0x5f   : > { %v1216_v48 = vcombine.high %v558_v47, %v558_v47  ;;  %v1218_v52 = vcombine.high %v559_v49, %v559_v49  ;;  %v1420_v54 = vld [vmem:[%s1737_s5 + $0x1c4] ss:$8 sps:$4 sm:$0xff]   ;;  %v1422_v55 = vld [vmem:[%s1737_s5 + $0xc0] ss:$8 sps:$4 sm:$0xff]   ;;  %v1424_v57 = vld [vmem:[%s1737_s5 + $0xd4] ss:$8 sps:$4 sm:$0xff]   ;;  %v1215_v5 = vcombine.low %v558_v47, %v558_v47  ;;  %v1217_v6 = vcombine.low %v559_v49, %v559_v49 }
  0x60   : > { %967 = vmatpush1.bf16.msra.mxu0 %v1374_v19  ;;  %v1423_v56 = vld [vmem:[%s1737_s5 + $0x1c0] ss:$8 sps:$4 sm:$0xff]   ;;  %v1426_v58 = vld [vmem:[%s1737_s5 + $0x1d4] ss:$8 sps:$4 sm:$0xff]   ;;  %v1428_v59 = vld [vmem:[%s1737_s5 + $0xd0] ss:$8 sps:$4 sm:$0xff]  }
  0x61   : > { %1008 = vmatpush1.bf16.msra.mxu1 %v1375_v20  ;;  %968 = vmatprep.subr.bf16.mxu0 %v1376_v21  ;;  %v1429_v60 = vld [vmem:[%s1737_s5 + $0x1d0] ss:$8 sps:$4 sm:$0xff]   ;;  %v1430_v61 = vld [vmem:[%s1737_s5 + $0xe4] ss:$8 sps:$4 sm:$0xff]   ;;  %v1434_v63 = vld [vmem:[%s1737_s5 + $0xe0] ss:$8 sps:$4 sm:$0xff]   ;;  %v1052_v21 = vlaneseq (!%p1283_p13) }
  0x62   : > { %1009 = vmatprep.subr.bf16.mxu1 %v1378_v22  ;;  %990 = vmatprep.mubr.bf16.mxu0 %v1216_v48  ;;  %v1432_v62 = vld [vmem:[%s1737_s5 + $0x1e4] ss:$8 sps:$4 sm:$0xff]   ;;  %v1435_v0 = vld [vmem:[%s1737_s5 + $0x1e0] ss:$8 sps:$4 sm:$0xff]   ;;  %v1436_v1 = vld [vmem:[%s1737_s5 + $0xf4] ss:$8 sps:$4 sm:$0xff]  }
  0x63   : > { %1031 = vmatprep.mubr.bf16.mxu1 %v1218_v52  ;;  %v1438_v2 = vld [vmem:[%s1737_s5 + $0x1f4] ss:$8 sps:$4 sm:$0xff]   ;;  %v1440_v3 = vld [vmem:[%s1737_s5 + $0xf0] ss:$8 sps:$4 sm:$0xff]   ;;  %v1053_v22 = vshrl.u32 (!%p1283_p13), %v1052_v21, 7 }
  0x64   : > { %969 = vmatpush1.bf16.msra.mxu0 %v1380_v23  ;;  %v1441_v4 = vld [vmem:[%s1737_s5 + $0x1f0] ss:$8 sps:$4 sm:$0xff]  }
  0x65   : > { %1010 = vmatpush1.bf16.msra.mxu1 %v1381_v24  ;;  %970 = vmatprep.subr.bf16.mxu0 %v1382_v25  ;;  %v556_v8 = vld [vmem:[#allocation2] sm:$0xff]  ;;  %v557_v12 = vld [vmem:[#allocation2 + $0x8] sm:$0xff]  ;;  %v1054_v24 = vsub.s32 (!%p1283_p13), 0, %v1053_v22  ;;  %v1058_v25 = vsub.s32 (!%p1283_p13), 1, %v1053_v22 }
  0x66   : > { %1011 = vmatprep.subr.bf16.mxu1 %v1384_v26  ;;  %v1050_v23 = vld [vmem:[%s538_s12] sm:$0x3] (!%p1283_p13) }
  0x68   : > { %971 = vmatpush1.bf16.msra.mxu0 %v1386_v27 }
  0x69   : > { %1012 = vmatpush1.bf16.msra.mxu1 %v1387_v28  ;;  %972 = vmatprep.subr.bf16.mxu0 %v1388_v29  ;;  %v1055_v28 = vrot.slane (!%p1283_p13), %v1050_v23, %v1054_v24  ;;  %v1059_v29 = vrot.slane (!%p1283_p13), %v1050_v23, %v1058_v25 }
  0x6a   : > { %1013 = vmatprep.subr.bf16.mxu1 %v1390_v30 }
  0x6c   : > { %973 = vmatpush1.bf16.msra.mxu0 %v1392_v31 }
  0x6d   : > { %1014 = vmatpush1.bf16.msra.mxu1 %v1393_v32  ;;  %974 = vmatprep.subr.bf16.mxu0 %v1394_v33 }
  0x6e   : > { %1015 = vmatprep.subr.bf16.mxu1 %v1396_v34 }
  0x70   : > { %975 = vmatpush1.bf16.msra.mxu0 %v1398_v35 }
  0x71   : > { %1016 = vmatpush1.bf16.msra.mxu1 %v1399_v36  ;;  %976 = vmatprep.subr.bf16.mxu0 %v1400_v37 }
  0x72   : > { %1017 = vmatprep.subr.bf16.mxu1 %v1402_v38 }
  0x74   : > { %977 = vmatpush1.bf16.msra.mxu0 %v1404_v39 }
  0x75   : > { %1018 = vmatpush1.bf16.msra.mxu1 %v1405_v40  ;;  %978 = vmatprep.subr.bf16.mxu0 %v1406_v41 }
  0x76   : > { %1019 = vmatprep.subr.bf16.mxu1 %v1408_v42 }
  0x78   : > { %979 = vmatpush1.bf16.msra.mxu0 %v1410_v43 }
  0x79   : > { %1020 = vmatpush1.bf16.msra.mxu1 %v1411_v44  ;;  %980 = vmatprep.subr.bf16.mxu0 %v1412_v45 }
  0x7a   : > { %1021 = vmatprep.subr.bf16.mxu1 %v1414_v46 }
  0x7c   : > { %981 = vmatpush1.bf16.msra.mxu0 %v1416_v50 }
  0x7d   : > { %1022 = vmatpush1.bf16.msra.mxu1 %v1417_v51  ;;  %982 = vmatprep.subr.bf16.mxu0 %v1418_v53 }
  0x7e   : > { %1023 = vmatprep.subr.bf16.mxu1 %v1420_v54 }
  0x80   : > { %983 = vmatpush1.bf16.msra.mxu0 %v1422_v55 }
  0x81   : > { %1024 = vmatpush1.bf16.msra.mxu1 %v1423_v56  ;;  %984 = vmatprep.subr.bf16.mxu0 %v1424_v57 }
  0x82   : > { %1025 = vmatprep.subr.bf16.mxu1 %v1426_v58 }
  0x84   : > { %985 = vmatpush1.bf16.msra.mxu0 %v1428_v59 }
  0x85   : > { %1026 = vmatpush1.bf16.msra.mxu1 %v1429_v60  ;;  %986 = vmatprep.subr.bf16.mxu0 %v1430_v61 }
  0x86   : > { %1027 = vmatprep.subr.bf16.mxu1 %v1432_v62 }
  0x88   : > { %987 = vmatpush1.bf16.msra.mxu0 %v1434_v63 }
  0x89   : > { %1028 = vmatpush1.bf16.msra.mxu1 %v1435_v0  ;;  %988 = vmatprep.subr.bf16.mxu0 %v1436_v1 }
  0x8a   : > { %1029 = vmatprep.subr.bf16.mxu1 %v1438_v2 }
  0x8c   : > { %989 = vmatpush1.bf16.msra.mxu0 %v1440_v3 }
  0x8d   : > { %1030 = vmatpush1.bf16.msra.mxu1 %v1441_v4 }
  0x8f   : > { %991 = vmatmul.mubr.bf16.vlgmr.msra.gmra.mrb[0].mxu0 %v1215_v5 }
  0x90   : > { %1032 = vmatmul.mubr.bf16.vlgmr.msra.gmra.mrb[0].mxu1 %v1217_v6 }
 0x162   : > { %v992_v7 = vpop.f32.mrb[0].mxu0 }
 0x163   : > { %v1033_v9 = vpop.f32.mrb[0].mxu1  ;;  %v994_v11 = vpop.f32.mrb[1].mxu0  ;;  %1047 = sbr.rel (%p1283_p13) target bundleno = 376 (0x178), region = 78 }
 0x164   : > { %v1034_v10 = vadd.f32 %v1033_v9, %v992_v7  ;;  %v1035_v13 = vpop.f32.mrb[1].mxu1  ;;  %v996_v15 = vpop.f32.mrb[2].mxu0 }
 0x165   : > { %v1036_v14 = vadd.f32 %v1035_v13, %v994_v11  ;;  %v1037_v16 = vpop.f32.mrb[2].mxu1  ;;  %v997_v18 = vpop.f32.mrb[3].mxu0 }
 0x166   : > { %v1040_v17 = vadd.f32 %v1034_v10, %v556_v8  ;;  %v1038_v19 = vpop.f32.mrb[3].mxu1 }
 0x167   : > { %v1041_v20 = vadd.f32 %v1036_v14, %v557_v12 }
 0x168   : > { %1042 = vst [vmem:[#allocation2] sm:$0xff] %v1040_v17 }
 0x169   : > { %1043 = vst [vmem:[#allocation2 + $0x8] sm:$0xff] %v1041_v20 }
 0x16f   : > { %v1048_v26 = vld [vmem:[#allocation2] sm:$0xff] }
 0x170   : > { %v1049_v27 = vld [vmem:[#allocation2 + $0x8] sm:$0xff]  ;;  %v1062_v30 = vadd.f32 %v1055_v28, %v1048_v26 }
 0x171   : > { %v1063_v31 = vadd.f32 %v1059_v29, %v1049_v27 }
 0x172   : > { %v1064_v32 = vmax.f32 %v1062_v30, 0.0 }
 0x173   : > { %v1065_v33 = vmax.f32 %v1063_v31, 0.0 }
 0x175   : > { %v1288_v34 = vpack.c.bf16 %v1065_v33, %v1064_v32 }
 0x177   : > { %1074 = vst [vmem:[%s1735_s15] sm:$0xff] %v1288_v34 }
 0x178 PF: > { %s13_s18 = sadd.s32 1, %s1500_s18   ;;  %s1838_s12 = smov %s1480_s13 }
 0x179   : > { %p10_p0 = scmp.ge.s32.totalorder %s13_s18, 20   ;;  %s1839_s13 = smov %s1574_s25 }
 0x17a   : > { %s1840_s14 = smov %s1492_s16  ;;  %s1841_s15 = smov %s1496_s17 }
 0x17b   : > { %s1842_s16 = smov %s1845_s19  ;;  %s1843_s17 = smov %s1849_s20 }
 0x17c   :  { %12 = sbr.rel (!%p10_p0) target bundleno = 4 (0x4), region = 119 }

// kernel: _lambda_.45
= control target key start
LH: loop header
LB: loop body
LE: loop exit
PB: predicated region body
PF: predicated region fallthrough
CT: control target
= control target key end

     0   :  { %vm1096_vm0 = vmmov 0   ;;  %s1431_s1 = inlined_call_operand.vmem [shape: bf16[512,256], index: 1, kind: input, shape index: {}]   ;;  %s1432_s0 = inlined_call_operand.vmem [shape: bf16[8,512], index: 0, kind: input, shape index: {}]   ;;  %s1433_s3 = inlined_call_operand.vmem [shape: bf16[256,128], index: 3, kind: input, shape index: {}]   ;;  %s1434_s5 = inlined_call_operand.vmem [shape: bf16[128,128], index: 5, kind: input, shape index: {}]   ;;  %s1435_s2 = inlined_call_operand.vmem [shape: f32[1,256], index: 2, kind: input, shape index: {}]   ;;  %s1436_s4 = inlined_call_operand.vmem [shape: f32[1,128], index: 4, kind: input, shape index: {}]   ;;  %s1437_s6 = inlined_call_operand.vmem [shape: f32[1,128], index: 6, kind: input, shape index: {}]   ;;  %s1438_s7 = inlined_call_operand.vmem [shape: f32[8,128], index: 7, kind: output, shape index: {}]  }
   0x1   :  { %v971_v0 = vld [vmem:[%s1431_s1 + $0x4] ss:$8 sps:$4 sm:$0xff]   ;;  %v973_v1 = vld [vmem:[%s1431_s1] ss:$8 sps:$4 sm:$0xff]   ;;  %v974_v2 = vld [vmem:[%s1431_s1 + $0x14] ss:$8 sps:$4 sm:$0xff]  }
   0x2   :  { %439 = vmatprep.subr.bf16.mxu0 %v971_v0  ;;  %v976_v3 = vld [vmem:[%s1431_s1 + $0x10] ss:$8 sps:$4 sm:$0xff]   ;;  %v977_v4 = vld [vmem:[%s1431_s1 + $0x24] ss:$8 sps:$4 sm:$0xff]   ;;  %v979_v5 = vld [vmem:[%s1431_s1 + $0x20] ss:$8 sps:$4 sm:$0xff]  }
   0x3   :  { %440 = vmatpush1.bf16.msra.mxu0 %v973_v1  ;;  %v980_v6 = vld [vmem:[%s1431_s1 + $0x34] ss:$8 sps:$4 sm:$0xff]   ;;  %v982_v7 = vld [vmem:[%s1431_s1 + $0x30] ss:$8 sps:$4 sm:$0xff]   ;;  %v983_v8 = vld [vmem:[%s1431_s1 + $0x44] ss:$8 sps:$4 sm:$0xff]  }
   0x4   :  { %441 = vmatprep.subr.bf16.mxu0 %v974_v2  ;;  %v985_v9 = vld [vmem:[%s1431_s1 + $0x40] ss:$8 sps:$4 sm:$0xff]   ;;  %v986_v10 = vld [vmem:[%s1431_s1 + $0x54] ss:$8 sps:$4 sm:$0xff]   ;;  %v988_v11 = vld [vmem:[%s1431_s1 + $0x50] ss:$8 sps:$4 sm:$0xff]  }
   0x5   :  { %v989_v12 = vld [vmem:[%s1431_s1 + $0x64] ss:$8 sps:$4 sm:$0xff]   ;;  %v991_v15 = vld [vmem:[%s1431_s1 + $0x60] ss:$8 sps:$4 sm:$0xff]   ;;  %v992_v16 = vld [vmem:[%s1431_s1 + $0x74] ss:$8 sps:$4 sm:$0xff]  }
   0x6   :  { %v1179_v13 = vld [vmem:[%s1432_s0] sm:$0xff]  ;;  %v994_v17 = vld [vmem:[%s1431_s1 + $0x70] ss:$8 sps:$4 sm:$0xff]   ;;  %v998_v20 = vld [vmem:[%s1431_s1 + $0x94] ss:$8 sps:$4 sm:$0xff]  }
   0x7   :  { %442 = vmatpush1.bf16.msra.mxu0 %v976_v3  ;;  %v819_v14 = vcombine.high %v1179_v13, %v1179_v13  ;;  %v995_v18 = vld [vmem:[%s1431_s1 + $0x84] ss:$8 sps:$4 sm:$0xff]   ;;  %v997_v19 = vld [vmem:[%s1431_s1 + $0x80] ss:$8 sps:$4 sm:$0xff]   ;;  %v1000_v21 = vld [vmem:[%s1431_s1 + $0x90] ss:$8 sps:$4 sm:$0xff]   ;;  %v818_v47 = vcombine.low %v1179_v13, %v1179_v13 }
   0x8   :  { %443 = vmatprep.subr.bf16.mxu0 %v977_v4  ;;  %v1001_v22 = vld [vmem:[%s1431_s1 + $0xa4] ss:$8 sps:$4 sm:$0xff]   ;;  %v1003_v23 = vld [vmem:[%s1431_s1 + $0xa0] ss:$8 sps:$4 sm:$0xff]   ;;  %v1004_v24 = vld [vmem:[%s1431_s1 + $0xb4] ss:$8 sps:$4 sm:$0xff]  }
   0x9   :  { %471 = vmatprep.mubr.bf16.mxu0 %v819_v14  ;;  %v1006_v25 = vld [vmem:[%s1431_s1 + $0xb0] ss:$8 sps:$4 sm:$0xff]   ;;  %v1007_v26 = vld [vmem:[%s1431_s1 + $0xc4] ss:$8 sps:$4 sm:$0xff]   ;;  %v1009_v28 = vld [vmem:[%s1431_s1 + $0xc0] ss:$8 sps:$4 sm:$0xff]  }
   0xa   :  { %v1071_v27 = vld [vmem:[%s1433_s3 + $0x40] sm:$0xff]   ;;  %v1010_v30 = vld [vmem:[%s1431_s1 + $0xd4] ss:$8 sps:$4 sm:$0xff]   ;;  %v1073_v31 = vld [vmem:[%s1433_s3 + $0x48] sm:$0xff]  }
   0xb   :  { %444 = vmatpush1.bf16.msra.mxu0 %v979_v5  ;;  %v1072_v29 = vld [vmem:[%s1433_s3] sm:$0xff]   ;;  %912 = vmatprep.subr.bf16.mxu1 %v1071_v27  ;;  %v1074_v32 = vld [vmem:[%s1433_s3 + $0x8] sm:$0xff]   ;;  %v1075_v33 = vld [vmem:[%s1433_s3 + $0x50] sm:$0xff]  }
   0xc   :  { %445 = vmatprep.subr.bf16.mxu0 %v980_v6  ;;  %913 = vmatpush3.bf16.msra.mxu1 %v1072_v29  ;;  %v1012_v34 = vld [vmem:[%s1431_s1 + $0xd0] ss:$8 sps:$4 sm:$0xff]   ;;  %v1013_v35 = vld [vmem:[%s1431_s1 + $0xe4] ss:$8 sps:$4 sm:$0xff]   ;;  %v1015_v38 = vld [vmem:[%s1431_s1 + $0xe0] ss:$8 sps:$4 sm:$0xff]  }
   0xd   :  { %914 = vmatprep.subr.bf16.mxu1 %v1073_v31  ;;  %v1076_v36 = vld [vmem:[%s1433_s3 + $0x10] sm:$0xff]   ;;  %v1077_v37 = vld [vmem:[%s1433_s3 + $0x58] sm:$0xff]   ;;  %v1079_v41 = vld [vmem:[%s1433_s3 + $0x60] sm:$0xff]  }
   0xe   :  { %v1016_v39 = vld [vmem:[%s1431_s1 + $0xf4] ss:$8 sps:$4 sm:$0xff]   ;;  %v1018_v42 = vld [vmem:[%s1431_s1 + $0xf0] ss:$8 sps:$4 sm:$0xff]   ;;  %v1080_v43 = vld [vmem:[%s1433_s3 + $0x20] sm:$0xff]  }
   0xf   :  { %446 = vmatpush1.bf16.msra.mxu0 %v982_v7  ;;  %v1078_v40 = vld [vmem:[%s1433_s3 + $0x18] sm:$0xff]   ;;  %v1273_v44 = vld [vmem:[%s1432_s0 + $0x8] sm:$0xff] }
  0x10   :  { %447 = vmatprep.subr.bf16.mxu0 %v983_v8  ;;  %915 = vmatpush3.bf16.msra.mxu1 %v1074_v32  ;;  %v1024_v45 = vld [vmem:[%s1431_s1 + $0x104] ss:$8 sps:$4 sm:$0xff]   ;;  %v1022_v48 = vld [vmem:[%s1431_s1 + $0x100] ss:$8 sps:$4 sm:$0xff]   ;;  %v821_v49 = vcombine.high %v1273_v44, %v1273_v44  ;;  %v1027_v50 = vld [vmem:[%s1431_s1 + $0x114] ss:$8 sps:$4 sm:$0xff]  }
  0x11   :  { %916 = vmatprep.subr.bf16.mxu1 %v1075_v33  ;;  %v1081_v46 = vld [vmem:[%s1433_s3 + $0x68] sm:$0xff]   ;;  %v1025_v52 = vld [vmem:[%s1431_s1 + $0x110] ss:$8 sps:$4 sm:$0xff]   ;;  %v1033_v55 = vld [vmem:[%s1431_s1 + $0x134] ss:$8 sps:$4 sm:$0xff]  }
  0x12   :  { %v1082_v51 = vld [vmem:[%s1433_s3 + $0x28] sm:$0xff]   ;;  %v1031_v56 = vld [vmem:[%s1431_s1 + $0x130] ss:$8 sps:$4 sm:$0xff]   ;;  %v1039_v59 = vld [vmem:[%s1431_s1 + $0x154] ss:$8 sps:$4 sm:$0xff]  }
  0x13   :  { %448 = vmatpush1.bf16.msra.mxu0 %v985_v9  ;;  %v1030_v53 = vld [vmem:[%s1431_s1 + $0x124] ss:$8 sps:$4 sm:$0xff]   ;;  %v1028_v54 = vld [vmem:[%s1431_s1 + $0x120] ss:$8 sps:$4 sm:$0xff]   ;;  %v1037_v60 = vld [vmem:[%s1431_s1 + $0x150] ss:$8 sps:$4 sm:$0xff]  }
  0x14   :  { %449 = vmatprep.subr.bf16.mxu0 %v986_v10  ;;  %917 = vmatpush3.bf16.msra.mxu1 %v1076_v36  ;;  %v1036_v57 = vld [vmem:[%s1431_s1 + $0x144] ss:$8 sps:$4 sm:$0xff]   ;;  %v1034_v58 = vld [vmem:[%s1431_s1 + $0x140] ss:$8 sps:$4 sm:$0xff]   ;;  %v1045_v63 = vld [vmem:[%s1431_s1 + $0x174] ss:$8 sps:$4 sm:$0xff]  }
  0x15   :  { %918 = vmatprep.subr.bf16.mxu1 %v1077_v37  ;;  %v1042_v61 = vld [vmem:[%s1431_s1 + $0x164] ss:$8 sps:$4 sm:$0xff]   ;;  %v1040_v62 = vld [vmem:[%s1431_s1 + $0x160] ss:$8 sps:$4 sm:$0xff]   ;;  %v1043_v0 = vld [vmem:[%s1431_s1 + $0x170] ss:$8 sps:$4 sm:$0xff]  }
  0x16   :  { %v1048_v1 = vld [vmem:[%s1431_s1 + $0x184] ss:$8 sps:$4 sm:$0xff]   ;;  %v1046_v2 = vld [vmem:[%s1431_s1 + $0x180] ss:$8 sps:$4 sm:$0xff]   ;;  %v1051_v3 = vld [vmem:[%s1431_s1 + $0x194] ss:$8 sps:$4 sm:$0xff]  }
  0x17   :  { %450 = vmatpush1.bf16.msra.mxu0 %v988_v11  ;;  %v1049_v4 = vld [vmem:[%s1431_s1 + $0x190] ss:$8 sps:$4 sm:$0xff]   ;;  %v1054_v5 = vld [vmem:[%s1431_s1 + $0x1a4] ss:$8 sps:$4 sm:$0xff]   ;;  %v1052_v6 = vld [vmem:[%s1431_s1 + $0x1a0] ss:$8 sps:$4 sm:$0xff]  }
  0x18   :  { %451 = vmatprep.subr.bf16.mxu0 %v989_v12  ;;  %919 = vmatpush3.bf16.msra.mxu1 %v1078_v40  ;;  %v1057_v7 = vld [vmem:[%s1431_s1 + $0x1b4] ss:$8 sps:$4 sm:$0xff]   ;;  %v1055_v8 = vld [vmem:[%s1431_s1 + $0x1b0] ss:$8 sps:$4 sm:$0xff]   ;;  %v1060_v9 = vld [vmem:[%s1431_s1 + $0x1c4] ss:$8 sps:$4 sm:$0xff]  }
  0x19   :  { %920 = vmatprep.subr.bf16.mxu1 %v1079_v41  ;;  %v1058_v10 = vld [vmem:[%s1431_s1 + $0x1c0] ss:$8 sps:$4 sm:$0xff]   ;;  %v1063_v11 = vld [vmem:[%s1431_s1 + $0x1d4] ss:$8 sps:$4 sm:$0xff]   ;;  %v1061_v12 = vld [vmem:[%s1431_s1 + $0x1d0] ss:$8 sps:$4 sm:$0xff]  }
  0x1a   :  { %v1066_v13 = vld [vmem:[%s1431_s1 + $0x1e4] ss:$8 sps:$4 sm:$0xff]   ;;  %v1064_v14 = vld [vmem:[%s1431_s1 + $0x1e0] ss:$8 sps:$4 sm:$0xff]  }
  0x1b   :  { %452 = vmatpush1.bf16.msra.mxu0 %v991_v15  ;;  %v1069_v15 = vld [vmem:[%s1431_s1 + $0x1f4] ss:$8 sps:$4 sm:$0xff]   ;;  %v1088_v41 = vld [vmem:[%s1434_s5 + $0x8] sm:$0xff]  }
  0x1c   :  { %453 = vmatprep.subr.bf16.mxu0 %v992_v16  ;;  %921 = vmatpush3.bf16.msra.mxu1 %v1080_v43  ;;  %v1067_v16 = vld [vmem:[%s1431_s1 + $0x1f0] ss:$8 sps:$4 sm:$0xff]  }
  0x1d   :  { %922 = vmatprep.subr.bf16.mxu1 %v1081_v46  ;;  %v1090_v43 = vld [vmem:[%s1434_s5 + $0x18] sm:$0xff]   ;;  %v1093_v46 = vld [vmem:[%s1434_s5 + $0x30] sm:$0xff]  }
  0x1f   :  { %454 = vmatpush1.bf16.msra.mxu0 %v994_v17  ;;  %v820_v17 = vcombine.low %v1273_v44, %v1273_v44  ;;  %v1091_v44 = vld [vmem:[%s1434_s5 + $0x20] sm:$0xff]  }
  0x20   :  { %455 = vmatprep.subr.bf16.mxu0 %v995_v18  ;;  %923 = vmatpush3.bf16.msra.mxu1 %v1082_v51  ;;  %v1083_v18 = vld [vmem:[%s1433_s3 + $0x70] sm:$0xff]  }
  0x21   :  { %924 = vmatprep.subr.bf16.mxu1 %v1083_v18 }
  0x23   :  { %456 = vmatpush1.bf16.msra.mxu0 %v997_v19  ;;  %v1084_v19 = vld [vmem:[%s1433_s3 + $0x30] sm:$0xff]  }
  0x24   :  { %457 = vmatprep.subr.bf16.mxu0 %v998_v20  ;;  %925 = vmatpush3.bf16.msra.mxu1 %v1084_v19  ;;  %v1085_v20 = vld [vmem:[%s1433_s3 + $0x78] sm:$0xff]  }
  0x25   :  { %926 = vmatprep.subr.bf16.mxu1 %v1085_v20 }
  0x27   :  { %458 = vmatpush1.bf16.msra.mxu0 %v1000_v21  ;;  %v1086_v21 = vld [vmem:[%s1433_s3 + $0x38] sm:$0xff]  }
  0x28   :  { %459 = vmatprep.subr.bf16.mxu0 %v1001_v22  ;;  %927 = vmatpush3.bf16.msra.mxu1 %v1086_v21  ;;  %v1095_v22 = vmov 0.0  }
  0x29   :  { %943 = vmatprep.subr.bf16.mxu1 %v1095_v22 }
  0x2b   :  { %460 = vmatpush1.bf16.msra.mxu0 %v1003_v23  ;;  %v95_v23 = vlaneseq }
  0x2c   :  { %461 = vmatprep.subr.bf16.mxu0 %v1004_v24 }
  0x2d   :  { %v96_v24 = vshrl.u32 %v95_v23, 7 }
  0x2f   :  { %462 = vmatpush1.bf16.msra.mxu0 %v1006_v25  ;;  %v97_v25 = vsub.s32 0, %v96_v24  ;;  %v101_v27 = vsub.s32 1, %v96_v24 }
  0x30   :  { %463 = vmatprep.subr.bf16.mxu0 %v1007_v26  ;;  %v93_v26 = vld [vmem:[%s1435_s2] sm:$0x3] }
  0x31   :  { %v102_v29 = vrot.slane %v93_v26, %v101_v27 }
  0x33   :  { %464 = vmatpush1.bf16.msra.mxu0 %v1009_v28  ;;  %v98_v28 = vrot.slane %v93_v26, %v97_v25 }
  0x34   :  { %465 = vmatprep.subr.bf16.mxu0 %v1010_v30 }
  0x37   :  { %466 = vmatpush1.bf16.msra.mxu0 %v1012_v34 }
  0x38   :  { %467 = vmatprep.subr.bf16.mxu0 %v1013_v35 }
  0x3b   :  { %468 = vmatpush1.bf16.msra.mxu0 %v1015_v38 }
  0x3c   :  { %469 = vmatprep.subr.bf16.mxu0 %v1016_v39  ;;  %v1087_v39 = vld [vmem:[%s1434_s5] sm:$0xff]  }
  0x3f   :  { %470 = vmatpush1.bf16.msra.mxu0 %v1018_v42  ;;  %v1089_v42 = vld [vmem:[%s1434_s5 + $0x10] sm:$0xff]  }
  0x40   :  { %480 = vmatprep.subr.bf16.mxu0 %v1024_v45  ;;  %v1092_v45 = vld [vmem:[%s1434_s5 + $0x28] sm:$0xff]  }
  0x42   :  { %472 = vmatmul.mubr.bf16.vlgmr.msra.gmra.mrb[0].mxu0 %v818_v47  ;;  %v1094_v47 = vld [vmem:[%s1434_s5 + $0x38] sm:$0xff]  }
  0x43   :  { %481 = vmatpush1.bf16.msra.mxu0 %v1022_v48  ;;  %512 = vmatprep.mubr.bf16.mxu0 %v821_v49  ;;  %v886_v49 = vld [vmem:[%s1436_s4] ss:$0 sm:$0xff] }
  0x44   :  { %482 = vmatprep.subr.bf16.mxu0 %v1027_v50 }
  0x47   :  { %483 = vmatpush1.bf16.msra.mxu0 %v1025_v52 }
  0x48   :  { %484 = vmatprep.subr.bf16.mxu0 %v1030_v53 }
  0x4b   :  { %485 = vmatpush1.bf16.msra.mxu0 %v1028_v54 }
  0x4c   :  { %486 = vmatprep.subr.bf16.mxu0 %v1033_v55 }
  0x4f   :  { %487 = vmatpush1.bf16.msra.mxu0 %v1031_v56 }
  0x50   :  { %488 = vmatprep.subr.bf16.mxu0 %v1036_v57  ;;  %v903_v57 = vld [vmem:[%s1437_s6] ss:$0 sm:$0xff] }
  0x53   :  { %489 = vmatpush1.bf16.msra.mxu0 %v1034_v58 }
  0x54   :  { %490 = vmatprep.subr.bf16.mxu0 %v1039_v59 }
  0x57   :  { %491 = vmatpush1.bf16.msra.mxu0 %v1037_v60 }
  0x58   :  { %492 = vmatprep.subr.bf16.mxu0 %v1042_v61 }
  0x5b   :  { %493 = vmatpush1.bf16.msra.mxu0 %v1040_v62 }
  0x5c   :  { %494 = vmatprep.subr.bf16.mxu0 %v1045_v63 }
  0x5f   :  { %495 = vmatpush1.bf16.msra.mxu0 %v1043_v0 }
  0x60   :  { %496 = vmatprep.subr.bf16.mxu0 %v1048_v1 }
  0x63   :  { %497 = vmatpush1.bf16.msra.mxu0 %v1046_v2 }
  0x64   :  { %498 = vmatprep.subr.bf16.mxu0 %v1051_v3 }
  0x67   :  { %499 = vmatpush1.bf16.msra.mxu0 %v1049_v4 }
  0x68   :  { %500 = vmatprep.subr.bf16.mxu0 %v1054_v5 }
  0x6b   :  { %501 = vmatpush1.bf16.msra.mxu0 %v1052_v6 }
  0x6c   :  { %502 = vmatprep.subr.bf16.mxu0 %v1057_v7 }
  0x6f   :  { %503 = vmatpush1.bf16.msra.mxu0 %v1055_v8 }
  0x70   :  { %504 = vmatprep.subr.bf16.mxu0 %v1060_v9 }
  0x73   :  { %505 = vmatpush1.bf16.msra.mxu0 %v1058_v10 }
  0x74   :  { %506 = vmatprep.subr.bf16.mxu0 %v1063_v11 }
  0x77   :  { %507 = vmatpush1.bf16.msra.mxu0 %v1061_v12 }
  0x78   :  { %508 = vmatprep.subr.bf16.mxu0 %v1066_v13 }
  0x7b   :  { %509 = vmatpush1.bf16.msra.mxu0 %v1064_v14 }
  0x7c   :  { %510 = vmatprep.subr.bf16.mxu0 %v1069_v15 }
  0x7f   :  { %511 = vmatpush1.bf16.msra.mxu0 %v1067_v16 }
  0x82   :  { %513 = vmatmul.mubr.bf16.vlgmr.msra.gmra.mrb[0].mxu0 %v820_v17 }
 0x155   :  { %v514_v30 = vpop.f32.mrb[0].mxu0 }
 0x156   :  { %v963_v31 = vadd.f32 %v514_v30, %v98_v28  ;;  %v516_v32 = vpop.f32.mrb[1].mxu0 }
 0x157   :  { %v964_v33 = vadd.f32 %v516_v32, %v102_v29  ;;  %v518_v34 = vpop.f32.mrb[2].mxu0 }
 0x158   :  { %v521_v35 = vmax.f32 %v963_v31, 0.0  ;;  %v519_v36 = vpop.f32.mrb[3].mxu0 }
 0x159   :  { %v522_v37 = vmax.f32 %v964_v33, 0.0 }
 0x15a   :  { %v523_v40 = vpack.c.bf16 %v521_v35, %v521_v35 }
 0x15b   :  { %v524_v38 = vpack.c.bf16 %v522_v37, %v522_v37 }
 0x15d   :  { %692 = vmatprep.mubr.bf16.mxu1 %v524_v38 }
 0x15e   :  { %693 = vmatmul.mubr.bf16.vlgmr.msra.gmra.mrb[0].mxu1 %v523_v40 }
 0x15f   :  { %944 = vmatpush3.bf16.msra.mxu1 %v1087_v39  ;;  %959 = vmatprep.mubr.msk.bf16.mxu1 %vm1096_vm0, %v1095_v22 }
 0x160   :  { %945 = vmatprep.subr.bf16.mxu1 %v1095_v22 }
 0x163   :  { %946 = vmatpush3.bf16.msra.mxu1 %v1088_v41 }
 0x164   :  { %947 = vmatprep.subr.bf16.mxu1 %v1095_v22 }
 0x167   :  { %948 = vmatpush3.bf16.msra.mxu1 %v1089_v42 }
 0x168   :  { %949 = vmatprep.subr.bf16.mxu1 %v1095_v22 }
 0x16b   :  { %950 = vmatpush3.bf16.msra.mxu1 %v1090_v43 }
 0x16c   :  { %951 = vmatprep.subr.bf16.mxu1 %v1095_v22 }
 0x16f   :  { %952 = vmatpush3.bf16.msra.mxu1 %v1091_v44 }
 0x170   :  { %953 = vmatprep.subr.bf16.mxu1 %v1095_v22 }
 0x173   :  { %954 = vmatpush3.bf16.msra.mxu1 %v1092_v45 }
 0x174   :  { %955 = vmatprep.subr.bf16.mxu1 %v1095_v22 }
 0x177   :  { %956 = vmatpush3.bf16.msra.mxu1 %v1093_v46 }
 0x178   :  { %957 = vmatprep.subr.bf16.mxu1 %v1095_v22 }
 0x17b   :  { %958 = vmatpush3.bf16.msra.mxu1 %v1094_v47 }
 0x231   :  { %v928_v48 = vpop.f32.mrb[0].mxu1 }
 0x232   :  { %v929_v50 = vpop.f32.mrb[1].mxu1 }
 0x233   :  { %v930_v51 = vadd.f32 %v929_v50, %v928_v48  ;;  %v931_v52 = vpop.f32.mrb[2].mxu1 }
 0x234   :  { %v932_v53 = vpop.f32.mrb[3].mxu1 }
 0x235   :  { %v695_v54 = vadd.f32 %v930_v51, %v886_v49 }
 0x237   :  { %v700_v55 = vmax.f32 %v695_v54, 0.0 }
 0x239   :  { %v701_v56 = vpack.c.bf16 %v700_v55, %v700_v55 }
 0x23b   :  { %960 = vmatmul.mubr.bf16.vlgmr.msra.gmra.mrb[4].mxu1 %v701_v56 }
 0x30e   :  { %v807_v58 = vpop.f32.mrb[4].mxu1 }
 0x30f   :  { %v808_v59 = vadd.f32 %v903_v57, %v807_v58  ;;  %v961_v60 = vpop.f32.mrb[5].mxu1 }
 0x310   :  { %v810_v61 = vpop.f32.mrb[6].mxu1 }
 0x311   :  { %813 = vst [vmem:[%s1438_s7] sm:$0xff] %v808_v59  ;;  %v962_v62 = vpop.f32.mrb[7].mxu1 }

</bundles_post_ra>
